<compile_context>
chip_gen: v6e
topology: v6e:2x2x1
jax: 0.10.0
libtpu: 0.0.40
codegen_flags: <defaults>
</compile_context>

<pallas_src>
import jax
import jax.numpy as jnp
from jax.experimental import pallas as pl
from jax.experimental.pallas import tpu as pltpu

IN_FEATURES = 1000
OUT_FEATURES = 1000


def _round_up(v, m):
    return ((v + m - 1) // m) * m


def _linear_silu_kernel(x_ref, w_ref, b_ref, o_ref):
    # x_ref: (TM, K) f32 | w_ref: (K, N) bf16 | b_ref: (1, N) f32 | o_ref: (TM, N) f32
    # bf16 x bf16 -> single-pass MXU with f32 accumulation; epilogue in f32.
    y = jnp.dot(x_ref[...].astype(jnp.bfloat16), w_ref[...],
                preferred_element_type=jnp.float32)
    y = y + b_ref[...]                  # broadcast bias over rows
    o_ref[...] = y * jax.nn.sigmoid(y)  # v1 * sigmoid(v1)  (SiLU), fused epilogue


def _resident_spec(shape):
    """BlockSpec for a constant-index (fully resident) operand.

    Requests single buffering when the installed Pallas supports pipeline_mode;
    falls back to the default (double-buffered) spec otherwise.
    """
    idx_map = lambda i: (0,) * len(shape)
    if hasattr(pl, "Buffered"):
        try:
            return pl.BlockSpec(shape, idx_map, pipeline_mode=pl.Buffered(1))
        except TypeError:
            pass
    return pl.BlockSpec(shape, idx_map)


def prepare_params(w, b):
    """One-time (load-time) parameter prep, hoisted off the forward hot path.

    w: (N, K) torch nn.Linear layout -> transposed to (K, N) and cast to bf16.
    b: (N,)  -> (1, N) f32.
    """
    wt = jnp.asarray(w, jnp.float32).T.astype(jnp.bfloat16)
    b2d = jnp.asarray(b, jnp.float32).reshape(1, -1)
    return wt, b2d


def linear_silu(x, wt, b2d, *, tm=1024):
    """x: (M, K) f32; wt: (K, N) bf16 (pre-transposed); b2d: (1, N) f32."""
    M, K = x.shape
    Kw, N = wt.shape
    assert K == Kw and b2d.shape == (1, N)

    # Row tile: big to amortize the ~0.35 us per-grid-step overhead, clamped so
    # the "parallel" M axis keeps >= 2 steps (v7x shards it over 2 TensorCores).
    tm = max(8, min(tm, _round_up(pl.cdiv(M, 2), 8)))
    grid = (pl.cdiv(M, tm),)  # ragged last block: OOB rows are clipped on store

    out = pl.pallas_call(
        _linear_silu_kernel,
        out_shape=jax.ShapeDtypeStruct((M, N), jnp.float32),
        grid_spec=pltpu.PrefetchScalarGridSpec(
            num_scalar_prefetch=0,
            grid=grid,
            in_specs=[
                pl.BlockSpec((tm, K), lambda i: (i, 0)),  # x row tile (K = full dim, no pad)
                _resident_spec((K, N)),                   # full bf16 weight, resident
                _resident_spec((1, N)),                   # bias, resident
            ],
            out_specs=pl.BlockSpec((tm, N), lambda i: (i, 0)),
        ),
        compiler_params=pltpu.CompilerParams(
            dimension_semantics=("parallel",),
            vmem_limit_bytes=32 << 20,
        ),
    )(x, wt, b2d)
    return out


def reference(x, w, b):
    y = x @ w.T + b
    return y * jax.nn.sigmoid(y)


if __name__ == "__main__":
    key = jax.random.PRNGKey(0)
    kx, kw, kb = jax.random.split(key, 3)

    # Feature dims fixed by the module (Linear(1000, 1000)); batch kept small.
    M = 256
    x = jax.random.normal(kx, (M, IN_FEATURES), dtype=jnp.float32)

    # Deterministic params mimicking torch.nn.Linear default init
    # (U[-1/sqrt(fan_in), +1/sqrt(fan_in)]), in torch layout (out, in).
    bound = 1.0 / (IN_FEATURES ** 0.5)
    w = jax.random.uniform(kw, (OUT_FEATURES, IN_FEATURES), jnp.float32, -bound, bound)
    b = jax.random.uniform(kb, (OUT_FEATURES,), jnp.float32, -bound, bound)

    wt, b2d = prepare_params(w, b)  # one-time, off the hot path
    out = linear_silu(x, wt, b2d)
    out = jax.block_until_ready(out)

    ref = reference(x, w, b)
    assert out.shape == (M, OUT_FEATURES)
    # bf16 matmul inputs (f32 accumulation) vs. f32 reference: ~1e-3 level error.
    assert jnp.allclose(out, ref, atol=2e-2, rtol=2e-2), "mismatch vs reference"

    print("KERNEL_OK")
</pallas_src>

<mosaic_0001>
module attributes {stable_mosaic.version = 11 : i64} {
  func.func @_linear_silu_kernel(%arg0: i32, %arg1: memref<128x1000xf32, #tpu.memory_space<vmem>>, %arg2: memref<1000x1000xbf16, #tpu.memory_space<vmem>>, %arg3: memref<1x1000xf32, #tpu.memory_space<vmem>>, %arg4: memref<128x1000xf32, #tpu.memory_space<vmem>>) attributes {dimension_semantics = [#tpu.dimension_semantics<parallel>], iteration_bounds = array<i64: 2>, scalar_prefetch = 0 : i64, scratch_operands = 0 : i64, tpu.core_type = #tpu.core_type<tc>, window_params = [{transform_indices = @transform_0, window_bounds = array<i64: 128, 1000>}, {pipeline_mode = #tpu.pipeline_mode<synchronous>, transform_indices = @transform_1, window_bounds = array<i64: 1000, 1000>}, {pipeline_mode = #tpu.pipeline_mode<synchronous>, transform_indices = @transform_2, window_bounds = array<i64: 1, 1000>}, {transform_indices = @transform_3, window_bounds = array<i64: 128, 1000>}]} {
    %c0 = arith.constant 0 : index
    %c0_0 = arith.constant 0 : index
    %0 = vector.load %arg1[%c0, %c0_0] : memref<128x1000xf32, #tpu.memory_space<vmem>>, vector<128x1000xf32>
    %1 = arith.truncf %0 : vector<128x1000xf32> to vector<128x1000xbf16>
    %c0_1 = arith.constant 0 : index
    %c0_2 = arith.constant 0 : index
    %2 = vector.load %arg2[%c0_1, %c0_2] : memref<1000x1000xbf16, #tpu.memory_space<vmem>>, vector<1000x1000xbf16>
    %cst = arith.constant dense<0.000000e+00> : vector<128x1000xf32>
    %3 = tpu.matmul %1, %2, %cst {dimension_numbers = #tpu.dot_dimension_numbers<[1], [0], [0], [1], [0, 0, 1, 1], [], []>} : vector<128x1000xbf16>, vector<1000x1000xbf16>, vector<128x1000xf32> -> vector<128x1000xf32>
    %c0_3 = arith.constant 0 : index
    %c0_4 = arith.constant 0 : index
    %4 = vector.load %arg3[%c0_3, %c0_4] : memref<1x1000xf32, #tpu.memory_space<vmem>>, vector<1x1000xf32>
    %5 = vector.broadcast %4 : vector<1x1000xf32> to vector<128x1000xf32>
    %6 = arith.addf %3, %5 : vector<128x1000xf32>
    %7 = arith.negf %6 : vector<128x1000xf32>
    %8 = math.exp %7 : vector<128x1000xf32>
    %cst_5 = arith.constant 1.000000e+00 : f32
    %9 = vector.broadcast %cst_5 : f32 to vector<128x1000xf32>
    %10 = arith.addf %9, %8 : vector<128x1000xf32>
    %11 = arith.divf %9, %10 : vector<128x1000xf32>
    %12 = arith.mulf %6, %11 : vector<128x1000xf32>
    %c0_6 = arith.constant 0 : index
    %c0_7 = arith.constant 0 : index
    %13 = vector.load %arg4[%c0_6, %c0_7] : memref<128x1000xf32, #tpu.memory_space<vmem>>, vector<128x1000xf32>
    tpu.vector_store %arg4[%c0_6, %c0_7], %12 {strides = array<i32>} : memref<128x1000xf32, #tpu.memory_space<vmem>>, vector<128x1000xf32>,
    return
  }
  func.func @transform_0(%arg0: i32) -> (i32, i32) {
    %c0_i32 = arith.constant 0 : i32
    %c0_i32_0 = arith.constant 0 : i32
    return %arg0, %c0_i32 : i32, i32
  }
  func.func @transform_1(%arg0: i32) -> (i32, i32) {
    %c0_i32 = arith.constant 0 : i32
    %c0_i32_0 = arith.constant 0 : i32
    %c0_i32_1 = arith.constant 0 : i32
    return %c0_i32, %c0_i32_0 : i32, i32
  }
  func.func @transform_2(%arg0: i32) -> (i32, i32) {
    %c0_i32 = arith.constant 0 : i32
    %c0_i32_0 = arith.constant 0 : i32
    %c0_i32_1 = arith.constant 0 : i32
    return %c0_i32, %c0_i32_0 : i32, i32
  }
  func.func @transform_3(%arg0: i32) -> (i32, i32) {
    %c0_i32 = arith.constant 0 : i32
    %c0_i32_0 = arith.constant 0 : i32
    return %arg0, %c0_i32 : i32, i32
  }
}

</mosaic_0001>

<bundles_post_ra>
// kernel: tpu_custom_call.1
= control target key start
LH: loop header
LB: loop body
LE: loop exit
PB: predicated region body
PF: predicated region fallthrough
CT: control target
= control target key end

     0   :  { %s7596_s12 = smov 0   ;;  %s12625_s0 = inlined_call_operand.vmem [shape: f32[256,1000], index: 0, kind: input, shape index: {}]   ;;  %s12626_s1 = inlined_call_operand.vmem [shape: bf16[1000,1000], index: 1, kind: input, shape index: {}]   ;;  %s12627_s2 = inlined_call_operand.vmem [shape: f32[1,1000], index: 2, kind: input, shape index: {}]   ;;  %s12628_s3 = inlined_call_operand.vmem [shape: f32[256,1000], index: 3, kind: output, shape index: {}]  }
   0x1 LB: > { %s6354_s13 = sadd.s32 4294967295, %s7574_s12   ;;  %p6358_p0 = scmp.ge.s32.totalorder %s7574_s12, 1  ;;  %s7574_s12 = sphi %s7596_s12, %s13_s12  }
   0x2   : > { %p139_p1 = scmp.lt.s32.totalorder %s7574_s12, 3 }
   0x4   : > { %p140_p2 = pnand %p6358_p0, %p139_p1 }
   0x6   : > { %143 = sbr.rel (%p140_p2) target bundleno = 945 (0x3b1), region = 32 }
   0xb   : > { %v428_v0 = vld [vmem:[%s12626_s1 + $0x1c0] sm:$0xff]  ;;  %s6359_s11 = sshll.u32 %s6354_s13, 4  ;;  %vm3439_vm0 = vcmask 1043456   ;;  %vm3414_vm1 = vcmask 850944  }
   0xc   : > { %v432_v1 = vld [vmem:[%s12626_s1 + $0x1e0] sm:$0xff]  ;;  %p166_p3 = scmp.lt.s32.totalorder %s6359_s11, 31 }
   0xd   : > { %v556_v2 = vld [vmem:[%s12626_s1 + $0x5c0] sm:$0xff]  ;;  %v6422_v3 = vcombine.high %v428_v0, %v432_v1  ;;  %v6421_v5 = vcombine.low %v428_v0, %v432_v1 }
   0xe   : > { %v560_v4 = vld [vmem:[%s12626_s1 + $0x5e0] sm:$0xff]  ;;  %s13569_s11 = smov (!%p166_p3, %s6359_s11), 31 }
   0xf   : > { %v420_v6 = vld [vmem:[%s12626_s1 + $0x180] sm:$0xff]  ;;  %v6550_v8 = vcombine.high %v556_v2, %v560_v4  ;;  %v6549_v9 = vcombine.low %v556_v2, %v560_v4  ;;  %3464 = vmatprep.subr.bf16.mxu0 %v6422_v3  ;;  %s7035_s10 = sshll.u32 %s13569_s11, 6 }
  0x10   : > { %v424_v7 = vld [vmem:[%s12626_s1 + $0x1a0] sm:$0xff]  ;;  %3465 = vmatpush1.bf16.msra.mxu0 %v6421_v5  ;;  %s7690_s20 = scalar_lea.vmem %s12625_s0, %s7035_s10  ;;  %s9969_s27 = scalar_lea.vmem %s12628_s3, %s7035_s10 }
  0x11   : > { %v6414_v10 = vcombine.high %v420_v6, %v424_v7  ;;  %v548_v11 = vld [vmem:[%s12626_s1 + $0x580] sm:$0xff]  ;;  %3577 = vmatprep.subr.bf16.mxu1 %v6550_v8  ;;  %v6413_v18 = vcombine.low %v420_v6, %v424_v7  ;;  %v181_v54 = vld [vmem:[%s7690_s20 + $0x8] sm:$0xff]  ;;  %v183_v59 = vld [vmem:[%s7690_s20 + $0x18] sm:$0xff] }
  0x12   : > { %v552_v12 = vld [vmem:[%s12626_s1 + $0x5a0] sm:$0xff]  ;;  %3578 = vmatpush1.bf16.msra.mxu1 %v6549_v9  ;;  %v189_v55 = vld [vmem:[%s7690_s20 + $0x48] sm:$0xff]  ;;  %v191_v60 = vld [vmem:[%s7690_s20 + $0x58] sm:$0xff] }
  0x13   : > { %v412_v13 = vld [vmem:[%s12626_s1 + $0x140] sm:$0xff]  ;;  %v6542_v14 = vcombine.high %v548_v11, %v552_v12  ;;  %3466 = vmatprep.subr.bf16.mxu0 %v6414_v10  ;;  %v6541_v19 = vcombine.low %v548_v11, %v552_v12  ;;  %v7706_v58 = vpack.c.bf16 %v189_v55, %v181_v54  ;;  %v7716_v63 = vpack.c.bf16 %v191_v60, %v183_v59 }
  0x14   : > { %v416_v15 = vld [vmem:[%s12626_s1 + $0x160] sm:$0xff]  ;;  %3467 = vmatpush1.bf16.msra.mxu0 %v6413_v18 }
  0x15   : > { %v540_v16 = vld [vmem:[%s12626_s1 + $0x540] sm:$0xff]  ;;  %v6406_v20 = vcombine.high %v412_v13, %v416_v15  ;;  %3579 = vmatprep.subr.bf16.mxu1 %v6542_v14  ;;  %v6405_v26 = vcombine.low %v412_v13, %v416_v15  ;;  %12853 = vst [vmem:[#allocation2_spill] sm:$0xff] %v7706_v58  ;;  %12854 = vst [vmem:[#allocation3_spill] sm:$0xff] %v7716_v63  ;;  %3496 = vmatprep.mubr.bf16.mxu0 %v7706_v58 }
  0x16   : > { %v544_v17 = vld [vmem:[%s12626_s1 + $0x560] sm:$0xff]  ;;  %3580 = vmatpush1.bf16.msra.mxu1 %v6541_v19  ;;  %3609 = vmatprep.mubr.bf16.mxu1 %v7716_v63 }
  0x17   : > { %v6534_v21 = vcombine.high %v540_v16, %v544_v17  ;;  %v404_v22 = vld [vmem:[%s12626_s1 + $0x100] sm:$0xff]  ;;  %3468 = vmatprep.subr.bf16.mxu0 %v6406_v20  ;;  %v6533_v27 = vcombine.low %v540_v16, %v544_v17 }
  0x18   : > { %v408_v23 = vld [vmem:[%s12626_s1 + $0x120] sm:$0xff]  ;;  %3469 = vmatpush1.bf16.msra.mxu0 %v6405_v26 }
  0x19   : > { %v532_v24 = vld [vmem:[%s12626_s1 + $0x500] sm:$0xff]  ;;  %v6398_v28 = vcombine.high %v404_v22, %v408_v23  ;;  %3581 = vmatprep.subr.bf16.mxu1 %v6534_v21  ;;  %v6397_v34 = vcombine.low %v404_v22, %v408_v23 }
  0x1a   : > { %v536_v25 = vld [vmem:[%s12626_s1 + $0x520] sm:$0xff]  ;;  %3582 = vmatpush1.bf16.msra.mxu1 %v6533_v27 }
  0x1b   : > { %v6526_v29 = vcombine.high %v532_v24, %v536_v25  ;;  %v396_v30 = vld [vmem:[%s12626_s1 + $0xc0] sm:$0xff]  ;;  %3470 = vmatprep.subr.bf16.mxu0 %v6398_v28  ;;  %v6525_v35 = vcombine.low %v532_v24, %v536_v25 }
  0x1c   : > { %v400_v31 = vld [vmem:[%s12626_s1 + $0xe0] sm:$0xff]  ;;  %3471 = vmatpush1.bf16.msra.mxu0 %v6397_v34 }
  0x1d   : > { %v524_v32 = vld [vmem:[%s12626_s1 + $0x4c0] sm:$0xff]  ;;  %v6390_v36 = vcombine.high %v396_v30, %v400_v31  ;;  %3583 = vmatprep.subr.bf16.mxu1 %v6526_v29  ;;  %v6389_v42 = vcombine.low %v396_v30, %v400_v31 }
  0x1e   : > { %v528_v33 = vld [vmem:[%s12626_s1 + $0x4e0] sm:$0xff]  ;;  %3584 = vmatpush1.bf16.msra.mxu1 %v6525_v35 }
  0x1f   : > { %v6518_v37 = vcombine.high %v524_v32, %v528_v33  ;;  %v388_v38 = vld [vmem:[%s12626_s1 + $0x80] sm:$0xff]  ;;  %3472 = vmatprep.subr.bf16.mxu0 %v6390_v36  ;;  %v6517_v43 = vcombine.low %v524_v32, %v528_v33 }
  0x20   : > { %v392_v39 = vld [vmem:[%s12626_s1 + $0xa0] sm:$0xff]  ;;  %3473 = vmatpush1.bf16.msra.mxu0 %v6389_v42 }
  0x21   : > { %v516_v40 = vld [vmem:[%s12626_s1 + $0x480] sm:$0xff]  ;;  %v6382_v44 = vcombine.high %v388_v38, %v392_v39  ;;  %3585 = vmatprep.subr.bf16.mxu1 %v6518_v37  ;;  %v6381_v50 = vcombine.low %v388_v38, %v392_v39 }
  0x22   : > { %v520_v41 = vld [vmem:[%s12626_s1 + $0x4a0] sm:$0xff]  ;;  %3586 = vmatpush1.bf16.msra.mxu1 %v6517_v43 }
  0x23   : > { %v6510_v45 = vcombine.high %v516_v40, %v520_v41  ;;  %v380_v46 = vld [vmem:[%s12626_s1 + $0x40] sm:$0xff]  ;;  %3474 = vmatprep.subr.bf16.mxu0 %v6382_v44  ;;  %v6509_v51 = vcombine.low %v516_v40, %v520_v41 }
  0x24   : > { %v384_v47 = vld [vmem:[%s12626_s1 + $0x60] sm:$0xff]  ;;  %3475 = vmatpush1.bf16.msra.mxu0 %v6381_v50 }
  0x25   : > { %v508_v48 = vld [vmem:[%s12626_s1 + $0x440] sm:$0xff]  ;;  %v6374_v52 = vcombine.high %v380_v46, %v384_v47  ;;  %3587 = vmatprep.subr.bf16.mxu1 %v6510_v45  ;;  %v6373_v0 = vcombine.low %v380_v46, %v384_v47 }
  0x26   : > { %v512_v49 = vld [vmem:[%s12626_s1 + $0x460] sm:$0xff]  ;;  %3588 = vmatpush1.bf16.msra.mxu1 %v6509_v51 }
  0x27   : > { %v372_v53 = vld [vmem:[%s12626_s1] sm:$0xff]  ;;  %v6502_v56 = vcombine.high %v508_v48, %v512_v49  ;;  %3476 = vmatprep.subr.bf16.mxu0 %v6374_v52  ;;  %v6501_v1 = vcombine.low %v508_v48, %v512_v49 }
  0x28   : > { %v376_v57 = vld [vmem:[%s12626_s1 + $0x20] sm:$0xff]  ;;  %3477 = vmatpush1.bf16.msra.mxu0 %v6373_v0 }
  0x29   : > { %v500_v61 = vld [vmem:[%s12626_s1 + $0x400] sm:$0xff]  ;;  %v6366_v2 = vcombine.high %v372_v53, %v376_v57  ;;  %3589 = vmatprep.subr.bf16.mxu1 %v6502_v56  ;;  %v6365_v8 = vcombine.low %v372_v53, %v376_v57 }
  0x2a   : > { %v504_v62 = vld [vmem:[%s12626_s1 + $0x420] sm:$0xff]  ;;  %3590 = vmatpush1.bf16.msra.mxu1 %v6501_v1 }
  0x2b   : > { %v6494_v3 = vcombine.high %v500_v61, %v504_v62  ;;  %v492_v4 = vld [vmem:[%s12626_s1 + $0x3c0] sm:$0xff]  ;;  %3478 = vmatprep.subr.bf16.mxu0 %v6366_v2  ;;  %v6493_v9 = vcombine.low %v500_v61, %v504_v62 }
  0x2c   : > { %v496_v5 = vld [vmem:[%s12626_s1 + $0x3e0] sm:$0xff]  ;;  %3479 = vmatpush1.bf16.msra.mxu0 %v6365_v8 }
  0x2d   : > { %v620_v6 = vld [vmem:[%s12626_s1 + $0x7c0] sm:$0xff]  ;;  %v6486_v10 = vcombine.high %v492_v4, %v496_v5  ;;  %3591 = vmatprep.subr.bf16.mxu1 %v6494_v3  ;;  %v6485_v16 = vcombine.low %v492_v4, %v496_v5 }
  0x2e   : > { %v624_v7 = vld [vmem:[%s12626_s1 + $0x7e0] sm:$0xff]  ;;  %3592 = vmatpush1.bf16.msra.mxu1 %v6493_v9 }
  0x2f   : > { %v6614_v11 = vcombine.high %v620_v6, %v624_v7  ;;  %v484_v12 = vld [vmem:[%s12626_s1 + $0x380] sm:$0xff]  ;;  %3480 = vmatprep.subr.bf16.mxu0 %v6486_v10  ;;  %v6613_v17 = vcombine.low %v620_v6, %v624_v7 }
  0x30   : > { %v488_v13 = vld [vmem:[%s12626_s1 + $0x3a0] sm:$0xff]  ;;  %3481 = vmatpush2.bf16.msra.mxu0 %v6485_v16 }
  0x31   : > { %v612_v14 = vld [vmem:[%s12626_s1 + $0x780] sm:$0xff]  ;;  %v6478_v18 = vcombine.high %v484_v12, %v488_v13  ;;  %3593 = vmatprep.subr.bf16.mxu1 %v6614_v11  ;;  %v6477_v24 = vcombine.low %v484_v12, %v488_v13 }
  0x32   : > { %v616_v15 = vld [vmem:[%s12626_s1 + $0x7a0] sm:$0xff]  ;;  %3594 = vmatpush2.bf16.msra.mxu1 %v6613_v17 }
  0x33   : > { %v6606_v19 = vcombine.high %v612_v14, %v616_v15  ;;  %v476_v20 = vld [vmem:[%s12626_s1 + $0x340] sm:$0xff]  ;;  %3482 = vmatprep.subr.bf16.mxu0 %v6478_v18  ;;  %v6605_v25 = vcombine.low %v612_v14, %v616_v15  ;;  %v182_v14 = vld [vmem:[%s7690_s20 + $0x10] sm:$0xff] }
  0x34   : > { %v480_v21 = vld [vmem:[%s12626_s1 + $0x360] sm:$0xff]  ;;  %3483 = vmatpush2.bf16.msra.mxu0 %v6477_v24  ;;  %v190_v15 = vld [vmem:[%s7690_s20 + $0x50] sm:$0xff]  ;;  %v207_v24 = vld [vmem:[%s7690_s20 + $0xd8] sm:$0xff] }
  0x35   : > { %v604_v22 = vld [vmem:[%s12626_s1 + $0x740] sm:$0xff]  ;;  %v6470_v26 = vcombine.high %v476_v20, %v480_v21  ;;  %3595 = vmatprep.subr.bf16.mxu1 %v6606_v19  ;;  %v6469_v32 = vcombine.low %v476_v20, %v480_v21  ;;  %v197_v20 = vld [vmem:[%s7690_s20 + $0x88] sm:$0xff] }
  0x36   : > { %v608_v23 = vld [vmem:[%s12626_s1 + $0x760] sm:$0xff]  ;;  %3596 = vmatpush2.bf16.msra.mxu1 %v6605_v25  ;;  %v7844_v25 = vpack.c.bf16 %v190_v15, %v182_v14  ;;  %v229_v14 = vld [vmem:[%s7690_s20 + $0x188] sm:$0xff] }
  0x37   : > { %v6598_v27 = vcombine.high %v604_v22, %v608_v23  ;;  %v468_v28 = vld [vmem:[%s12626_s1 + $0x300] sm:$0xff]  ;;  %3484 = vmatprep.subr.bf16.mxu0 %v6470_v26  ;;  %v6597_v33 = vcombine.low %v604_v22, %v608_v23  ;;  %v205_v22 = vld [vmem:[%s7690_s20 + $0xc8] sm:$0xff]  ;;  %v199_v23 = vld [vmem:[%s7690_s20 + $0x98] sm:$0xff] }
  0x38   : > { %v472_v29 = vld [vmem:[%s12626_s1 + $0x320] sm:$0xff]  ;;  %3485 = vmatpush2.bf16.msra.mxu0 %v6469_v32  ;;  %12856 = vst [vmem:[#allocation5_spill] sm:$0xff] %v7844_v25  ;;  %v7854_v32 = vpack.c.bf16 %v207_v24, %v199_v23 }
  0x39   : > { %v596_v30 = vld [vmem:[%s12626_s1 + $0x700] sm:$0xff]  ;;  %v6462_v34 = vcombine.high %v468_v28, %v472_v29  ;;  %3597 = vmatprep.subr.bf16.mxu1 %v6598_v27  ;;  %v6461_v40 = vcombine.low %v468_v28, %v472_v29 }
  0x3a   : > { %v600_v31 = vld [vmem:[%s12626_s1 + $0x720] sm:$0xff]  ;;  %3598 = vmatpush2.bf16.msra.mxu1 %v6597_v33  ;;  %12858 = vst [vmem:[#allocation7_spill] sm:$0xff] %v7854_v32 }
  0x3b   : > { %v6590_v35 = vcombine.high %v596_v30, %v600_v31  ;;  %v460_v36 = vld [vmem:[%s12626_s1 + $0x2c0] sm:$0xff]  ;;  %3486 = vmatprep.subr.bf16.mxu0 %v6462_v34  ;;  %v6589_v41 = vcombine.low %v596_v30, %v600_v31  ;;  %v7852_v31 = vpack.c.bf16 %v205_v22, %v197_v20 }
  0x3c   : > { %v464_v37 = vld [vmem:[%s12626_s1 + $0x2e0] sm:$0xff]  ;;  %3487 = vmatpush2.bf16.msra.mxu0 %v6461_v40 }
  0x3d   : > { %v588_v38 = vld [vmem:[%s12626_s1 + $0x6c0] sm:$0xff]  ;;  %v6454_v42 = vcombine.high %v460_v36, %v464_v37  ;;  %3599 = vmatprep.subr.bf16.mxu1 %v6590_v35  ;;  %v6453_v48 = vcombine.low %v460_v36, %v464_v37  ;;  %12857 = vst [vmem:[#allocation6_spill] sm:$0xff] %v7852_v31 }
  0x3e   : > { %v592_v39 = vld [vmem:[%s12626_s1 + $0x6e0] sm:$0xff]  ;;  %3600 = vmatpush2.bf16.msra.mxu1 %v6589_v41 }
  0x3f   : > { %v6582_v43 = vcombine.high %v588_v38, %v592_v39  ;;  %v452_v44 = vld [vmem:[%s12626_s1 + $0x280] sm:$0xff]  ;;  %3488 = vmatprep.subr.bf16.mxu0 %v6454_v42  ;;  %v6581_v49 = vcombine.low %v588_v38, %v592_v39  ;;  %v198_v42 = vld [vmem:[%s7690_s20 + $0x90] sm:$0xff] }
  0x40   : > { %v456_v45 = vld [vmem:[%s12626_s1 + $0x2a0] sm:$0xff]  ;;  %3489 = vmatpush2.bf16.msra.mxu0 %v6453_v48  ;;  %v213_v48 = vld [vmem:[%s7690_s20 + $0x108] sm:$0xff] }
  0x41   : > { %v580_v46 = vld [vmem:[%s12626_s1 + $0x680] sm:$0xff]  ;;  %v6446_v50 = vcombine.high %v452_v44, %v456_v45  ;;  %3601 = vmatprep.subr.bf16.mxu1 %v6582_v43  ;;  %v6445_v56 = vcombine.low %v452_v44, %v456_v45  ;;  %v206_v43 = vld [vmem:[%s7690_s20 + $0xd0] sm:$0xff] }
  0x42   : > { %v584_v47 = vld [vmem:[%s12626_s1 + $0x6a0] sm:$0xff]  ;;  %3602 = vmatpush2.bf16.msra.mxu1 %v6581_v49 }
  0x43   : > { %v6574_v51 = vcombine.high %v580_v46, %v584_v47  ;;  %v444_v52 = vld [vmem:[%s12626_s1 + $0x240] sm:$0xff]  ;;  %3490 = vmatprep.subr.bf16.mxu0 %v6446_v50  ;;  %v6573_v57 = vcombine.low %v580_v46, %v584_v47  ;;  %v221_v50 = vld [vmem:[%s7690_s20 + $0x148] sm:$0xff] }
  0x44   : > { %v448_v53 = vld [vmem:[%s12626_s1 + $0x260] sm:$0xff]  ;;  %3491 = vmatpush2.bf16.msra.mxu0 %v6445_v56 }
  0x45   : > { %v572_v54 = vld [vmem:[%s12626_s1 + $0x640] sm:$0xff]  ;;  %v6438_v59 = vcombine.high %v444_v52, %v448_v53  ;;  %3603 = vmatprep.subr.bf16.mxu1 %v6574_v51  ;;  %v6437_v2 = vcombine.low %v444_v52, %v448_v53  ;;  %v215_v51 = vld [vmem:[%s7690_s20 + $0x118] sm:$0xff]  ;;  %v7888_v53 = vpack.c.bf16 %v206_v43, %v198_v42 }
  0x46   : > { %v576_v55 = vld [vmem:[%s12626_s1 + $0x660] sm:$0xff]  ;;  %3604 = vmatpush2.bf16.msra.mxu1 %v6573_v57  ;;  %v223_v52 = vld [vmem:[%s7690_s20 + $0x158] sm:$0xff] }
  0x47   : > { %v6566_v60 = vcombine.high %v572_v54, %v576_v55  ;;  %v436_v61 = vld [vmem:[%s12626_s1 + $0x200] sm:$0xff]  ;;  %3492 = vmatprep.subr.bf16.mxu0 %v6438_v59  ;;  %v6565_v3 = vcombine.low %v572_v54, %v576_v55  ;;  %12860 = vst [vmem:[#allocation9_spill] sm:$0xff] %v7888_v53 }
  0x48   : > { %v440_v62 = vld [vmem:[%s12626_s1 + $0x220] sm:$0xff]  ;;  %3493 = vmatpush2.bf16.msra.mxu0 %v6437_v2 }
  0x49   : > { %v564_v0 = vld [vmem:[%s12626_s1 + $0x600] sm:$0xff]  ;;  %v6430_v4 = vcombine.high %v436_v61, %v440_v62  ;;  %3605 = vmatprep.subr.bf16.mxu1 %v6566_v60  ;;  %v6429_v10 = vcombine.low %v436_v61, %v440_v62  ;;  %v7896_v60 = vpack.c.bf16 %v221_v50, %v213_v48  ;;  %v7898_v61 = vpack.c.bf16 %v223_v52, %v215_v51  ;;  %v253_v48 = vld [vmem:[%s7690_s20 + $0x248] sm:$0xff]  ;;  %v247_v50 = vld [vmem:[%s7690_s20 + $0x218] sm:$0xff] }
  0x4a   : > { %v568_v1 = vld [vmem:[%s12626_s1 + $0x620] sm:$0xff]  ;;  %3606 = vmatpush2.bf16.msra.mxu1 %v6565_v3  ;;  %v255_v51 = vld [vmem:[%s7690_s20 + $0x258] sm:$0xff] }
  0x4b   : > { %v6558_v5 = vcombine.high %v564_v0, %v568_v1  ;;  %v684_v6 = vld [vmem:[%s12626_s1 + $0x9c0] sm:$0xff]  ;;  %3494 = vmatprep.subr.bf16.mxu0 %v6430_v4  ;;  %v6557_v13 = vcombine.low %v564_v0, %v568_v1  ;;  %12861 = vst [vmem:[#allocation10_spill] sm:$0xff] %v7896_v60  ;;  %12862 = vst [vmem:[#allocation11_spill] sm:$0xff] %v7898_v61 }
  0x4c   : > { %v688_v7 = vld [vmem:[%s12626_s1 + $0x9e0] sm:$0xff]  ;;  %3495 = vmatpush2.bf16.msra.mxu0 %v6429_v10 }
  0x4d   : > { %v812_v8 = vld [vmem:[%s12626_s1 + $0xdc0] sm:$0xff]  ;;  %v6678_v16 = vcombine.high %v684_v6, %v688_v7  ;;  %3607 = vmatprep.subr.bf16.mxu1 %v6558_v5  ;;  %v6677_v26 = vcombine.low %v684_v6, %v688_v7 }
  0x4e   : > { %v816_v9 = vld [vmem:[%s12626_s1 + $0xde0] sm:$0xff]  ;;  %3608 = vmatpush2.bf16.msra.mxu1 %v6557_v13 }
  0x4f   : > { %v180_v11 = vld [vmem:[%s7690_s20] sm:$0xff]  ;;  %v6806_v17 = vcombine.high %v812_v8, %v816_v9  ;;  %3690 = vmatprep.subr.bf16.mxu0 %v6678_v16  ;;  %v6805_v29 = vcombine.low %v812_v8, %v816_v9  ;;  %v214_v8 = vld [vmem:[%s7690_s20 + $0x110] sm:$0xff]  ;;  %v237_v16 = vld [vmem:[%s7690_s20 + $0x1c8] sm:$0xff] }
  0x50   : > { %v188_v12 = vld [vmem:[%s7690_s20 + $0x40] sm:$0xff]  ;;  %v222_v9 = vld [vmem:[%s7690_s20 + $0x150] sm:$0xff] }
  0x51   : > { %v676_v18 = vld [vmem:[%s12626_s1 + $0x980] sm:$0xff]  ;;  %v7839_v21 = vpack.c.bf16 %v188_v12, %v180_v11  ;;  %3803 = vmatprep.subr.bf16.mxu1 %v6806_v17  ;;  %3610 = vmatmul.mubr.bf16.vlgmr.msra.gmra.mxu1 %v7844_v25  ;;  %v231_v17 = vld [vmem:[%s7690_s20 + $0x198] sm:$0xff] }
  0x52   : > { %v680_v19 = vld [vmem:[%s12626_s1 + $0x9a0] sm:$0xff]  ;;  %3804 = vmatpush1.bf16.msra.mxu1 %v6805_v29  ;;  %3619 = vmatprep.mubr.bf16.mxu1 %v7854_v32 }
  0x53   : > { %12855 = vst [vmem:[#allocation4_spill] sm:$0xff] %v7839_v21  ;;  %v804_v27 = vld [vmem:[%s12626_s1 + $0xd80] sm:$0xff]  ;;  %v6670_v30 = vcombine.high %v676_v18, %v680_v19  ;;  %3497 = vmatmul.mubr.bf16.vlgmr.msra.gmra.mxu0 %v7839_v21  ;;  %v6669_v38 = vcombine.low %v676_v18, %v680_v19  ;;  %v239_v18 = vld [vmem:[%s7690_s20 + $0x1d8] sm:$0xff]  ;;  %v7932_v19 = vpack.c.bf16 %v222_v9, %v214_v8  ;;  %v246_v8 = vld [vmem:[%s7690_s20 + $0x210] sm:$0xff] }
  0x54   : > { %v808_v28 = vld [vmem:[%s12626_s1 + $0xda0] sm:$0xff]  ;;  %3691 = vmatpush1.bf16.msra.mxu0 %v6677_v26  ;;  %3506 = vmatprep.mubr.bf16.mxu0 %v7852_v31  ;;  %v254_v9 = vld [vmem:[%s7690_s20 + $0x250] sm:$0xff] }
  0x55   : > { %v668_v33 = vld [vmem:[%s12626_s1 + $0x940] sm:$0xff]  ;;  %v6798_v35 = vcombine.high %v804_v27, %v808_v28  ;;  %3692 = vmatprep.subr.bf16.mxu0 %v6670_v30  ;;  %v6797_v41 = vcombine.low %v804_v27, %v808_v28  ;;  %12864 = vst [vmem:[#allocation13_spill] sm:$0xff] %v7932_v19  ;;  %v7940_v27 = vpack.c.bf16 %v237_v16, %v229_v14 }
  0x56   : > { %v672_v34 = vld [vmem:[%s12626_s1 + $0x960] sm:$0xff]  ;;  %v7942_v28 = vpack.c.bf16 %v239_v18, %v231_v17  ;;  %v261_v17 = vld [vmem:[%s7690_s20 + $0x288] sm:$0xff] }
  0x57   : > { %v796_v36 = vld [vmem:[%s12626_s1 + $0xd40] sm:$0xff]  ;;  %v6662_v44 = vcombine.high %v668_v33, %v672_v34  ;;  %3805 = vmatprep.subr.bf16.mxu1 %v6798_v35  ;;  %v6661_v54 = vcombine.low %v668_v33, %v672_v34  ;;  %12865 = vst [vmem:[#allocation14_spill] sm:$0xff] %v7940_v27 }
  0x58   : > { %v800_v37 = vld [vmem:[%s12626_s1 + $0xd60] sm:$0xff]  ;;  %3693 = vmatpush1.bf16.msra.mxu0 %v6669_v38  ;;  %3806 = vmatpush1.bf16.msra.mxu1 %v6797_v41  ;;  %12866 = vst [vmem:[#allocation15_spill] sm:$0xff] %v7942_v28 }
  0x59   : > { %v196_v39 = vld [vmem:[%s7690_s20 + $0x80] sm:$0xff]  ;;  %v6790_v45 = vcombine.high %v796_v36, %v800_v37  ;;  %3694 = vmatprep.subr.bf16.mxu0 %v6662_v44  ;;  %v6789_v57 = vcombine.low %v796_v36, %v800_v37  ;;  %3620 = vmatmul.mubr.bf16.gmra.mxu1 %v7888_v53 }
  0x5a   : > { %v204_v40 = vld [vmem:[%s7690_s20 + $0xc0] sm:$0xff]  ;;  %3629 = vmatprep.mubr.bf16.mxu1 %v7898_v61 }
  0x5b   : > { %v660_v46 = vld [vmem:[%s12626_s1 + $0x900] sm:$0xff]  ;;  %v7883_v49 = vpack.c.bf16 %v204_v40, %v196_v39  ;;  %3807 = vmatprep.subr.bf16.mxu1 %v6790_v45  ;;  %v230_v39 = vld [vmem:[%s7690_s20 + $0x190] sm:$0xff] }
  0x5c   : > { %v664_v47 = vld [vmem:[%s12626_s1 + $0x920] sm:$0xff]  ;;  %3695 = vmatpush1.bf16.msra.mxu0 %v6661_v54  ;;  %3808 = vmatpush1.bf16.msra.mxu1 %v6789_v57  ;;  %v238_v40 = vld [vmem:[%s7690_s20 + $0x1d0] sm:$0xff] }
  0x5d   : > { %12859 = vst [vmem:[#allocation8_spill] sm:$0xff] %v7883_v49  ;;  %v788_v55 = vld [vmem:[%s12626_s1 + $0xd00] sm:$0xff]  ;;  %v6654_v59 = vcombine.high %v660_v46, %v664_v47  ;;  %3507 = vmatmul.mubr.bf16.gmra.mxu0 %v7883_v49  ;;  %v6653_v4 = vcombine.low %v660_v46, %v664_v47  ;;  %v245_v46 = vld [vmem:[%s7690_s20 + $0x208] sm:$0xff]  ;;  %v7976_v52 = vpack.c.bf16 %v238_v40, %v230_v39 }
  0x5e   : > { %v792_v56 = vld [vmem:[%s12626_s1 + $0xd20] sm:$0xff]  ;;  %3516 = vmatprep.mubr.bf16.mxu0 %v7896_v60 }
  0x5f   : > { %v652_v62 = vld [vmem:[%s12626_s1 + $0x8c0] sm:$0xff]  ;;  %v6782_v1 = vcombine.high %v788_v55, %v792_v56  ;;  %3696 = vmatprep.subr.bf16.mxu0 %v6654_v59  ;;  %v6781_v7 = vcombine.low %v788_v55, %v792_v56  ;;  %12868 = vst [vmem:[#allocation17_spill] sm:$0xff] %v7976_v52 }
  0x60   : > { %v656_v0 = vld [vmem:[%s12626_s1 + $0x8e0] sm:$0xff]  ;;  %3697 = vmatpush1.bf16.msra.mxu0 %v6653_v4 }
  0x61   : > { %v780_v2 = vld [vmem:[%s12626_s1 + $0xcc0] sm:$0xff]  ;;  %v6646_v10 = vcombine.high %v652_v62, %v656_v0  ;;  %3809 = vmatprep.subr.bf16.mxu1 %v6782_v1  ;;  %v6645_v20 = vcombine.low %v652_v62, %v656_v0  ;;  %3630 = vmatmul.mubr.bf16.gmra.mxu1 %v7932_v19  ;;  %v7984_v62 = vpack.c.bf16 %v253_v48, %v245_v46  ;;  %v270_v46 = vld [vmem:[%s7690_s20 + $0x2d0] sm:$0xff] }
  0x62   : > { %v784_v3 = vld [vmem:[%s12626_s1 + $0xce0] sm:$0xff]  ;;  %3810 = vmatpush1.bf16.msra.mxu1 %v6781_v7  ;;  %3639 = vmatprep.mubr.bf16.mxu1 %v7942_v28  ;;  %v7986_v0 = vpack.c.bf16 %v255_v51, %v247_v50 }
  0x63   : > { %v212_v5 = vld [vmem:[%s7690_s20 + $0x100] sm:$0xff]  ;;  %v6774_v13 = vcombine.high %v780_v2, %v784_v3  ;;  %3698 = vmatprep.subr.bf16.mxu0 %v6646_v10  ;;  %v6773_v26 = vcombine.low %v780_v2, %v784_v3  ;;  %12869 = vst [vmem:[#allocation18_spill] sm:$0xff] %v7984_v62 }
  0x64   : > { %v220_v6 = vld [vmem:[%s7690_s20 + $0x140] sm:$0xff]  ;;  %3699 = vmatpush1.bf16.msra.mxu0 %v6645_v20  ;;  %12870 = vst [vmem:[#allocation19_spill] sm:$0xff] %v7986_v0  ;;  %v269_v20 = vld [vmem:[%s7690_s20 + $0x2c8] sm:$0xff] }
  0x65   : > { %v644_v11 = vld [vmem:[%s12626_s1 + $0x880] sm:$0xff]  ;;  %v7927_v15 = vpack.c.bf16 %v220_v6, %v212_v5  ;;  %3811 = vmatprep.subr.bf16.mxu1 %v6774_v13 }
  0x66   : > { %v648_v12 = vld [vmem:[%s12626_s1 + $0x8a0] sm:$0xff]  ;;  %3812 = vmatpush1.bf16.msra.mxu1 %v6773_v26 }
  0x67   : > { %12863 = vst [vmem:[#allocation12_spill] sm:$0xff] %v7927_v15  ;;  %v772_v22 = vld [vmem:[%s12626_s1 + $0xc80] sm:$0xff]  ;;  %v6638_v24 = vcombine.high %v644_v11, %v648_v12  ;;  %3517 = vmatmul.mubr.bf16.gmra.mxu0 %v7927_v15  ;;  %v6637_v36 = vcombine.low %v644_v11, %v648_v12 }
  0x68   : > { %v776_v23 = vld [vmem:[%s12626_s1 + $0xca0] sm:$0xff]  ;;  %3526 = vmatprep.mubr.bf16.mxu0 %v7940_v27 }
  0x69   : > { %v636_v29 = vld [vmem:[%s12626_s1 + $0x840] sm:$0xff]  ;;  %v6766_v33 = vcombine.high %v772_v22, %v776_v23  ;;  %3700 = vmatprep.subr.bf16.mxu0 %v6638_v24  ;;  %v6765_v42 = vcombine.low %v772_v22, %v776_v23  ;;  %3640 = vmatmul.mubr.bf16.gmra.mxu1 %v7976_v52  ;;  %v263_v22 = vld [vmem:[%s7690_s20 + $0x298] sm:$0xff]  ;;  %v8017_v24 = vpack.c.bf16 %v254_v9, %v246_v8 }
  0x6a   : > { %v640_v30 = vld [vmem:[%s12626_s1 + $0x860] sm:$0xff]  ;;  %3701 = vmatpush1.bf16.msra.mxu0 %v6637_v36  ;;  %3649 = vmatprep.mubr.bf16.mxu1 %v7986_v0  ;;  %v271_v23 = vld [vmem:[%s7690_s20 + $0x2d8] sm:$0xff] }
  0x6b   : > { %v764_v34 = vld [vmem:[%s12626_s1 + $0xc40] sm:$0xff]  ;;  %v6630_v41 = vcombine.high %v636_v29, %v640_v30  ;;  %3813 = vmatprep.subr.bf16.mxu1 %v6766_v33  ;;  %v6629_v54 = vcombine.low %v636_v29, %v640_v30  ;;  %12872 = vst [vmem:[#allocation21_spill] sm:$0xff] %v8017_v24  ;;  %v8029_v36 = vpack.c.bf16 %v271_v23, %v263_v22  ;;  %v278_v23 = vld [vmem:[%s7690_s20 + $0x310] sm:$0xff] }
  0x6c   : > { %v768_v35 = vld [vmem:[%s12626_s1 + $0xc60] sm:$0xff]  ;;  %3814 = vmatpush1.bf16.msra.mxu1 %v6765_v42 }
  0x6d   : > { %v228_v37 = vld [vmem:[%s7690_s20 + $0x180] sm:$0xff]  ;;  %v6758_v45 = vcombine.high %v764_v34, %v768_v35  ;;  %3702 = vmatprep.subr.bf16.mxu0 %v6630_v41  ;;  %v6757_v59 = vcombine.low %v764_v34, %v768_v35  ;;  %v8027_v35 = vpack.c.bf16 %v269_v20, %v261_v17  ;;  %12874 = vst [vmem:[#allocation23_spill] sm:$0xff] %v8029_v36 }
  0x6e   : > { %v236_v38 = vld [vmem:[%s7690_s20 + $0x1c0] sm:$0xff]  ;;  %3703 = vmatpush1.bf16.msra.mxu0 %v6629_v54 }
  0x6f   : > { %v628_v43 = vld [vmem:[%s12626_s1 + $0x800] sm:$0xff]  ;;  %v7971_v47 = vpack.c.bf16 %v236_v38, %v228_v37  ;;  %3815 = vmatprep.subr.bf16.mxu1 %v6758_v45  ;;  %12873 = vst [vmem:[#allocation22_spill] sm:$0xff] %v8027_v35  ;;  %v262_v45 = vld [vmem:[%s7690_s20 + $0x290] sm:$0xff] }
  0x70   : > { %v632_v44 = vld [vmem:[%s12626_s1 + $0x820] sm:$0xff]  ;;  %3816 = vmatpush1.bf16.msra.mxu1 %v6757_v59  ;;  %v285_v59 = vld [vmem:[%s7690_s20 + $0x348] sm:$0xff] }
  0x71   : > { %12867 = vst [vmem:[#allocation16_spill] sm:$0xff] %v7971_v47  ;;  %v756_v55 = vld [vmem:[%s12626_s1 + $0xc00] sm:$0xff]  ;;  %v6622_v57 = vcombine.high %v628_v43, %v632_v44  ;;  %3527 = vmatmul.mubr.bf16.gmra.mxu0 %v7971_v47  ;;  %v6621_v5 = vcombine.low %v628_v43, %v632_v44  ;;  %3650 = vmatmul.mubr.bf16.gmra.mxu1 %v8017_v24 }
  0x72   : > { %v760_v56 = vld [vmem:[%s12626_s1 + $0xc20] sm:$0xff]  ;;  %3536 = vmatprep.mubr.bf16.mxu0 %v7984_v62  ;;  %3659 = vmatprep.mubr.bf16.mxu1 %v8029_v36 }
  0x73   : > { %v748_v1 = vld [vmem:[%s12626_s1 + $0xbc0] sm:$0xff]  ;;  %v6750_v3 = vcombine.high %v756_v55, %v760_v56  ;;  %3704 = vmatprep.subr.bf16.mxu0 %v6622_v57  ;;  %v6749_v11 = vcombine.low %v756_v55, %v760_v56  ;;  %v277_v56 = vld [vmem:[%s7690_s20 + $0x308] sm:$0xff] }
  0x74   : > { %v752_v2 = vld [vmem:[%s12626_s1 + $0xbe0] sm:$0xff]  ;;  %3705 = vmatpush1.bf16.msra.mxu0 %v6621_v5  ;;  %v8071_v9 = vpack.c.bf16 %v285_v59, %v277_v56 }
  0x75   : > { %v868_v4 = vld [vmem:[%s12626_s1 + $0xf80] sm:$0xff]  ;;  %v6742_v10 = vcombine.high %v748_v1, %v752_v2  ;;  %3817 = vmatprep.subr.bf16.mxu1 %v6750_v3  ;;  %v6741_v26 = vcombine.low %v748_v1, %v752_v2  ;;  %v279_v1 = vld [vmem:[%s7690_s20 + $0x318] sm:$0xff]  ;;  %v8063_v3 = vpack.c.bf16 %v270_v46, %v262_v45 }
  0x76   : > { %v244_v6 = vld [vmem:[%s7690_s20 + $0x200] sm:$0xff]  ;;  %v6862_v14 = vcombine.high %v868_v4, %v868_v4  ;;  %v6861_v16 = vcombine.low %v868_v4, %v868_v4  ;;  %3818 = vmatpush1.bf16.msra.mxu1 %v6749_v11  ;;  %v287_v2 = vld [vmem:[%s7690_s20 + $0x358] sm:$0xff]  ;;  %12877 = vst [vmem:[#allocation26_spill] sm:$0xff] %v8071_v9 }
  0x77   : > { %v252_v7 = vld [vmem:[%s7690_s20 + $0x240] sm:$0xff]  ;;  %3706 = vmatprep.subr.bf16.mxu0 %v6742_v10  ;;  %12876 = vst [vmem:[#allocation25_spill] sm:$0xff] %v8063_v3  ;;  %v8073_v10 = vpack.c.bf16 %v287_v2, %v279_v1 }
  0x78   : > { %v740_v12 = vld [vmem:[%s12626_s1 + $0xb80] sm:$0xff]  ;;  %v8012_v18 = vpack.c.bf16 %v252_v7, %v244_v6  ;;  %6869 = vmatprep.subr.msk.bf16.mxu1 %vm3439_vm0, %v6862_v14  ;;  %v3441_v34 = vsel %vm3439_vm0, %v6861_v16, 0  ;;  %3707 = vmatpush2.bf16.msra.mxu0 %v6741_v26  ;;  %v286_v26 = vld [vmem:[%s7690_s20 + $0x350] sm:$0xff] }
  0x79   : > { %v744_v13 = vld [vmem:[%s12626_s1 + $0xba0] sm:$0xff]  ;;  %12878 = vst [vmem:[#allocation27_spill] sm:$0xff] %v8073_v10  ;;  %3660 = vmatmul.mubr.bf16.gmra.mxu1 %v8063_v3 }
  0x7a   : > { %12871 = vst [vmem:[#allocation20_spill] sm:$0xff] %v8012_v18  ;;  %v860_v29 = vld [vmem:[%s12626_s1 + $0xf40] sm:$0xff]  ;;  %v6734_v33 = vcombine.high %v740_v12, %v744_v13  ;;  %3537 = vmatmul.mubr.bf16.gmra.mxu0 %v8012_v18  ;;  %v6733_v42 = vcombine.low %v740_v12, %v744_v13  ;;  %3822 = vmatpush2.bf16.msra.mxu1 %v3441_v34 }
  0x7b   : > { %v864_v30 = vld [vmem:[%s12626_s1 + $0xf60] sm:$0xff]  ;;  %3546 = vmatprep.mubr.bf16.mxu0 %v8027_v35  ;;  %3669 = vmatprep.mubr.bf16.mxu1 %v8073_v10 }
  0x7c   : > { %v732_v37 = vld [vmem:[%s12626_s1 + $0xb40] sm:$0xff]  ;;  %v6854_v39 = vcombine.high %v860_v29, %v864_v30  ;;  %3708 = vmatprep.subr.bf16.mxu0 %v6734_v33  ;;  %v6853_v50 = vcombine.low %v860_v29, %v864_v30 }
  0x7d   : > { %v736_v38 = vld [vmem:[%s12626_s1 + $0xb60] sm:$0xff]  ;;  %3709 = vmatpush2.bf16.msra.mxu0 %v6733_v42  ;;  %v303_v42 = vld [vmem:[%s7690_s20 + $0x3d8] sm:$0xff] }
  0x7e   : > { %v852_v40 = vld [vmem:[%s12626_s1 + $0xf00] sm:$0xff]  ;;  %v6726_v48 = vcombine.high %v732_v37, %v736_v38  ;;  %3823 = vmatprep.subr.bf16.mxu1 %v6854_v39  ;;  %v6725_v4 = vcombine.low %v732_v37, %v736_v38  ;;  %v293_v38 = vld [vmem:[%s7690_s20 + $0x388] sm:$0xff] }
  0x7f   : > { %v856_v41 = vld [vmem:[%s12626_s1 + $0xf20] sm:$0xff]  ;;  %3824 = vmatpush2.bf16.msra.mxu1 %v6853_v50 }
  0x80   : > { %v260_v43 = vld [vmem:[%s7690_s20 + $0x280] sm:$0xff]  ;;  %v6846_v55 = vcombine.high %v852_v40, %v856_v41  ;;  %3710 = vmatprep.subr.bf16.mxu0 %v6726_v48  ;;  %v6845_v8 = vcombine.low %v852_v40, %v856_v41  ;;  %v301_v40 = vld [vmem:[%s7690_s20 + $0x3c8] sm:$0xff]  ;;  %v295_v41 = vld [vmem:[%s7690_s20 + $0x398] sm:$0xff] }
  0x81   : > { %v268_v44 = vld [vmem:[%s7690_s20 + $0x2c0] sm:$0xff]  ;;  %3711 = vmatpush2.bf16.msra.mxu0 %v6725_v4 }
  0x82   : > { %v724_v51 = vld [vmem:[%s12626_s1 + $0xb00] sm:$0xff]  ;;  %v8058_v57 = vpack.c.bf16 %v268_v44, %v260_v43  ;;  %3825 = vmatprep.subr.bf16.mxu1 %v6846_v55  ;;  %v8107_v43 = vpack.c.bf16 %v286_v26, %v278_v23  ;;  %v187_v23 = vld [vmem:[%s7690_s20 + $0x38] sm:$0xff] }
  0x83   : > { %v728_v54 = vld [vmem:[%s12626_s1 + $0xb20] sm:$0xff]  ;;  %3826 = vmatpush2.bf16.msra.mxu1 %v6845_v8  ;;  %v302_v8 = vld [vmem:[%s7690_s20 + $0x3d0] sm:$0xff]  ;;  %v195_v26 = vld [vmem:[%s7690_s20 + $0x78] sm:$0xff] }
  0x84   : > { %12875 = vst [vmem:[#allocation24_spill] sm:$0xff] %v8058_v57  ;;  %v844_v5 = vld [vmem:[%s12626_s1 + $0xec0] sm:$0xff]  ;;  %v6718_v7 = vcombine.high %v724_v51, %v728_v54  ;;  %3547 = vmatmul.mubr.bf16.gmra.mxu0 %v8058_v57  ;;  %v6717_v17 = vcombine.low %v724_v51, %v728_v54  ;;  %12880 = vst [vmem:[#allocation29_spill] sm:$0xff] %v8107_v43  ;;  %v8115_v51 = vpack.c.bf16 %v301_v40, %v293_v38 }
  0x85   : > { %v848_v6 = vld [vmem:[%s12626_s1 + $0xee0] sm:$0xff]  ;;  %3556 = vmatprep.mubr.bf16.mxu0 %v8071_v9  ;;  %v8117_v54 = vpack.c.bf16 %v303_v42, %v295_v41  ;;  %3670 = vmatmul.mubr.bf16.gmra.mxu1 %v8107_v43  ;;  %v8161_v41 = vpack.c.bf16 %v195_v26, %v187_v23  ;;  %v429_v42 = vld [vmem:[%s12626_s1 + $0x1c8] sm:$0xff] }
  0x86   : > { %v716_v11 = vld [vmem:[%s12626_s1 + $0xac0] sm:$0xff]  ;;  %v6838_v13 = vcombine.high %v844_v5, %v848_v6  ;;  %3712 = vmatprep.subr.bf16.mxu0 %v6718_v7  ;;  %v6837_v30 = vcombine.low %v844_v5, %v848_v6  ;;  %12881 = vst [vmem:[#allocation30_spill] sm:$0xff] %v8115_v51  ;;  %v294_v7 = vld [vmem:[%s7690_s20 + $0x390] sm:$0xff]  ;;  %v413_v26 = vld [vmem:[%s12626_s1 + $0x148] sm:$0xff] }
  0x87   : > { %v720_v12 = vld [vmem:[%s12626_s1 + $0xae0] sm:$0xff]  ;;  %3713 = vmatpush2.bf16.msra.mxu0 %v6717_v17  ;;  %12882 = vst [vmem:[#allocation31_spill] sm:$0xff] %v8117_v54  ;;  %3679 = vmatprep.mubr.bf16.mxu1 %v8117_v54  ;;  %v185_v17 = vld [vmem:[%s7690_s20 + $0x28] sm:$0xff]  ;;  %12886 = vst [vmem:[#allocation35_spill] sm:$0xff] %v8161_v41 }
  0x88   : > { %v836_v14 = vld [vmem:[%s12626_s1 + $0xe80] sm:$0xff]  ;;  %v6710_v29 = vcombine.high %v716_v11, %v720_v12  ;;  %3827 = vmatprep.subr.bf16.mxu1 %v6838_v13  ;;  %v6709_v44 = vcombine.low %v716_v11, %v720_v12 }
  0x89   : > { %v840_v16 = vld [vmem:[%s12626_s1 + $0xea0] sm:$0xff]  ;;  %3828 = vmatpush2.bf16.msra.mxu1 %v6837_v30 }
  0x8a   : > { %v276_v20 = vld [vmem:[%s7690_s20 + $0x300] sm:$0xff]  ;;  %v6830_v37 = vcombine.high %v836_v14, %v840_v16  ;;  %3714 = vmatprep.subr.bf16.mxu0 %v6710_v29  ;;  %v6829_v50 = vcombine.low %v836_v14, %v840_v16  ;;  %v8151_v29 = vpack.c.bf16 %v302_v8, %v294_v7  ;;  %v201_v7 = vld [vmem:[%s7690_s20 + $0xa8] sm:$0xff] }
  0x8b   : > { %v284_v22 = vld [vmem:[%s7690_s20 + $0x340] sm:$0xff]  ;;  %3715 = vmatpush2.bf16.msra.mxu0 %v6709_v44  ;;  %v433_v44 = vld [vmem:[%s12626_s1 + $0x1e8] sm:$0xff] }
  0x8c   : > { %v708_v33 = vld [vmem:[%s12626_s1 + $0xa80] sm:$0xff]  ;;  %v8102_v39 = vpack.c.bf16 %v284_v22, %v276_v20  ;;  %3829 = vmatprep.subr.bf16.mxu1 %v6830_v37  ;;  %v193_v22 = vld [vmem:[%s7690_s20 + $0x68] sm:$0xff]  ;;  %12884 = vst [vmem:[#allocation33_spill] sm:$0xff] %v8151_v29 }
  0x8d   : > { %v712_v34 = vld [vmem:[%s12626_s1 + $0xaa0] sm:$0xff]  ;;  %3830 = vmatpush2.bf16.msra.mxu1 %v6829_v50  ;;  %v8159_v40 = vpack.c.bf16 %v193_v22, %v185_v17  ;;  %v209_v8 = vld [vmem:[%s7690_s20 + $0xe8] sm:$0xff] }
  0x8e   : > { %12879 = vst [vmem:[#allocation28_spill] sm:$0xff] %v8102_v39  ;;  %v828_v45 = vld [vmem:[%s12626_s1 + $0xe40] sm:$0xff]  ;;  %v6702_v48 = vcombine.high %v708_v33, %v712_v34  ;;  %3557 = vmatmul.mubr.bf16.gmra.mxu0 %v8102_v39  ;;  %v6701_v4 = vcombine.low %v708_v33, %v712_v34  ;;  %v557_v33 = vld [vmem:[%s12626_s1 + $0x5c8] sm:$0xff]  ;;  %3680 = vmatmul.mubr.bf16.gmra.mxu1 %v8151_v29 }
  0x8f   : > { %v832_v46 = vld [vmem:[%s12626_s1 + $0xe60] sm:$0xff]  ;;  %3566 = vmatprep.mubr.bf16.mxu0 %v8115_v51  ;;  %v561_v34 = vld [vmem:[%s12626_s1 + $0x5e8] sm:$0xff]  ;;  %12885 = vst [vmem:[#allocation34_spill] sm:$0xff] %v8159_v40  ;;  %6870 = vmatprep.mubr.msk.bf16.mxu1 %vm3414_vm1, %v8161_v41  ;;  %v8198_v23 = vpack.c.bf16 %v209_v8, %v201_v7 }
  0x90   : > { %v700_v55 = vld [vmem:[%s12626_s1 + $0xa40] sm:$0xff]  ;;  %v6822_v59 = vcombine.high %v828_v45, %v832_v46  ;;  %3716 = vmatprep.subr.bf16.mxu0 %v6702_v48  ;;  %v6821_v12 = vcombine.low %v828_v45, %v832_v46  ;;  %v6552_v45 = vcombine.high %v557_v33, %v561_v34  ;;  %v225_v7 = vld [vmem:[%s7690_s20 + $0x168] sm:$0xff] }
  0x91   : > { %v704_v56 = vld [vmem:[%s12626_s1 + $0xa60] sm:$0xff]  ;;  %3717 = vmatpush2.bf16.msra.mxu0 %v6701_v4  ;;  %v549_v4 = vld [vmem:[%s12626_s1 + $0x588] sm:$0xff]  ;;  %12889 = vst [vmem:[#allocation38_spill] sm:$0xff] %v8198_v23 }
  0x92   : > { %v820_v1 = vld [vmem:[%s12626_s1 + $0xe00] sm:$0xff]  ;;  %v6694_v11 = vcombine.high %v700_v55, %v704_v56  ;;  %3831 = vmatprep.subr.bf16.mxu1 %v6822_v59  ;;  %v6693_v30 = vcombine.low %v700_v55, %v704_v56  ;;  %v186_v55 = vld [vmem:[%s7690_s20 + $0x30] sm:$0xff]  ;;  %v6424_v59 = vcombine.high %v429_v42, %v433_v44 }
  0x93   : > { %v824_v2 = vld [vmem:[%s12626_s1 + $0xe20] sm:$0xff]  ;;  %3832 = vmatpush2.bf16.msra.mxu1 %v6821_v12  ;;  %v194_v56 = vld [vmem:[%s7690_s20 + $0x70] sm:$0xff]  ;;  %v6423_v12 = vcombine.low %v429_v42, %v433_v44 }
  0x94   : > { %v292_v5 = vld [vmem:[%s7690_s20 + $0x380] sm:$0xff]  ;;  %v6814_v16 = vcombine.high %v820_v1, %v824_v2  ;;  %3718 = vmatprep.subr.bf16.mxu0 %v6694_v11  ;;  %v6813_v38 = vcombine.low %v820_v1, %v824_v2  ;;  %v421_v1 = vld [vmem:[%s12626_s1 + $0x188] sm:$0xff]  ;;  %v8194_v11 = vpack.c.bf16 %v194_v56, %v186_v55 }
  0x95   : > { %v300_v6 = vld [vmem:[%s7690_s20 + $0x3c0] sm:$0xff]  ;;  %3719 = vmatpush2.bf16.msra.mxu0 %v6693_v30  ;;  %v425_v2 = vld [vmem:[%s12626_s1 + $0x1a8] sm:$0xff] }
  0x96   : > { %v692_v13 = vld [vmem:[%s12626_s1 + $0xa00] sm:$0xff]  ;;  %v8146_v20 = vpack.c.bf16 %v300_v6, %v292_v5  ;;  %3833 = vmatprep.subr.bf16.mxu1 %v6814_v16  ;;  %v553_v6 = vld [vmem:[%s12626_s1 + $0x5a8] sm:$0xff]  ;;  %12888 = vst [vmem:[#allocation37_spill] sm:$0xff] %v8194_v11  ;;  %v6551_v16 = vcombine.low %v557_v33, %v561_v34  ;;  %v6416_v17 = vcombine.high %v421_v1, %v425_v2 }
  0x97   : > { %v696_v14 = vld [vmem:[%s12626_s1 + $0xa20] sm:$0xff]  ;;  %3834 = vmatpush2.bf16.msra.mxu1 %v6813_v38  ;;  %v6544_v22 = vcombine.high %v549_v4, %v553_v6  ;;  %v417_v30 = vld [vmem:[%s12626_s1 + $0x168] sm:$0xff]  ;;  %v6415_v38 = vcombine.low %v421_v1, %v425_v2 }
  0x98   : > { %12883 = vst [vmem:[#allocation32_spill] sm:$0xff] %v8146_v20  ;;  %v6686_v37 = vcombine.high %v692_v13, %v696_v14  ;;  %3567 = vmatmul.mubr.bf16.gmra.mxu0 %v8146_v20  ;;  %v6685_v46 = vcombine.low %v692_v13, %v696_v14  ;;  %v184_v48 = vld [vmem:[%s7690_s20 + $0x20] sm:$0xff]  ;;  %4029 = vmatprep.subr.bf16.mxu1 %v6552_v45  ;;  %v203_v13 = vld [vmem:[%s7690_s20 + $0xb8] sm:$0xff]  ;;  %v541_v33 = vld [vmem:[%s12626_s1 + $0x548] sm:$0xff] }
  0x99   : > { %v192_v50 = vld [vmem:[%s7690_s20 + $0x60] sm:$0xff]  ;;  %3722 = vmatprep.mubr.bf16.mxu0 %v8159_v40  ;;  %v211_v14 = vld [vmem:[%s7690_s20 + $0xf8] sm:$0xff]  ;;  %v545_v34 = vld [vmem:[%s12626_s1 + $0x568] sm:$0xff]  ;;  %v6543_v45 = vcombine.low %v549_v4, %v553_v6 }
  0x9a   : > { %3720 = vmatprep.subr.bf16.mxu0 %v6686_v37  ;;  %v8187_v5 = vpack.c.bf16 %v192_v50, %v184_v48  ;;  %v8207_v37 = vpack.c.bf16 %v211_v14, %v203_v13  ;;  %3836 = vmatmul.mubr.bf16.vlgmr.msra.gmra.mxu1 %v8194_v11  ;;  %v200_v42 = vld [vmem:[%s7690_s20 + $0xa0] sm:$0xff]  ;;  %v210_v48 = vld [vmem:[%s7690_s20 + $0xf0] sm:$0xff]  ;;  %v6408_v50 = vcombine.high %v413_v26, %v417_v30  ;;  %v405_v56 = vld [vmem:[%s12626_s1 + $0x108] sm:$0xff] }
  0x9b   : > { %3721 = vmatpush2.bf16.msra.mxu0 %v6685_v46  ;;  %v208_v44 = vld [vmem:[%s7690_s20 + $0xe0] sm:$0xff]  ;;  %4030 = vmatpush1.bf16.msra.mxu1 %v6551_v16  ;;  %v202_v46 = vld [vmem:[%s7690_s20 + $0xb0] sm:$0xff]  ;;  %v6536_v55 = vcombine.high %v541_v33, %v545_v34  ;;  %v533_v1 = vld [vmem:[%s12626_s1 + $0x508] sm:$0xff]  ;;  %v6535_v16 = vcombine.low %v541_v33, %v545_v34 }
  0x9c   : > { %12887 = vst [vmem:[#allocation36_spill] sm:$0xff] %v8187_v5  ;;  %3916 = vmatprep.subr.bf16.mxu0 %v6424_v59  ;;  %12890 = vst [vmem:[#allocation39_spill] sm:$0xff] %v8207_v37  ;;  %4031 = vmatprep.subr.bf16.mxu1 %v6544_v22  ;;  %v409_v59 = vld [vmem:[%s12626_s1 + $0x128] sm:$0xff]  ;;  %v8232_v2 = vpack.c.bf16 %v208_v44, %v200_v42  ;;  %v8239_v8 = vpack.c.bf16 %v210_v48, %v202_v46  ;;  %v219_v13 = vld [vmem:[%s7690_s20 + $0x138] sm:$0xff] }
  0x9d   : > { %6871 = vmatprep.mubr.msk.bf16.mxu1 %vm3414_vm1, %v8207_v37  ;;  %v537_v4 = vld [vmem:[%s12626_s1 + $0x528] sm:$0xff]  ;;  %v227_v14 = vld [vmem:[%s7690_s20 + $0x178] sm:$0xff]  ;;  %v6399_v44 = vcombine.low %v405_v56, %v409_v59  ;;  %v224_v46 = vld [vmem:[%s7690_s20 + $0x160] sm:$0xff] }
  0x9e   : > { %12891 = vst [vmem:[#allocation40_spill] sm:$0xff] %v8232_v2  ;;  %v217_v6 = vld [vmem:[%s7690_s20 + $0x128] sm:$0xff]  ;;  %12892 = vst [vmem:[#allocation41_spill] sm:$0xff] %v8239_v8  ;;  %v6528_v22 = vcombine.high %v533_v1, %v537_v4  ;;  %v6527_v48 = vcombine.low %v533_v1, %v537_v4 }
  0x9f   : > { %4032 = vmatpush1.bf16.msra.mxu1 %v6543_v45  ;;  %v8243_v42 = vpack.c.bf16 %v225_v7, %v217_v6  ;;  %v525_v33 = vld [vmem:[%s12626_s1 + $0x4c8] sm:$0xff]  ;;  %v216_v45 = vld [vmem:[%s7690_s20 + $0x120] sm:$0xff] }
  0xa0   : > { %3723 = vmatmul.mubr.bf16.vlgmr.msra.gmra.mxu0 %v8187_v5  ;;  %4033 = vmatprep.subr.bf16.mxu1 %v6536_v55  ;;  %v529_v34 = vld [vmem:[%s12626_s1 + $0x4e8] sm:$0xff]  ;;  %v226_v55 = vld [vmem:[%s7690_s20 + $0x170] sm:$0xff]  ;;  %v8277_v4 = vpack.c.bf16 %v224_v46, %v216_v45 }
  0xa1   : > { %3917 = vmatpush1.bf16.msra.mxu0 %v6423_v12  ;;  %3732 = vmatprep.mubr.bf16.mxu0 %v8198_v23  ;;  %v6407_v12 = vcombine.low %v413_v26, %v417_v30  ;;  %12893 = vst [vmem:[#allocation42_spill] sm:$0xff] %v8243_v42  ;;  %v401_v26 = vld [vmem:[%s12626_s1 + $0xe8] sm:$0xff]  ;;  %v8252_v30 = vpack.c.bf16 %v227_v14, %v219_v13 }
  0xa2   : > { %3918 = vmatprep.subr.bf16.mxu0 %v6416_v17  ;;  %v6400_v17 = vcombine.high %v405_v56, %v409_v59  ;;  %3846 = vmatmul.mubr.bf16.gmra.mxu1 %v8239_v8  ;;  %v6520_v7 = vcombine.high %v525_v33, %v529_v34  ;;  %v389_v56 = vld [vmem:[%s12626_s1 + $0x88] sm:$0xff]  ;;  %12895 = vst [vmem:[#allocation44_spill] sm:$0xff] %v8277_v4 }
  0xa3   : > { %12894 = vst [vmem:[#allocation43_spill] sm:$0xff] %v8252_v30  ;;  %4034 = vmatpush1.bf16.msra.mxu1 %v6535_v16  ;;  %v393_v59 = vld [vmem:[%s12626_s1 + $0xa8] sm:$0xff]  ;;  %6872 = vmatprep.mubr.msk.bf16.mxu1 %vm3414_vm1, %v8252_v30  ;;  %v6519_v8 = vcombine.low %v525_v33, %v529_v34 }
  0xa4   : > { %4035 = vmatprep.subr.bf16.mxu1 %v6528_v22  ;;  %v517_v1 = vld [vmem:[%s12626_s1 + $0x488] sm:$0xff]  ;;  %v235_v22 = vld [vmem:[%s7690_s20 + $0x1b8] sm:$0xff]  ;;  %v6384_v30 = vcombine.high %v389_v56, %v393_v59 }
  0xa5   : > { %3919 = vmatpush1.bf16.msra.mxu0 %v6415_v38  ;;  %v397_v38 = vld [vmem:[%s12626_s1 + $0xc8] sm:$0xff] }
  0xa6   : > { %3920 = vmatprep.subr.bf16.mxu0 %v6408_v50  ;;  %v218_v50 = vld [vmem:[%s7690_s20 + $0x130] sm:$0xff]  ;;  %v6392_v6 = vcombine.high %v397_v38, %v401_v26  ;;  %v233_v13 = vld [vmem:[%s7690_s20 + $0x1a8] sm:$0xff] }
  0xa7   : > { %v241_v14 = vld [vmem:[%s7690_s20 + $0x1e8] sm:$0xff]  ;;  %v8284_v16 = vpack.c.bf16 %v226_v55, %v218_v50  ;;  %4036 = vmatpush1.bf16.msra.mxu1 %v6527_v48  ;;  %v6383_v48 = vcombine.low %v389_v56, %v393_v59  ;;  %v232_v50 = vld [vmem:[%s7690_s20 + $0x1a0] sm:$0xff] }
  0xa8   : > { %3733 = vmatmul.mubr.bf16.gmra.mxu0 %v8232_v2  ;;  %4037 = vmatprep.subr.bf16.mxu1 %v6520_v7  ;;  %v8288_v46 = vpack.c.bf16 %v241_v14, %v233_v13  ;;  %v509_v33 = vld [vmem:[%s12626_s1 + $0x448] sm:$0xff]  ;;  %v240_v55 = vld [vmem:[%s7690_s20 + $0x1e0] sm:$0xff]  ;;  %v242_v7 = vld [vmem:[%s7690_s20 + $0x1f0] sm:$0xff] }
  0xa9   : > { %3921 = vmatpush1.bf16.msra.mxu0 %v6407_v12  ;;  %3742 = vmatprep.mubr.bf16.mxu0 %v8243_v42  ;;  %v521_v12 = vld [vmem:[%s12626_s1 + $0x4a8] sm:$0xff]  ;;  %12896 = vst [vmem:[#allocation45_spill] sm:$0xff] %v8284_v16  ;;  %v243_v42 = vld [vmem:[%s7690_s20 + $0x1f8] sm:$0xff]  ;;  %v8322_v59 = vpack.c.bf16 %v240_v55, %v232_v50 }
  0xaa   : > { %3922 = vmatprep.subr.bf16.mxu0 %v6400_v17  ;;  %v6391_v17 = vcombine.low %v397_v38, %v401_v26  ;;  %v6512_v45 = vcombine.high %v517_v1, %v521_v12  ;;  %12897 = vst [vmem:[#allocation46_spill] sm:$0xff] %v8288_v46  ;;  %v385_v38 = vld [vmem:[%s12626_s1 + $0x68] sm:$0xff]  ;;  %v8297_v26 = vpack.c.bf16 %v243_v42, %v235_v22 }
  0xab   : > { %v513_v34 = vld [vmem:[%s12626_s1 + $0x468] sm:$0xff]  ;;  %3856 = vmatmul.mubr.bf16.gmra.mxu1 %v8284_v16  ;;  %v6511_v42 = vcombine.low %v517_v1, %v521_v12  ;;  %12899 = vst [vmem:[#allocation48_spill] sm:$0xff] %v8322_v59  ;;  %v259_v16 = vld [vmem:[%s7690_s20 + $0x278] sm:$0xff] }
  0xac   : > { %12898 = vst [vmem:[#allocation47_spill] sm:$0xff] %v8297_v26  ;;  %4038 = vmatpush1.bf16.msra.mxu1 %v6519_v8  ;;  %v6504_v14 = vcombine.high %v509_v33, %v513_v34  ;;  %v373_v56 = vld [vmem:[%s12626_s1 + $0x8] sm:$0xff]  ;;  %6873 = vmatprep.mubr.msk.bf16.mxu1 %vm3414_vm1, %v8297_v26 }
  0xad   : > { %3923 = vmatpush1.bf16.msra.mxu0 %v6399_v44  ;;  %v381_v44 = vld [vmem:[%s12626_s1 + $0x48] sm:$0xff]  ;;  %4039 = vmatprep.subr.bf16.mxu1 %v6512_v45 }
  0xae   : > { %3924 = vmatprep.subr.bf16.mxu0 %v6392_v6  ;;  %v234_v6 = vld [vmem:[%s7690_s20 + $0x1b0] sm:$0xff]  ;;  %v6376_v13 = vcombine.high %v381_v44, %v385_v38  ;;  %v377_v8 = vld [vmem:[%s12626_s1 + $0x28] sm:$0xff]  ;;  %v6375_v45 = vcombine.low %v381_v44, %v385_v38 }
  0xaf   : > { %v505_v1 = vld [vmem:[%s12626_s1 + $0x428] sm:$0xff]  ;;  %v8329_v22 = vpack.c.bf16 %v242_v7, %v234_v6  ;;  %v6368_v26 = vcombine.high %v373_v56, %v377_v8  ;;  %v248_v6 = vld [vmem:[%s7690_s20 + $0x220] sm:$0xff] }
  0xb0   : > { %3743 = vmatmul.mubr.bf16.gmra.mxu0 %v8277_v4  ;;  %v249_v12 = vld [vmem:[%s7690_s20 + $0x228] sm:$0xff]  ;;  %4040 = vmatpush1.bf16.msra.mxu1 %v6511_v42  ;;  %v6503_v4 = vcombine.low %v509_v33, %v513_v34  ;;  %v6367_v42 = vcombine.low %v373_v56, %v377_v8  ;;  %v256_v7 = vld [vmem:[%s7690_s20 + $0x260] sm:$0xff] }
  0xb1   : > { %3925 = vmatpush1.bf16.msra.mxu0 %v6391_v17  ;;  %3752 = vmatprep.mubr.bf16.mxu0 %v8288_v46  ;;  %v257_v17 = vld [vmem:[%s7690_s20 + $0x268] sm:$0xff]  ;;  %12900 = vst [vmem:[#allocation49_spill] sm:$0xff] %v8329_v22  ;;  %v251_v46 = vld [vmem:[%s7690_s20 + $0x238] sm:$0xff]  ;;  %v8367_v8 = vpack.c.bf16 %v256_v7, %v248_v6 }
  0xb2   : > { %3926 = vmatprep.subr.bf16.mxu0 %v6384_v30  ;;  %v501_v30 = vld [vmem:[%s12626_s1 + $0x408] sm:$0xff]  ;;  %4041 = vmatprep.subr.bf16.mxu1 %v6504_v14  ;;  %v8333_v55 = vpack.c.bf16 %v257_v17, %v249_v12  ;;  %v8342_v38 = vpack.c.bf16 %v259_v16, %v251_v46  ;;  %v250_v46 = vld [vmem:[%s7690_s20 + $0x230] sm:$0xff] }
  0xb3   : > { %v6496_v50 = vcombine.high %v501_v30, %v505_v1  ;;  %v497_v44 = vld [vmem:[%s12626_s1 + $0x3e8] sm:$0xff]  ;;  %3866 = vmatmul.mubr.bf16.gmra.mxu1 %v8329_v22  ;;  %v6495_v16 = vcombine.low %v501_v30, %v505_v1  ;;  %12903 = vst [vmem:[#allocation52_spill] sm:$0xff] %v8367_v8  ;;  %v275_v22 = vld [vmem:[%s7690_s20 + $0x2f8] sm:$0xff] }
  0xb4   : > { %12901 = vst [vmem:[#allocation50_spill] sm:$0xff] %v8333_v55  ;;  %12902 = vst [vmem:[#allocation51_spill] sm:$0xff] %v8342_v38  ;;  %v621_v33 = vld [vmem:[%s12626_s1 + $0x7c8] sm:$0xff]  ;;  %4042 = vmatpush1.bf16.msra.mxu1 %v6503_v4  ;;  %6874 = vmatprep.mubr.msk.bf16.mxu1 %vm3414_vm1, %v8342_v38 }
  0xb5   : > { %3927 = vmatpush1.bf16.msra.mxu0 %v6383_v48  ;;  %v493_v48 = vld [vmem:[%s12626_s1 + $0x3c8] sm:$0xff]  ;;  %4043 = vmatprep.subr.bf16.mxu1 %v6496_v50 }
  0xb6   : > { %3928 = vmatprep.subr.bf16.mxu0 %v6376_v13  ;;  %v625_v34 = vld [vmem:[%s12626_s1 + $0x7e8] sm:$0xff]  ;;  %v258_v13 = vld [vmem:[%s7690_s20 + $0x270] sm:$0xff]  ;;  %v6488_v14 = vcombine.high %v493_v48, %v497_v44  ;;  %v6487_v50 = vcombine.low %v493_v48, %v497_v44 }
  0xb7   : > { %v6616_v12 = vcombine.high %v621_v33, %v625_v34  ;;  %v485_v56 = vld [vmem:[%s12626_s1 + $0x388] sm:$0xff] }
  0xb8   : > { %3753 = vmatmul.mubr.bf16.gmra.mxu0 %v8322_v59  ;;  %v489_v4 = vld [vmem:[%s12626_s1 + $0x3a8] sm:$0xff]  ;;  %4044 = vmatpush1.bf16.msra.mxu1 %v6495_v16  ;;  %v6615_v59 = vcombine.low %v621_v33, %v625_v34 }
  0xb9   : > { %3929 = vmatpush1.bf16.msra.mxu0 %v6375_v45  ;;  %3762 = vmatprep.mubr.bf16.mxu0 %v8333_v55  ;;  %v617_v30 = vld [vmem:[%s12626_s1 + $0x7a8] sm:$0xff]  ;;  %v8374_v45 = vpack.c.bf16 %v258_v13, %v250_v46  ;;  %v267_v55 = vld [vmem:[%s7690_s20 + $0x2b8] sm:$0xff]  ;;  %v6480_v38 = vcombine.high %v485_v56, %v489_v4  ;;  %v6479_v16 = vcombine.low %v485_v56, %v489_v4  ;;  %v264_v46 = vld [vmem:[%s7690_s20 + $0x2a0] sm:$0xff] }
  0xba   : > { %3930 = vmatprep.subr.bf16.mxu0 %v6368_v26  ;;  %v613_v26 = vld [vmem:[%s12626_s1 + $0x788] sm:$0xff]  ;;  %4045 = vmatprep.subr.bf16.mxu1 %v6616_v12  ;;  %v8387_v44 = vpack.c.bf16 %v275_v22, %v267_v55  ;;  %v272_v13 = vld [vmem:[%s7690_s20 + $0x2e0] sm:$0xff]  ;;  %v266_v55 = vld [vmem:[%s7690_s20 + $0x2b0] sm:$0xff] }
  0xbb   : > { %v265_v1 = vld [vmem:[%s7690_s20 + $0x2a8] sm:$0xff]  ;;  %12904 = vst [vmem:[#allocation53_spill] sm:$0xff] %v8374_v45  ;;  %v6608_v6 = vcombine.high %v613_v26, %v617_v30  ;;  %3876 = vmatmul.mubr.bf16.gmra.mxu1 %v8374_v45  ;;  %v6607_v22 = vcombine.low %v613_v26, %v617_v30  ;;  %v8412_v4 = vpack.c.bf16 %v272_v13, %v264_v46  ;;  %v291_v45 = vld [vmem:[%s7690_s20 + $0x378] sm:$0xff] }
  0xbc   : > { %v273_v17 = vld [vmem:[%s7690_s20 + $0x2e8] sm:$0xff]  ;;  %12906 = vst [vmem:[#allocation55_spill] sm:$0xff] %v8387_v44  ;;  %4046 = vmatpush2.bf16.msra.mxu1 %v6615_v59  ;;  %6875 = vmatprep.mubr.msk.bf16.mxu1 %vm3414_vm1, %v8387_v44 }
  0xbd   : > { %3931 = vmatpush1.bf16.msra.mxu0 %v6367_v42  ;;  %v8378_v7 = vpack.c.bf16 %v273_v17, %v265_v1  ;;  %v477_v42 = vld [vmem:[%s12626_s1 + $0x348] sm:$0xff]  ;;  %4047 = vmatprep.subr.bf16.mxu1 %v6608_v6  ;;  %12907 = vst [vmem:[#allocation56_spill] sm:$0xff] %v8412_v4 }
  0xbe   : > { %3932 = vmatprep.subr.bf16.mxu0 %v6488_v14  ;;  %v481_v48 = vld [vmem:[%s12626_s1 + $0x368] sm:$0xff]  ;;  %v274_v14 = vld [vmem:[%s7690_s20 + $0x2f0] sm:$0xff] }
  0xbf   : > { %12905 = vst [vmem:[#allocation54_spill] sm:$0xff] %v8378_v7  ;;  %v605_v33 = vld [vmem:[%s12626_s1 + $0x748] sm:$0xff]  ;;  %v6472_v12 = vcombine.high %v477_v42, %v481_v48  ;;  %v6471_v6 = vcombine.low %v477_v42, %v481_v48 }
  0xc0   : > { %3763 = vmatmul.mubr.bf16.gmra.mxu0 %v8367_v8  ;;  %v609_v34 = vld [vmem:[%s12626_s1 + $0x768] sm:$0xff]  ;;  %4048 = vmatpush2.bf16.msra.mxu1 %v6607_v22 }
  0xc1   : > { %3933 = vmatpush2.bf16.msra.mxu0 %v6487_v50  ;;  %3772 = vmatprep.mubr.bf16.mxu0 %v8378_v7  ;;  %v6600_v1 = vcombine.high %v605_v33, %v609_v34  ;;  %v469_v56 = vld [vmem:[%s12626_s1 + $0x308] sm:$0xff]  ;;  %v8419_v50 = vpack.c.bf16 %v274_v14, %v266_v55  ;;  %v283_v7 = vld [vmem:[%s7690_s20 + $0x338] sm:$0xff]  ;;  %v6599_v8 = vcombine.low %v605_v33, %v609_v34  ;;  %v280_v55 = vld [vmem:[%s7690_s20 + $0x320] sm:$0xff] }
  0xc2   : > { %3934 = vmatprep.subr.bf16.mxu0 %v6480_v38  ;;  %v473_v59 = vld [vmem:[%s12626_s1 + $0x328] sm:$0xff]  ;;  %v8432_v48 = vpack.c.bf16 %v291_v45, %v283_v7  ;;  %v288_v14 = vld [vmem:[%s7690_s20 + $0x360] sm:$0xff]  ;;  %v282_v7 = vld [vmem:[%s7690_s20 + $0x330] sm:$0xff] }
  0xc3   : > { %v597_v38 = vld [vmem:[%s12626_s1 + $0x708] sm:$0xff]  ;;  %12908 = vst [vmem:[#allocation57_spill] sm:$0xff] %v8419_v50  ;;  %v6464_v44 = vcombine.high %v469_v56, %v473_v59  ;;  %4049 = vmatprep.subr.bf16.mxu1 %v6600_v1  ;;  %3886 = vmatmul.mubr.bf16.gmra.mxu1 %v8419_v50  ;;  %v6463_v22 = vcombine.low %v469_v56, %v473_v59  ;;  %v307_v50 = vld [vmem:[%s7690_s20 + $0x3f8] sm:$0xff] }
  0xc4   : > { %v601_v26 = vld [vmem:[%s12626_s1 + $0x728] sm:$0xff]  ;;  %12910 = vst [vmem:[#allocation59_spill] sm:$0xff] %v8432_v48  ;;  %4050 = vmatpush2.bf16.msra.mxu1 %v6599_v8  ;;  %6876 = vmatprep.mubr.msk.bf16.mxu1 %vm3414_vm1, %v8432_v48  ;;  %v8457_v59 = vpack.c.bf16 %v288_v14, %v280_v55 }
  0xc5   : > { %v281_v30 = vld [vmem:[%s7690_s20 + $0x328] sm:$0xff]  ;;  %3935 = vmatpush2.bf16.msra.mxu0 %v6479_v16  ;;  %v6592_v46 = vcombine.high %v597_v38, %v601_v26  ;;  %v6591_v45 = vcombine.low %v597_v38, %v601_v26 }
  0xc6   : > { %v289_v17 = vld [vmem:[%s7690_s20 + $0x368] sm:$0xff]  ;;  %3936 = vmatprep.subr.bf16.mxu0 %v6472_v12  ;;  %v290_v12 = vld [vmem:[%s7690_s20 + $0x370] sm:$0xff]  ;;  %12911 = vst [vmem:[#allocation60_spill] sm:$0xff] %v8457_v59 }
  0xc7   : > { %v8423_v13 = vpack.c.bf16 %v289_v17, %v281_v30  ;;  %v461_v16 = vld [vmem:[%s12626_s1 + $0x2c8] sm:$0xff]  ;;  %4051 = vmatprep.subr.bf16.mxu1 %v6592_v46 }
  0xc8   : > { %v465_v42 = vld [vmem:[%s12626_s1 + $0x2e8] sm:$0xff]  ;;  %3773 = vmatmul.mubr.bf16.gmra.mxu0 %v8412_v4  ;;  %4052 = vmatpush2.bf16.msra.mxu1 %v6591_v45 }
  0xc9   : > { %12909 = vst [vmem:[#allocation58_spill] sm:$0xff] %v8423_v13  ;;  %v589_v33 = vld [vmem:[%s12626_s1 + $0x6c8] sm:$0xff]  ;;  %3937 = vmatpush2.bf16.msra.mxu0 %v6471_v6  ;;  %v6456_v1 = vcombine.high %v461_v16, %v465_v42  ;;  %3782 = vmatprep.mubr.bf16.mxu0 %v8423_v13  ;;  %v8464_v6 = vpack.c.bf16 %v290_v12, %v282_v7  ;;  %v299_v13 = vld [vmem:[%s7690_s20 + $0x3b8] sm:$0xff]  ;;  %v296_v7 = vld [vmem:[%s7690_s20 + $0x3a0] sm:$0xff] }
  0xca   : > { %v593_v34 = vld [vmem:[%s12626_s1 + $0x6e8] sm:$0xff]  ;;  %3938 = vmatprep.subr.bf16.mxu0 %v6464_v44  ;;  %v6455_v46 = vcombine.low %v461_v16, %v465_v42  ;;  %v8477_v42 = vpack.c.bf16 %v307_v50, %v299_v13  ;;  %v304_v12 = vld [vmem:[%s7690_s20 + $0x3e0] sm:$0xff]  ;;  %v306_v50 = vld [vmem:[%s7690_s20 + $0x3f0] sm:$0xff] }
  0xcb   : > { %v6584_v30 = vcombine.high %v589_v33, %v593_v34  ;;  %v453_v56 = vld [vmem:[%s12626_s1 + $0x288] sm:$0xff]  ;;  %12912 = vst [vmem:[#allocation61_spill] sm:$0xff] %v8464_v6  ;;  %v6583_v4 = vcombine.low %v589_v33, %v593_v34  ;;  %3896 = vmatmul.mubr.bf16.gmra.mxu1 %v8464_v6 }
  0xcc   : > { %v457_v8 = vld [vmem:[%s12626_s1 + $0x2a8] sm:$0xff]  ;;  %12914 = vst [vmem:[#allocation63_spill] sm:$0xff] %v8477_v42  ;;  %6877 = vmatprep.mubr.msk.bf16.mxu1 %vm3414_vm1, %v8477_v42 }
  0xcd   : > { %v581_v44 = vld [vmem:[%s12626_s1 + $0x688] sm:$0xff]  ;;  %3939 = vmatpush2.bf16.msra.mxu0 %v6463_v22  ;;  %v6448_v48 = vcombine.high %v453_v56, %v457_v8  ;;  %4053 = vmatprep.subr.bf16.mxu1 %v6584_v30  ;;  %v6447_v45 = vcombine.low %v453_v56, %v457_v8  ;;  %v298_v30 = vld [vmem:[%s7690_s20 + $0x3b0] sm:$0xff] }
  0xce   : > { %v585_v38 = vld [vmem:[%s12626_s1 + $0x6a8] sm:$0xff]  ;;  %3940 = vmatprep.subr.bf16.mxu0 %v6456_v1  ;;  %4054 = vmatpush2.bf16.msra.mxu1 %v6583_v4  ;;  %v8499_v4 = vpack.c.bf16 %v304_v12, %v296_v7 }
  0xcf   : > { %v297_v26 = vld [vmem:[%s7690_s20 + $0x3a8] sm:$0xff]  ;;  %v6576_v55 = vcombine.high %v581_v44, %v585_v38  ;;  %v6575_v1 = vcombine.low %v581_v44, %v585_v38  ;;  %v8507_v44 = vpack.c.bf16 %v306_v50, %v298_v30 }
  0xd0   : > { %v305_v17 = vld [vmem:[%s7690_s20 + $0x3e8] sm:$0xff]  ;;  %3783 = vmatmul.mubr.bf16.gmra.mxu0 %v8457_v59  ;;  %12915 = vst [vmem:[#allocation64_spill] sm:$0xff] %v8499_v4 }
  0xd1   : > { %v8468_v14 = vpack.c.bf16 %v305_v17, %v297_v26  ;;  %v445_v22 = vld [vmem:[%s12626_s1 + $0x248] sm:$0xff]  ;;  %3941 = vmatpush2.bf16.msra.mxu0 %v6455_v46  ;;  %4055 = vmatprep.subr.bf16.mxu1 %v6576_v55  ;;  %12916 = vst [vmem:[#allocation65_spill] sm:$0xff] %v8507_v44 }
  0xd2   : > { %v449_v16 = vld [vmem:[%s12626_s1 + $0x268] sm:$0xff]  ;;  %3942 = vmatprep.subr.bf16.mxu0 %v6448_v48  ;;  %4056 = vmatpush2.bf16.msra.mxu1 %v6575_v1 }
  0xd3   : > { %12913 = vst [vmem:[#allocation62_spill] sm:$0xff] %v8468_v14  ;;  %v573_v33 = vld [vmem:[%s12626_s1 + $0x648] sm:$0xff]  ;;  %v6440_v13 = vcombine.high %v445_v22, %v449_v16  ;;  %3792 = vmatprep.mubr.bf16.mxu0 %v8468_v14  ;;  %v6439_v38 = vcombine.low %v445_v22, %v449_v16  ;;  %3906 = vmatmul.mubr.bf16.gmra.mxu1 %v8507_v44 }
  0xd4   : > { %v577_v34 = vld [vmem:[%s12626_s1 + $0x668] sm:$0xff]  ;;  %4061 = vmatprep.mubr.bf16.mxu1 %v7716_v63 }
  0xd5   : > { %v6568_v26 = vcombine.high %v573_v33, %v577_v34  ;;  %v437_v17 = vld [vmem:[%s12626_s1 + $0x208] sm:$0xff]  ;;  %3943 = vmatpush2.bf16.msra.mxu0 %v6447_v45  ;;  %v6567_v46 = vcombine.low %v573_v33, %v577_v34 }
  0xd6   : > { %v441_v56 = vld [vmem:[%s12626_s1 + $0x228] sm:$0xff]  ;;  %3944 = vmatprep.subr.bf16.mxu0 %v6440_v13 }
  0xd7   : > { %v565_v48 = vld [vmem:[%s12626_s1 + $0x608] sm:$0xff]  ;;  %v6432_v55 = vcombine.high %v437_v17, %v441_v56  ;;  %4057 = vmatprep.subr.bf16.mxu1 %v6568_v26  ;;  %v6431_v33 = vcombine.low %v437_v17, %v441_v56 }
  0xd8   : > { %v569_v8 = vld [vmem:[%s12626_s1 + $0x628] sm:$0xff]  ;;  %3793 = vmatmul.mubr.bf16.gmra.mxu0 %v8499_v4  ;;  %4058 = vmatpush2.bf16.msra.mxu1 %v6567_v46 }
  0xd9   : > { %v6560_v42 = vcombine.high %v565_v48, %v569_v8  ;;  %v685_v7 = vld [vmem:[%s12626_s1 + $0x9c8] sm:$0xff]  ;;  %3945 = vmatpush2.bf16.msra.mxu0 %v6439_v38  ;;  %v6559_v34 = vcombine.low %v565_v48, %v569_v8  ;;  %3948 = vmatprep.mubr.bf16.mxu0 %v7706_v58 }
  0xda   : > { %v689_v12 = vld [vmem:[%s12626_s1 + $0x9e8] sm:$0xff]  ;;  %3946 = vmatprep.subr.bf16.mxu0 %v6432_v55 }
  0xdb   : > { %v813_v22 = vld [vmem:[%s12626_s1 + $0xdc8] sm:$0xff]  ;;  %v6680_v45 = vcombine.high %v685_v7, %v689_v12  ;;  %4059 = vmatprep.subr.bf16.mxu1 %v6560_v42  ;;  %v6679_v13 = vcombine.low %v685_v7, %v689_v12 }
  0xdc   : > { %v817_v16 = vld [vmem:[%s12626_s1 + $0xde8] sm:$0xff]  ;;  %4060 = vmatpush2.bf16.msra.mxu1 %v6559_v34 }
  0xdd   : > { %v6808_v1 = vcombine.high %v813_v22, %v817_v16  ;;  %v677_v30 = vld [vmem:[%s12626_s1 + $0x988] sm:$0xff]  ;;  %3947 = vmatpush2.bf16.msra.mxu0 %v6431_v33  ;;  %v6807_v17 = vcombine.low %v813_v22, %v817_v16 }
  0xde   : > { %v681_v50 = vld [vmem:[%s12626_s1 + $0x9a8] sm:$0xff]  ;;  %4142 = vmatprep.subr.bf16.mxu0 %v6680_v45 }
  0xdf   : > { %v805_v26 = vld [vmem:[%s12626_s1 + $0xd88] sm:$0xff]  ;;  %v6672_v56 = vcombine.high %v677_v30, %v681_v50  ;;  %4255 = vmatprep.subr.bf16.mxu1 %v6808_v1  ;;  %4062 = vmatmul.mubr.bf16.vlgmr.msra.gmra.mxu1 %v7844_v25  ;;  %v6671_v7 = vcombine.low %v677_v30, %v681_v50 }
  0xe0   : > { %v809_v42 = vld [vmem:[%s12626_s1 + $0xda8] sm:$0xff]  ;;  %3949 = vmatmul.mubr.bf16.vlgmr.msra.gmra.mxu0 %v7839_v21  ;;  %4256 = vmatpush1.bf16.msra.mxu1 %v6807_v17 }
  0xe1   : > { %v669_v48 = vld [vmem:[%s12626_s1 + $0x948] sm:$0xff]  ;;  %v6800_v38 = vcombine.high %v805_v26, %v809_v42  ;;  %4143 = vmatpush1.bf16.msra.mxu0 %v6679_v13  ;;  %v6799_v12 = vcombine.low %v805_v26, %v809_v42  ;;  %3958 = vmatprep.mubr.bf16.mxu0 %v7852_v31 }
  0xe2   : > { %v673_v8 = vld [vmem:[%s12626_s1 + $0x968] sm:$0xff]  ;;  %4144 = vmatprep.subr.bf16.mxu0 %v6672_v56  ;;  %4071 = vmatprep.mubr.bf16.mxu1 %v7854_v32 }
  0xe3   : > { %v797_v46 = vld [vmem:[%s12626_s1 + $0xd48] sm:$0xff]  ;;  %v6664_v22 = vcombine.high %v669_v48, %v673_v8  ;;  %4257 = vmatprep.subr.bf16.mxu1 %v6800_v38  ;;  %v6663_v45 = vcombine.low %v669_v48, %v673_v8 }
  0xe4   : > { %v801_v55 = vld [vmem:[%s12626_s1 + $0xd68] sm:$0xff]  ;;  %4258 = vmatpush1.bf16.msra.mxu1 %v6799_v12 }
  0xe5   : > { %v6792_v16 = vcombine.high %v797_v46, %v801_v55  ;;  %v661_v33 = vld [vmem:[%s12626_s1 + $0x908] sm:$0xff]  ;;  %4145 = vmatpush1.bf16.msra.mxu0 %v6671_v7  ;;  %v6791_v50 = vcombine.low %v797_v46, %v801_v55 }
  0xe6   : > { %v665_v34 = vld [vmem:[%s12626_s1 + $0x928] sm:$0xff]  ;;  %4146 = vmatprep.subr.bf16.mxu0 %v6664_v22 }
  0xe7   : > { %v789_v1 = vld [vmem:[%s12626_s1 + $0xd08] sm:$0xff]  ;;  %v6656_v13 = vcombine.high %v661_v33, %v665_v34  ;;  %4259 = vmatprep.subr.bf16.mxu1 %v6792_v16  ;;  %4072 = vmatmul.mubr.bf16.gmra.mxu1 %v7888_v53  ;;  %v6655_v8 = vcombine.low %v661_v33, %v665_v34 }
  0xe8   : > { %v793_v30 = vld [vmem:[%s12626_s1 + $0xd28] sm:$0xff]  ;;  %3959 = vmatmul.mubr.bf16.gmra.mxu0 %v7883_v49  ;;  %4260 = vmatpush1.bf16.msra.mxu1 %v6791_v50  ;;  %v9212_v49 = vld [vmem:[%s12626_s1 + $0x930] sm:$0xff] }
  0xe9   : > { %v653_v26 = vld [vmem:[%s12626_s1 + $0x8c8] sm:$0xff]  ;;  %v6784_v17 = vcombine.high %v789_v1, %v793_v30  ;;  %4147 = vmatpush1.bf16.msra.mxu0 %v6663_v45  ;;  %v6783_v38 = vcombine.low %v789_v1, %v793_v30  ;;  %3968 = vmatprep.mubr.bf16.mxu0 %v7896_v60  ;;  %v9164_v60 = vld [vmem:[%s12626_s1 + $0xdb0] sm:$0xff]  ;;  %12977 = vst [vmem:[#allocation107_spill] sm:$0xff] %v9212_v49 }
  0xea   : > { %v657_v42 = vld [vmem:[%s12626_s1 + $0x8e8] sm:$0xff]  ;;  %4148 = vmatprep.subr.bf16.mxu0 %v6656_v13  ;;  %4081 = vmatprep.mubr.bf16.mxu1 %v7898_v61 }
  0xeb   : > { %v781_v56 = vld [vmem:[%s12626_s1 + $0xcc8] sm:$0xff]  ;;  %v6648_v46 = vcombine.high %v653_v26, %v657_v42  ;;  %4261 = vmatprep.subr.bf16.mxu1 %v6784_v17  ;;  %v6647_v22 = vcombine.low %v653_v26, %v657_v42 }
  0xec   : > { %v785_v48 = vld [vmem:[%s12626_s1 + $0xce8] sm:$0xff]  ;;  %4262 = vmatpush1.bf16.msra.mxu1 %v6783_v38 }
  0xed   : > { %v645_v55 = vld [vmem:[%s12626_s1 + $0x888] sm:$0xff]  ;;  %v6776_v12 = vcombine.high %v781_v56, %v785_v48  ;;  %4149 = vmatpush1.bf16.msra.mxu0 %v6655_v8  ;;  %v6775_v45 = vcombine.low %v781_v56, %v785_v48 }
  0xee   : > { %v649_v7 = vld [vmem:[%s12626_s1 + $0x8a8] sm:$0xff]  ;;  %4150 = vmatprep.subr.bf16.mxu0 %v6648_v46 }
  0xef   : > { %v773_v16 = vld [vmem:[%s12626_s1 + $0xc88] sm:$0xff]  ;;  %v6640_v34 = vcombine.high %v645_v55, %v649_v7  ;;  %4263 = vmatprep.subr.bf16.mxu1 %v6776_v12  ;;  %4082 = vmatmul.mubr.bf16.gmra.mxu1 %v7932_v19  ;;  %v6639_v42 = vcombine.low %v645_v55, %v649_v7 }
  0xf0   : > { %v777_v33 = vld [vmem:[%s12626_s1 + $0xca8] sm:$0xff]  ;;  %3969 = vmatmul.mubr.bf16.gmra.mxu0 %v7927_v15  ;;  %4264 = vmatpush1.bf16.msra.mxu1 %v6775_v45  ;;  %v12956_v15 = vld [vmem:[#allocation54_spill] sm:$0xff] }
  0xf1   : > { %v637_v1 = vld [vmem:[%s12626_s1 + $0x848] sm:$0xff]  ;;  %v6768_v50 = vcombine.high %v773_v16, %v777_v33  ;;  %4151 = vmatpush1.bf16.msra.mxu0 %v6647_v22  ;;  %v6767_v56 = vcombine.low %v773_v16, %v777_v33  ;;  %3978 = vmatprep.mubr.bf16.mxu0 %v7940_v27  ;;  %v486_v27 = vld [vmem:[%s12626_s1 + $0x390] sm:$0xff] }
  0xf2   : > { %v641_v30 = vld [vmem:[%s12626_s1 + $0x868] sm:$0xff]  ;;  %4152 = vmatprep.subr.bf16.mxu0 %v6640_v34  ;;  %4091 = vmatprep.mubr.bf16.mxu1 %v7942_v28 }
  0xf3   : > { %v765_v13 = vld [vmem:[%s12626_s1 + $0xc48] sm:$0xff]  ;;  %v6632_v17 = vcombine.high %v637_v1, %v641_v30  ;;  %4265 = vmatprep.subr.bf16.mxu1 %v6768_v50  ;;  %v6631_v46 = vcombine.low %v637_v1, %v641_v30 }
  0xf4   : > { %v769_v26 = vld [vmem:[%s12626_s1 + $0xc68] sm:$0xff]  ;;  %4266 = vmatpush1.bf16.msra.mxu1 %v6767_v56 }
  0xf5   : > { %v629_v48 = vld [vmem:[%s12626_s1 + $0x808] sm:$0xff]  ;;  %v6760_v38 = vcombine.high %v765_v13, %v769_v26  ;;  %4153 = vmatpush1.bf16.msra.mxu0 %v6639_v42  ;;  %v6759_v22 = vcombine.low %v765_v13, %v769_v26 }
  0xf6   : > { %v633_v8 = vld [vmem:[%s12626_s1 + $0x828] sm:$0xff]  ;;  %4154 = vmatprep.subr.bf16.mxu0 %v6632_v17 }
  0xf7   : > { %v757_v55 = vld [vmem:[%s12626_s1 + $0xc08] sm:$0xff]  ;;  %v6624_v12 = vcombine.high %v629_v48, %v633_v8  ;;  %4267 = vmatprep.subr.bf16.mxu1 %v6760_v38  ;;  %4092 = vmatmul.mubr.bf16.gmra.mxu1 %v7976_v52  ;;  %v6623_v1 = vcombine.low %v629_v48, %v633_v8 }
  0xf8   : > { %v761_v7 = vld [vmem:[%s12626_s1 + $0xc28] sm:$0xff]  ;;  %3979 = vmatmul.mubr.bf16.gmra.mxu0 %v7971_v47  ;;  %4268 = vmatpush1.bf16.msra.mxu1 %v6759_v22  ;;  %v12943_v47 = vld [vmem:[#allocation50_spill] sm:$0xff] }
  0xf9   : > { %v749_v16 = vld [vmem:[%s12626_s1 + $0xbc8] sm:$0xff]  ;;  %v6752_v34 = vcombine.high %v757_v55, %v761_v7  ;;  %4155 = vmatpush1.bf16.msra.mxu0 %v6631_v46  ;;  %v6751_v50 = vcombine.low %v757_v55, %v761_v7  ;;  %3988 = vmatprep.mubr.bf16.mxu0 %v7984_v62 }
  0xfa   : > { %v753_v33 = vld [vmem:[%s12626_s1 + $0xbe8] sm:$0xff]  ;;  %4156 = vmatprep.subr.bf16.mxu0 %v6624_v12  ;;  %4101 = vmatprep.mubr.bf16.mxu1 %v7986_v0  ;;  %v498_v0 = vld [vmem:[%s12626_s1 + $0x3f0] sm:$0xff] }
  0xfb   : > { %v869_v45 = vld [vmem:[%s12626_s1 + $0xf88] sm:$0xff]  ;;  %v6744_v30 = vcombine.high %v749_v16, %v753_v33  ;;  %4269 = vmatprep.subr.bf16.mxu1 %v6752_v34  ;;  %v6743_v56 = vcombine.low %v749_v16, %v753_v33 }
  0xfc   : > { %v741_v13 = vld [vmem:[%s12626_s1 + $0xb88] sm:$0xff]  ;;  %v6864_v42 = vcombine.high %v869_v45, %v869_v45  ;;  %v6863_v17 = vcombine.low %v869_v45, %v869_v45  ;;  %4270 = vmatpush1.bf16.msra.mxu1 %v6751_v50 }
  0xfd   : > { %v745_v26 = vld [vmem:[%s12626_s1 + $0xba8] sm:$0xff]  ;;  %4157 = vmatpush1.bf16.msra.mxu0 %v6623_v1 }
  0xfe   : > { %v861_v48 = vld [vmem:[%s12626_s1 + $0xf48] sm:$0xff]  ;;  %4158 = vmatprep.subr.bf16.mxu0 %v6744_v30  ;;  %v6736_v38 = vcombine.high %v741_v13, %v745_v26  ;;  %6878 = vmatprep.subr.msk.bf16.mxu1 %vm3439_vm0, %v6864_v42  ;;  %v3447_v46 = vsel %vm3439_vm0, %v6863_v17, 0  ;;  %v6735_v33 = vcombine.low %v741_v13, %v745_v26 }
  0xff   : > { %v865_v8 = vld [vmem:[%s12626_s1 + $0xf68] sm:$0xff]  ;;  %4102 = vmatmul.mubr.bf16.gmra.mxu1 %v8017_v24 }
 0x100   : > { %v733_v55 = vld [vmem:[%s12626_s1 + $0xb48] sm:$0xff]  ;;  %3989 = vmatmul.mubr.bf16.gmra.mxu0 %v8012_v18  ;;  %v6856_v12 = vcombine.high %v861_v48, %v865_v8  ;;  %4274 = vmatpush2.bf16.msra.mxu1 %v3447_v46  ;;  %v6855_v45 = vcombine.low %v861_v48, %v865_v8  ;;  %v494_v18 = vld [vmem:[%s12626_s1 + $0x3d0] sm:$0xff] }
 0x101   : > { %v737_v7 = vld [vmem:[%s12626_s1 + $0xb68] sm:$0xff]  ;;  %4159 = vmatpush2.bf16.msra.mxu0 %v6743_v56  ;;  %3998 = vmatprep.mubr.bf16.mxu0 %v8027_v35  ;;  %v374_v35 = vld [vmem:[%s12626_s1 + $0x10] sm:$0xff] }
 0x102   : > { %v853_v22 = vld [vmem:[%s12626_s1 + $0xf08] sm:$0xff]  ;;  %4160 = vmatprep.subr.bf16.mxu0 %v6736_v38  ;;  %v6728_v34 = vcombine.high %v733_v55, %v737_v7  ;;  %4111 = vmatprep.mubr.bf16.mxu1 %v8029_v36  ;;  %v6727_v13 = vcombine.low %v733_v55, %v737_v7 }
 0x103   : > { %v857_v16 = vld [vmem:[%s12626_s1 + $0xf28] sm:$0xff]  ;;  %4275 = vmatprep.subr.bf16.mxu1 %v6856_v12 }
 0x104   : > { %v725_v1 = vld [vmem:[%s12626_s1 + $0xb08] sm:$0xff]  ;;  %v6848_v50 = vcombine.high %v853_v22, %v857_v16  ;;  %4276 = vmatpush2.bf16.msra.mxu1 %v6855_v45  ;;  %v6847_v56 = vcombine.low %v853_v22, %v857_v16 }
 0x105   : > { %v729_v30 = vld [vmem:[%s12626_s1 + $0xb28] sm:$0xff]  ;;  %4161 = vmatpush2.bf16.msra.mxu0 %v6735_v33 }
 0x106   : > { %v845_v26 = vld [vmem:[%s12626_s1 + $0xec8] sm:$0xff]  ;;  %4162 = vmatprep.subr.bf16.mxu0 %v6728_v34  ;;  %v6720_v17 = vcombine.high %v725_v1, %v729_v30  ;;  %4277 = vmatprep.subr.bf16.mxu1 %v6848_v50  ;;  %v6719_v7 = vcombine.low %v725_v1, %v729_v30 }
 0x107   : > { %v849_v42 = vld [vmem:[%s12626_s1 + $0xee8] sm:$0xff]  ;;  %4112 = vmatmul.mubr.bf16.gmra.mxu1 %v8063_v3 }
 0x108   : > { %v717_v48 = vld [vmem:[%s12626_s1 + $0xac8] sm:$0xff]  ;;  %3999 = vmatmul.mubr.bf16.gmra.mxu0 %v8058_v57  ;;  %v6840_v38 = vcombine.high %v845_v26, %v849_v42  ;;  %4278 = vmatpush2.bf16.msra.mxu1 %v6847_v56  ;;  %v6839_v22 = vcombine.low %v845_v26, %v849_v42  ;;  %v12931_v57 = vld [vmem:[#allocation46_spill] sm:$0xff] }
 0x109   : > { %v721_v8 = vld [vmem:[%s12626_s1 + $0xae8] sm:$0xff]  ;;  %4163 = vmatpush2.bf16.msra.mxu0 %v6727_v13  ;;  %4008 = vmatprep.mubr.bf16.mxu0 %v8071_v9 }
 0x10a   : > { %v837_v46 = vld [vmem:[%s12626_s1 + $0xe88] sm:$0xff]  ;;  %4164 = vmatprep.subr.bf16.mxu0 %v6720_v17  ;;  %v6712_v12 = vcombine.high %v717_v48, %v721_v8  ;;  %4121 = vmatprep.mubr.bf16.mxu1 %v8073_v10  ;;  %v6711_v45 = vcombine.low %v717_v48, %v721_v8  ;;  %v386_v10 = vld [vmem:[%s12626_s1 + $0x70] sm:$0xff] }
 0x10b   : > { %v841_v55 = vld [vmem:[%s12626_s1 + $0xea8] sm:$0xff]  ;;  %4279 = vmatprep.subr.bf16.mxu1 %v6840_v38 }
 0x10c   : > { %v709_v16 = vld [vmem:[%s12626_s1 + $0xa88] sm:$0xff]  ;;  %v6832_v34 = vcombine.high %v837_v46, %v841_v55  ;;  %4280 = vmatpush2.bf16.msra.mxu1 %v6839_v22  ;;  %v6831_v13 = vcombine.low %v837_v46, %v841_v55 }
 0x10d   : > { %v713_v33 = vld [vmem:[%s12626_s1 + $0xaa8] sm:$0xff]  ;;  %4165 = vmatpush2.bf16.msra.mxu0 %v6719_v7 }
 0x10e   : > { %v829_v1 = vld [vmem:[%s12626_s1 + $0xe48] sm:$0xff]  ;;  %4166 = vmatprep.subr.bf16.mxu0 %v6712_v12  ;;  %v6704_v50 = vcombine.high %v709_v16, %v713_v33  ;;  %4281 = vmatprep.subr.bf16.mxu1 %v6832_v34  ;;  %v6703_v8 = vcombine.low %v709_v16, %v713_v33  ;;  %v558_v16 = vld [vmem:[%s12626_s1 + $0x5d0] sm:$0xff] }
 0x10f   : > { %v833_v30 = vld [vmem:[%s12626_s1 + $0xe68] sm:$0xff]  ;;  %4122 = vmatmul.mubr.bf16.gmra.mxu1 %v8107_v43  ;;  %v562_v33 = vld [vmem:[%s12626_s1 + $0x5f0] sm:$0xff] }
 0x110   : > { %v701_v26 = vld [vmem:[%s12626_s1 + $0xa48] sm:$0xff]  ;;  %4009 = vmatmul.mubr.bf16.gmra.mxu0 %v8102_v39  ;;  %v6824_v17 = vcombine.high %v829_v1, %v833_v30  ;;  %4282 = vmatpush2.bf16.msra.mxu1 %v6831_v13  ;;  %v6823_v46 = vcombine.low %v829_v1, %v833_v30  ;;  %v430_v1 = vld [vmem:[%s12626_s1 + $0x1d0] sm:$0xff] }
 0x111   : > { %v705_v42 = vld [vmem:[%s12626_s1 + $0xa68] sm:$0xff]  ;;  %4167 = vmatpush2.bf16.msra.mxu0 %v6711_v45  ;;  %4018 = vmatprep.mubr.bf16.mxu0 %v8115_v51  ;;  %v434_v30 = vld [vmem:[%s12626_s1 + $0x1f0] sm:$0xff] }
 0x112   : > { %v821_v56 = vld [vmem:[%s12626_s1 + $0xe08] sm:$0xff]  ;;  %4168 = vmatprep.subr.bf16.mxu0 %v6704_v50  ;;  %v6696_v38 = vcombine.high %v701_v26, %v705_v42  ;;  %4131 = vmatprep.mubr.bf16.mxu1 %v8117_v54  ;;  %v6695_v22 = vcombine.low %v701_v26, %v705_v42  ;;  %v6554_v50 = vcombine.high %v558_v16, %v562_v33  ;;  %v422_v42 = vld [vmem:[%s12626_s1 + $0x190] sm:$0xff] }
 0x113   : > { %v825_v48 = vld [vmem:[%s12626_s1 + $0xe28] sm:$0xff]  ;;  %4283 = vmatprep.subr.bf16.mxu1 %v6824_v17  ;;  %v6426_v26 = vcombine.high %v430_v1, %v434_v30  ;;  %v426_v17 = vld [vmem:[%s12626_s1 + $0x1b0] sm:$0xff] }
 0x114   : > { %v693_v55 = vld [vmem:[%s12626_s1 + $0xa08] sm:$0xff]  ;;  %v6816_v12 = vcombine.high %v821_v56, %v825_v48  ;;  %4284 = vmatpush2.bf16.msra.mxu1 %v6823_v46  ;;  %v6815_v45 = vcombine.low %v821_v56, %v825_v48  ;;  %v550_v56 = vld [vmem:[%s12626_s1 + $0x590] sm:$0xff]  ;;  %v6418_v46 = vcombine.high %v422_v42, %v426_v17 }
 0x115   : > { %v697_v7 = vld [vmem:[%s12626_s1 + $0xa28] sm:$0xff]  ;;  %4169 = vmatpush2.bf16.msra.mxu0 %v6703_v8  ;;  %v554_v48 = vld [vmem:[%s12626_s1 + $0x5b0] sm:$0xff]  ;;  %v6425_v8 = vcombine.low %v430_v1, %v434_v30 }
 0x116   : > { %4170 = vmatprep.subr.bf16.mxu0 %v6696_v38  ;;  %v6688_v34 = vcombine.high %v693_v55, %v697_v7  ;;  %4285 = vmatprep.subr.bf16.mxu1 %v6816_v12  ;;  %v6687_v13 = vcombine.low %v693_v55, %v697_v7  ;;  %v6553_v38 = vcombine.low %v558_v16, %v562_v33  ;;  %v414_v7 = vld [vmem:[%s12626_s1 + $0x150] sm:$0xff]  ;;  %v8770_v33 = vpop.f32.mrf.mxu1 }
 0x117   : > { %4132 = vmatmul.mubr.bf16.gmra.mxu1 %v8151_v29  ;;  %v6546_v55 = vcombine.high %v550_v56, %v554_v48  ;;  %v418_v12 = vld [vmem:[%s12626_s1 + $0x170] sm:$0xff]  ;;  %v6545_v30 = vcombine.low %v550_v56, %v554_v48 }
 0x118   : > { %4019 = vmatmul.mubr.bf16.gmra.mxu0 %v8146_v20  ;;  %4286 = vmatpush2.bf16.msra.mxu1 %v6815_v45  ;;  %v546_v16 = vld [vmem:[%s12626_s1 + $0x570] sm:$0xff]  ;;  %v6417_v45 = vcombine.low %v422_v42, %v426_v17  ;;  %v12919_v20 = vld [vmem:[#allocation42_spill] sm:$0xff] }
 0x119   : > { %4171 = vmatpush2.bf16.msra.mxu0 %v6695_v22  ;;  %4174 = vmatprep.mubr.bf16.mxu0 %v8159_v40  ;;  %v8761_v22 = vpop.f32.mrf.mxu0  ;;  %v410_v42 = vld [vmem:[%s12626_s1 + $0x130] sm:$0xff] }
 0x11a   : > { %4172 = vmatprep.subr.bf16.mxu0 %v6688_v34  ;;  %6879 = vmatprep.mubr.msk.bf16.mxu1 %vm3414_vm1, %v8161_v41  ;;  %v542_v34 = vld [vmem:[%s12626_s1 + $0x550] sm:$0xff] }
 0x11b   : > { %4481 = vmatprep.subr.bf16.mxu1 %v6554_v50  ;;  %v8773_v1 = vpop.f32.mrf.mxu0  ;;  %v6410_v50 = vcombine.high %v414_v7, %v418_v12  ;;  %v534_v56 = vld [vmem:[%s12626_s1 + $0x510] sm:$0xff] }
 0x11c   : > { %v538_v48 = vld [vmem:[%s12626_s1 + $0x530] sm:$0xff] }
 0x11d   : > { %4173 = vmatpush2.bf16.msra.mxu0 %v6687_v13  ;;  %v8775_v13 = vpop.f32.mrf.mxu1  ;;  %v8784_v17 = vpop.f32.mrf.mxu0  ;;  %v398_v41 = vld [vmem:[%s12626_s1 + $0xd0] sm:$0xff] }
 0x11e   : > { %4368 = vmatprep.subr.bf16.mxu0 %v6426_v26  ;;  %v6538_v26 = vcombine.high %v542_v34, %v546_v16  ;;  %v402_v40 = vld [vmem:[%s12626_s1 + $0xf0] sm:$0xff] }
 0x11f   : > { %4288 = vmatmul.mubr.bf16.vlgmr.msra.gmra.mxu1 %v8194_v11  ;;  %v390_v51 = vld [vmem:[%s12626_s1 + $0x90] sm:$0xff] }
 0x120   : > { %4175 = vmatmul.mubr.bf16.vlgmr.msra.gmra.mxu0 %v8187_v5  ;;  %4482 = vmatpush1.bf16.msra.mxu1 %v6553_v38  ;;  %v406_v5 = vld [vmem:[%s12626_s1 + $0x110] sm:$0xff]  ;;  %v6409_v38 = vcombine.low %v414_v7, %v418_v12 }
 0x121   : > { %4369 = vmatpush1.bf16.msra.mxu0 %v6425_v8  ;;  %4483 = vmatprep.subr.bf16.mxu1 %v6546_v55  ;;  %v8794_v8 = vpop.f32.mrf.mxu1  ;;  %v6537_v55 = vcombine.low %v542_v34, %v546_v16  ;;  %v526_v7 = vld [vmem:[%s12626_s1 + $0x4d0] sm:$0xff]  ;;  %v12917_v16 = vld [vmem:[#allocation41_spill] sm:$0xff] }
 0x122   : > { %4370 = vmatprep.subr.bf16.mxu0 %v6418_v46  ;;  %4184 = vmatprep.mubr.bf16.mxu0 %v8198_v23  ;;  %v8796_v46 = vpop.f32.mrf.mxu0  ;;  %v6402_v23 = vcombine.high %v406_v5, %v410_v42  ;;  %v530_v12 = vld [vmem:[%s12626_s1 + $0x4f0] sm:$0xff] }
 0x123   : > { %6880 = vmatprep.mubr.msk.bf16.mxu1 %vm3414_vm1, %v8207_v37  ;;  %v8798_v11 = vpop.f32.mrf.mxu1  ;;  %v6530_v37 = vcombine.high %v534_v56, %v538_v48  ;;  %v6522_v54 = vcombine.high %v526_v7, %v530_v12  ;;  %v382_v39 = vld [vmem:[%s12626_s1 + $0x50] sm:$0xff] }
 0x124   : > { %4484 = vmatpush1.bf16.msra.mxu1 %v6545_v30  ;;  %v6401_v30 = vcombine.low %v406_v5, %v410_v42  ;;  %v394_v5 = vld [vmem:[%s12626_s1 + $0xb0] sm:$0xff] }
 0x125   : > { %4371 = vmatpush1.bf16.msra.mxu0 %v6417_v45  ;;  %4485 = vmatprep.subr.bf16.mxu1 %v6538_v26  ;;  %v8806_v45 = vpop.f32.mrf.mxu0  ;;  %v8815_v34 = vpop.f32.mrf.mxu1  ;;  %v6529_v26 = vcombine.low %v534_v56, %v538_v48  ;;  %v6393_v48 = vcombine.low %v398_v41, %v402_v40 }
 0x126   : > { %4372 = vmatprep.subr.bf16.mxu0 %v6410_v50 }
 0x127   : > { %4298 = vmatmul.mubr.bf16.gmra.mxu1 %v12917_v16  ;;  %v8818_v50 = vpop.f32.mrf.mxu0  ;;  %v8820_v29 = vpop.f32.mrf.mxu1  ;;  %v6386_v16 = vcombine.high %v390_v51, %v394_v5 }
 0x128   : > { %4185 = vmatmul.mubr.bf16.gmra.mxu0 %v8232_v2  ;;  %4486 = vmatpush1.bf16.msra.mxu1 %v6537_v55  ;;  %v6394_v2 = vcombine.high %v398_v41, %v402_v40  ;;  %12918 = vst [vmem:[#allocation66_spill] sm:$0xff] %v8820_v29  ;;  %v12926_v40 = vld [vmem:[#allocation44_spill] sm:$0xff] }
 0x129   : > { %4373 = vmatpush1.bf16.msra.mxu0 %v6409_v38  ;;  %4487 = vmatprep.subr.bf16.mxu1 %v6530_v37  ;;  %v8829_v42 = vpop.f32.mrf.mxu0  ;;  %v12921_v38 = vld [vmem:[#allocation43_spill] sm:$0xff]  ;;  %v522_v37 = vld [vmem:[%s12626_s1 + $0x4b0] sm:$0xff]  ;;  %v8839_v56 = vpop.f32.mrf.mxu1 }
 0x12a   : > { %4374 = vmatprep.subr.bf16.mxu0 %v6402_v23  ;;  %4194 = vmatprep.mubr.bf16.mxu0 %v12919_v20  ;;  %12920 = vst [vmem:[#allocation67_spill] sm:$0xff] %v8829_v42  ;;  %v518_v23 = vld [vmem:[%s12626_s1 + $0x490] sm:$0xff]  ;;  %12922 = vst [vmem:[#allocation68_spill] sm:$0xff] %v8839_v56  ;;  %v6521_v20 = vcombine.low %v526_v7, %v530_v12  ;;  %v12928_v7 = vld [vmem:[#allocation45_spill] sm:$0xff]  ;;  %v6385_v12 = vcombine.low %v390_v51, %v394_v5 }
 0x12b   : > { %6881 = vmatprep.mubr.msk.bf16.mxu1 %vm3414_vm1, %v12921_v38  ;;  %v8841_v55 = vpop.f32.mrf.mxu0  ;;  %v8843_v43 = vpop.f32.mrf.mxu1  ;;  %v6514_v38 = vcombine.high %v518_v23, %v522_v37  ;;  %v510_v41 = vld [vmem:[%s12626_s1 + $0x450] sm:$0xff]  ;;  %v6513_v9 = vcombine.low %v518_v23, %v522_v37  ;;  %v12933_v5 = vld [vmem:[#allocation47_spill] sm:$0xff]  ;;  %v6377_v37 = vcombine.low %v382_v39, %v386_v10 }
 0x12c   : > { %4488 = vmatpush1.bf16.msra.mxu1 %v6529_v26  ;;  %12923 = vst [vmem:[#allocation69_spill] sm:$0xff] %v8841_v55  ;;  %12924 = vst [vmem:[#allocation70_spill] sm:$0xff] %v8843_v43  ;;  %v378_v51 = vld [vmem:[%s12626_s1 + $0x30] sm:$0xff] }
 0x12d   : > { %4375 = vmatpush1.bf16.msra.mxu0 %v6401_v30  ;;  %4489 = vmatprep.subr.bf16.mxu1 %v6522_v54  ;;  %v8851_v30 = vpop.f32.mrf.mxu0  ;;  %v514_v54 = vld [vmem:[%s12626_s1 + $0x470] sm:$0xff] }
 0x12e   : > { %4376 = vmatprep.subr.bf16.mxu0 %v6394_v2  ;;  %12925 = vst [vmem:[#allocation71_spill] sm:$0xff] %v8851_v30  ;;  %v8860_v2 = vpop.f32.mrf.mxu1  ;;  %v6506_v36 = vcombine.high %v510_v41, %v514_v54  ;;  %v9139_v43 = vld [vmem:[%s12626_s1 + $0x990] sm:$0xff] }
 0x12f   : > { %12927 = vst [vmem:[#allocation72_spill] sm:$0xff] %v8860_v2  ;;  %4308 = vmatmul.mubr.bf16.gmra.mxu1 %v12928_v7  ;;  %v8863_v26 = vpop.f32.mrf.mxu0  ;;  %v6370_v7 = vcombine.high %v374_v35, %v378_v51  ;;  %v9187_v56 = vld [vmem:[%s12626_s1 + $0xd50] sm:$0xff] }
 0x130   : > { %4195 = vmatmul.mubr.bf16.gmra.mxu0 %v12926_v40  ;;  %4490 = vmatpush1.bf16.msra.mxu1 %v6521_v20  ;;  %12929 = vst [vmem:[#allocation73_spill] sm:$0xff] %v8863_v26  ;;  %v6378_v40 = vcombine.high %v382_v39, %v386_v10  ;;  %v8865_v3 = vpop.f32.mrf.mxu1  ;;  %v622_v10 = vld [vmem:[%s12626_s1 + $0x7d0] sm:$0xff]  ;;  %12973 = vst [vmem:[#allocation103_spill] sm:$0xff] %v9187_v56 }
 0x131   : > { %4377 = vmatpush1.bf16.msra.mxu0 %v6393_v48  ;;  %12930 = vst [vmem:[#allocation74_spill] sm:$0xff] %v8865_v3  ;;  %4491 = vmatprep.subr.bf16.mxu1 %v6514_v38  ;;  %v8874_v20 = vpop.f32.mrf.mxu0  ;;  %v506_v38 = vld [vmem:[%s12626_s1 + $0x430] sm:$0xff] }
 0x132   : > { %4378 = vmatprep.subr.bf16.mxu0 %v6386_v16  ;;  %4204 = vmatprep.mubr.bf16.mxu0 %v12931_v57  ;;  %12932 = vst [vmem:[#allocation75_spill] sm:$0xff] %v8874_v20  ;;  %v502_v16 = vld [vmem:[%s12626_s1 + $0x410] sm:$0xff]  ;;  %v8884_v23 = vpop.f32.mrf.mxu1  ;;  %v6505_v57 = vcombine.low %v510_v41, %v514_v54  ;;  %v6369_v41 = vcombine.low %v374_v35, %v378_v51  ;;  %v12945_v51 = vld [vmem:[#allocation51_spill] sm:$0xff] }
 0x133   : > { %6882 = vmatprep.mubr.msk.bf16.mxu1 %vm3414_vm1, %v12933_v5  ;;  %12934 = vst [vmem:[#allocation76_spill] sm:$0xff] %v8884_v23  ;;  %v8886_v48 = vpop.f32.mrf.mxu0  ;;  %v6498_v5 = vcombine.high %v502_v16, %v506_v38  ;;  %v6497_v62 = vcombine.low %v502_v16, %v506_v38  ;;  %v490_v35 = vld [vmem:[%s12626_s1 + $0x3b0] sm:$0xff]  ;;  %v6489_v38 = vcombine.low %v494_v18, %v498_v0 }
 0x134   : > { %4492 = vmatpush1.bf16.msra.mxu1 %v6513_v9  ;;  %12935 = vst [vmem:[#allocation77_spill] sm:$0xff] %v8886_v48  ;;  %v8888_v24 = vpop.f32.mrf.mxu1  ;;  %v12938_v9 = vld [vmem:[#allocation48_spill] sm:$0xff] }
 0x135   : > { %4379 = vmatpush1.bf16.msra.mxu0 %v6385_v12  ;;  %12936 = vst [vmem:[#allocation78_spill] sm:$0xff] %v8888_v24  ;;  %4493 = vmatprep.subr.bf16.mxu1 %v6506_v36  ;;  %v8896_v12 = vpop.f32.mrf.mxu0  ;;  %v626_v36 = vld [vmem:[%s12626_s1 + $0x7f0] sm:$0xff] }
 0x136   : > { %4380 = vmatprep.subr.bf16.mxu0 %v6378_v40  ;;  %12937 = vst [vmem:[#allocation79_spill] sm:$0xff] %v8896_v12  ;;  %v8905_v39 = vpop.f32.mrf.mxu1  ;;  %v12940_v40 = vld [vmem:[#allocation49_spill] sm:$0xff]  ;;  %v6618_v28 = vcombine.high %v622_v10, %v626_v36  ;;  %v478_v24 = vld [vmem:[%s12626_s1 + $0x350] sm:$0xff] }
 0x137   : > { %12939 = vst [vmem:[#allocation80_spill] sm:$0xff] %v8905_v39  ;;  %4318 = vmatmul.mubr.bf16.gmra.mxu1 %v12940_v40  ;;  %v8908_v54 = vpop.f32.mrf.mxu0  ;;  %v6617_v40 = vcombine.low %v622_v10, %v626_v36  ;;  %v12952_v10 = vld [vmem:[#allocation53_spill] sm:$0xff]  ;;  %v6481_v36 = vcombine.low %v486_v27, %v490_v35  ;;  %v9065_v23 = vld [vmem:[%s12626_s1 + $0x670] sm:$0xff] }
 0x138   : > { %4205 = vmatmul.mubr.bf16.gmra.mxu0 %v12938_v9  ;;  %4494 = vmatpush1.bf16.msra.mxu1 %v6505_v57  ;;  %12941 = vst [vmem:[#allocation81_spill] sm:$0xff] %v8908_v54  ;;  %v6490_v9 = vcombine.high %v494_v18, %v498_v0  ;;  %v8910_v52 = vpop.f32.mrf.mxu1  ;;  %v606_v18 = vld [vmem:[%s12626_s1 + $0x750] sm:$0xff] }
 0x139   : > { %4381 = vmatpush1.bf16.msra.mxu0 %v6377_v37  ;;  %12942 = vst [vmem:[#allocation82_spill] sm:$0xff] %v8910_v52  ;;  %4495 = vmatprep.subr.bf16.mxu1 %v6498_v5  ;;  %v8919_v57 = vpop.f32.mrf.mxu0  ;;  %v618_v5 = vld [vmem:[%s12626_s1 + $0x7b0] sm:$0xff]  ;;  %v874_v37 = vlaneseq  ;;  %v6482_v52 = vcombine.high %v486_v27, %v490_v35 }
 0x13a   : > { %4382 = vmatprep.subr.bf16.mxu0 %v6370_v7  ;;  %4214 = vmatprep.mubr.bf16.mxu0 %v12943_v47  ;;  %12944 = vst [vmem:[#allocation83_spill] sm:$0xff] %v8919_v57  ;;  %v614_v7 = vld [vmem:[%s12626_s1 + $0x790] sm:$0xff]  ;;  %v8929_v16 = vpop.f32.mrf.mxu1 }
 0x13b   : > { %6883 = vmatprep.mubr.msk.bf16.mxu1 %vm3414_vm1, %v12945_v51  ;;  %12946 = vst [vmem:[#allocation84_spill] sm:$0xff] %v8929_v16  ;;  %v8931_v47 = vpop.f32.mrf.mxu0  ;;  %v6610_v39 = vcombine.high %v614_v7, %v618_v5  ;;  %v8968_v27 = vld [vmem:[%s12626_s1 + $0x330] sm:$0xff] }
 0x13c   : > { %4496 = vmatpush1.bf16.msra.mxu1 %v6497_v62  ;;  %12947 = vst [vmem:[#allocation85_spill] sm:$0xff] %v8931_v47  ;;  %v8933_v51 = vpop.f32.mrf.mxu1  ;;  %v12950_v62 = vld [vmem:[#allocation52_spill] sm:$0xff] }
 0x13d   : > { %4383 = vmatpush1.bf16.msra.mxu0 %v6369_v41  ;;  %12948 = vst [vmem:[#allocation86_spill] sm:$0xff] %v8933_v51  ;;  %4497 = vmatprep.subr.bf16.mxu1 %v6618_v28  ;;  %v482_v41 = vld [vmem:[%s12626_s1 + $0x370] sm:$0xff]  ;;  %v8941_v0 = vpop.f32.mrf.mxu0  ;;  %v8953_v51 = vshrl.u32 %v874_v37, 7 }
 0x13e   : > { %4384 = vmatprep.subr.bf16.mxu0 %v6490_v9  ;;  %12949 = vst [vmem:[#allocation87_spill] sm:$0xff] %v8941_v0  ;;  %v610_v28 = vld [vmem:[%s12626_s1 + $0x770] sm:$0xff]  ;;  %v8950_v9 = vpop.f32.mrf.mxu1  ;;  %v6474_v0 = vcombine.high %v478_v24, %v482_v41 }
 0x13f   : > { %12951 = vst [vmem:[#allocation88_spill] sm:$0xff] %v8950_v9  ;;  %4328 = vmatmul.mubr.bf16.gmra.mxu1 %v12952_v10  ;;  %12953 = vst [vmem:[#allocation89_spill] sm:$0xff] %v8953_v51  ;;  %v8955_v16 = vpop.f32.mrf.mxu0  ;;  %v6602_v47 = vcombine.high %v606_v18, %v610_v28  ;;  %v8963_v10 = vld [vmem:[%s12626_s1 + $0x310] sm:$0xff] }
 0x140   : > { %4215 = vmatmul.mubr.bf16.gmra.mxu0 %v12950_v62  ;;  %4498 = vmatpush2.bf16.msra.mxu1 %v6617_v40  ;;  %12954 = vst [vmem:[#allocation90_spill] sm:$0xff] %v8955_v16  ;;  %v6609_v62 = vcombine.low %v614_v7, %v618_v5  ;;  %v8957_v19 = vpop.f32.mrf.mxu1  ;;  %v8982_v35 = vld [vmem:[%s12626_s1 + $0x730] sm:$0xff]  ;;  %v872_v7 = vld [vmem:[%s12627_s2] sm:$0xff] }
 0x141   : > { %4385 = vmatpush2.bf16.msra.mxu0 %v6489_v38  ;;  %12955 = vst [vmem:[#allocation91_spill] sm:$0xff] %v8957_v19  ;;  %4499 = vmatprep.subr.bf16.mxu1 %v6610_v39  ;;  %v8970_v40 = vpop.f32.mrf.mxu0  ;;  %v8977_v39 = vld [vmem:[%s12626_s1 + $0x710] sm:$0xff]  ;;  %v6473_v38 = vcombine.low %v478_v24, %v482_v41  ;;  %v6601_v19 = vcombine.low %v606_v18, %v610_v28 }
 0x142   : > { %4386 = vmatprep.subr.bf16.mxu0 %v6482_v52  ;;  %4224 = vmatprep.mubr.bf16.mxu0 %v12956_v15  ;;  %12957 = vst [vmem:[#allocation92_spill] sm:$0xff] %v8970_v40  ;;  %v12958_v52 = vld [vmem:[#allocation55_spill] sm:$0xff]  ;;  %v8987_v5 = vpop.f32.mrf.mxu1  ;;  %v8992_v37 = vld [vmem:[%s12626_s1 + $0x2d0] sm:$0xff]  ;;  %v6466_v40 = vcombine.high %v8963_v10, %v8968_v27  ;;  %v6594_v18 = vcombine.high %v8977_v39, %v8982_v35 }
 0x143   : > { %6884 = vmatprep.mubr.msk.bf16.mxu1 %vm3414_vm1, %v12958_v52  ;;  %12959 = vst [vmem:[#allocation93_spill] sm:$0xff] %v8987_v5  ;;  %v876_v52 = vsub.s32 0, %v8953_v51  ;;  %v8995_v15 = vpop.f32.mrf.mxu0  ;;  %v9007_v24 = vld [vmem:[%s12626_s1 + $0x6d0] sm:$0xff] }
 0x144   : > { %4500 = vmatpush2.bf16.msra.mxu1 %v6609_v62  ;;  %12960 = vst [vmem:[#allocation94_spill] sm:$0xff] %v8995_v15  ;;  %v9012_v41 = vld [vmem:[%s12626_s1 + $0x6f0] sm:$0xff]  ;;  %v9015_v62 = vpop.f32.mrf.mxu1 }
 0x145   : > { %4387 = vmatpush2.bf16.msra.mxu0 %v6481_v36  ;;  %v9002_v36 = vld [vmem:[%s12626_s1 + $0x2f0] sm:$0xff]  ;;  %12961 = vst [vmem:[#allocation95_spill] sm:$0xff] %v9015_v62  ;;  %4501 = vmatprep.subr.bf16.mxu1 %v6602_v47  ;;  %v9039_v62 = vpop.f32.mrf.mxu0  ;;  %v6586_v3 = vcombine.high %v9007_v24, %v9012_v41 }
 0x146   : > { %4388 = vmatprep.subr.bf16.mxu0 %v6474_v0  ;;  %v880_v0 = vsub.s32 1, %v8953_v51  ;;  %v9022_v28 = vld [vmem:[%s12626_s1 + $0x290] sm:$0xff]  ;;  %12962 = vst [vmem:[#allocation96_spill] sm:$0xff] %v9039_v62  ;;  %v9057_v54 = vpop.f32.mrf.mxu1  ;;  %v12965_v62 = vld [vmem:[#allocation57_spill] sm:$0xff] }
 0x147   : > { %v9027_v5 = vld [vmem:[%s12626_s1 + $0x2b0] sm:$0xff]  ;;  %12964 = vst [vmem:[#allocation97_spill] sm:$0xff] %v9057_v54  ;;  %4338 = vmatmul.mubr.bf16.gmra.mxu1 %v12965_v62  ;;  %v9077_v62 = vrot.slane %v872_v7, %v876_v52 }
 0x148   : > { %v9032_v51 = vld [vmem:[%s12626_s1 + $0x690] sm:$0xff]  ;;  %4502 = vmatpush2.bf16.msra.mxu1 %v6601_v19 }
 0x149   : > { %v9037_v47 = vld [vmem:[%s12626_s1 + $0x6b0] sm:$0xff]  ;;  %4389 = vmatpush2.bf16.msra.mxu0 %v6473_v38  ;;  %v9079_v38 = vpop.f32.mrf.mxu0  ;;  %4503 = vmatprep.subr.bf16.mxu1 %v6594_v18 }
 0x14a   : > { %v12963_v15 = vld [vmem:[#allocation56_spill] sm:$0xff]  ;;  %12966 = vst [vmem:[#allocation98_spill] sm:$0xff] %v9079_v38  ;;  %4390 = vmatprep.subr.bf16.mxu0 %v6466_v40  ;;  %v9100_v40 = vrot.slane %v872_v7, %v880_v0  ;;  %v6457_v38 = vcombine.low %v8992_v37, %v9002_v36  ;;  %v6578_v2 = vcombine.high %v9032_v51, %v9037_v47 }
 0x14b   : > { %4225 = vmatmul.mubr.bf16.gmra.mxu0 %v12963_v15  ;;  %v9045_v9 = vld [vmem:[%s12626_s1 + $0x250] sm:$0xff]  ;;  %v6465_v15 = vcombine.low %v8963_v10, %v8968_v27  ;;  %v6593_v10 = vcombine.low %v8977_v39, %v8982_v35  ;;  %v6458_v27 = vcombine.high %v8992_v37, %v9002_v36  ;;  %v9102_v39 = vpop.f32.mrf.mxu1  ;;  %v12968_v35 = vld [vmem:[#allocation58_spill] sm:$0xff]  ;;  %v9124_v18 = vpop.f32.mrf.mxu0  ;;  %v12970_v37 = vld [vmem:[#allocation59_spill] sm:$0xff]  ;;  %v6585_v36 = vcombine.low %v9007_v24, %v9012_v41 }
 0x14c   : > { %v9050_v16 = vld [vmem:[%s12626_s1 + $0x270] sm:$0xff]  ;;  %12967 = vst [vmem:[#allocation99_spill] sm:$0xff] %v9102_v39  ;;  %4234 = vmatprep.mubr.bf16.mxu0 %v12968_v35  ;;  %12969 = vst [vmem:[#allocation100_spill] sm:$0xff] %v9124_v18  ;;  %6885 = vmatprep.mubr.msk.bf16.mxu1 %vm3414_vm1, %v12970_v37  ;;  %v6450_v39 = vcombine.high %v9022_v28, %v9027_v5 }
 0x14d   : > { %v9055_v57 = vld [vmem:[%s12626_s1 + $0x650] sm:$0xff]  ;;  %v9151_v41 = vpop.f32.mrf.mxu1  ;;  %4391 = vmatpush2.bf16.msra.mxu0 %v6465_v15  ;;  %4504 = vmatpush2.bf16.msra.mxu1 %v6593_v10  ;;  %v9176_v18 = vpop.f32.mrf.mxu0  ;;  %v12997_v49 = vcombine.high %v9045_v9, %v9050_v16 }
 0x14e   : > { %v9070_v12 = vld [vmem:[%s12626_s1 + $0x210] sm:$0xff]  ;;  %12971 = vst [vmem:[#allocation101_spill] sm:$0xff] %v9151_v41  ;;  %12972 = vst [vmem:[#allocation102_spill] sm:$0xff] %v9176_v18  ;;  %4392 = vmatprep.subr.bf16.mxu0 %v6458_v27  ;;  %4505 = vmatprep.subr.bf16.mxu1 %v6586_v3 }
 0x14f   : > { %v9075_v54 = vld [vmem:[%s12626_s1 + $0x230] sm:$0xff]  ;;  %v9199_v61 = vpop.f32.mrf.mxu1  ;;  %v9224_v26 = vpop.f32.mrf.mxu0  ;;  %4348 = vmatmul.mubr.bf16.gmra.mxu1 %v8464_v6  ;;  %v12989_v6 = vld [vmem:[#allocation63_spill] sm:$0xff] }
 0x150   : > { %v9088_v48 = vld [vmem:[%s12626_s1 + $0x610] sm:$0xff]  ;;  %12976 = vst [vmem:[#allocation106_spill] sm:$0xff] %v9199_v61  ;;  %12978 = vst [vmem:[#allocation108_spill] sm:$0xff] %v9224_v26  ;;  %6886 = vmatprep.mubr.msk.bf16.mxu1 %vm3414_vm1, %v12989_v6 }
 0x151   : > { %v9093_v52 = vld [vmem:[%s12626_s1 + $0x630] sm:$0xff]  ;;  %v9250_v53 = vpop.f32.mrf.mxu1  ;;  %4393 = vmatpush2.bf16.msra.mxu0 %v6457_v38  ;;  %4506 = vmatpush2.bf16.msra.mxu1 %v6585_v36  ;;  %v9274_v61 = vpop.f32.mrf.mxu0 }
 0x152   : > { %v9098_v19 = vld [vmem:[%s12626_s1 + $0x9d0] sm:$0xff]  ;;  %12981 = vst [vmem:[#allocation111_spill] sm:$0xff] %v9250_v53  ;;  %12983 = vst [vmem:[#allocation113_spill] sm:$0xff] %v9274_v61  ;;  %4394 = vmatprep.subr.bf16.mxu0 %v6450_v39  ;;  %4507 = vmatprep.subr.bf16.mxu1 %v6578_v2 }
 0x153   : > { %v9112_v20 = vld [vmem:[%s12626_s1 + $0x9f0] sm:$0xff]  ;;  %4235 = vmatmul.mubr.bf16.gmra.mxu0 %v8457_v59  ;;  %v9297_v26 = vpop.f32.mrf.mxu1 }
 0x154   : > { %v9117_v7 = vld [vmem:[%s12626_s1 + $0xdd0] sm:$0xff]  ;;  %12985 = vst [vmem:[#allocation115_spill] sm:$0xff] %v9297_v26  ;;  %4244 = vmatprep.mubr.bf16.mxu0 %v8468_v14  ;;  %v9321_v14 = vpop.f32.mrf.mxu0 }
 0x155   : > { %v9122_v0 = vld [vmem:[%s12626_s1 + $0xdf0] sm:$0xff]  ;;  %12988 = vst [vmem:[#allocation118_spill] sm:$0xff] %v9321_v14  ;;  %v9348_v61 = vpop.f32.mrf.mxu1  ;;  %v12999_v14 = vcombine.high %v9055_v57, %v9065_v23 }
 0x156   : > { %v9144_v37 = vld [vmem:[%s12626_s1 + $0x9b0] sm:$0xff]  ;;  %12992 = vst [vmem:[#allocation121_spill] sm:$0xff] %v9348_v61 }
 0x157   : > { %v9149_v24 = vld [vmem:[%s12626_s1 + $0xd90] sm:$0xff]  ;;  %4358 = vmatmul.mubr.bf16.gmra.mxu1 %v8507_v44 }
 0x158   : > { %v9169_v15 = vld [vmem:[%s12626_s1 + $0x950] sm:$0xff]  ;;  %4513 = vmatprep.mubr.bf16.mxu1 %v7716_v63 }
 0x159   : > { %v9174_v35 = vld [vmem:[%s12626_s1 + $0x970] sm:$0xff] }
 0x15a   : > { %v9192_v10 = vld [vmem:[%s12626_s1 + $0xd70] sm:$0xff] }
 0x15b   : > { %12974 = vst [vmem:[#allocation104_spill] sm:$0xff] %v9192_v10  ;;  %v9197_v27 = vld [vmem:[%s12626_s1 + $0x910] sm:$0xff]  ;;  %4245 = vmatmul.mubr.bf16.gmra.mxu0 %v8499_v4 }
 0x15c   : > { %12975 = vst [vmem:[#allocation105_spill] sm:$0xff] %v9197_v27  ;;  %v9217_v3 = vld [vmem:[%s12626_s1 + $0xd10] sm:$0xff]  ;;  %v12993_v27 = vcombine.low %v9022_v28, %v9027_v5  ;;  %4400 = vmatprep.mubr.bf16.mxu0 %v7706_v58  ;;  %v13016_v58 = vcombine.low %v9070_v12, %v9075_v54 }
 0x15d   : > { %v9222_v41 = vld [vmem:[%s12626_s1 + $0xd30] sm:$0xff] }
 0x15e   : > { %v9238_v55 = vld [vmem:[%s12626_s1 + $0x8d0] sm:$0xff]  ;;  %4395 = vmatpush2.bf16.msra.mxu0 %v12993_v27  ;;  %v12995_v27 = vcombine.low %v9032_v51, %v9037_v47 }
 0x15f   : > { %12979 = vst [vmem:[#allocation109_spill] sm:$0xff] %v9238_v55  ;;  %v9243_v59 = vld [vmem:[%s12626_s1 + $0x8f0] sm:$0xff]  ;;  %v9379_v55 = vpop.f32.mrf.mxu0  ;;  %4396 = vmatprep.subr.bf16.mxu0 %v12997_v49 }
 0x160   : > { %12980 = vst [vmem:[#allocation110_spill] sm:$0xff] %v9243_v59  ;;  %v9248_v18 = vld [vmem:[%s12626_s1 + $0x890] sm:$0xff]  ;;  %4508 = vmatpush2.bf16.msra.mxu1 %v12995_v27  ;;  %12996 = vst [vmem:[#allocation123_spill] sm:$0xff] %v9379_v55  ;;  %v9405_v27 = vpop.f32.mrf.mxu1 }
 0x161   : > { %v9262_v29 = vld [vmem:[%s12626_s1 + $0x8b0] sm:$0xff]  ;;  %12998 = vst [vmem:[#allocation124_spill] sm:$0xff] %v9405_v27  ;;  %4509 = vmatprep.subr.bf16.mxu1 %v12999_v14 }
 0x162   : > { %12982 = vst [vmem:[#allocation112_spill] sm:$0xff] %v9262_v29  ;;  %v9267_v53 = vld [vmem:[%s12626_s1 + $0xcd0] sm:$0xff]  ;;  %v9433_v29 = vpop.f32.mrf.mxu0 }
 0x163   : > { %v9272_v38 = vld [vmem:[%s12626_s1 + $0xcf0] sm:$0xff]  ;;  %13002 = vst [vmem:[#allocation127_spill] sm:$0xff] %v9433_v29 }
 0x164   : > { %v9285_v42 = vld [vmem:[%s12626_s1 + $0x850] sm:$0xff] }
 0x165   : > { %v9290_v36 = vld [vmem:[%s12626_s1 + $0x870] sm:$0xff] }
 0x166   : > { %12984 = vst [vmem:[#allocation114_spill] sm:$0xff] %v9290_v36  ;;  %v9295_v39 = vld [vmem:[%s12626_s1 + $0xc90] sm:$0xff]  ;;  %v9459_v36 = vpop.f32.mrf.mxu1 }
 0x167   : > { %v9309_v10 = vld [vmem:[%s12626_s1 + $0xcb0] sm:$0xff]  ;;  %13005 = vst [vmem:[#allocation130_spill] sm:$0xff] %v9459_v36  ;;  %v13013_v36 = vcombine.high %v9088_v48, %v9093_v52 }
 0x168   : > { %v9314_v2 = vld [vmem:[%s12626_s1 + $0x810] sm:$0xff] }
 0x169   : > { %12986 = vst [vmem:[#allocation116_spill] sm:$0xff] %v9314_v2  ;;  %v9319_v30 = vld [vmem:[%s12626_s1 + $0x830] sm:$0xff]  ;;  %v13010_v2 = vcombine.high %v9070_v12, %v9075_v54  ;;  %v13018_v12 = vcombine.low %v9088_v48, %v9093_v52  ;;  %v3503_v48 = vadd.f32 %v8784_v17, %v9077_v62 }
 0x16a   : > { %12987 = vst [vmem:[#allocation117_spill] sm:$0xff] %v9319_v30  ;;  %v9336_v56 = vld [vmem:[%s12626_s1 + $0xc50] sm:$0xff]  ;;  %v13006_v30 = vcombine.low %v9045_v9, %v9050_v16  ;;  %v13008_v16 = vcombine.low %v9055_v57, %v9065_v23  ;;  %v9489_v9 = vpop.f32.mrf.mxu0 }
 0x16b   : > { %v9341_v6 = vld [vmem:[%s12626_s1 + $0xc70] sm:$0xff]  ;;  %13009 = vst [vmem:[#allocation132_spill] sm:$0xff] %v9489_v9  ;;  %v3501_v9 = vadd.f32 %v8773_v1, %v9100_v40 }
 0x16c   : > { %12990 = vst [vmem:[#allocation119_spill] sm:$0xff] %v9341_v6  ;;  %v9346_v26 = vld [vmem:[%s12626_s1 + $0xbd0] sm:$0xff]  ;;  %4397 = vmatpush2.bf16.msra.mxu0 %v13006_v30  ;;  %4510 = vmatpush2.bf16.msra.mxu1 %v13008_v16  ;;  %v3499_v16 = vadd.f32 %v8761_v22, %v9077_v62 }
 0x16d   : > { %12991 = vst [vmem:[#allocation120_spill] sm:$0xff] %v9346_v26  ;;  %v9364_v61 = vld [vmem:[%s12626_s1 + $0xbf0] sm:$0xff]  ;;  %4398 = vmatprep.subr.bf16.mxu0 %v13010_v2  ;;  %4511 = vmatprep.subr.bf16.mxu1 %v13013_v36 }
 0x16e   : > { %12994 = vst [vmem:[#allocation122_spill] sm:$0xff] %v9364_v61  ;;  %v9369_v5 = vld [vmem:[%s12626_s1 + $0xc10] sm:$0xff]  ;;  %v9517_v61 = vpop.f32.mrf.mxu1 }
 0x16f   : > { %v9374_v28 = vld [vmem:[%s12626_s1 + $0xc30] sm:$0xff]  ;;  %13012 = vst [vmem:[#allocation134_spill] sm:$0xff] %v9517_v61  ;;  %v9537_v61 = vpop.f32.mrf.mxu0 }
 0x170   : > { %v9393_v51 = vld [vmem:[%s12626_s1 + $0xb90] sm:$0xff]  ;;  %13014 = vst [vmem:[#allocation135_spill] sm:$0xff] %v9537_v61  ;;  %v9565_v29 = vpop.f32.mrf.mxu1  ;;  %4399 = vmatpush2.bf16.msra.mxu0 %v13016_v58  ;;  %4512 = vmatpush2.bf16.msra.mxu1 %v13018_v12  ;;  %v13020_v61 = vcombine.high %v9098_v19, %v9112_v20  ;;  %v13022_v12 = vcombine.high %v9117_v7, %v9122_v0 }
 0x171   : > { %v9398_v47 = vld [vmem:[%s12626_s1 + $0xbb0] sm:$0xff]  ;;  %13015 = vst [vmem:[#allocation136_spill] sm:$0xff] %v9565_v29  ;;  %v9594_v54 = vpop.f32.mrf.mxu0 }
 0x172   : > { %v9403_v49 = vld [vmem:[%s12626_s1 + $0xf90] sm:$0xff]  ;;  %13019 = vst [vmem:[#allocation138_spill] sm:$0xff] %v9594_v54  ;;  %4594 = vmatprep.subr.bf16.mxu0 %v13020_v61  ;;  %v9608_v52 = vpop.f32.mrf.mxu1  ;;  %4707 = vmatprep.subr.bf16.mxu1 %v13022_v12  ;;  %v13025_v61 = vcombine.low %v9098_v19, %v9112_v20  ;;  %v13028_v19 = vcombine.low %v9117_v7, %v9122_v0 }
 0x173   : > { %v9421_v27 = vld [vmem:[%s12626_s1 + $0xb50] sm:$0xff]  ;;  %13021 = vst [vmem:[#allocation139_spill] sm:$0xff] %v9608_v52  ;;  %v3724_v17 = vpop.f32.mrf.mxu0  ;;  %4401 = vmatmul.mubr.bf16.vlgmr.msra.gmra.mxu0 %v7839_v21  ;;  %v3614_v52 = vadd.f32 %v8775_v13, %v3501_v9  ;;  %v3505_v21 = vadd.f32 %v8796_v46, %v9100_v40  ;;  %4514 = vmatmul.mubr.bf16.vlgmr.msra.gmra.mxu1 %v7844_v25  ;;  %v9656_v13 = vld [vmem:[%s12626_s1 + $0x1d8] sm:$0xff] }
 0x174   : > { %13000 = vst [vmem:[#allocation125_spill] sm:$0xff] %v9421_v27  ;;  %v9426_v14 = vld [vmem:[%s12626_s1 + $0xb70] sm:$0xff]  ;;  %v3837_v54 = vpop.f32.mrf.mxu1  ;;  %4595 = vmatpush1.bf16.msra.mxu0 %v13025_v61  ;;  %13026 = vst [vmem:[#allocation142_spill] sm:$0xff] %v9656_v13  ;;  %v9661_v46 = vld [vmem:[%s12626_s1 + $0x1f8] sm:$0xff]  ;;  %v3509_v9 = vadd.f32 %v8806_v45, %v9077_v62  ;;  %4708 = vmatpush1.bf16.msra.mxu1 %v13028_v19  ;;  %v3511_v7 = vadd.f32 %v8818_v50, %v9100_v40 }
 0x175   : > { %13001 = vst [vmem:[#allocation126_spill] sm:$0xff] %v9426_v14  ;;  %v9431_v59 = vld [vmem:[%s12626_s1 + $0xf50] sm:$0xff]  ;;  %13027 = vst [vmem:[#allocation143_spill] sm:$0xff] %v9661_v46  ;;  %v3726_v20 = vpop.f32.mrf.mxu0  ;;  %4410 = vmatprep.mubr.bf16.mxu0 %v7852_v31  ;;  %4523 = vmatprep.mubr.bf16.mxu1 %v7854_v32  ;;  %v13030_v19 = vcombine.high %v9149_v24, %v9164_v60  ;;  %v9701_v61 = vld [vmem:[%s12626_s1 + $0x5d8] sm:$0xff] }
 0x176   : > { %v9447_v6 = vld [vmem:[%s12626_s1 + $0xf70] sm:$0xff]  ;;  %v3727_v45 = vadd.f32 %v3726_v20, %v3614_v52  ;;  %13032 = vst [vmem:[#allocation144_spill] sm:$0xff] %v9701_v61  ;;  %v13041_v32 = vld [vmem:[#allocation69_spill] sm:$0xff]  ;;  %v13055_v46 = vld [vmem:[#allocation11_spill] sm:$0xff] }
 0x177   : > { %v9452_v4 = vld [vmem:[%s12626_s1 + $0xb10] sm:$0xff]  ;;  %v3728_v0 = vpop.f32.mrf.mxu0  ;;  %4709 = vmatprep.subr.bf16.mxu1 %v13030_v19  ;;  %v13031_v19 = vcombine.low %v9139_v43, %v9144_v37  ;;  %v13056_v13 = vld [vmem:[#allocation70_spill] sm:$0xff] }
 0x178   : > { %13003 = vst [vmem:[#allocation128_spill] sm:$0xff] %v9452_v4  ;;  %v9457_v55 = vld [vmem:[%s12626_s1 + $0xb30] sm:$0xff] }
 0x179   : > { %13004 = vst [vmem:[#allocation129_spill] sm:$0xff] %v9457_v55  ;;  %v9474_v26 = vld [vmem:[%s12626_s1 + $0xf10] sm:$0xff]  ;;  %v3616_v55 = vadd.f32 %v8794_v8, %v3503_v48  ;;  %v3618_v48 = vadd.f32 %v8798_v11, %v3505_v21  ;;  %v3622_v21 = vadd.f32 %v8815_v34, %v3509_v9  ;;  %v13034_v11 = vld [vmem:[#allocation67_spill] sm:$0xff]  ;;  %v13040_v8 = vld [vmem:[#allocation66_spill] sm:$0xff] }
 0x17a   : > { %v9479_v44 = vld [vmem:[%s12626_s1 + $0xf30] sm:$0xff] }
 0x17b   : > { %13007 = vst [vmem:[#allocation131_spill] sm:$0xff] %v9479_v44  ;;  %v9484_v30 = vld [vmem:[%s12626_s1 + $0xad0] sm:$0xff]  ;;  %v3729_v50 = vadd.f32 %v3728_v0, %v3616_v55  ;;  %v3730_v55 = vpop.f32.mrf.mxu0 }
 0x17c   : > { %v9503_v23 = vld [vmem:[%s12626_s1 + $0xaf0] sm:$0xff]  ;;  %v3731_v34 = vadd.f32 %v3730_v55, %v3618_v48 }
 0x17d   : > { %13011 = vst [vmem:[#allocation133_spill] sm:$0xff] %v9503_v23  ;;  %v9508_v57 = vld [vmem:[%s12626_s1 + $0xed0] sm:$0xff]  ;;  %v3612_v23 = vadd.f32 %v8770_v33, %v3499_v16 }
 0x17e   : > { %v9513_v2 = vld [vmem:[%s12626_s1 + $0xef0] sm:$0xff] }
 0x17f   : > { %v9530_v14 = vld [vmem:[%s12626_s1 + $0xa90] sm:$0xff]  ;;  %v3725_v16 = vadd.f32 %v3724_v17, %v3612_v23  ;;  %v13029_v23 = vcombine.high %v9139_v43, %v9144_v37  ;;  %v13035_v43 = vcombine.high %v9169_v15, %v9174_v35  ;;  %v13036_v37 = vcombine.low %v9149_v24, %v9164_v60  ;;  %v13042_v24 = vld [vmem:[#allocation71_spill] sm:$0xff] }
 0x180   : > { %v9535_v22 = vld [vmem:[%s12626_s1 + $0xab0] sm:$0xff]  ;;  %v3515_v60 = vadd.f32 %v13041_v32, %v9100_v40  ;;  %v13045_v32 = vcombine.low %v9169_v15, %v9174_v35 }
 0x181   : > { %v9551_v27 = vld [vmem:[%s12626_s1 + $0xe90] sm:$0xff]  ;;  %4596 = vmatprep.subr.bf16.mxu0 %v13029_v23  ;;  %v9676_v25 = vadd.f32 %v3837_v54, %v3725_v16  ;;  %v9706_v54 = vld [vmem:[%s12626_s1 + $0x5f8] sm:$0xff]  ;;  %4710 = vmatpush1.bf16.msra.mxu1 %v13036_v37  ;;  %v3519_v37 = vadd.f32 %v13042_v24, %v9077_v62 }
 0x182   : > { %v9556_v63 = vld [vmem:[%s12626_s1 + $0xeb0] sm:$0xff]  ;;  %4597 = vmatpush1.bf16.msra.mxu0 %v13031_v19  ;;  %13033 = vst [vmem:[#allocation145_spill] sm:$0xff] %v9706_v54 }
 0x183   : > { %v9561_v36 = vld [vmem:[%s12626_s1 + $0xa50] sm:$0xff]  ;;  %v6905_v52 = vmul.f32 -1.442695, %v9676_v25  ;;  %4598 = vmatprep.subr.bf16.mxu0 %v13035_v43  ;;  %v3624_v43 = vadd.f32 %v13040_v8, %v3511_v7  ;;  %v13044_v7 = vld [vmem:[#allocation9_spill] sm:$0xff] }
 0x184   : > { %v9579_v44 = vld [vmem:[%s12626_s1 + $0xa70] sm:$0xff]  ;;  %4524 = vmatmul.mubr.bf16.gmra.mxu1 %v13044_v7  ;;  %v9743_v8 = vld [vmem:[%s12626_s1 + $0x198] sm:$0xff]  ;;  %v13051_v7 = vld [vmem:[#allocation107_spill] sm:$0xff] }
 0x185   : > { %13017 = vst [vmem:[#allocation137_spill] sm:$0xff] %v9579_v44  ;;  %v9584_v1 = vld [vmem:[%s12626_s1 + $0xe50] sm:$0xff]  ;;  %v3839_v44 = vpop.f32.mrf.mxu1  ;;  %7053 = vpow2.f32 %v6905_v52  ;;  %13046 = vst [vmem:[#allocation67_spill] sm:$0xff] %v9743_v8  ;;  %4533 = vmatprep.mubr.bf16.mxu1 %v13055_v46 }
 0x186   : > { %v9589_v58 = vld [vmem:[%s12626_s1 + $0xe70] sm:$0xff]  ;;  %v9693_v16 = vadd.f32 %v3839_v44, %v3727_v45  ;;  %v3513_v44 = vadd.f32 %v13034_v11, %v9077_v62  ;;  %v13037_v11 = vld [vmem:[#allocation103_spill] sm:$0xff]  ;;  %v3734_v45 = vpop.f32.mrf.mxu0  ;;  %4599 = vmatpush1.bf16.msra.mxu0 %v13045_v32 }
 0x187   : > { %v9620_v29 = vld [vmem:[%s12626_s1 + $0xa10] sm:$0xff]  ;;  %v3841_v20 = vpop.f32.mrf.mxu1 }
 0x188   : > { %13023 = vst [vmem:[#allocation140_spill] sm:$0xff] %v9620_v29  ;;  %v9625_v33 = vld [vmem:[%s12626_s1 + $0xa30] sm:$0xff]  ;;  %v6906_v0 = vmul.f32 -1.442695, %v9693_v16  ;;  %v9720_v19 = vadd.f32 %v3841_v20, %v3729_v50  ;;  %v3736_v24 = vpop.f32.mrf.mxu0  ;;  %v13050_v50 = vld [vmem:[#allocation105_spill] sm:$0xff] }
 0x189   : > { %13024 = vst [vmem:[#allocation141_spill] sm:$0xff] %v9625_v33  ;;  %v9639_v4 = vld [vmem:[%s12626_s1 + $0xe10] sm:$0xff]  ;;  %v3843_v9 = vpop.f32.mrf.mxu1  ;;  %v13052_v35 = vcombine.high %v13050_v50, %v13051_v7 }
 0x18a   : > { %v9651_v12 = vld [vmem:[%s12626_s1 + $0xe30] sm:$0xff]  ;;  %7055 = vpow2.f32 %v6906_v0  ;;  %v6913_v48 = vmul.f32 -1.442695, %v9720_v19  ;;  %v9734_v20 = vadd.f32 %v3843_v9, %v3731_v34  ;;  %v9748_v0 = vld [vmem:[%s12626_s1 + $0x1b8] sm:$0xff] }
 0x18b   : > { %v13038_v23 = vld [vmem:[#allocation104_spill] sm:$0xff]  ;;  %v3847_v55 = vpop.f32.mrf.mxu1  ;;  %13047 = vst [vmem:[#allocation103_spill] sm:$0xff] %v9748_v0  ;;  %4600 = vmatprep.subr.bf16.mxu0 %v13052_v35  ;;  %v3628_v35 = vadd.f32 %v13056_v13, %v3515_v60  ;;  %v13061_v60 = vld [vmem:[#allocation74_spill] sm:$0xff]  ;;  %v13078_v0 = vld [vmem:[#allocation87_spill] sm:$0xff] }
 0x18c   : > { %v13039_v17 = vcombine.high %v13037_v11, %v13038_v23  ;;  %v13043_v52 = vld [vmem:[#allocation8_spill] sm:$0xff]  ;;  %v13053_v15 = vcombine.low %v13037_v11, %v13038_v23  ;;  %7057 = vpow2.f32 %v6913_v48  ;;  %v13058_v23 = vld [vmem:[#allocation75_spill] sm:$0xff]  ;;  %v13059_v48 = vcombine.high %v9217_v3, %v9222_v41 }
 0x18d   : > { %4411 = vmatmul.mubr.bf16.gmra.mxu0 %v13043_v52  ;;  %v13048_v34 = vld [vmem:[#allocation68_spill] sm:$0xff]  ;;  %v6914_v52 = vmul.f32 -1.442695, %v9734_v20  ;;  %v3523_v11 = vadd.f32 %v13058_v23, %v9077_v62  ;;  %v13062_v23 = vld [vmem:[#allocation77_spill] sm:$0xff] }
 0x18e   : > { %4711 = vmatprep.subr.bf16.mxu1 %v13039_v17  ;;  %v3735_v17 = vadd.f32 %v3734_v45, %v3622_v21  ;;  %v3626_v9 = vadd.f32 %v13048_v34, %v3513_v44  ;;  %v13049_v21 = vld [vmem:[#allocation73_spill] sm:$0xff]  ;;  %v3737_v44 = vadd.f32 %v3736_v24, %v3624_v43  ;;  %v3849_v34 = vpop.f32.mrf.mxu1  ;;  %v13057_v33 = vld [vmem:[#allocation72_spill] sm:$0xff]  ;;  %v3525_v32 = vadd.f32 %v13062_v23, %v9100_v40  ;;  %v13071_v23 = vld [vmem:[#allocation83_spill] sm:$0xff] }
 0x18f   : > { %v3521_v45 = vadd.f32 %v13049_v21, %v9100_v40  ;;  %4712 = vmatpush1.bf16.msra.mxu1 %v13053_v15  ;;  %v13054_v21 = vld [vmem:[#allocation10_spill] sm:$0xff]  ;;  %v3632_v29 = vadd.f32 %v13057_v33, %v3519_v37  ;;  %v3738_v15 = vpop.f32.mrf.mxu0  ;;  %7059 = vpow2.f32 %v6914_v52  ;;  %v13060_v33 = vcombine.low %v13050_v50, %v13051_v7  ;;  %v13064_v52 = vld [vmem:[#allocation109_spill] sm:$0xff]  ;;  %v13079_v54 = vld [vmem:[#allocation112_spill] sm:$0xff] }
 0x190   : > { %v9762_v31 = vadd.f32 %v3847_v55, %v3735_v17  ;;  %4420 = vmatprep.mubr.bf16.mxu0 %v13054_v21  ;;  %4713 = vmatprep.subr.bf16.mxu1 %v13059_v48  ;;  %v9776_v55 = vadd.f32 %v3849_v34, %v3737_v44  ;;  %v3739_v24 = vadd.f32 %v3738_v15, %v3626_v9  ;;  %v3851_v13 = vpop.f32.mrf.mxu1  ;;  %v13063_v48 = vld [vmem:[#allocation79_spill] sm:$0xff]  ;;  %v13065_v21 = vld [vmem:[#allocation110_spill] sm:$0xff]  ;;  %v13069_v15 = vld [vmem:[#allocation76_spill] sm:$0xff] }
 0x191   : > { %4601 = vmatpush1.bf16.msra.mxu0 %v13060_v33  ;;  %v3634_v37 = vadd.f32 %v13061_v60, %v3521_v45  ;;  %v3529_v46 = vadd.f32 %v13063_v48, %v9077_v62  ;;  %v3740_v43 = vpop.f32.mrf.mxu0  ;;  %v13066_v8 = vcombine.high %v13064_v52, %v13065_v21  ;;  %v13067_v9 = vcombine.low %v9217_v3, %v9222_v41  ;;  %v13070_v60 = vld [vmem:[#allocation81_spill] sm:$0xff] }
 0x192   : > { %v6921_v17 = vmul.f32 -1.442695, %v9762_v31  ;;  %v6922_v50 = vmul.f32 -1.442695, %v9776_v55  ;;  %v9793_v7 = vadd.f32 %v3851_v13, %v3739_v24  ;;  %v3741_v45 = vadd.f32 %v3740_v43, %v3628_v35  ;;  %v3853_v44 = vpop.f32.mrf.mxu1  ;;  %v13072_v3 = vld [vmem:[#allocation85_spill] sm:$0xff]  ;;  %v13073_v24 = vld [vmem:[#allocation12_spill] sm:$0xff] }
 0x193   : > { %4602 = vmatprep.subr.bf16.mxu0 %v13066_v8  ;;  %4714 = vmatpush1.bf16.msra.mxu1 %v13067_v9  ;;  %v13068_v34 = vcombine.high %v9267_v53, %v9272_v38  ;;  %v3636_v33 = vadd.f32 %v13069_v15, %v3523_v11  ;;  %v3531_v8 = vadd.f32 %v13070_v60, %v9100_v40  ;;  %v3744_v48 = vpop.f32.mrf.mxu0  ;;  %v13074_v11 = vld [vmem:[#allocation13_spill] sm:$0xff]  ;;  %v13076_v15 = vld [vmem:[#allocation78_spill] sm:$0xff] }
 0x194   : > { %7061 = vpow2.f32 %v6921_v17  ;;  %v3533_v41 = vadd.f32 %v13071_v23, %v9077_v62  ;;  %v3535_v17 = vadd.f32 %v13072_v3, %v9100_v40  ;;  %v6929_v35 = vmul.f32 -1.442695, %v9793_v7  ;;  %v3857_v9 = vpop.f32.mrf.mxu1  ;;  %4534 = vmatmul.mubr.bf16.gmra.mxu1 %v13074_v11  ;;  %v13077_v23 = vld [vmem:[#allocation80_spill] sm:$0xff]  ;;  %v13086_v11 = vld [vmem:[#allocation86_spill] sm:$0xff] }
 0x195   : > { %4715 = vmatprep.subr.bf16.mxu1 %v13068_v34  ;;  %4421 = vmatmul.mubr.bf16.gmra.mxu0 %v13073_v24  ;;  %7063 = vpow2.f32 %v6922_v50  ;;  %v9807_v43 = vadd.f32 %v3853_v44, %v3741_v45  ;;  %v3745_v13 = vadd.f32 %v3744_v48, %v3632_v29  ;;  %v13075_v34 = vcombine.low %v13064_v52, %v13065_v21  ;;  %v3746_v50 = vpop.f32.mrf.mxu0  ;;  %v13083_v48 = vld [vmem:[#allocation15_spill] sm:$0xff] }
 0x196   : > { %v3638_v60 = vadd.f32 %v13076_v15, %v3525_v32  ;;  %v3642_v3 = vadd.f32 %v13077_v23, %v3529_v46  ;;  %v3539_v24 = vadd.f32 %v13078_v0, %v9077_v62  ;;  %v13080_v45 = vcombine.high %v9248_v18, %v13079_v54  ;;  %v3859_v44 = vpop.f32.mrf.mxu1  ;;  %v13082_v46 = vld [vmem:[#allocation14_spill] sm:$0xff]  ;;  %4543 = vmatprep.mubr.bf16.mxu1 %v13083_v48  ;;  %v7054_v0 = vpop.eup %7053  ;;  %v13085_v23 = vld [vmem:[#allocation84_spill] sm:$0xff] }
 0x197   : > { %4603 = vmatpush1.bf16.msra.mxu0 %v13075_v34  ;;  %v13081_v29 = vcombine.low %v9267_v53, %v9272_v38  ;;  %7065 = vpow2.f32 %v6929_v35  ;;  %v6930_v21 = vmul.f32 -1.442695, %v9807_v43  ;;  %v9824_v52 = vadd.f32 %v3857_v9, %v3745_v13  ;;  %4430 = vmatprep.mubr.bf16.mxu0 %v13082_v46  ;;  %v13084_v34 = vld [vmem:[#allocation82_spill] sm:$0xff]  ;;  %v3748_v13 = vpop.f32.mrf.mxu0 }
 0x198   : > { %4604 = vmatprep.subr.bf16.mxu0 %v13080_v45  ;;  %v3747_v32 = vadd.f32 %v3746_v50, %v3634_v37  ;;  %v3644_v15 = vadd.f32 %v13084_v34, %v3531_v8  ;;  %v9830_v45 = vadd.f32 %v13085_v23, %v3533_v41  ;;  %v9833_v53 = vadd.f32 %v13086_v11, %v3535_v17  ;;  %v13087_v38 = vld [vmem:[#allocation90_spill] sm:$0xff]  ;;  %v3861_v8 = vpop.f32.mrf.mxu1  ;;  %v7056_v17 = vpop.eup %7055  ;;  %v13090_v11 = vld [vmem:[#allocation88_spill] sm:$0xff] }
 0x199   : > { %4716 = vmatpush1.bf16.msra.mxu1 %v13081_v29  ;;  %v3541_v35 = vadd.f32 %v13087_v38, %v9100_v40  ;;  %v13088_v37 = vcombine.high %v9295_v39, %v9309_v10  ;;  %v5656_v9 = vadd.f32 1.0, %v7054_v0  ;;  %7067 = vpow2.f32 %v6930_v21  ;;  %v13091_v23 = vld [vmem:[#allocation92_spill] sm:$0xff]  ;;  %v13092_v21 = vld [vmem:[#allocation114_spill] sm:$0xff] }
 0x19a   : > { %v6937_v50 = vmul.f32 -1.442695, %v9824_v52  ;;  %v9841_v29 = vadd.f32 %v3859_v44, %v3747_v32  ;;  %v13089_v41 = vcombine.low %v9248_v18, %v13079_v54  ;;  %v9847_v34 = vadd.f32 %v13090_v11, %v3539_v24 }
 0x19b   : > { %4717 = vmatprep.subr.bf16.mxu1 %v13088_v37  ;;  %v3543_v38 = vadd.f32 %v13091_v23, %v9077_v62  ;;  %v3749_v48 = vadd.f32 %v3748_v13, %v3636_v33  ;;  %v3750_v37 = vpop.f32.mrf.mxu0  ;;  %v13093_v0 = vcombine.high %v9285_v42, %v13092_v21  ;;  %v13094_v32 = vcombine.low %v9295_v39, %v9309_v10  ;;  %v3863_v13 = vpop.f32.mrf.mxu1  ;;  %v13099_v39 = vld [vmem:[#allocation94_spill] sm:$0xff] }
 0x19c   : > { %4605 = vmatpush1.bf16.msra.mxu0 %v13089_v41  ;;  %v13095_v18 = vcombine.low %v9403_v49, %v9403_v49  ;;  %7069 = vrcp.f32 %v5656_v9  ;;  %v5657_v24 = vadd.f32 1.0, %v7056_v17  ;;  %v6938_v44 = vmul.f32 -1.442695, %v9841_v29  ;;  %v13096_v41 = vld [vmem:[#allocation119_spill] sm:$0xff]  ;;  %v7058_v23 = vpop.eup %7057  ;;  %v13101_v17 = vld [vmem:[#allocation16_spill] sm:$0xff] }
 0x19d   : > { %4606 = vmatprep.subr.bf16.mxu0 %v13093_v0  ;;  %4718 = vmatpush1.bf16.msra.mxu1 %v13094_v32  ;;  %v3751_v33 = vadd.f32 %v3750_v37, %v3638_v60  ;;  %v13097_v11 = vcombine.high %v9336_v56, %v13096_v41  ;;  %v13098_v0 = vld [vmem:[#allocation91_spill] sm:$0xff]  ;;  %v3545_v32 = vadd.f32 %v13099_v39, %v9100_v40  ;;  %7071 = vpow2.f32 %v6937_v50  ;;  %v3754_v9 = vpop.f32.mrf.mxu0  ;;  %v3867_v61 = vpop.f32.mrf.mxu1  ;;  %v13104_v39 = vld [vmem:[#allocation93_spill] sm:$0xff] }
 0x19e   : > { %v9861_v54 = vsel %vm3439_vm0, %v13095_v18, 0  ;;  %v9868_v10 = vadd.f32 %v13098_v0, %v3541_v35  ;;  %v9872_v18 = vadd.f32 %v3861_v8, %v3749_v48  ;;  %4431 = vmatmul.mubr.bf16.gmra.mxu0 %v13101_v17  ;;  %7073 = vrcp.f32 %v5657_v24  ;;  %v7060_v0 = vpop.eup %7059  ;;  %v13105_v48 = vld [vmem:[#allocation96_spill] sm:$0xff] }
 0x19f   : > { %4719 = vmatprep.subr.bf16.mxu1 %v13097_v11  ;;  %v5664_v60 = vadd.f32 1.0, %v7058_v23  ;;  %v9875_v37 = vadd.f32 %v3863_v13, %v3751_v33  ;;  %v3755_v46 = vadd.f32 %v3754_v9, %v3642_v3  ;;  %v13102_v11 = vld [vmem:[#allocation17_spill] sm:$0xff]  ;;  %v13103_v35 = vcombine.low %v9285_v42, %v13092_v21  ;;  %v3756_v33 = vpop.f32.mrf.mxu0  ;;  %v13106_v13 = vld [vmem:[#allocation116_spill] sm:$0xff] }
 0x1a0   : > { %13100 = vst [vmem:[#allocation104_spill] sm:$0xff] %v9872_v18  ;;  %4544 = vmatmul.mubr.bf16.gmra.mxu1 %v13102_v11  ;;  %v9882_v50 = vadd.f32 %v13104_v39, %v3543_v38  ;;  %v3549_v8 = vadd.f32 %v13105_v48, %v9077_v62  ;;  %7075 = vpow2.f32 %v6938_v44  ;;  %v6945_v24 = vmul.f32 -1.442695, %v9872_v18  ;;  %v13107_v3 = vld [vmem:[#allocation117_spill] sm:$0xff]  ;;  %v13110_v39 = vld [vmem:[#allocation18_spill] sm:$0xff]  ;;  %v13111_v44 = vld [vmem:[#allocation19_spill] sm:$0xff] }
 0x1a1   : > { %4607 = vmatpush1.bf16.msra.mxu0 %v13103_v35  ;;  %v13108_v23 = vcombine.high %v13106_v13, %v13107_v3  ;;  %v13109_v9 = vcombine.low %v9336_v56, %v13096_v41  ;;  %7077 = vrcp.f32 %v5664_v60  ;;  %v5665_v42 = vadd.f32 1.0, %v7060_v0  ;;  %v3869_v35 = vpop.f32.mrf.mxu1  ;;  %4440 = vmatprep.mubr.bf16.mxu0 %v13110_v39  ;;  %v7062_v48 = vpop.eup %7061  ;;  %v13112_v11 = vld [vmem:[#allocation95_spill] sm:$0xff] }
 0x1a2   : > { %v6946_v38 = vmul.f32 -1.442695, %v9875_v37  ;;  %v9894_v21 = vadd.f32 %v3867_v61, %v3755_v46  ;;  %4553 = vmatprep.mubr.bf16.mxu1 %v13111_v44  ;;  %v9899_v17 = vadd.f32 %v13112_v11, %v3545_v32  ;;  %7079 = vpow2.f32 %v6945_v24  ;;  %v3758_v41 = vpop.f32.mrf.mxu0  ;;  %v7064_v11 = vpop.eup %7063  ;;  %v13119_v44 = vld [vmem:[#allocation122_spill] sm:$0xff] }
 0x1a3   : > { %4608 = vmatprep.subr.bf16.mxu0 %v13108_v23  ;;  %4720 = vmatpush1.bf16.msra.mxu1 %v13109_v9  ;;  %v13113_v23 = vld [vmem:[#allocation98_spill] sm:$0xff]  ;;  %v3757_v56 = vadd.f32 %v3756_v33, %v3644_v15  ;;  %v13114_v60 = vcombine.high %v9369_v5, %v9374_v28  ;;  %7081 = vrcp.f32 %v5665_v42  ;;  %v5672_v61 = vadd.f32 1.0, %v7062_v48  ;;  %v3871_v9 = vpop.f32.mrf.mxu1  ;;  %v13117_v15 = vld [vmem:[#allocation100_spill] sm:$0xff] }
 0x1a4   : > { %v3551_v18 = vadd.f32 %v13113_v23, %v9100_v40  ;;  %v6953_v46 = vmul.f32 -1.442695, %v9894_v21  ;;  %v3759_v0 = vadd.f32 %v3758_v41, %v9830_v45  ;;  %v13115_v32 = vcombine.low %v13106_v13, %v13107_v3  ;;  %v13116_v23 = vld [vmem:[#allocation97_spill] sm:$0xff]  ;;  %v3760_v42 = vpop.f32.mrf.mxu0  ;;  %v13118_v48 = vld [vmem:[#allocation120_spill] sm:$0xff] }
 0x1a5   : > { %4721 = vmatprep.subr.bf16.mxu1 %v13114_v60  ;;  %v9912_v24 = vadd.f32 %v13116_v23, %v3549_v8  ;;  %v3553_v33 = vadd.f32 %v13117_v15, %v9077_v62  ;;  %7083 = vpow2.f32 %v6946_v38  ;;  %v9916_v60 = vadd.f32 %v3869_v35, %v3757_v56  ;;  %v3873_v41 = vpop.f32.mrf.mxu1  ;;  %v7066_v35 = vpop.eup %7065  ;;  %v13123_v56 = vld [vmem:[#allocation99_spill] sm:$0xff]  ;;  %v13126_v23 = vld [vmem:[#allocation21_spill] sm:$0xff] }
 0x1a6   : > { %4609 = vmatpush1.bf16.msra.mxu0 %v13115_v32  ;;  %v13120_v39 = vcombine.high %v13118_v48, %v13119_v44  ;;  %v13121_v45 = vcombine.low %v9369_v5, %v9374_v28  ;;  %7085 = vrcp.f32 %v5672_v61  ;;  %v5673_v13 = vadd.f32 1.0, %v7064_v11  ;;  %v3764_v61 = vpop.f32.mrf.mxu0  ;;  %v7068_v15 = vpop.eup %7067 }
 0x1a7   : > { %v9924_v3 = vadd.f32 %v3871_v9, %v3759_v0  ;;  %v3761_v8 = vadd.f32 %v3760_v42, %v9833_v53  ;;  %v13122_v38 = vcombine.high %v9403_v49, %v9403_v49  ;;  %v9932_v32 = vadd.f32 %v13123_v56, %v3551_v18  ;;  %v13125_v0 = vld [vmem:[#allocation20_spill] sm:$0xff]  ;;  %v3877_v11 = vpop.f32.mrf.mxu1  ;;  %v13131_v56 = vld [vmem:[#allocation22_spill] sm:$0xff] }
 0x1a8   : > { %4610 = vmatprep.subr.bf16.mxu0 %v13120_v39  ;;  %4722 = vmatpush1.bf16.msra.mxu1 %v13121_v45  ;;  %v13124_v39 = vld [vmem:[#allocation102_spill] sm:$0xff]  ;;  %7087 = vpow2.f32 %v6953_v46  ;;  %v6954_v28 = vmul.f32 -1.442695, %v9916_v60  ;;  %v5680_v53 = vadd.f32 1.0, %v7066_v35  ;;  %v13127_v18 = vcombine.low %v13118_v48, %v13119_v44  ;;  %v13128_v46 = vld [vmem:[#allocation101_spill] sm:$0xff]  ;;  %v13129_v45 = vld [vmem:[#allocation108_spill] sm:$0xff] }
 0x1a9   : > { %6887 = vmatprep.subr.msk.bf16.mxu1 %vm3439_vm0, %v13122_v38  ;;  %v3555_v5 = vadd.f32 %v13124_v39, %v9100_v40  ;;  %4441 = vmatmul.mubr.bf16.gmra.mxu0 %v13125_v0  ;;  %7089 = vrcp.f32 %v5673_v13  ;;  %v6961_v9 = vmul.f32 -1.442695, %v9924_v3  ;;  %v9939_v49 = vadd.f32 %v3873_v41, %v3761_v8  ;;  %v3766_v8 = vpop.f32.mrf.mxu0  ;;  %v3879_v35 = vpop.f32.mrf.mxu1  ;;  %v13132_v39 = vld [vmem:[#allocation23_spill] sm:$0xff]  ;;  %v10618_v0 = vld [vmem:[%s12626_s1 + $0x658] sm:$0xff] }
 0x1aa   : > { %4554 = vmatmul.mubr.bf16.gmra.mxu1 %v13126_v23  ;;  %4611 = vmatpush2.bf16.msra.mxu0 %v13127_v18  ;;  %v9946_v42 = vadd.f32 %v13128_v46, %v3553_v33  ;;  %v3559_v38 = vadd.f32 %v13129_v45, %v9077_v62  ;;  %7091 = vpow2.f32 %v6954_v28  ;;  %v3765_v13 = vadd.f32 %v3764_v61, %v9847_v34  ;;  %v7070_v28 = vpop.eup %7069  ;;  %v13133_v34 = vld [vmem:[#allocation106_spill] sm:$0xff]  ;;  %v13134_v18 = vld [vmem:[#allocation113_spill] sm:$0xff] }
 0x1ab   : > { %v13130_v41 = vcombine.high %v9393_v51, %v9398_v47  ;;  %7093 = vrcp.f32 %v5680_v53  ;;  %v5681_v44 = vadd.f32 1.0, %v7068_v15  ;;  %v6962_v48 = vmul.f32 -1.442695, %v9939_v49  ;;  %4450 = vmatprep.mubr.bf16.mxu0 %v13131_v56  ;;  %4563 = vmatprep.mubr.bf16.mxu1 %v13132_v39  ;;  %v7072_v15 = vpop.eup %7071  ;;  %v10597_v56 = vld [vmem:[%s12626_s1 + $0x6b8] sm:$0xff] }
 0x1ac   : > { %4726 = vmatpush2.bf16.msra.mxu1 %v9861_v54  ;;  %v3767_v33 = vadd.f32 %v3766_v8, %v9868_v10  ;;  %v9960_v61 = vadd.f32 %v13133_v34, %v3555_v5  ;;  %v3561_v46 = vadd.f32 %v13134_v18, %v9100_v40  ;;  %7095 = vpow2.f32 %v6961_v9  ;;  %v3768_v10 = vpop.f32.mrf.mxu0  ;;  %v10602_v23 = vld [vmem:[%s12626_s1 + $0x258] sm:$0xff] }
 0x1ad   : > { %4612 = vmatprep.subr.bf16.mxu0 %v13130_v41  ;;  %v9971_v54 = vadd.f32 %v3877_v11, %v3765_v13  ;;  %v13135_v53 = vcombine.high %v9431_v59, %v9447_v6  ;;  %v6040_v5 = vmul.f32 %v7070_v28, %v9676_v25  ;;  %7097 = vrcp.f32 %v5681_v44  ;;  %v3881_v41 = vpop.f32.mrf.mxu1  ;;  %v7074_v11 = vpop.eup %7073  ;;  %v13137_v13 = vld [vmem:[#allocation111_spill] sm:$0xff]  ;;  %v13138_v25 = vld [vmem:[#allocation125_spill] sm:$0xff]  ;;  %v13139_v44 = vld [vmem:[#allocation126_spill] sm:$0xff] }
 0x1ae   : > { %v9977_v45 = vadd.f32 %v3879_v35, %v3767_v33  ;;  %v3769_v8 = vadd.f32 %v3768_v10, %v9882_v50  ;;  %v13136_v9 = vcombine.low %v9393_v51, %v9398_v47  ;;  %v9984_v34 = vadd.f32 %v13137_v13, %v3559_v38  ;;  %v3770_v39 = vpop.f32.mrf.mxu0  ;;  %v7076_v35 = vpop.eup %7075  ;;  %v13142_v10 = vld [vmem:[#allocation131_spill] sm:$0xff] }
 0x1af   : > { %4727 = vmatprep.subr.bf16.mxu1 %v13135_v53  ;;  %v5688_v18 = vadd.f32 1.0, %v7072_v15  ;;  %7099 = vpow2.f32 %v6962_v48  ;;  %v6969_v53 = vmul.f32 -1.442695, %v9971_v54  ;;  %v13140_v33 = vcombine.high %v13138_v25, %v13139_v44  ;;  %6168 = vst [vmem:[%s9969_s27] sm:$0xff] %v6040_v5  ;;  %v3883_v28 = vpop.f32.mrf.mxu1  ;;  %v13144_v13 = vld [vmem:[#allocation115_spill] sm:$0xff] }
 0x1b0   : > { %4613 = vmatpush2.bf16.msra.mxu0 %v13136_v9  ;;  %v13141_v50 = vcombine.low %v9431_v59, %v9447_v6  ;;  %v6041_v51 = vmul.f32 %v7074_v11, %v9693_v16  ;;  %v6970_v47 = vmul.f32 -1.442695, %v9977_v45  ;;  %v9996_v38 = vadd.f32 %v3881_v41, %v3769_v8  ;;  %v7078_v9 = vpop.eup %7077  ;;  %v13145_v6 = vld [vmem:[#allocation118_spill] sm:$0xff]  ;;  %v3774_v11 = vpop.f32.mrf.mxu0 }
 0x1b1   : > { %4614 = vmatprep.subr.bf16.mxu0 %v13140_v33  ;;  %v3771_v48 = vadd.f32 %v3770_v39, %v9899_v17  ;;  %v13143_v15 = vcombine.high %v9474_v26, %v13142_v10  ;;  %v10003_v59 = vadd.f32 %v13144_v13, %v3561_v46  ;;  %v3563_v5 = vadd.f32 %v13145_v6, %v9077_v62  ;;  %v13146_v33 = vld [vmem:[#allocation24_spill] sm:$0xff]  ;;  %v7080_v8 = vpop.eup %7079  ;;  %v3887_v46 = vpop.f32.mrf.mxu1  ;;  %v13151_v6 = vld [vmem:[#allocation129_spill] sm:$0xff] }
 0x1b2   : > { %4728 = vmatpush2.bf16.msra.mxu1 %v13141_v50  ;;  %7101 = vrcp.f32 %v5688_v18  ;;  %v5689_v16 = vadd.f32 1.0, %v7076_v35  ;;  %4451 = vmatmul.mubr.bf16.gmra.mxu0 %v13146_v33  ;;  %6169 = vst [vmem:[%s9969_s27 + $0x8] sm:$0xff] %v6041_v51  ;;  %v6048_v17 = vmul.f32 %v7078_v9, %v9720_v19  ;;  %v6977_v39 = vmul.f32 -1.442695, %v9996_v38  ;;  %v13147_v50 = vld [vmem:[#allocation25_spill] sm:$0xff]  ;;  %v7082_v35 = vpop.eup %7081  ;;  %v13150_v9 = vld [vmem:[#allocation128_spill] sm:$0xff] }
 0x1b3   : > { %4729 = vmatprep.subr.bf16.mxu1 %v13143_v15  ;;  %7103 = vpow2.f32 %v6969_v53  ;;  %v10011_v41 = vadd.f32 %v3883_v28, %v3771_v48  ;;  %4564 = vmatmul.mubr.bf16.gmra.mxu1 %v13147_v50  ;;  %v13148_v18 = vcombine.low %v13138_v25, %v13139_v44  ;;  %v13149_v15 = vld [vmem:[#allocation123_spill] sm:$0xff]  ;;  %v5696_v51 = vadd.f32 1.0, %v7080_v8  ;;  %v3776_v53 = vpop.f32.mrf.mxu0  ;;  %v7084_v50 = vpop.eup %7083  ;;  %v10592_v33 = vld [vmem:[%s12626_s1 + $0x698] sm:$0xff] }
 0x1b4   : > { %v3565_v13 = vadd.f32 %v13149_v15, %v9100_v40  ;;  %7105 = vrcp.f32 %v5689_v16  ;;  %v3775_v19 = vadd.f32 %v3774_v11, %v9912_v24  ;;  %v13152_v48 = vcombine.high %v13150_v9, %v13151_v6  ;;  %6176 = vst [vmem:[%s9969_s27 + $0x40] sm:$0xff] %v6048_v17  ;;  %v3889_v24 = vpop.f32.mrf.mxu1  ;;  %v13154_v11 = vld [vmem:[#allocation26_spill] sm:$0xff]  ;;  %v13155_v8 = vld [vmem:[#allocation27_spill] sm:$0xff]  ;;  %v13156_v15 = vld [vmem:[#allocation121_spill] sm:$0xff] }
 0x1b5   : > { %4615 = vmatpush2.bf16.msra.mxu0 %v13148_v18  ;;  %v13153_v28 = vcombine.low %v9474_v26, %v13142_v10  ;;  %v6049_v25 = vmul.f32 %v7082_v35, %v9734_v20  ;;  %7107 = vpow2.f32 %v6970_v47  ;;  %v6978_v44 = vmul.f32 -1.442695, %v10011_v41  ;;  %4460 = vmatprep.mubr.bf16.mxu0 %v13154_v11  ;;  %v7086_v18 = vpop.eup %7085  ;;  %v3778_v17 = vpop.f32.mrf.mxu0  ;;  %v13254_v11 = vld [vmem:[#allocation57_spill] sm:$0xff] }
 0x1b6   : > { %4616 = vmatprep.subr.bf16.mxu0 %v13152_v48  ;;  %v3777_v16 = vadd.f32 %v3776_v53, %v9932_v32  ;;  %4573 = vmatprep.mubr.bf16.mxu1 %v13155_v8  ;;  %v10033_v48 = vadd.f32 %v13156_v15, %v3563_v5  ;;  %7109 = vrcp.f32 %v5696_v51  ;;  %v5697_v26 = vadd.f32 1.0, %v7084_v50  ;;  %v7088_v47 = vpop.eup %7087  ;;  %v3891_v53 = vpop.f32.mrf.mxu1  ;;  %v13159_v51 = vld [vmem:[#allocation124_spill] sm:$0xff]  ;;  %v13244_v8 = vld [vmem:[#allocation54_spill] sm:$0xff] }
 0x1b7   : > { %4730 = vmatpush2.bf16.msra.mxu1 %v13153_v28  ;;  %v10035_v10 = vadd.f32 %v3887_v46, %v3775_v19  ;;  %v13157_v20 = vcombine.high %v9508_v57, %v9513_v2  ;;  %6177 = vst [vmem:[%s9969_s27 + $0x48] sm:$0xff] %v6049_v25  ;;  %v6056_v32 = vmul.f32 %v7086_v18, %v9762_v31  ;;  %7111 = vpow2.f32 %v6977_v39  ;;  %v7090_v50 = vpop.eup %7089  ;;  %v3780_v15 = vpop.f32.mrf.mxu0  ;;  %v13160_v31 = vld [vmem:[#allocation133_spill] sm:$0xff] }
 0x1b8   : > { %v10042_v35 = vadd.f32 %v3889_v24, %v3777_v16  ;;  %v3779_v5 = vadd.f32 %v3778_v17, %v9946_v42  ;;  %v13158_v46 = vcombine.low %v13150_v9, %v13151_v6  ;;  %v10049_v19 = vadd.f32 %v13159_v51, %v3565_v13  ;;  %v7092_v16 = vpop.eup %7091  ;;  %v3893_v24 = vpop.f32.mrf.mxu1  ;;  %v13164_v17 = vld [vmem:[#allocation127_spill] sm:$0xff] }
 0x1b9   : > { %4731 = vmatprep.subr.bf16.mxu1 %v13157_v20  ;;  %7113 = vrcp.f32 %v5697_v26  ;;  %v5704_v28 = vadd.f32 1.0, %v7088_v47  ;;  %v6985_v25 = vmul.f32 -1.442695, %v10035_v10  ;;  %v13161_v39 = vcombine.high %v9484_v30, %v13160_v31  ;;  %6184 = vst [vmem:[%s9969_s27 + $0x80] sm:$0xff] %v6056_v32  ;;  %v7094_v26 = vpop.eup %7093  ;;  %v3784_v47 = vpop.f32.mrf.mxu0 }
 0x1ba   : > { %4617 = vmatpush2.bf16.msra.mxu0 %v13158_v46  ;;  %v13162_v42 = vcombine.low %v9508_v57, %v9513_v2  ;;  %v6057_v9 = vmul.f32 %v7090_v50, %v9776_v55  ;;  %7115 = vpow2.f32 %v6978_v44  ;;  %v6986_v13 = vmul.f32 -1.442695, %v10042_v35  ;;  %v13165_v55 = vld [vmem:[#allocation28_spill] sm:$0xff]  ;;  %v7096_v44 = vpop.eup %7095  ;;  %v3897_v46 = vpop.f32.mrf.mxu1  ;;  %v13166_v50 = vld [vmem:[#allocation29_spill] sm:$0xff] }
 0x1bb   : > { %4618 = vmatprep.subr.bf16.mxu0 %v13161_v39  ;;  %v10061_v6 = vadd.f32 %v3891_v53, %v3779_v5  ;;  %v13163_v18 = vcombine.high %v9551_v27, %v9556_v63  ;;  %v3569_v57 = vadd.f32 %v13164_v17, %v9077_v62  ;;  %7117 = vrcp.f32 %v5704_v28  ;;  %4461 = vmatmul.mubr.bf16.gmra.mxu0 %v13165_v55  ;;  %v13168_v28 = vld [vmem:[#allocation132_spill] sm:$0xff]  ;;  %v13173_v17 = vld [vmem:[#allocation130_spill] sm:$0xff] }
 0x1bc   : > { %4732 = vmatpush2.bf16.msra.mxu1 %v13162_v42  ;;  %v5705_v2 = vadd.f32 1.0, %v7092_v16  ;;  %v3781_v20 = vadd.f32 %v3780_v15, %v9960_v61  ;;  %6185 = vst [vmem:[%s9969_s27 + $0x88] sm:$0xff] %v6057_v9  ;;  %v6064_v32 = vmul.f32 %v7094_v26, %v9793_v7  ;;  %7119 = vpow2.f32 %v6985_v25  ;;  %v7098_v61 = vpop.eup %7097  ;;  %v3786_v25 = vpop.f32.mrf.mxu0  ;;  %v13172_v26 = vld [vmem:[#allocation31_spill] sm:$0xff] }
 0x1bd   : > { %4733 = vmatprep.subr.bf16.mxu1 %v13163_v18  ;;  %v6993_v5 = vmul.f32 -1.442695, %v10061_v6  ;;  %v3785_v53 = vadd.f32 %v3784_v47, %v9984_v34  ;;  %4574 = vmatmul.mubr.bf16.gmra.mxu1 %v13166_v50  ;;  %v13167_v51 = vcombine.low %v9484_v30, %v13160_v31  ;;  %v3571_v15 = vadd.f32 %v13168_v28, %v9100_v40  ;;  %v7100_v16 = vpop.eup %7099  ;;  %v13171_v18 = vld [vmem:[#allocation30_spill] sm:$0xff] }
 0x1be   : > { %7121 = vrcp.f32 %v5705_v2  ;;  %v5712_v39 = vadd.f32 1.0, %v7096_v44  ;;  %v10080_v7 = vadd.f32 %v3893_v24, %v3781_v20  ;;  %v13169_v42 = vcombine.high %v9530_v14, %v9535_v22  ;;  %6192 = vst [vmem:[%s9969_s27 + $0xc0] sm:$0xff] %v6064_v32  ;;  %v3899_v24 = vpop.f32.mrf.mxu1  ;;  %4470 = vmatprep.mubr.bf16.mxu0 %v13171_v18  ;;  %4583 = vmatprep.mubr.bf16.mxu1 %v13172_v26  ;;  %v3788_v20 = vpop.f32.mrf.mxu0  ;;  %v13232_v26 = vld [vmem:[#allocation50_spill] sm:$0xff] }
 0x1bf   : > { %4619 = vmatpush2.bf16.msra.mxu0 %v13167_v51  ;;  %v13170_v34 = vcombine.low %v9551_v27, %v9556_v63  ;;  %v6065_v30 = vmul.f32 %v7098_v61, %v9807_v43  ;;  %7123 = vpow2.f32 %v6986_v13  ;;  %v10090_v31 = vadd.f32 %v3897_v46, %v3785_v53  ;;  %v7102_v13 = vpop.eup %7101  ;;  %v13176_v46 = vld [vmem:[#allocation134_spill] sm:$0xff]  ;;  %v13177_v61 = vld [vmem:[#allocation135_spill] sm:$0xff] }
 0x1c0   : > { %4620 = vmatprep.subr.bf16.mxu0 %v13169_v42  ;;  %v3787_v9 = vadd.f32 %v3786_v25, %v10003_v59  ;;  %v3682_v2 = vadd.f32 %v13173_v17, %v3569_v57  ;;  %7125 = vrcp.f32 %v5712_v39  ;;  %v5713_v63 = vadd.f32 1.0, %v7100_v16  ;;  %v3901_v32 = vpop.f32.mrf.mxu1  ;;  %v7104_v53 = vpop.eup %7103  ;;  %v13178_v25 = vld [vmem:[#allocation137_spill] sm:$0xff]  ;;  %v13183_v17 = vld [vmem:[#allocation32_spill] sm:$0xff] }
 0x1c1   : > { %4734 = vmatpush2.bf16.msra.mxu1 %v13170_v34  ;;  %v6994_v27 = vmul.f32 -1.442695, %v10080_v7  ;;  %v13174_v43 = vcombine.high %v9584_v1, %v9589_v58  ;;  %6193 = vst [vmem:[%s9969_s27 + $0xc8] sm:$0xff] %v6065_v30  ;;  %7127 = vpow2.f32 %v6993_v5  ;;  %v7001_v59 = vmul.f32 -1.442695, %v10090_v31  ;;  %v3790_v39 = vpop.f32.mrf.mxu0  ;;  %v13182_v30 = vld [vmem:[#allocation138_spill] sm:$0xff] }
 0x1c2   : > { %v10102_v47 = vadd.f32 %v3899_v24, %v3787_v9  ;;  %v3789_v44 = vadd.f32 %v3788_v20, %v10033_v48  ;;  %v13175_v57 = vcombine.low %v9530_v14, %v9535_v22  ;;  %v3684_v51 = vadd.f32 %v13176_v46, %v3571_v15  ;;  %v7106_v14 = vpop.eup %7105 }
 0x1c3   : > { %4735 = vmatprep.subr.bf16.mxu1 %v13174_v43  ;;  %v3573_v28 = vadd.f32 %v13177_v61, %v9077_v62  ;;  %v6072_v5 = vmul.f32 %v7102_v13, %v9824_v52  ;;  %7129 = vrcp.f32 %v5713_v63  ;;  %v13179_v42 = vcombine.high %v9561_v36, %v13178_v25  ;;  %v3903_v62 = vpop.f32.mrf.mxu1  ;;  %v7108_v16 = vpop.eup %7107  ;;  %4471 = vmatmul.mubr.bf16.gmra.mxu0 %v13183_v17  ;;  %v13188_v61 = vld [vmem:[#allocation140_spill] sm:$0xff] }
 0x1c4   : > { %4621 = vmatpush2.bf16.msra.mxu0 %v13175_v57  ;;  %v13180_v48 = vcombine.low %v9584_v1, %v9589_v58  ;;  %v5720_v22 = vadd.f32 1.0, %v7104_v53  ;;  %7131 = vpow2.f32 %v6994_v27  ;;  %v7002_v15 = vmul.f32 -1.442695, %v10102_v47  ;;  %v3794_v24 = vpop.f32.mrf.mxu0  ;;  %v7110_v63 = vpop.eup %7109 }
 0x1c5   : > { %4622 = vmatprep.subr.bf16.mxu0 %v13179_v42  ;;  %v10119_v34 = vadd.f32 %v3901_v32, %v3789_v44  ;;  %v13181_v52 = vcombine.high %v9639_v4, %v9651_v12  ;;  %v3575_v9 = vadd.f32 %v13182_v30, %v9100_v40  ;;  %6200 = vst [vmem:[%s9969_s27 + $0x100] sm:$0xff] %v6072_v5  ;;  %7133 = vpow2.f32 %v7001_v59  ;;  %v3907_v13 = vpop.f32.mrf.mxu1  ;;  %v13184_v44 = vld [vmem:[#allocation33_spill] sm:$0xff]  ;;  %v13186_v59 = vld [vmem:[#allocation136_spill] sm:$0xff] }
 0x1c6   : > { %4736 = vmatpush2.bf16.msra.mxu1 %v13180_v48  ;;  %v6073_v1 = vmul.f32 %v7106_v14, %v9841_v29  ;;  %v3791_v58 = vadd.f32 %v3790_v39, %v10049_v19  ;;  %7135 = vrcp.f32 %v5720_v22  ;;  %v5721_v27 = vadd.f32 1.0, %v7108_v16  ;;  %v7112_v29 = vpop.eup %7111  ;;  %v13187_v19 = vld [vmem:[#allocation104_spill] sm:$0xff]  ;;  %v3796_v46 = vpop.f32.mrf.mxu0  ;;  %v13192_v14 = vld [vmem:[#allocation34_spill] sm:$0xff]  ;;  %v13193_v22 = vld [vmem:[#allocation35_spill] sm:$0xff] }
 0x1c7   : > { %4737 = vmatprep.subr.bf16.mxu1 %v13181_v52  ;;  %v7009_v20 = vmul.f32 -1.442695, %v10119_v34  ;;  %v3795_v43 = vadd.f32 %v3794_v24, %v3682_v2  ;;  %4584 = vmatmul.mubr.bf16.gmra.mxu1 %v13184_v44  ;;  %v13185_v40 = vcombine.low %v9561_v36, %v13178_v25  ;;  %v3686_v32 = vadd.f32 %v13186_v59, %v3573_v28  ;;  %v13189_v2 = vld [vmem:[#allocation141_spill] sm:$0xff]  ;;  %v7114_v36 = vpop.eup %7113  ;;  %v3909_v48 = vpop.f32.mrf.mxu1 }
 0x1c8   : > { %6201 = vst [vmem:[%s9969_s27 + $0x108] sm:$0xff] %v6073_v1  ;;  %v6080_v57 = vmul.f32 %v7110_v63, %v13187_v19  ;;  %7137 = vpow2.f32 %v7002_v15  ;;  %v10138_v53 = vadd.f32 %v3903_v62, %v3791_v58  ;;  %v13190_v5 = vcombine.high %v13188_v61, %v13189_v2  ;;  %4626 = vmatprep.mubr.bf16.mxu0 %v13192_v14  ;;  %v10154_v15 = vld [vmem:[%s12626_s1 + $0x598] sm:$0xff]  ;;  %v13194_v62 = vld [vmem:[#allocation139_spill] sm:$0xff]  ;;  %v3798_v30 = vpop.f32.mrf.mxu0  ;;  %v13195_v1 = vld [vmem:[#allocation144_spill] sm:$0xff] }
 0x1c9   : > { %4623 = vmatpush2.bf16.msra.mxu0 %v13185_v40  ;;  %v13191_v39 = vcombine.low %v9639_v4, %v9651_v12  ;;  %7139 = vrcp.f32 %v5721_v27  ;;  %v5728_v25 = vadd.f32 1.0, %v7112_v29  ;;  %v10146_v28 = vadd.f32 %v3907_v13, %v3795_v43  ;;  %6888 = vmatprep.mubr.msk.bf16.mxu1 %vm3414_vm1, %v13193_v22  ;;  %v10159_v4 = vld [vmem:[%s12626_s1 + $0x5b8] sm:$0xff]  ;;  %v7116_v12 = vpop.eup %7115  ;;  %v3911_v40 = vpop.f32.mrf.mxu1  ;;  %v13199_v19 = vld [vmem:[#allocation142_spill] sm:$0xff] }
 0x1ca   : > { %4624 = vmatprep.subr.bf16.mxu0 %v13190_v5  ;;  %v3797_v42 = vadd.f32 %v3796_v46, %v3684_v51  ;;  %v3688_v51 = vadd.f32 %v13194_v62, %v3575_v9  ;;  %6208 = vst [vmem:[%s9969_s27 + $0x140] sm:$0xff] %v6080_v57  ;;  %v6081_v52 = vmul.f32 %v7114_v36, %v9875_v37  ;;  %7141 = vpow2.f32 %v7009_v20  ;;  %v13196_v58 = vld [vmem:[#allocation145_spill] sm:$0xff]  ;;  %v7118_v63 = vpop.eup %7117  ;;  %v3800_v59 = vpop.f32.mrf.mxu0  ;;  %v13200_v57 = vld [vmem:[#allocation143_spill] sm:$0xff] }
 0x1cb   : > { %4738 = vmatpush2.bf16.msra.mxu1 %v13191_v39  ;;  %v7010_v16 = vmul.f32 -1.442695, %v10138_v53  ;;  %v13197_v24 = vcombine.high %v13195_v1, %v13196_v58  ;;  %7143 = vrcp.f32 %v5728_v25  ;;  %v5729_v27 = vadd.f32 1.0, %v7116_v12  ;;  %v7120_v37 = vpop.eup %7119  ;;  %v3913_v25 = vpop.f32.mrf.mxu1 }
 0x1cc   : > { %v7017_v43 = vmul.f32 -1.442695, %v10146_v28  ;;  %v10169_v13 = vadd.f32 %v3909_v48, %v3797_v42  ;;  %v13198_v9 = vcombine.low %v13188_v61, %v13189_v2  ;;  %6209 = vst [vmem:[%s9969_s27 + $0x148] sm:$0xff] %v6081_v52  ;;  %v6088_v20 = vmul.f32 %v7118_v63, %v9894_v21  ;;  %v7122_v39 = vpop.eup %7121  ;;  %v10185_v21 = vld [vmem:[%s12626_s1 + $0x158] sm:$0xff]  ;;  %v10196_v62 = vpop.f32.mrf.mxu0  ;;  %v13203_v52 = vld [vmem:[#allocation103_spill] sm:$0xff] }
 0x1cd   : > { %4933 = vmatprep.subr.bf16.mxu1 %v13197_v24  ;;  %7145 = vpow2.f32 %v7010_v16  ;;  %v3799_v29 = vadd.f32 %v3798_v30, %v3686_v32  ;;  %v13201_v46 = vcombine.high %v13199_v19, %v13200_v57  ;;  %v6548_v5 = vcombine.high %v10154_v15, %v10159_v4  ;;  %v10190_v32 = vld [vmem:[%s12626_s1 + $0x178] sm:$0xff]  ;;  %v7124_v42 = vpop.eup %7123  ;;  %v13204_v16 = vld [vmem:[#allocation67_spill] sm:$0xff] }
 0x1ce   : > { %4625 = vmatpush2.bf16.msra.mxu0 %v13198_v9  ;;  %7147 = vrcp.f32 %v5729_v27  ;;  %v5736_v36 = vadd.f32 1.0, %v7120_v37  ;;  %v7018_v61 = vmul.f32 -1.442695, %v10169_v13  ;;  %v3801_v2 = vadd.f32 %v3800_v59, %v3688_v51  ;;  %6216 = vst [vmem:[%s9969_s27 + $0x180] sm:$0xff] %v6088_v20  ;;  %v13202_v51 = vld [vmem:[#allocation36_spill] sm:$0xff]  ;;  %v10204_v24 = vld [vmem:[%s12626_s1 + $0x558] sm:$0xff]  ;;  %v7126_v63 = vpop.eup %7125 }
 0x1cf   : > { %4820 = vmatprep.subr.bf16.mxu0 %v13201_v46  ;;  %v6089_v48 = vmul.f32 %v7122_v39, %v9916_v60  ;;  %7149 = vpow2.f32 %v7017_v43  ;;  %v10194_v12 = vadd.f32 %v3911_v40, %v3799_v29  ;;  %v6419_v30 = vcombine.low %v13204_v16, %v13203_v52  ;;  %v10209_v60 = vld [vmem:[%s12626_s1 + $0x578] sm:$0xff]  ;;  %v10213_v40 = vpop.f32.mrf.mxu1  ;;  %v7128_v29 = vpop.eup %7127 }
 0x1d0   : > { %7151 = vrcp.f32 %v5736_v36  ;;  %v5737_v27 = vadd.f32 1.0, %v7124_v42  ;;  %v10211_v43 = vadd.f32 %v3913_v25, %v3801_v2  ;;  %v13205_v9 = vld [vmem:[#allocation37_spill] sm:$0xff]  ;;  %v13206_v37 = vcombine.low %v13199_v19, %v13200_v57  ;;  %v10227_v36 = vpop.f32.mrf.mxu0 }
 0x1d1   : > { %4627 = vmatmul.mubr.bf16.vlgmr.msra.gmra.mxu0 %v13202_v51  ;;  %4740 = vmatmul.mubr.bf16.vlgmr.msra.gmra.mxu1 %v13205_v9  ;;  %v6547_v20 = vcombine.low %v10154_v15, %v10159_v4  ;;  %6217 = vst [vmem:[%s9969_s27 + $0x188] sm:$0xff] %v6089_v48  ;;  %v6096_v59 = vmul.f32 %v7126_v63, %v9924_v3  ;;  %7153 = vpow2.f32 %v7018_v61  ;;  %v7025_v46 = vmul.f32 -1.442695, %v10194_v12  ;;  %v7130_v4 = vpop.eup %7129  ;;  %v10235_v61 = vpop.f32.mrf.mxu1  ;;  %v10243_v2 = vld [vmem:[%s12626_s1 + $0x118] sm:$0xff] }
 0x1d2   : > { %4821 = vmatpush1.bf16.msra.mxu0 %v13206_v37  ;;  %v13207_v39 = vcombine.low %v13195_v1, %v13196_v58  ;;  %v13208_v19 = vcombine.high %v13204_v16, %v13203_v52  ;;  %v6412_v15 = vcombine.high %v10185_v21, %v10190_v32  ;;  %7155 = vrcp.f32 %v5737_v27  ;;  %v13209_v1 = vld [vmem:[#allocation38_spill] sm:$0xff]  ;;  %v10248_v25 = vld [vmem:[%s12626_s1 + $0x138] sm:$0xff]  ;;  %v7132_v42 = vpop.eup %7131  ;;  %v10252_v48 = vpop.f32.mrf.mxu0  ;;  %v13210_v52 = vld [vmem:[#allocation39_spill] sm:$0xff] }
 0x1d3   : > { %v5744_v3 = vadd.f32 1.0, %v7128_v29  ;;  %v7026_v57 = vmul.f32 -1.442695, %v10211_v43  ;;  %4636 = vmatprep.mubr.bf16.mxu0 %v13209_v1  ;;  %v6540_v58 = vcombine.high %v10204_v24, %v10209_v60  ;;  %6224 = vst [vmem:[%s9969_s27 + $0x1c0] sm:$0xff] %v6096_v59  ;;  %7157 = vpow2.f32 %v7025_v46  ;;  %6889 = vmatprep.mubr.msk.bf16.mxu1 %vm3414_vm1, %v13210_v52  ;;  %v10259_v16 = vld [vmem:[%s12626_s1 + $0x518] sm:$0xff]  ;;  %v7134_v27 = vpop.eup %7133 }
 0x1d4   : > { %4934 = vmatpush1.bf16.msra.mxu1 %v13207_v39  ;;  %4822 = vmatprep.subr.bf16.mxu0 %v13208_v19  ;;  %v10264_v63 = vld [vmem:[%s12626_s1 + $0x538] sm:$0xff]  ;;  %v5745_v37 = vadd.f32 1.0, %v7132_v42  ;;  %v6411_v29 = vcombine.low %v10185_v21, %v10190_v32  ;;  %v7136_v59 = vpop.eup %7135  ;;  %v5752_v46 = vadd.f32 1.0, %v7134_v27  ;;  %v10271_v39 = vpop.f32.mrf.mxu0  ;;  %v6539_v19 = vcombine.low %v10204_v24, %v10209_v60 }
 0x1d5   : > { %4935 = vmatprep.subr.bf16.mxu1 %v6548_v5  ;;  %v6097_v5 = vmul.f32 %v7130_v4, %v9939_v49  ;;  %7159 = vrcp.f32 %v5744_v3  ;;  %v10266_v49 = vpop.f32.mrf.mxu1  ;;  %v6404_v4 = vcombine.high %v10243_v2, %v10248_v25  ;;  %v7138_v3 = vpop.eup %7137  ;;  %v6532_v32 = vcombine.high %v10259_v16, %v10264_v63  ;;  %v10290_v24 = vld [vmem:[%s12626_s1 + $0xf8] sm:$0xff] }
 0x1d6   : > { %4823 = vmatpush1.bf16.msra.mxu0 %v6419_v30  ;;  %7161 = vpow2.f32 %v7026_v57  ;;  %v6104_v30 = vmul.f32 %v7136_v59, %v9971_v54  ;;  %v7140_v60 = vpop.eup %7139  ;;  %v5753_v54 = vadd.f32 1.0, %v7138_v3  ;;  %v13211_v57 = vld [vmem:[#allocation40_spill] sm:$0xff]  ;;  %v10303_v42 = vld [vmem:[%s12626_s1 + $0x4f8] sm:$0xff] }
 0x1d7   : > { %6225 = vst [vmem:[%s9969_s27 + $0x1c8] sm:$0xff] %v6097_v5  ;;  %4824 = vmatprep.subr.bf16.mxu0 %v6412_v15  ;;  %7163 = vrcp.f32 %v5745_v37  ;;  %v10278_v21 = vpop.f32.mrf.mxu1  ;;  %v10292_v15 = vpop.f32.mrf.mxu0  ;;  %v6105_v27 = vmul.f32 %v7140_v60, %v9977_v45  ;;  %v13212_v59 = vld [vmem:[#allocation41_spill] sm:$0xff] }
 0x1d8   : > { %4936 = vmatpush1.bf16.msra.mxu1 %v6547_v20  ;;  %v10285_v20 = vld [vmem:[%s12626_s1 + $0xd8] sm:$0xff]  ;;  %7165 = vrcp.f32 %v5752_v46  ;;  %v7142_v5 = vpop.eup %7141  ;;  %6232 = vst [vmem:[%s9969_s27 + $0x200] sm:$0xff] %v6104_v30  ;;  %v6403_v46 = vcombine.low %v10243_v2, %v10248_v25  ;;  %v6531_v30 = vcombine.low %v10259_v16, %v10264_v63  ;;  %v13213_v2 = vld [vmem:[#allocation42_spill] sm:$0xff] }
 0x1d9   : > { %4937 = vmatprep.subr.bf16.mxu1 %v6540_v58  ;;  %4637 = vmatmul.mubr.bf16.gmra.mxu0 %v13211_v57  ;;  %v10298_v58 = vld [vmem:[%s12626_s1 + $0x4d8] sm:$0xff]  ;;  %v10307_v37 = vpop.f32.mrf.mxu1  ;;  %v7144_v3 = vpop.eup %7143  ;;  %7167 = vrcp.f32 %v5753_v54  ;;  %v5760_v57 = vadd.f32 1.0, %v7142_v5  ;;  %v6396_v45 = vcombine.high %v10285_v20, %v10290_v24  ;;  %6233 = vst [vmem:[%s9969_s27 + $0x208] sm:$0xff] %v6105_v27 }
 0x1da   : > { %4750 = vmatmul.mubr.bf16.gmra.mxu1 %v13212_v59  ;;  %4825 = vmatpush1.bf16.msra.mxu0 %v6411_v29  ;;  %v10312_v52 = vpop.f32.mrf.mxu0  ;;  %v7146_v60 = vpop.eup %7145  ;;  %v6112_v29 = vmul.f32 %v7144_v3, %v9996_v38  ;;  %v6524_v25 = vcombine.high %v10298_v58, %v10303_v42  ;;  %v10328_v16 = vld [vmem:[%s12626_s1 + $0x98] sm:$0xff]  ;;  %v6523_v9 = vcombine.low %v10298_v58, %v10303_v42 }
 0x1db   : > { %4826 = vmatprep.subr.bf16.mxu0 %v6404_v4  ;;  %v10320_v59 = vpop.f32.mrf.mxu1  ;;  %4646 = vmatprep.mubr.bf16.mxu0 %v13213_v2  ;;  %v10333_v63 = vld [vmem:[%s12626_s1 + $0xb8] sm:$0xff]  ;;  %7169 = vrcp.f32 %v5760_v57  ;;  %v5761_v38 = vadd.f32 1.0, %v7146_v60  ;;  %v6395_v60 = vcombine.low %v10285_v20, %v10290_v24 }
 0x1dc   : > { %4938 = vmatpush1.bf16.msra.mxu1 %v6539_v19  ;;  %v7148_v19 = vpop.eup %7147  ;;  %v10335_v4 = vpop.f32.mrf.mxu0  ;;  %v10342_v54 = vld [vmem:[%s12626_s1 + $0x498] sm:$0xff]  ;;  %6240 = vst [vmem:[%s9969_s27 + $0x240] sm:$0xff] %v6112_v29  ;;  %v6388_v29 = vcombine.high %v10328_v16, %v10333_v63 }
 0x1dd   : > { %4939 = vmatprep.subr.bf16.mxu1 %v6532_v32  ;;  %v13214_v32 = vld [vmem:[#allocation43_spill] sm:$0xff]  ;;  %v10347_v5 = vld [vmem:[%s12626_s1 + $0x4b8] sm:$0xff]  ;;  %v7150_v27 = vpop.eup %7149  ;;  %v6113_v57 = vmul.f32 %v7148_v19, %v10011_v41  ;;  %v10351_v3 = vpop.f32.mrf.mxu1  ;;  %7171 = vrcp.f32 %v5761_v38 }
 0x1de   : > { %6890 = vmatprep.mubr.msk.bf16.mxu1 %vm3414_vm1, %v13214_v32  ;;  %4827 = vmatpush1.bf16.msra.mxu0 %v6403_v46  ;;  %v7152_v32 = vpop.eup %7151  ;;  %v5768_v2 = vadd.f32 1.0, %v7150_v27  ;;  %v10355_v1 = vpop.f32.mrf.mxu0  ;;  %v6516_v20 = vcombine.high %v10342_v54, %v10347_v5  ;;  %v10370_v24 = vld [vmem:[%s12626_s1 + $0x58] sm:$0xff] }
 0x1df   : > { %4828 = vmatprep.subr.bf16.mxu0 %v6396_v45  ;;  %v7154_v41 = vpop.eup %7153  ;;  %6241 = vst [vmem:[%s9969_s27 + $0x248] sm:$0xff] %v6113_v57  ;;  %v6120_v46 = vmul.f32 %v7152_v32, %v10035_v10  ;;  %v10363_v19 = vpop.f32.mrf.mxu1  ;;  %v10375_v58 = vld [vmem:[%s12626_s1 + $0x78] sm:$0xff]  ;;  %v13216_v45 = vld [vmem:[#allocation44_spill] sm:$0xff] }
 0x1e0   : > { %4940 = vmatpush1.bf16.msra.mxu1 %v6531_v30  ;;  %13215 = vst [vmem:[#allocation66_spill] sm:$0xff] %v10363_v19  ;;  %v7156_v42 = vpop.eup %7155  ;;  %7173 = vrcp.f32 %v5768_v2  ;;  %v5769_v30 = vadd.f32 1.0, %v7154_v41  ;;  %v10377_v10 = vpop.f32.mrf.mxu0  ;;  %v10388_v38 = vld [vmem:[%s12626_s1 + $0x478] sm:$0xff]  ;;  %v6387_v41 = vcombine.low %v10328_v16, %v10333_v63  ;;  %v13220_v16 = vld [vmem:[#allocation46_spill] sm:$0xff] }
 0x1e1   : > { %4941 = vmatprep.subr.bf16.mxu1 %v6524_v25  ;;  %4647 = vmatmul.mubr.bf16.gmra.mxu0 %v13216_v45  ;;  %v10383_v25 = vld [vmem:[%s12626_s1 + $0x458] sm:$0xff]  ;;  %v7158_v32 = vpop.eup %7157  ;;  %6248 = vst [vmem:[%s9969_s27 + $0x280] sm:$0xff] %v6120_v46  ;;  %v6121_v2 = vmul.f32 %v7156_v42, %v10042_v35  ;;  %v10392_v27 = vpop.f32.mrf.mxu1  ;;  %v6515_v46 = vcombine.low %v10342_v54, %v10347_v5 }
 0x1e2   : > { %13217 = vst [vmem:[#allocation69_spill] sm:$0xff] %v10392_v27  ;;  %v13218_v57 = vld [vmem:[#allocation45_spill] sm:$0xff]  ;;  %4829 = vmatpush1.bf16.msra.mxu0 %v6395_v60  ;;  %v7160_v45 = vpop.eup %7159  ;;  %7175 = vrcp.f32 %v5769_v30  ;;  %v5776_v51 = vadd.f32 1.0, %v7158_v32  ;;  %v10397_v22 = vpop.f32.mrf.mxu0  ;;  %v6380_v35 = vcombine.high %v10370_v24, %v10375_v58  ;;  %4656 = vmatprep.mubr.bf16.mxu0 %v13220_v16  ;;  %v13222_v30 = vld [vmem:[#allocation47_spill] sm:$0xff]  ;;  %v6507_v14 = vcombine.low %v10383_v25, %v10388_v38 }
 0x1e3   : > { %4760 = vmatmul.mubr.bf16.gmra.mxu1 %v13218_v57  ;;  %4830 = vmatprep.subr.bf16.mxu0 %v6388_v29  ;;  %v7162_v42 = vpop.eup %7161  ;;  %6249 = vst [vmem:[%s9969_s27 + $0x288] sm:$0xff] %v6121_v2  ;;  %v6128_v60 = vmul.f32 %v7160_v45, %v10061_v6  ;;  %v10405_v57 = vpop.f32.mrf.mxu1  ;;  %v375_v63 = vld [vmem:[%s12626_s1 + $0x18] sm:$0xff] }
 0x1e4   : > { %4942 = vmatpush1.bf16.msra.mxu1 %v6523_v9  ;;  %13219 = vst [vmem:[#allocation71_spill] sm:$0xff] %v10405_v57  ;;  %v6508_v9 = vcombine.high %v10383_v25, %v10388_v38  ;;  %v379_v54 = vld [vmem:[%s12626_s1 + $0x38] sm:$0xff]  ;;  %v7164_v5 = vpop.eup %7163  ;;  %7177 = vrcp.f32 %v5776_v51  ;;  %v5777_v29 = vadd.f32 1.0, %v7162_v42  ;;  %v10416_v6 = vpop.f32.mrf.mxu0  ;;  %6891 = vmatprep.mubr.msk.bf16.mxu1 %vm3414_vm1, %v13222_v30  ;;  %v6379_v42 = vcombine.low %v10370_v24, %v10375_v58  ;;  %v13227_v38 = vld [vmem:[#allocation48_spill] sm:$0xff] }
 0x1e5   : > { %4943 = vmatprep.subr.bf16.mxu1 %v6516_v20  ;;  %13221 = vst [vmem:[#allocation68_spill] sm:$0xff] %v10416_v6  ;;  %v503_v20 = vld [vmem:[%s12626_s1 + $0x418] sm:$0xff]  ;;  %v7166_v32 = vpop.eup %7165  ;;  %6256 = vst [vmem:[%s9969_s27 + $0x2c0] sm:$0xff] %v6128_v60  ;;  %v6129_v2 = vmul.f32 %v7164_v5, %v10080_v7  ;;  %v10428_v51 = vpop.f32.mrf.mxu1  ;;  %v6372_v60 = vcombine.high %v375_v63, %v379_v54 }
 0x1e6   : > { %v507_v45 = vld [vmem:[%s12626_s1 + $0x438] sm:$0xff]  ;;  %13223 = vst [vmem:[#allocation73_spill] sm:$0xff] %v10428_v51  ;;  %4831 = vmatpush1.bf16.msra.mxu0 %v6387_v41  ;;  %v6136_v30 = vmul.f32 %v7166_v32, %v10090_v31  ;;  %7179 = vrcp.f32 %v5777_v29  ;;  %v10433_v16 = vpop.f32.mrf.mxu0  ;;  %v7168_v44 = vpop.eup %7167 }
 0x1e7   : > { %13224 = vst [vmem:[#allocation105_spill] sm:$0xff] %v10433_v16  ;;  %4832 = vmatprep.subr.bf16.mxu0 %v6380_v35  ;;  %6257 = vst [vmem:[%s9969_s27 + $0x2c8] sm:$0xff] %v6129_v2  ;;  %v10438_v7 = vpop.f32.mrf.mxu1  ;;  %v6500_v41 = vcombine.high %v503_v20, %v507_v45  ;;  %v495_v31 = vld [vmem:[%s12626_s1 + $0x3d8] sm:$0xff]  ;;  %v6137_v58 = vmul.f32 %v7168_v44, %v10102_v47  ;;  %v6371_v47 = vcombine.low %v375_v63, %v379_v54 }
 0x1e8   : > { %4944 = vmatpush1.bf16.msra.mxu1 %v6515_v46  ;;  %13225 = vst [vmem:[#allocation107_spill] sm:$0xff] %v10438_v7  ;;  %v499_v24 = vld [vmem:[%s12626_s1 + $0x3f8] sm:$0xff]  ;;  %6264 = vst [vmem:[%s9969_s27 + $0x300] sm:$0xff] %v6136_v30  ;;  %v10448_v25 = vpop.f32.mrf.mxu0  ;;  %v6499_v32 = vcombine.low %v503_v20, %v507_v45  ;;  %v13234_v20 = vld [vmem:[#allocation51_spill] sm:$0xff] }
 0x1e9   : > { %4945 = vmatprep.subr.bf16.mxu1 %v6508_v9  ;;  %13226 = vst [vmem:[#allocation70_spill] sm:$0xff] %v10448_v25  ;;  %4657 = vmatmul.mubr.bf16.gmra.mxu0 %v13227_v38  ;;  %v623_v46 = vld [vmem:[%s12626_s1 + $0x7d8] sm:$0xff]  ;;  %v7170_v9 = vpop.eup %7169  ;;  %v10457_v5 = vpop.f32.mrf.mxu1  ;;  %6265 = vst [vmem:[%s9969_s27 + $0x308] sm:$0xff] %v6137_v58  ;;  %v6492_v2 = vcombine.high %v495_v31, %v499_v24  ;;  %v6491_v58 = vcombine.low %v495_v31, %v499_v24 }
 0x1ea   : > { %v627_v35 = vld [vmem:[%s12626_s1 + $0x7f8] sm:$0xff]  ;;  %13228 = vst [vmem:[#allocation72_spill] sm:$0xff] %v10457_v5  ;;  %4833 = vmatpush1.bf16.msra.mxu0 %v6379_v42  ;;  %v6144_v44 = vmul.f32 %v7170_v9, %v10119_v34  ;;  %v10462_v30 = vpop.f32.mrf.mxu0  ;;  %v7172_v38 = vpop.eup %7171  ;;  %4666 = vmatprep.mubr.bf16.mxu0 %v13232_v26 }
 0x1eb   : > { %v13229_v29 = vld [vmem:[#allocation49_spill] sm:$0xff]  ;;  %13230 = vst [vmem:[#allocation75_spill] sm:$0xff] %v10462_v30  ;;  %4834 = vmatprep.subr.bf16.mxu0 %v6372_v60  ;;  %v10464_v17 = vpop.f32.mrf.mxu1  ;;  %v6619_v9 = vcombine.low %v623_v46, %v627_v35 }
 0x1ec   : > { %4770 = vmatmul.mubr.bf16.gmra.mxu1 %v13229_v29  ;;  %13231 = vst [vmem:[#allocation74_spill] sm:$0xff] %v10464_v17  ;;  %v6620_v29 = vcombine.high %v623_v46, %v627_v35  ;;  %v487_v63 = vld [vmem:[%s12626_s1 + $0x398] sm:$0xff]  ;;  %6272 = vst [vmem:[%s9969_s27 + $0x340] sm:$0xff] %v6144_v44  ;;  %v10475_v54 = vpop.f32.mrf.mxu0  ;;  %v13239_v46 = vld [vmem:[#allocation52_spill] sm:$0xff] }
 0x1ed   : > { %4946 = vmatpush1.bf16.msra.mxu1 %v6507_v14  ;;  %v491_v34 = vld [vmem:[%s12626_s1 + $0x3b8] sm:$0xff]  ;;  %v6145_v14 = vmul.f32 %v7172_v38, %v10138_v53  ;;  %13233 = vst [vmem:[#allocation77_spill] sm:$0xff] %v10475_v54  ;;  %6892 = vmatprep.mubr.msk.bf16.mxu1 %vm3414_vm1, %v13234_v20  ;;  %v7174_v60 = vpop.eup %7173 }
 0x1ee   : > { %4947 = vmatprep.subr.bf16.mxu1 %v6500_v41  ;;  %v615_v45 = vld [vmem:[%s12626_s1 + $0x798] sm:$0xff]  ;;  %v10485_v41 = vpop.f32.mrf.mxu1  ;;  %4835 = vmatpush1.bf16.msra.mxu0 %v6371_v47  ;;  %v6152_v53 = vmul.f32 %v7174_v60, %v10146_v28  ;;  %v10489_v38 = vpop.f32.mrf.mxu0  ;;  %v6484_v44 = vcombine.high %v487_v63, %v491_v34 }
 0x1ef   : > { %v619_v42 = vld [vmem:[%s12626_s1 + $0x7b8] sm:$0xff]  ;;  %13235 = vst [vmem:[#allocation79_spill] sm:$0xff] %v10485_v41  ;;  %6273 = vst [vmem:[%s9969_s27 + $0x348] sm:$0xff] %v6145_v14  ;;  %4836 = vmatprep.subr.bf16.mxu0 %v6492_v2  ;;  %v7176_v20 = vpop.eup %7175 }
 0x1f0   : > { %13236 = vst [vmem:[#allocation109_spill] sm:$0xff] %v10489_v38  ;;  %v10491_v26 = vpop.f32.mrf.mxu1  ;;  %v6612_v18 = vcombine.high %v615_v45, %v619_v42  ;;  %v479_v47 = vld [vmem:[%s12626_s1 + $0x358] sm:$0xff]  ;;  %6280 = vst [vmem:[%s9969_s27 + $0x380] sm:$0xff] %v6152_v53  ;;  %v6153_v31 = vmul.f32 %v7176_v20, %v10169_v13  ;;  %v10501_v24 = vpop.f32.mrf.mxu0  ;;  %v6483_v13 = vcombine.low %v487_v63, %v491_v34  ;;  %v13272_v38 = vld [vmem:[#allocation62_spill] sm:$0xff] }
 0x1f1   : > { %4948 = vmatpush1.bf16.msra.mxu1 %v6499_v32  ;;  %13237 = vst [vmem:[#allocation110_spill] sm:$0xff] %v10491_v26  ;;  %v483_v28 = vld [vmem:[%s12626_s1 + $0x378] sm:$0xff]  ;;  %13238 = vst [vmem:[#allocation76_spill] sm:$0xff] %v10501_v24  ;;  %4667 = vmatmul.mubr.bf16.gmra.mxu0 %v13239_v46  ;;  %v7178_v32 = vpop.eup %7177  ;;  %v6611_v53 = vcombine.low %v615_v45, %v619_v42  ;;  %v13246_v42 = vld [vmem:[#allocation55_spill] sm:$0xff] }
 0x1f2   : > { %4949 = vmatprep.subr.bf16.mxu1 %v6620_v29  ;;  %v607_v35 = vld [vmem:[%s12626_s1 + $0x758] sm:$0xff]  ;;  %v10510_v2 = vpop.f32.mrf.mxu1  ;;  %4837 = vmatpush2.bf16.msra.mxu0 %v6491_v58  ;;  %6281 = vst [vmem:[%s9969_s27 + $0x388] sm:$0xff] %v6153_v31  ;;  %v6160_v20 = vmul.f32 %v7178_v32, %v10194_v12  ;;  %v10515_v60 = vpop.f32.mrf.mxu0  ;;  %v6476_v46 = vcombine.high %v479_v47, %v483_v28  ;;  %v13264_v26 = vld [vmem:[#allocation60_spill] sm:$0xff] }
 0x1f3   : > { %v611_v29 = vld [vmem:[%s12626_s1 + $0x778] sm:$0xff]  ;;  %13240 = vst [vmem:[#allocation81_spill] sm:$0xff] %v10510_v2  ;;  %13242 = vst [vmem:[#allocation83_spill] sm:$0xff] %v10515_v60  ;;  %4838 = vmatprep.subr.bf16.mxu0 %v6484_v44  ;;  %v7180_v50 = vpop.eup %7179  ;;  %4676 = vmatprep.mubr.bf16.mxu0 %v13244_v8  ;;  %v6475_v44 = vcombine.low %v479_v47, %v483_v28 }
 0x1f4   : > { %v13241_v14 = vld [vmem:[#allocation53_spill] sm:$0xff]  ;;  %v10517_v55 = vpop.f32.mrf.mxu1  ;;  %6288 = vst [vmem:[%s9969_s27 + $0x3c0] sm:$0xff] %v6160_v20  ;;  %v6161_v34 = vmul.f32 %v7180_v50, %v10211_v43  ;;  %v10528_v45 = vpop.f32.mrf.mxu0  ;;  %v6603_v43 = vcombine.low %v607_v35, %v611_v29 }
 0x1f5   : > { %4780 = vmatmul.mubr.bf16.gmra.mxu1 %v13241_v14  ;;  %13243 = vst [vmem:[#allocation85_spill] sm:$0xff] %v10517_v55  ;;  %v6604_v14 = vcombine.high %v607_v35, %v611_v29  ;;  %v471_v63 = vld [vmem:[%s12626_s1 + $0x318] sm:$0xff]  ;;  %13245 = vst [vmem:[#allocation78_spill] sm:$0xff] %v10528_v45 }
 0x1f6   : > { %4950 = vmatpush2.bf16.msra.mxu1 %v6619_v9  ;;  %v475_v12 = vld [vmem:[%s12626_s1 + $0x338] sm:$0xff]  ;;  %6893 = vmatprep.mubr.msk.bf16.mxu1 %vm3414_vm1, %v13246_v42  ;;  %v10542_v9 = vpop.f32.mrf.mxu1  ;;  %6289 = vst [vmem:[%s9969_s27 + $0x3c8] sm:$0xff] %v6161_v34  ;;  %v10545_v50 = vpop.f32.mrf.mxu0 }
 0x1f7   : > { %4951 = vmatprep.subr.bf16.mxu1 %v6612_v18  ;;  %v10535_v18 = vld [vmem:[%s12626_s1 + $0x718] sm:$0xff]  ;;  %13247 = vst [vmem:[#allocation80_spill] sm:$0xff] %v10542_v9  ;;  %4839 = vmatpush2.bf16.msra.mxu0 %v6483_v13  ;;  %13248 = vst [vmem:[#allocation87_spill] sm:$0xff] %v10545_v50  ;;  %v6468_v31 = vcombine.high %v471_v63, %v475_v12  ;;  %v13252_v13 = vld [vmem:[#allocation56_spill] sm:$0xff] }
 0x1f8   : > { %v10540_v58 = vld [vmem:[%s12626_s1 + $0x738] sm:$0xff]  ;;  %4840 = vmatprep.subr.bf16.mxu0 %v6476_v46  ;;  %v10547_v32 = vpop.f32.mrf.mxu1  ;;  %v13259_v50 = vld [vmem:[#allocation59_spill] sm:$0xff] }
 0x1f9   : > { %13249 = vst [vmem:[#allocation112_spill] sm:$0xff] %v10547_v32  ;;  %v6596_v20 = vcombine.high %v10535_v18, %v10540_v58  ;;  %v10554_v42 = vld [vmem:[%s12626_s1 + $0x2d8] sm:$0xff]  ;;  %4677 = vmatmul.mubr.bf16.gmra.mxu0 %v13252_v13  ;;  %v6467_v13 = vcombine.low %v471_v63, %v475_v12  ;;  %v6595_v12 = vcombine.low %v10535_v18, %v10540_v58  ;;  %v13257_v18 = vld [vmem:[#allocation58_spill] sm:$0xff] }
 0x1fa   : > { %4952 = vmatpush2.bf16.msra.mxu1 %v6611_v53  ;;  %v10559_v47 = vld [vmem:[%s12626_s1 + $0x2f8] sm:$0xff]  ;;  %4686 = vmatprep.mubr.bf16.mxu0 %v13257_v18 }
 0x1fb   : > { %4953 = vmatprep.subr.bf16.mxu1 %v6604_v14  ;;  %v10564_v28 = vld [vmem:[%s12626_s1 + $0x6d8] sm:$0xff]  ;;  %v10568_v14 = vpop.f32.mrf.mxu0  ;;  %4841 = vmatpush2.bf16.msra.mxu0 %v6475_v44 }
 0x1fc   : > { %v13250_v46 = vld [vmem:[#allocation89_spill] sm:$0xff]  ;;  %13251 = vst [vmem:[#allocation82_spill] sm:$0xff] %v10568_v14  ;;  %4842 = vmatprep.subr.bf16.mxu0 %v6468_v31 }
 0x1fd   : > { %v884_v35 = vsub.s32 2, %v13250_v46  ;;  %v888_v29 = vsub.s32 3, %v13250_v46  ;;  %v10574_v53 = vld [vmem:[%s12626_s1 + $0x6f8] sm:$0xff]  ;;  %v10586_v46 = vpop.f32.mrf.mxu1  ;;  %4790 = vmatmul.mubr.bf16.gmra.mxu1 %v13254_v11  ;;  %v10609_v63 = vpop.f32.mrf.mxu0  ;;  %v6460_v11 = vcombine.high %v10554_v42, %v10559_v47 }
 0x1fe   : > { %v10579_v34 = vld [vmem:[%s12626_s1 + $0x298] sm:$0xff]  ;;  %13253 = vst [vmem:[#allocation84_spill] sm:$0xff] %v10586_v46  ;;  %4954 = vmatpush2.bf16.msra.mxu1 %v6603_v43  ;;  %13255 = vst [vmem:[#allocation86_spill] sm:$0xff] %v10609_v63  ;;  %v6588_v58 = vcombine.high %v10564_v28, %v10574_v53  ;;  %6894 = vmatprep.mubr.msk.bf16.mxu1 %vm3414_vm1, %v13259_v50  ;;  %v6587_v50 = vcombine.low %v10564_v28, %v10574_v53 }
 0x1ff   : > { %v10584_v8 = vld [vmem:[%s12626_s1 + $0x2b8] sm:$0xff]  ;;  %v10630_v31 = vpop.f32.mrf.mxu1  ;;  %4955 = vmatprep.subr.bf16.mxu1 %v6596_v20  ;;  %v7565_v20 = vld [vmem:[%s12627_s2] sm:$0xff]  ;;  %v10657_v9 = vpop.f32.mrf.mxu0  ;;  %4843 = vmatpush2.bf16.msra.mxu0 %v6467_v13  ;;  %v6580_v53 = vcombine.high %v10592_v33, %v10597_v56 }
 0x200   : > { %v10607_v44 = vld [vmem:[%s12626_s1 + $0x278] sm:$0xff]  ;;  %13256 = vst [vmem:[#allocation90_spill] sm:$0xff] %v10630_v31  ;;  %v10653_v18 = vrot.slane %v7565_v20, %v884_v35  ;;  %v10655_v14 = vrot.slane %v7565_v20, %v888_v29  ;;  %13258 = vst [vmem:[#allocation88_spill] sm:$0xff] %v10657_v9  ;;  %v6459_v20 = vcombine.low %v10554_v42, %v10559_v47  ;;  %4844 = vmatprep.subr.bf16.mxu0 %v6460_v11 }
 0x201   : > { %v10623_v46 = vld [vmem:[%s12626_s1 + $0x678] sm:$0xff]  ;;  %v10676_v29 = vpop.f32.mrf.mxu1  ;;  %v6452_v2 = vcombine.high %v10579_v34, %v10584_v8  ;;  %v10701_v47 = vpop.f32.mrf.mxu0  ;;  %4687 = vmatmul.mubr.bf16.gmra.mxu0 %v13264_v26  ;;  %v13280_v16 = vcombine.low %v10579_v34, %v10584_v8  ;;  %v13282_v34 = vcombine.low %v10592_v33, %v10597_v56  ;;  %v13284_v57 = vcombine.high %v10602_v23, %v10607_v44 }
 0x202   : > { %v10628_v43 = vld [vmem:[%s12626_s1 + $0x218] sm:$0xff]  ;;  %13260 = vst [vmem:[#allocation92_spill] sm:$0xff] %v10676_v29  ;;  %4956 = vmatpush2.bf16.msra.mxu1 %v6595_v12  ;;  %13261 = vst [vmem:[#allocation114_spill] sm:$0xff] %v10701_v47  ;;  %4696 = vmatprep.mubr.bf16.mxu0 %v13272_v38  ;;  %v13288_v19 = vcombine.high %v10618_v0, %v10623_v46 }
 0x203   : > { %v10638_v63 = vld [vmem:[%s12626_s1 + $0x238] sm:$0xff]  ;;  %v10724_v28 = vpop.f32.mrf.mxu1  ;;  %4957 = vmatprep.subr.bf16.mxu1 %v6588_v58  ;;  %v10749_v9 = vpop.f32.mrf.mxu0  ;;  %4845 = vmatpush2.bf16.msra.mxu0 %v6459_v20 }
 0x204   : > { %v10643_v32 = vld [vmem:[%s12626_s1 + $0x618] sm:$0xff]  ;;  %13262 = vst [vmem:[#allocation119_spill] sm:$0xff] %v10724_v28  ;;  %13263 = vst [vmem:[#allocation91_spill] sm:$0xff] %v10749_v9  ;;  %4846 = vmatprep.subr.bf16.mxu0 %v6452_v2 }
 0x205   : > { %v10648_v31 = vld [vmem:[%s12626_s1 + $0x638] sm:$0xff]  ;;  %v10775_v41 = vpop.f32.mrf.mxu1  ;;  %v10799_v9 = vpop.f32.mrf.mxu0 }
 0x206   : > { %v10664_v55 = vld [vmem:[%s12626_s1 + $0x9d8] sm:$0xff]  ;;  %13265 = vst [vmem:[#allocation94_spill] sm:$0xff] %v10775_v41  ;;  %4958 = vmatpush2.bf16.msra.mxu1 %v6587_v50  ;;  %13268 = vst [vmem:[#allocation96_spill] sm:$0xff] %v10799_v9  ;;  %v13277_v9 = vld [vmem:[#allocation63_spill] sm:$0xff] }
 0x207   : > { %v10669_v45 = vld [vmem:[%s12626_s1 + $0x9f8] sm:$0xff]  ;;  %v10822_v5 = vpop.f32.mrf.mxu1  ;;  %4959 = vmatprep.subr.bf16.mxu1 %v6580_v53  ;;  %v10846_v38 = vpop.f32.mrf.mxu0  ;;  %4847 = vmatpush2.bf16.msra.mxu0 %v13280_v16 }
 0x208   : > { %v10674_v35 = vld [vmem:[%s12626_s1 + $0xdd8] sm:$0xff]  ;;  %13271 = vst [vmem:[#allocation95_spill] sm:$0xff] %v10822_v5  ;;  %13276 = vst [vmem:[#allocation120_spill] sm:$0xff] %v10846_v38  ;;  %4848 = vmatprep.subr.bf16.mxu0 %v13284_v57 }
 0x209   : > { %v10689_v60 = vld [vmem:[%s12626_s1 + $0xdf8] sm:$0xff]  ;;  %v10873_v5 = vpop.f32.mrf.mxu1  ;;  %v10904_v27 = vpop.f32.mrf.mxu0 }
 0x20a   : > { %v10694_v13 = vld [vmem:[%s12626_s1 + $0x998] sm:$0xff]  ;;  %13279 = vst [vmem:[#allocation99_spill] sm:$0xff] %v10873_v5  ;;  %4960 = vmatpush2.bf16.msra.mxu1 %v13282_v34  ;;  %13283 = vst [vmem:[#allocation101_spill] sm:$0xff] %v10904_v27  ;;  %v13293_v27 = vld [vmem:[#allocation64_spill] sm:$0xff] }
 0x20b   : > { %v10699_v42 = vld [vmem:[%s12626_s1 + $0x9b8] sm:$0xff]  ;;  %v10930_v34 = vpop.f32.mrf.mxu1  ;;  %4961 = vmatprep.subr.bf16.mxu1 %v13288_v19  ;;  %4697 = vmatmul.mubr.bf16.gmra.mxu0 %v13293_v27 }
 0x20c   : > { %v10712_v29 = vld [vmem:[%s12626_s1 + $0xd98] sm:$0xff]  ;;  %13287 = vst [vmem:[#allocation113_spill] sm:$0xff] %v10930_v34 }
 0x20d   : > { %v10717_v12 = vld [vmem:[%s12626_s1 + $0xdb8] sm:$0xff] }
 0x20e   : > { %v10722_v11 = vld [vmem:[%s12626_s1 + $0x958] sm:$0xff] }
 0x20f   : > { %v10737_v17 = vld [vmem:[%s12626_s1 + $0x978] sm:$0xff] }
 0x210   : > { %v10742_v58 = vld [vmem:[%s12626_s1 + $0xd58] sm:$0xff] }
 0x211   : > { %v10747_v47 = vld [vmem:[%s12626_s1 + $0xd78] sm:$0xff] }
 0x212   : > { %v10763_v7 = vld [vmem:[%s12626_s1 + $0x918] sm:$0xff] }
 0x213   : > { %v10768_v26 = vld [vmem:[%s12626_s1 + $0x938] sm:$0xff] }
 0x214   : > { %v10773_v28 = vld [vmem:[%s12626_s1 + $0xd18] sm:$0xff] }
 0x215   : > { %v13266_v24 = vld [vmem:[#allocation61_spill] sm:$0xff] }
 0x216   : > { %4800 = vmatmul.mubr.bf16.gmra.mxu1 %v13266_v24  ;;  %v10787_v54 = vld [vmem:[%s12626_s1 + $0xd38] sm:$0xff] }
 0x217   : > { %v10792_v41 = vld [vmem:[%s12626_s1 + $0x8d8] sm:$0xff]  ;;  %6895 = vmatprep.mubr.msk.bf16.mxu1 %vm3414_vm1, %v13277_v9 }
 0x218   : > { %v10797_v20 = vld [vmem:[%s12626_s1 + $0x8f8] sm:$0xff] }
 0x219   : > { %13267 = vst [vmem:[#allocation93_spill] sm:$0xff] %v10797_v20  ;;  %v10810_v30 = vld [vmem:[%s12626_s1 + $0x898] sm:$0xff]  ;;  %v10958_v20 = vpop.f32.mrf.mxu0 }
 0x21a   : > { %13269 = vst [vmem:[#allocation116_spill] sm:$0xff] %v10810_v30  ;;  %v10815_v50 = vld [vmem:[%s12626_s1 + $0x8b8] sm:$0xff]  ;;  %13292 = vst [vmem:[#allocation131_spill] sm:$0xff] %v10958_v20  ;;  %v13307_v30 = vld [vmem:[#allocation3_spill] sm:$0xff] }
 0x21b   : > { %13270 = vst [vmem:[#allocation117_spill] sm:$0xff] %v10815_v50  ;;  %v10820_v2 = vld [vmem:[%s12626_s1 + $0xcd8] sm:$0xff]  ;;  %v10979_v50 = vpop.f32.mrf.mxu1 }
 0x21c   : > { %v10834_v25 = vld [vmem:[%s12626_s1 + $0xcf8] sm:$0xff]  ;;  %13295 = vst [vmem:[#allocation118_spill] sm:$0xff] %v10979_v50  ;;  %v13305_v50 = vld [vmem:[#allocation2_spill] sm:$0xff] }
 0x21d   : > { %13273 = vst [vmem:[#allocation98_spill] sm:$0xff] %v10834_v25  ;;  %v10839_v53 = vld [vmem:[%s12626_s1 + $0x858] sm:$0xff]  ;;  %4852 = vmatprep.mubr.bf16.mxu0 %v13305_v50 }
 0x21e   : > { %13274 = vst [vmem:[#allocation97_spill] sm:$0xff] %v10839_v53  ;;  %v10844_v24 = vld [vmem:[%s12626_s1 + $0x878] sm:$0xff]  ;;  %v13301_v53 = vcombine.high %v10628_v43, %v10638_v63 }
 0x21f   : > { %13275 = vst [vmem:[#allocation100_spill] sm:$0xff] %v10844_v24  ;;  %v10861_v6 = vld [vmem:[%s12626_s1 + $0xc98] sm:$0xff]  ;;  %v13297_v24 = vcombine.low %v10602_v23, %v10607_v44  ;;  %v11009_v44 = vpop.f32.mrf.mxu0 }
 0x220   : > { %v10866_v9 = vld [vmem:[%s12626_s1 + $0xcb8] sm:$0xff]  ;;  %13300 = vst [vmem:[#allocation128_spill] sm:$0xff] %v11009_v44 }
 0x221   : > { %v10871_v51 = vld [vmem:[%s12626_s1 + $0x818] sm:$0xff]  ;;  %4849 = vmatpush2.bf16.msra.mxu0 %v13297_v24  ;;  %v13299_v24 = vcombine.low %v10618_v0, %v10623_v46  ;;  %v11057_v50 = vpop.f32.mrf.mxu0 }
 0x222   : > { %13278 = vst [vmem:[#allocation122_spill] sm:$0xff] %v10871_v51  ;;  %v10889_v5 = vld [vmem:[%s12626_s1 + $0x838] sm:$0xff]  ;;  %4850 = vmatprep.subr.bf16.mxu0 %v13301_v53  ;;  %v3951_v53 = vadd.f32 %v10196_v62, %v10653_v18  ;;  %13306 = vst [vmem:[#allocation124_spill] sm:$0xff] %v11057_v50 }
 0x223   : > { %13281 = vst [vmem:[#allocation102_spill] sm:$0xff] %v10889_v5  ;;  %v10894_v8 = vld [vmem:[%s12626_s1 + $0xc58] sm:$0xff]  ;;  %4962 = vmatpush2.bf16.msra.mxu1 %v13299_v24  ;;  %v11032_v24 = vpop.f32.mrf.mxu1  ;;  %v13304_v5 = vcombine.high %v10643_v32, %v10648_v31 }
 0x224   : > { %v10899_v16 = vld [vmem:[%s12626_s1 + $0xc78] sm:$0xff]  ;;  %13303 = vst [vmem:[#allocation121_spill] sm:$0xff] %v11032_v24 }
 0x225   : > { %v10918_v56 = vld [vmem:[%s12626_s1 + $0xbd8] sm:$0xff]  ;;  %4963 = vmatprep.subr.bf16.mxu1 %v13304_v5  ;;  %v11085_v44 = vpop.f32.mrf.mxu1 }
 0x226   : > { %13285 = vst [vmem:[#allocation108_spill] sm:$0xff] %v10918_v56  ;;  %v10923_v33 = vld [vmem:[%s12626_s1 + $0xbf8] sm:$0xff]  ;;  %13308 = vst [vmem:[#allocation133_spill] sm:$0xff] %v11085_v44 }
 0x227   : > { %13286 = vst [vmem:[#allocation106_spill] sm:$0xff] %v10923_v33  ;;  %v10928_v57 = vld [vmem:[%s12626_s1 + $0xc18] sm:$0xff] }
 0x228   : > { %v10946_v34 = vld [vmem:[%s12626_s1 + $0xc38] sm:$0xff] }
 0x229   : > { %13289 = vst [vmem:[#allocation111_spill] sm:$0xff] %v10946_v34  ;;  %v10951_v19 = vld [vmem:[%s12626_s1 + $0xb98] sm:$0xff] }
 0x22a   : > { %13290 = vst [vmem:[#allocation125_spill] sm:$0xff] %v10951_v19  ;;  %v10956_v38 = vld [vmem:[%s12626_s1 + $0xbb8] sm:$0xff]  ;;  %v13309_v19 = vcombine.low %v10628_v43, %v10638_v63  ;;  %v3955_v63 = vadd.f32 %v10252_v48, %v10653_v18  ;;  %v13312_v43 = vcombine.low %v10643_v32, %v10648_v31  ;;  %v4064_v31 = vadd.f32 %v10213_v40, %v3951_v53  ;;  %v13317_v40 = vld [vmem:[#allocation4_spill] sm:$0xff] }
 0x22b   : > { %13291 = vst [vmem:[#allocation126_spill] sm:$0xff] %v10956_v38  ;;  %v10972_v25 = vld [vmem:[%s12626_s1 + $0xf98] sm:$0xff]  ;;  %v3953_v38 = vadd.f32 %v10227_v36, %v10655_v14 }
 0x22c   : > { %v10977_v27 = vld [vmem:[%s12626_s1 + $0xb58] sm:$0xff]  ;;  %4851 = vmatpush2.bf16.msra.mxu0 %v13309_v19  ;;  %4964 = vmatpush2.bf16.msra.mxu1 %v13312_v43  ;;  %v11111_v19 = vpop.f32.mrf.mxu0  ;;  %v11131_v43 = vpop.f32.mrf.mxu1 }
 0x22d   : > { %13294 = vst [vmem:[#allocation115_spill] sm:$0xff] %v10977_v27  ;;  %v13296_v20 = vld [vmem:[#allocation65_spill] sm:$0xff]  ;;  %13313 = vst [vmem:[#allocation130_spill] sm:$0xff] %v11111_v19  ;;  %v3957_v19 = vadd.f32 %v10271_v39, %v10655_v14 }
 0x22e   : > { %4810 = vmatmul.mubr.bf16.gmra.mxu1 %v13296_v20  ;;  %v10994_v51 = vld [vmem:[%s12626_s1 + $0xb78] sm:$0xff]  ;;  %13315 = vst [vmem:[#allocation134_spill] sm:$0xff] %v11131_v43  ;;  %v4289_v53 = vpop.f32.mrf.mxu1 }
 0x22f   : > { %13298 = vst [vmem:[#allocation123_spill] sm:$0xff] %v10994_v51  ;;  %v10999_v20 = vld [vmem:[%s12626_s1 + $0xf58] sm:$0xff]  ;;  %4965 = vmatprep.mubr.bf16.mxu1 %v13307_v30  ;;  %v13314_v51 = vcombine.high %v10664_v55, %v10669_v45  ;;  %4853 = vmatmul.mubr.bf16.vlgmr.msra.gmra.mxu0 %v13317_v40  ;;  %v4066_v40 = vadd.f32 %v10235_v61, %v3953_v38 }
 0x230   : > { %v11004_v23 = vld [vmem:[%s12626_s1 + $0xf78] sm:$0xff]  ;;  %v4068_v38 = vadd.f32 %v10266_v49, %v3955_v63  ;;  %v13322_v49 = vld [vmem:[#allocation6_spill] sm:$0xff]  ;;  %v13323_v63 = vld [vmem:[#allocation7_spill] sm:$0xff] }
 0x231   : > { %v11023_v0 = vld [vmem:[%s12626_s1 + $0xb18] sm:$0xff]  ;;  %5046 = vmatprep.subr.bf16.mxu0 %v13314_v51  ;;  %v13316_v51 = vcombine.high %v10674_v35, %v10689_v60  ;;  %4862 = vmatprep.mubr.bf16.mxu0 %v13322_v49 }
 0x232   : > { %v11028_v46 = vld [vmem:[%s12626_s1 + $0xb38] sm:$0xff] }
 0x233   : > { %13302 = vst [vmem:[#allocation129_spill] sm:$0xff] %v11028_v46  ;;  %v11045_v33 = vld [vmem:[%s12626_s1 + $0xf18] sm:$0xff]  ;;  %5159 = vmatprep.subr.bf16.mxu1 %v13316_v51  ;;  %v4176_v46 = vpop.f32.mrf.mxu0  ;;  %v13319_v51 = vcombine.low %v10664_v55, %v10669_v45  ;;  %v13320_v45 = vcombine.low %v10674_v35, %v10689_v60 }
 0x234   : > { %v11050_v62 = vld [vmem:[%s12626_s1 + $0xf38] sm:$0xff]  ;;  %v4177_v44 = vadd.f32 %v4176_v46, %v4064_v31  ;;  %v3961_v46 = vadd.f32 %v10292_v15, %v10653_v18  ;;  %v13321_v31 = vcombine.high %v10694_v13, %v10699_v42 }
 0x235   : > { %v11055_v5 = vld [vmem:[%s12626_s1 + $0xad8] sm:$0xff]  ;;  %5047 = vmatpush1.bf16.msra.mxu0 %v13319_v51  ;;  %v4178_v55 = vpop.f32.mrf.mxu0 }
 0x236   : > { %v11071_v56 = vld [vmem:[%s12626_s1 + $0xaf8] sm:$0xff]  ;;  %5048 = vmatprep.subr.bf16.mxu0 %v13321_v31  ;;  %v11189_v51 = vadd.f32 %v4289_v53, %v4177_v44  ;;  %v4179_v27 = vadd.f32 %v4178_v55, %v4066_v40  ;;  %v4070_v44 = vadd.f32 %v10278_v21, %v3957_v19  ;;  %v3963_v53 = vadd.f32 %v10312_v52, %v10655_v14 }
 0x237   : > { %v11076_v30 = vld [vmem:[%s12626_s1 + $0xed8] sm:$0xff]  ;;  %v4180_v40 = vpop.f32.mrf.mxu0  ;;  %v13326_v55 = vcombine.high %v10712_v29, %v10717_v12  ;;  %v13327_v52 = vcombine.low %v10694_v13, %v10699_v42  ;;  %v13328_v31 = vcombine.high %v10722_v11, %v10737_v17 }
 0x238   : > { %v11081_v24 = vld [vmem:[%s12626_s1 + $0xef8] sm:$0xff]  ;;  %v6907_v49 = vmul.f32 -1.442695, %v11189_v51  ;;  %v4181_v15 = vadd.f32 %v4180_v40, %v4068_v38  ;;  %v13331_v40 = vld [vmem:[#allocation8_spill] sm:$0xff] }
 0x239   : > { %v11099_v34 = vld [vmem:[%s12626_s1 + $0xa98] sm:$0xff]  ;;  %5049 = vmatpush1.bf16.msra.mxu0 %v13327_v52 }
 0x23a   : > { %13310 = vst [vmem:[#allocation127_spill] sm:$0xff] %v11099_v34  ;;  %v11104_v36 = vld [vmem:[%s12626_s1 + $0xab8] sm:$0xff]  ;;  %v4291_v34 = vpop.f32.mrf.mxu1  ;;  %5050 = vmatprep.subr.bf16.mxu0 %v13328_v31  ;;  %7181 = vpow2.f32 %v6907_v49  ;;  %4863 = vmatmul.mubr.bf16.gmra.mxu0 %v13331_v40  ;;  %v13360_v31 = vld [vmem:[#allocation76_spill] sm:$0xff] }
 0x23b   : > { %13311 = vst [vmem:[#allocation132_spill] sm:$0xff] %v11104_v36  ;;  %v11123_v48 = vld [vmem:[%s12626_s1 + $0xe98] sm:$0xff] }
 0x23c   : > { %v11128_v32 = vld [vmem:[%s12626_s1 + $0xeb8] sm:$0xff]  ;;  %v4293_v21 = vpop.f32.mrf.mxu1 }
 0x23d   : > { %v11154_v50 = vld [vmem:[%s12626_s1 + $0xa58] sm:$0xff] }
 0x23e   : > { %v11159_v39 = vld [vmem:[%s12626_s1 + $0xa78] sm:$0xff]  ;;  %v4295_v38 = vpop.f32.mrf.mxu1 }
 0x23f   : > { %v13318_v43 = vld [vmem:[#allocation5_spill] sm:$0xff] }
 0x240   : > { %4966 = vmatmul.mubr.bf16.vlgmr.msra.gmra.mxu1 %v13318_v43  ;;  %v11171_v36 = vld [vmem:[%s12626_s1 + $0xe58] sm:$0xff]  ;;  %v4182_v43 = vpop.f32.mrf.mxu0 }
 0x241   : > { %v11176_v61 = vld [vmem:[%s12626_s1 + $0xe78] sm:$0xff]  ;;  %5160 = vmatpush1.bf16.msra.mxu1 %v13320_v45  ;;  %4975 = vmatprep.mubr.bf16.mxu1 %v13323_v63  ;;  %v11216_v63 = vadd.f32 %v4291_v34, %v4179_v27  ;;  %v3965_v45 = vadd.f32 %v10335_v4, %v10653_v18  ;;  %v13329_v27 = vcombine.low %v10712_v29, %v10717_v12 }
 0x242   : > { %v11198_v60 = vld [vmem:[%s12626_s1 + $0xa18] sm:$0xff]  ;;  %5161 = vmatprep.subr.bf16.mxu1 %v13326_v55  ;;  %v4074_v55 = vadd.f32 %v10307_v37, %v3961_v46  ;;  %v11235_v34 = vadd.f32 %v4293_v21, %v4181_v15  ;;  %v4183_v37 = vadd.f32 %v4182_v43, %v4070_v44  ;;  %v13330_v4 = vcombine.high %v10742_v58, %v10747_v47  ;;  %v4186_v44 = vpop.f32.mrf.mxu0 }
 0x243   : > { %13324 = vst [vmem:[#allocation135_spill] sm:$0xff] %v11198_v60  ;;  %v11203_v35 = vld [vmem:[%s12626_s1 + $0xa38] sm:$0xff]  ;;  %v6908_v42 = vmul.f32 -1.442695, %v11216_v63  ;;  %v4076_v12 = vadd.f32 %v10320_v59, %v3963_v53  ;;  %v3967_v43 = vadd.f32 %v10355_v1, %v10655_v14  ;;  %v3971_v15 = vadd.f32 %v10377_v10, %v10653_v18 }
 0x244   : > { %13325 = vst [vmem:[#allocation137_spill] sm:$0xff] %v11203_v35  ;;  %v11243_v46 = vld [vmem:[%s12626_s1 + $0xe18] sm:$0xff]  ;;  %v6915_v49 = vmul.f32 -1.442695, %v11235_v34  ;;  %v11259_v21 = vadd.f32 %v4295_v38, %v4183_v37  ;;  %v4187_v52 = vadd.f32 %v4186_v44, %v4074_v55  ;;  %v13333_v1 = vcombine.low %v10722_v11, %v10737_v17  ;;  %v13337_v38 = vld [vmem:[#allocation11_spill] sm:$0xff]  ;;  %v13338_v44 = vld [vmem:[#allocation66_spill] sm:$0xff] }
 0x245   : > { %5162 = vmatpush1.bf16.msra.mxu1 %v13329_v27  ;;  %v11248_v29 = vld [vmem:[%s12626_s1 + $0xe38] sm:$0xff]  ;;  %7183 = vpow2.f32 %v6908_v42  ;;  %v4299_v27 = vpop.f32.mrf.mxu1  ;;  %v4078_v10 = vadd.f32 %v10351_v3, %v3965_v45  ;;  %v3973_v53 = vadd.f32 %v10397_v22, %v10655_v14  ;;  %v13334_v42 = vcombine.high %v10763_v7, %v10768_v26  ;;  %v13336_v22 = vld [vmem:[#allocation10_spill] sm:$0xff]  ;;  %v13359_v37 = vld [vmem:[#allocation72_spill] sm:$0xff] }
 0x246   : > { %5163 = vmatprep.subr.bf16.mxu1 %v13330_v4  ;;  %v13332_v59 = vld [vmem:[#allocation9_spill] sm:$0xff]  ;;  %5051 = vmatpush1.bf16.msra.mxu0 %v13333_v1  ;;  %v4188_v4 = vpop.f32.mrf.mxu0  ;;  %v13335_v55 = vcombine.low %v10742_v58, %v10747_v47  ;;  %7185 = vpow2.f32 %v6915_v49  ;;  %v6916_v17 = vmul.f32 -1.442695, %v11259_v21  ;;  %v11277_v11 = vadd.f32 %v4299_v27, %v4187_v52  ;;  %v13340_v47 = vld [vmem:[#allocation68_spill] sm:$0xff] }
 0x247   : > { %5052 = vmatprep.subr.bf16.mxu0 %v13334_v42  ;;  %v4189_v3 = vadd.f32 %v4188_v4, %v4076_v12  ;;  %v4301_v45 = vpop.f32.mrf.mxu1  ;;  %4872 = vmatprep.mubr.bf16.mxu0 %v13336_v22  ;;  %v4080_v40 = vadd.f32 %v13338_v44, %v3967_v43  ;;  %v3975_v58 = vadd.f32 %v13340_v47, %v10653_v18  ;;  %v13361_v12 = vld [vmem:[#allocation116_spill] sm:$0xff]  ;;  %v13362_v19 = vld [vmem:[#allocation117_spill] sm:$0xff] }
 0x248   : > { %4976 = vmatmul.mubr.bf16.gmra.mxu1 %v13332_v59  ;;  %v13339_v59 = vld [vmem:[#allocation69_spill] sm:$0xff]  ;;  %v4190_v42 = vpop.f32.mrf.mxu0  ;;  %v13341_v49 = vcombine.high %v10773_v28, %v10787_v54  ;;  %7187 = vpow2.f32 %v6916_v17  ;;  %v6923_v52 = vmul.f32 -1.442695, %v11277_v11 }
 0x249   : > { %5164 = vmatpush1.bf16.msra.mxu1 %v13335_v55  ;;  %4985 = vmatprep.mubr.bf16.mxu1 %v13337_v38  ;;  %v4084_v1 = vadd.f32 %v13339_v59, %v3971_v15  ;;  %v11291_v27 = vadd.f32 %v4301_v45, %v4189_v3  ;;  %v4191_v4 = vadd.f32 %v4190_v42, %v4078_v10  ;;  %v4303_v43 = vpop.f32.mrf.mxu1  ;;  %v13343_v55 = vld [vmem:[#allocation71_spill] sm:$0xff]  ;;  %v13344_v38 = vld [vmem:[#allocation105_spill] sm:$0xff]  ;;  %v13345_v59 = vld [vmem:[#allocation70_spill] sm:$0xff] }
 0x24a   : > { %5165 = vmatprep.subr.bf16.mxu1 %v13341_v49  ;;  %v13342_v15 = vcombine.low %v10763_v7, %v10768_v26  ;;  %v4086_v22 = vadd.f32 %v13343_v55, %v3973_v53  ;;  %v3977_v44 = vadd.f32 %v13344_v38, %v10655_v14  ;;  %v3981_v47 = vadd.f32 %v13345_v59, %v10653_v18  ;;  %v4192_v49 = vpop.f32.mrf.mxu0  ;;  %v13346_v17 = vld [vmem:[#allocation93_spill] sm:$0xff]  ;;  %v13349_v45 = vld [vmem:[#allocation98_spill] sm:$0xff]  ;;  %v13352_v38 = vld [vmem:[#allocation75_spill] sm:$0xff] }
 0x24b   : > { %v13347_v13 = vcombine.high %v10792_v41, %v13346_v17  ;;  %v13348_v10 = vcombine.low %v10773_v28, %v10787_v54  ;;  %7189 = vpow2.f32 %v6923_v52  ;;  %v6924_v26 = vmul.f32 -1.442695, %v11291_v27  ;;  %v4305_v3 = vpop.f32.mrf.mxu1  ;;  %v13353_v59 = vld [vmem:[#allocation77_spill] sm:$0xff] }
 0x24c   : > { %5053 = vmatpush1.bf16.msra.mxu0 %v13342_v15  ;;  %v11308_v7 = vadd.f32 %v4303_v43, %v4191_v4  ;;  %v4193_v53 = vadd.f32 %v4192_v49, %v4080_v40  ;;  %v13350_v42 = vcombine.high %v10820_v2, %v13349_v45  ;;  %v13351_v15 = vld [vmem:[#allocation73_spill] sm:$0xff]  ;;  %v3985_v54 = vadd.f32 %v13353_v59, %v10653_v18  ;;  %v13355_v4 = vld [vmem:[#allocation12_spill] sm:$0xff] }
 0x24d   : > { %5054 = vmatprep.subr.bf16.mxu0 %v13347_v13  ;;  %5166 = vmatpush1.bf16.msra.mxu1 %v13348_v10  ;;  %v4088_v55 = vadd.f32 %v13351_v15, %v3975_v58  ;;  %v3983_v13 = vadd.f32 %v13352_v38, %v10655_v14  ;;  %v13354_v28 = vld [vmem:[#allocation109_spill] sm:$0xff]  ;;  %v4196_v10 = vpop.f32.mrf.mxu0  ;;  %7191 = vpow2.f32 %v6924_v26  ;;  %v13357_v15 = vcombine.low %v10792_v41, %v13346_v17  ;;  %v13358_v38 = vld [vmem:[#allocation107_spill] sm:$0xff] }
 0x24e   : > { %5167 = vmatprep.subr.bf16.mxu1 %v13350_v42  ;;  %v3987_v52 = vadd.f32 %v13354_v28, %v10655_v14  ;;  %4873 = vmatmul.mubr.bf16.gmra.mxu0 %v13355_v4  ;;  %v6931_v40 = vmul.f32 -1.442695, %v11308_v7  ;;  %v11322_v43 = vadd.f32 %v4305_v3, %v4193_v53  ;;  %v4197_v49 = vadd.f32 %v4196_v10, %v4084_v1  ;;  %v4309_v42 = vpop.f32.mrf.mxu1  ;;  %v13356_v58 = vld [vmem:[#allocation13_spill] sm:$0xff]  ;;  %v13367_v10 = vld [vmem:[#allocation74_spill] sm:$0xff] }
 0x24f   : > { %v4090_v59 = vadd.f32 %v13358_v38, %v3977_v44  ;;  %v4094_v28 = vadd.f32 %v13359_v37, %v3981_v47  ;;  %v3991_v4 = vadd.f32 %v13360_v31, %v10653_v18  ;;  %v4198_v26 = vpop.f32.mrf.mxu0  ;;  %v13363_v53 = vcombine.high %v13361_v12, %v13362_v19  ;;  %v13365_v37 = vld [vmem:[#allocation14_spill] sm:$0xff]  ;;  %v13366_v47 = vld [vmem:[#allocation15_spill] sm:$0xff]  ;;  %v7182_v31 = vpop.eup %7181 }
 0x250   : > { %4986 = vmatmul.mubr.bf16.gmra.mxu1 %v13356_v58  ;;  %5055 = vmatpush1.bf16.msra.mxu0 %v13357_v15  ;;  %v13364_v1 = vcombine.low %v10820_v2, %v13349_v45  ;;  %7193 = vpow2.f32 %v6931_v40  ;;  %v6932_v41 = vmul.f32 -1.442695, %v11322_v43  ;;  %v11339_v17 = vadd.f32 %v4309_v42, %v4197_v49  ;;  %v4311_v3 = vpop.f32.mrf.mxu1  ;;  %v13368_v15 = vld [vmem:[#allocation79_spill] sm:$0xff] }
 0x251   : > { %5056 = vmatprep.subr.bf16.mxu0 %v13363_v53  ;;  %v4199_v44 = vadd.f32 %v4198_v26, %v4086_v22  ;;  %4882 = vmatprep.mubr.bf16.mxu0 %v13365_v37  ;;  %v4096_v58 = vadd.f32 %v13367_v10, %v3983_v13  ;;  %v11345_v38 = vadd.f32 %v13368_v15, %v3985_v54  ;;  %v13369_v53 = vld [vmem:[#allocation110_spill] sm:$0xff]  ;;  %v13370_v45 = vld [vmem:[#allocation83_spill] sm:$0xff]  ;;  %v4200_v49 = vpop.f32.mrf.mxu0  ;;  %v5658_v42 = vadd.f32 1.0, %v7182_v31  ;;  %v13373_v37 = vld [vmem:[#allocation81_spill] sm:$0xff] }
 0x252   : > { %5168 = vmatpush1.bf16.msra.mxu1 %v13364_v1  ;;  %4995 = vmatprep.mubr.bf16.mxu1 %v13366_v47  ;;  %v11348_v2 = vadd.f32 %v13369_v53, %v3987_v52  ;;  %v3993_v40 = vadd.f32 %v13370_v45, %v10655_v14  ;;  %v13371_v22 = vcombine.high %v10861_v6, %v10866_v9  ;;  %7195 = vpow2.f32 %v6932_v41  ;;  %v4313_v13 = vpop.f32.mrf.mxu1  ;;  %v7184_v52 = vpop.eup %7183  ;;  %v13374_v10 = vld [vmem:[#allocation78_spill] sm:$0xff]  ;;  %v13375_v31 = vld [vmem:[#allocation97_spill] sm:$0xff]  ;;  %v13376_v41 = vld [vmem:[#allocation100_spill] sm:$0xff] }
 0x253   : > { %v6939_v26 = vmul.f32 -1.442695, %v11339_v17  ;;  %v11356_v1 = vadd.f32 %v4311_v3, %v4199_v44  ;;  %v13372_v54 = vcombine.low %v13361_v12, %v13362_v19  ;;  %v11362_v47 = vadd.f32 %v13373_v37, %v3991_v4  ;;  %v4202_v45 = vpop.f32.mrf.mxu0  ;;  %v7186_v37 = vpop.eup %7185 }
 0x254   : > { %5169 = vmatprep.subr.bf16.mxu1 %v13371_v22  ;;  %v3995_v15 = vadd.f32 %v13374_v10, %v10653_v18  ;;  %v4201_v53 = vadd.f32 %v4200_v49, %v4088_v55  ;;  %v13377_v22 = vcombine.high %v13375_v31, %v13376_v41  ;;  %v13378_v44 = vcombine.low %v10861_v6, %v10866_v9  ;;  %v4315_v49 = vpop.f32.mrf.mxu1  ;;  %v13381_v10 = vld [vmem:[#allocation85_spill] sm:$0xff]  ;;  %v13382_v9 = vld [vmem:[#allocation87_spill] sm:$0xff] }
 0x255   : > { %5057 = vmatpush1.bf16.msra.mxu0 %v13372_v54  ;;  %v13379_v19 = vcombine.low %v10972_v25, %v10972_v25  ;;  %7197 = vrcp.f32 %v5658_v42  ;;  %v5659_v4 = vadd.f32 1.0, %v7184_v52  ;;  %v6940_v3 = vmul.f32 -1.442695, %v11356_v1  ;;  %v4206_v42 = vpop.f32.mrf.mxu0  ;;  %v13383_v52 = vld [vmem:[#allocation16_spill] sm:$0xff] }
 0x256   : > { %5058 = vmatprep.subr.bf16.mxu0 %v13377_v22  ;;  %5170 = vmatpush1.bf16.msra.mxu1 %v13378_v44  ;;  %v4203_v55 = vadd.f32 %v4202_v45, %v4090_v59  ;;  %v13380_v54 = vcombine.high %v10894_v8, %v10899_v16  ;;  %v11383_v6 = vadd.f32 %v13381_v10, %v3993_v40  ;;  %7199 = vpow2.f32 %v6939_v26  ;;  %v4319_v35 = vpop.f32.mrf.mxu1  ;;  %v7188_v10 = vpop.eup %7187 }
 0x257   : > { %v11376_v12 = vsel %vm3439_vm0, %v13379_v19, 0  ;;  %v3997_v22 = vadd.f32 %v13382_v9, %v10655_v14  ;;  %v11387_v44 = vadd.f32 %v4313_v13, %v4201_v53  ;;  %4883 = vmatmul.mubr.bf16.gmra.mxu0 %v13383_v52  ;;  %7201 = vrcp.f32 %v5659_v4  ;;  %v13386_v9 = vld [vmem:[#allocation80_spill] sm:$0xff]  ;;  %v13387_v13 = vld [vmem:[#allocation82_spill] sm:$0xff] }
 0x258   : > { %5171 = vmatprep.subr.bf16.mxu1 %v13380_v54  ;;  %v5666_v59 = vadd.f32 1.0, %v7186_v37  ;;  %v11390_v45 = vadd.f32 %v4315_v49, %v4203_v55  ;;  %v4207_v19 = vadd.f32 %v4206_v42, %v4094_v28  ;;  %v13384_v54 = vld [vmem:[#allocation17_spill] sm:$0xff]  ;;  %v13385_v40 = vcombine.low %v13375_v31, %v13376_v41  ;;  %v4208_v55 = vpop.f32.mrf.mxu0  ;;  %v13388_v49 = vld [vmem:[#allocation122_spill] sm:$0xff]  ;;  %v4321_v52 = vpop.f32.mrf.mxu1 }
 0x259   : > { %4996 = vmatmul.mubr.bf16.gmra.mxu1 %v13384_v54  ;;  %v11397_v26 = vadd.f32 %v13386_v9, %v3995_v15  ;;  %v4001_v53 = vadd.f32 %v13387_v13, %v10653_v18  ;;  %7203 = vpow2.f32 %v6940_v3  ;;  %v6947_v4 = vmul.f32 -1.442695, %v11387_v44  ;;  %v13389_v28 = vld [vmem:[#allocation102_spill] sm:$0xff]  ;;  %v13394_v3 = vld [vmem:[#allocation19_spill] sm:$0xff]  ;;  %v13395_v9 = vld [vmem:[#allocation112_spill] sm:$0xff] }
 0x25a   : > { %5059 = vmatpush1.bf16.msra.mxu0 %v13385_v40  ;;  %v13390_v37 = vcombine.high %v13388_v49, %v13389_v28  ;;  %v13391_v42 = vcombine.low %v10894_v8, %v10899_v16  ;;  %7205 = vrcp.f32 %v5666_v59  ;;  %v5667_v31 = vadd.f32 1.0, %v7188_v10  ;;  %v13393_v54 = vld [vmem:[#allocation18_spill] sm:$0xff]  ;;  %5005 = vmatprep.mubr.bf16.mxu1 %v13394_v3  ;;  %v7190_v40 = vpop.eup %7189  ;;  %v4210_v16 = vpop.f32.mrf.mxu0  ;;  %v13397_v59 = vld [vmem:[#allocation111_spill] sm:$0xff] }
 0x25b   : > { %v6948_v15 = vmul.f32 -1.442695, %v11390_v45  ;;  %v11409_v41 = vadd.f32 %v4319_v35, %v4207_v19  ;;  %4892 = vmatprep.mubr.bf16.mxu0 %v13393_v54  ;;  %v11414_v13 = vadd.f32 %v13395_v9, %v3997_v22  ;;  %7207 = vpow2.f32 %v6947_v4  ;;  %v4323_v54 = vpop.f32.mrf.mxu1  ;;  %v7192_v3 = vpop.eup %7191  ;;  %v13400_v9 = vld [vmem:[#allocation84_spill] sm:$0xff] }
 0x25c   : > { %5060 = vmatprep.subr.bf16.mxu0 %v13390_v37  ;;  %5172 = vmatpush1.bf16.msra.mxu1 %v13391_v42  ;;  %v13396_v37 = vld [vmem:[#allocation86_spill] sm:$0xff]  ;;  %v4209_v8 = vadd.f32 %v4208_v55, %v4096_v58  ;;  %v13398_v10 = vcombine.high %v10928_v57, %v13397_v59  ;;  %7209 = vrcp.f32 %v5667_v31  ;;  %v5674_v35 = vadd.f32 1.0, %v7190_v40  ;;  %v13401_v58 = vld [vmem:[#allocation88_spill] sm:$0xff]  ;;  %v4212_v31 = vpop.f32.mrf.mxu0 }
 0x25d   : > { %13392 = vst [vmem:[#allocation138_spill] sm:$0xff] %v11409_v41  ;;  %v4003_v60 = vadd.f32 %v13396_v37, %v10655_v14  ;;  %v6955_v19 = vmul.f32 -1.442695, %v11409_v41  ;;  %v4211_v42 = vadd.f32 %v4210_v16, %v11345_v38  ;;  %v13399_v22 = vcombine.low %v13388_v49, %v13389_v28  ;;  %v13402_v40 = vld [vmem:[#allocation108_spill] sm:$0xff]  ;;  %v4325_v16 = vpop.f32.mrf.mxu1 }
 0x25e   : > { %5173 = vmatprep.subr.bf16.mxu1 %v13398_v10  ;;  %v11427_v4 = vadd.f32 %v13400_v9, %v4001_v53  ;;  %v4005_v55 = vadd.f32 %v13401_v58, %v10653_v18  ;;  %7211 = vpow2.f32 %v6948_v15  ;;  %v11431_v37 = vadd.f32 %v4321_v52, %v4209_v8  ;;  %v13403_v10 = vld [vmem:[#allocation106_spill] sm:$0xff]  ;;  %v7194_v52 = vpop.eup %7193  ;;  %v13410_v9 = vld [vmem:[#allocation21_spill] sm:$0xff] }
 0x25f   : > { %5061 = vmatpush1.bf16.msra.mxu0 %v13399_v22  ;;  %v13404_v41 = vcombine.high %v13402_v40, %v13403_v10  ;;  %v13405_v38 = vcombine.low %v10928_v57, %v13397_v59  ;;  %7213 = vrcp.f32 %v5674_v35  ;;  %v5675_v49 = vadd.f32 1.0, %v7192_v3  ;;  %v13407_v8 = vld [vmem:[#allocation90_spill] sm:$0xff]  ;;  %v4216_v35 = vpop.f32.mrf.mxu0  ;;  %v4329_v3 = vpop.f32.mrf.mxu1 }
 0x260   : > { %v11439_v28 = vadd.f32 %v4323_v54, %v4211_v42  ;;  %v4213_v53 = vadd.f32 %v4212_v31, %v11348_v2  ;;  %v13406_v15 = vcombine.high %v10972_v25, %v10972_v25  ;;  %v11447_v22 = vadd.f32 %v13407_v8, %v4003_v60  ;;  %v13409_v42 = vld [vmem:[#allocation20_spill] sm:$0xff]  ;;  %v7196_v58 = vpop.eup %7195 }
 0x261   : > { %5062 = vmatprep.subr.bf16.mxu0 %v13404_v41  ;;  %5174 = vmatpush1.bf16.msra.mxu1 %v13405_v38  ;;  %v13408_v41 = vld [vmem:[#allocation114_spill] sm:$0xff]  ;;  %7215 = vpow2.f32 %v6955_v19  ;;  %v6956_v59 = vmul.f32 -1.442695, %v11431_v37  ;;  %v5682_v2 = vadd.f32 1.0, %v7194_v52  ;;  %v13411_v60 = vcombine.low %v13402_v40, %v13403_v10  ;;  %v13412_v19 = vld [vmem:[#allocation92_spill] sm:$0xff]  ;;  %v13413_v38 = vld [vmem:[#allocation91_spill] sm:$0xff]  ;;  %v4218_v52 = vpop.f32.mrf.mxu0 }
 0x262   : > { %6896 = vmatprep.subr.msk.bf16.mxu1 %vm3439_vm0, %v13406_v15  ;;  %v4007_v57 = vadd.f32 %v13408_v41, %v10655_v14  ;;  %4893 = vmatmul.mubr.bf16.gmra.mxu0 %v13409_v42  ;;  %7217 = vrcp.f32 %v5675_v49  ;;  %v6963_v54 = vmul.f32 -1.442695, %v11439_v28  ;;  %v11454_v25 = vadd.f32 %v4325_v16, %v4213_v53  ;;  %v13414_v53 = vld [vmem:[#allocation125_spill] sm:$0xff]  ;;  %v13415_v16 = vld [vmem:[#allocation126_spill] sm:$0xff]  ;;  %v4331_v41 = vpop.f32.mrf.mxu1 }
 0x263   : > { %5006 = vmatmul.mubr.bf16.gmra.mxu1 %v13410_v9  ;;  %5063 = vmatpush2.bf16.msra.mxu0 %v13411_v60  ;;  %v11461_v31 = vadd.f32 %v13412_v19, %v4005_v55  ;;  %v4011_v15 = vadd.f32 %v13413_v38, %v10653_v18  ;;  %7219 = vpow2.f32 %v6956_v59  ;;  %v4217_v49 = vadd.f32 %v4216_v35, %v11362_v47  ;;  %v13417_v42 = vld [vmem:[#allocation22_spill] sm:$0xff]  ;;  %v13418_v9 = vld [vmem:[#allocation23_spill] sm:$0xff]  ;;  %v7198_v59 = vpop.eup %7197  ;;  %v13420_v60 = vld [vmem:[#allocation96_spill] sm:$0xff] }
 0x264   : > { %v13416_v8 = vcombine.high %v13414_v53, %v13415_v16  ;;  %7221 = vrcp.f32 %v5682_v2  ;;  %v5683_v40 = vadd.f32 1.0, %v7196_v58  ;;  %v6964_v10 = vmul.f32 -1.442695, %v11454_v25  ;;  %4902 = vmatprep.mubr.bf16.mxu0 %v13417_v42  ;;  %5015 = vmatprep.mubr.bf16.mxu1 %v13418_v9  ;;  %v13419_v47 = vld [vmem:[#allocation119_spill] sm:$0xff]  ;;  %v4220_v2 = vpop.f32.mrf.mxu0 }
 0x265   : > { %5178 = vmatpush2.bf16.msra.mxu1 %v11376_v12  ;;  %v4219_v55 = vadd.f32 %v4218_v52, %v11383_v6  ;;  %v11475_v35 = vadd.f32 %v13419_v47, %v4007_v57  ;;  %v4013_v19 = vadd.f32 %v13420_v60, %v10655_v14  ;;  %7223 = vpow2.f32 %v6963_v54  ;;  %v7200_v6 = vpop.eup %7199 }
 0x266   : > { %5064 = vmatprep.subr.bf16.mxu0 %v13416_v8  ;;  %v11479_v12 = vadd.f32 %v4329_v3, %v4217_v49  ;;  %v13421_v58 = vcombine.high %v10999_v20, %v11004_v23  ;;  %v6042_v38 = vmul.f32 %v7198_v59, %v11189_v51  ;;  %7225 = vrcp.f32 %v5683_v40  ;;  %v4333_v8 = vpop.f32.mrf.mxu1  ;;  %v7202_v3 = vpop.eup %7201  ;;  %v13423_v49 = vld [vmem:[#allocation94_spill] sm:$0xff]  ;;  %v13424_v51 = vld [vmem:[#allocation115_spill] sm:$0xff] }
 0x267   : > { %v11485_v52 = vadd.f32 %v4331_v41, %v4219_v55  ;;  %v4221_v57 = vadd.f32 %v4220_v2, %v11397_v26  ;;  %v13422_v54 = vcombine.low %v13414_v53, %v13415_v16  ;;  %v11492_v42 = vadd.f32 %v13423_v49, %v4011_v15  ;;  %v4222_v60 = vpop.f32.mrf.mxu0  ;;  %v13425_v40 = vld [vmem:[#allocation123_spill] sm:$0xff]  ;;  %v7204_v41 = vpop.eup %7203 }
 0x268   : > { %5179 = vmatprep.subr.bf16.mxu1 %v13421_v58  ;;  %v5690_v9 = vadd.f32 1.0, %v7200_v6  ;;  %7227 = vpow2.f32 %v6964_v10  ;;  %v6971_v47 = vmul.f32 -1.442695, %v11479_v12  ;;  %v13426_v55 = vcombine.high %v13424_v51, %v13425_v40  ;;  %6170 = vst [vmem:[%s9969_s27 + $0x10] sm:$0xff] %v6042_v38  ;;  %v4335_v59 = vpop.f32.mrf.mxu1  ;;  %v7206_v58 = vpop.eup %7205  ;;  %v13429_v6 = vld [vmem:[#allocation95_spill] sm:$0xff] }
 0x269   : > { %5065 = vmatpush2.bf16.msra.mxu0 %v13422_v54  ;;  %v13427_v26 = vcombine.low %v10999_v20, %v11004_v23  ;;  %v6043_v53 = vmul.f32 %v7202_v3, %v11216_v63  ;;  %v6972_v15 = vmul.f32 -1.442695, %v11485_v52  ;;  %v11504_v16 = vadd.f32 %v4333_v8, %v4221_v57  ;;  %v13430_v23 = vld [vmem:[#allocation120_spill] sm:$0xff]  ;;  %v4226_v54 = vpop.f32.mrf.mxu0  ;;  %v7208_v57 = vpop.eup %7207 }
 0x26a   : > { %5066 = vmatprep.subr.bf16.mxu0 %v13426_v55  ;;  %v4223_v10 = vadd.f32 %v4222_v60, %v11414_v13  ;;  %v13428_v2 = vcombine.high %v11045_v33, %v11050_v62  ;;  %v11511_v20 = vadd.f32 %v13429_v6, %v4013_v19  ;;  %v4015_v38 = vadd.f32 %v13430_v23, %v10653_v18  ;;  %v13431_v3 = vld [vmem:[#allocation24_spill] sm:$0xff]  ;;  %v4339_v19 = vpop.f32.mrf.mxu1  ;;  %v13432_v60 = vld [vmem:[#allocation25_spill] sm:$0xff]  ;;  %v7210_v55 = vpop.eup %7209  ;;  %v13438_v23 = vld [vmem:[#allocation26_spill] sm:$0xff] }
 0x26b   : > { %5180 = vmatpush2.bf16.msra.mxu1 %v13427_v26  ;;  %7229 = vrcp.f32 %v5690_v9  ;;  %v5691_v63 = vadd.f32 1.0, %v7204_v41  ;;  %4903 = vmatmul.mubr.bf16.gmra.mxu0 %v13431_v3  ;;  %6171 = vst [vmem:[%s9969_s27 + $0x18] sm:$0xff] %v6043_v53  ;;  %v6050_v13 = vmul.f32 %v7206_v58, %v11235_v34  ;;  %v6979_v8 = vmul.f32 -1.442695, %v11504_v16  ;;  %v13434_v26 = vld [vmem:[#allocation101_spill] sm:$0xff]  ;;  %v7212_v58 = vpop.eup %7211  ;;  %v13440_v3 = vld [vmem:[#allocation99_spill] sm:$0xff] }
 0x26c   : > { %5181 = vmatprep.subr.bf16.mxu1 %v13428_v2  ;;  %7231 = vpow2.f32 %v6971_v47  ;;  %v11519_v49 = vadd.f32 %v4335_v59, %v4223_v10  ;;  %5016 = vmatmul.mubr.bf16.gmra.mxu1 %v13432_v60  ;;  %v13433_v9 = vcombine.low %v13424_v51, %v13425_v40  ;;  %v4017_v41 = vadd.f32 %v13434_v26, %v10655_v14  ;;  %v4228_v47 = vpop.f32.mrf.mxu0  ;;  %v13435_v2 = vld [vmem:[#allocation129_spill] sm:$0xff] }
 0x26d   : > { %7233 = vrcp.f32 %v5691_v63  ;;  %v5698_v53 = vadd.f32 1.0, %v7208_v57  ;;  %v4227_v34 = vadd.f32 %v4226_v54, %v11427_v4  ;;  %v13436_v10 = vcombine.high %v11023_v0, %v13435_v2  ;;  %6178 = vst [vmem:[%s9969_s27 + $0x50] sm:$0xff] %v6050_v13  ;;  %v4341_v4 = vpop.f32.mrf.mxu1  ;;  %4912 = vmatprep.mubr.bf16.mxu0 %v13438_v23  ;;  %v13439_v63 = vld [vmem:[#allocation27_spill] sm:$0xff]  ;;  %v7214_v54 = vpop.eup %7213  ;;  %v13443_v26 = vld [vmem:[#allocation113_spill] sm:$0xff] }
 0x26e   : > { %5067 = vmatpush2.bf16.msra.mxu0 %v13433_v9  ;;  %v13437_v59 = vcombine.low %v11045_v33, %v11050_v62  ;;  %v6051_v51 = vmul.f32 %v7210_v55, %v11259_v21  ;;  %7235 = vpow2.f32 %v6972_v15  ;;  %v6980_v40 = vmul.f32 -1.442695, %v11519_v49  ;;  %5025 = vmatprep.mubr.bf16.mxu1 %v13439_v63  ;;  %v4230_v13 = vpop.f32.mrf.mxu0  ;;  %v7216_v15 = vpop.eup %7215 }
 0x26f   : > { %5068 = vmatprep.subr.bf16.mxu0 %v13436_v10  ;;  %v4229_v6 = vadd.f32 %v4228_v47, %v11447_v22  ;;  %v11541_v57 = vadd.f32 %v13440_v3, %v4015_v38  ;;  %7237 = vrcp.f32 %v5698_v53  ;;  %v5699_v33 = vadd.f32 1.0, %v7212_v58  ;;  %v4343_v9 = vpop.f32.mrf.mxu1  ;;  %v7218_v55 = vpop.eup %7217 }
 0x270   : > { %5182 = vmatpush2.bf16.msra.mxu1 %v13437_v59  ;;  %v11543_v62 = vadd.f32 %v4339_v19, %v4227_v34  ;;  %v13441_v21 = vcombine.high %v11076_v30, %v11081_v24  ;;  %6179 = vst [vmem:[%s9969_s27 + $0x58] sm:$0xff] %v6051_v51  ;;  %v6058_v22 = vmul.f32 %v7214_v54, %v11277_v11  ;;  %7239 = vpow2.f32 %v6979_v8  ;;  %v4232_v10 = vpop.f32.mrf.mxu0  ;;  %v7220_v8 = vpop.eup %7219 }
 0x271   : > { %v11550_v60 = vadd.f32 %v4341_v4, %v4229_v6  ;;  %v4231_v38 = vadd.f32 %v4230_v13, %v11461_v31  ;;  %v13442_v19 = vcombine.low %v11023_v0, %v13435_v2  ;;  %v11557_v53 = vadd.f32 %v13443_v26, %v4017_v41  ;;  %v4345_v59 = vpop.f32.mrf.mxu1  ;;  %v7222_v51 = vpop.eup %7221  ;;  %v13447_v6 = vld [vmem:[#allocation131_spill] sm:$0xff]  ;;  %v13449_v13 = vld [vmem:[#allocation29_spill] sm:$0xff] }
 0x272   : > { %5183 = vmatprep.subr.bf16.mxu1 %v13441_v21  ;;  %7241 = vrcp.f32 %v5699_v33  ;;  %v5706_v34 = vadd.f32 1.0, %v7216_v15  ;;  %v6987_v47 = vmul.f32 -1.442695, %v11543_v62  ;;  %v13444_v11 = vcombine.high %v11055_v5, %v11071_v56  ;;  %6186 = vst [vmem:[%s9969_s27 + $0x90] sm:$0xff] %v6058_v22  ;;  %v4236_v23 = vpop.f32.mrf.mxu0  ;;  %v13451_v15 = vld [vmem:[#allocation128_spill] sm:$0xff] }
 0x273   : > { %5069 = vmatpush2.bf16.msra.mxu0 %v13442_v19  ;;  %v13445_v31 = vcombine.low %v11076_v30, %v11081_v24  ;;  %v6059_v0 = vmul.f32 %v7218_v55, %v11291_v27  ;;  %7243 = vpow2.f32 %v6980_v40  ;;  %v6988_v41 = vmul.f32 -1.442695, %v11550_v60  ;;  %v13448_v27 = vld [vmem:[#allocation28_spill] sm:$0xff]  ;;  %v7224_v40 = vpop.eup %7223  ;;  %v4349_v33 = vpop.f32.mrf.mxu1  ;;  %v13452_v19 = vld [vmem:[#allocation127_spill] sm:$0xff] }
 0x274   : > { %5070 = vmatprep.subr.bf16.mxu0 %v13444_v11  ;;  %v11569_v2 = vadd.f32 %v4343_v9, %v4231_v38  ;;  %v13446_v58 = vcombine.high %v11123_v48, %v11128_v32  ;;  %v4021_v24 = vadd.f32 %v13447_v6, %v10653_v18  ;;  %7245 = vrcp.f32 %v5706_v34  ;;  %4913 = vmatmul.mubr.bf16.gmra.mxu0 %v13448_v27  ;;  %v4238_v9 = vpop.f32.mrf.mxu0  ;;  %v13453_v55 = vld [vmem:[#allocation132_spill] sm:$0xff]  ;;  %v13456_v11 = vld [vmem:[#allocation30_spill] sm:$0xff] }
 0x275   : > { %5184 = vmatpush2.bf16.msra.mxu1 %v13445_v31  ;;  %v5707_v30 = vadd.f32 1.0, %v7220_v8  ;;  %v4233_v4 = vadd.f32 %v4232_v10, %v11475_v35  ;;  %6187 = vst [vmem:[%s9969_s27 + $0x98] sm:$0xff] %v6059_v0  ;;  %v6066_v63 = vmul.f32 %v7222_v51, %v11308_v7  ;;  %7247 = vpow2.f32 %v6987_v47  ;;  %v7226_v35 = vpop.eup %7225  ;;  %v4351_v10 = vpop.f32.mrf.mxu1  ;;  %4922 = vmatprep.mubr.bf16.mxu0 %v13456_v11  ;;  %v13457_v31 = vld [vmem:[#allocation31_spill] sm:$0xff]  ;;  %v13458_v8 = vld [vmem:[#allocation118_spill] sm:$0xff]  ;;  %v13462_v27 = vld [vmem:[#allocation124_spill] sm:$0xff] }
 0x276   : > { %5185 = vmatprep.subr.bf16.mxu1 %v13446_v58  ;;  %v6995_v54 = vmul.f32 -1.442695, %v11569_v2  ;;  %v4237_v3 = vadd.f32 %v4236_v23, %v11492_v42  ;;  %5026 = vmatmul.mubr.bf16.gmra.mxu1 %v13449_v13  ;;  %v13450_v21 = vcombine.low %v11055_v5, %v11071_v56  ;;  %v4023_v22 = vadd.f32 %v13451_v15, %v10655_v14  ;;  %v7228_v34 = vpop.eup %7227 }
 0x277   : > { %7249 = vrcp.f32 %v5707_v30  ;;  %v5714_v38 = vadd.f32 1.0, %v7224_v40  ;;  %v11588_v7 = vadd.f32 %v4345_v59, %v4233_v4  ;;  %v13454_v26 = vcombine.high %v13452_v19, %v13453_v55  ;;  %6194 = vst [vmem:[%s9969_s27 + $0xd0] sm:$0xff] %v6066_v63  ;;  %5035 = vmatprep.mubr.bf16.mxu1 %v13457_v31  ;;  %v4240_v59 = vpop.f32.mrf.mxu0  ;;  %v4353_v6 = vpop.f32.mrf.mxu1  ;;  %v13461_v4 = vld [vmem:[#allocation121_spill] sm:$0xff] }
 0x278   : > { %5071 = vmatpush2.bf16.msra.mxu0 %v13450_v21  ;;  %v13455_v42 = vcombine.low %v11123_v48, %v11128_v32  ;;  %v6067_v56 = vmul.f32 %v7226_v35, %v11322_v43  ;;  %7251 = vpow2.f32 %v6988_v41  ;;  %v11598_v5 = vadd.f32 %v4349_v33, %v4237_v3  ;;  %v7230_v41 = vpop.eup %7229 }
 0x279   : > { %5072 = vmatprep.subr.bf16.mxu0 %v13454_v26  ;;  %v4239_v47 = vadd.f32 %v4238_v9, %v11511_v20  ;;  %v4134_v0 = vadd.f32 %v13458_v8, %v4021_v24  ;;  %7253 = vrcp.f32 %v5714_v38  ;;  %v5715_v48 = vadd.f32 1.0, %v7228_v34  ;;  %v7232_v30 = vpop.eup %7231 }
 0x27a   : > { %5186 = vmatpush2.bf16.msra.mxu1 %v13455_v42  ;;  %v6996_v32 = vmul.f32 -1.442695, %v11588_v7  ;;  %v13459_v43 = vcombine.high %v11171_v36, %v11176_v61  ;;  %6195 = vst [vmem:[%s9969_s27 + $0xd8] sm:$0xff] %v6067_v56  ;;  %7255 = vpow2.f32 %v6995_v54  ;;  %v7003_v20 = vmul.f32 -1.442695, %v11598_v5  ;;  %v4242_v54 = vpop.f32.mrf.mxu0  ;;  %v7234_v33 = vpop.eup %7233 }
 0x27b   : > { %v11610_v58 = vadd.f32 %v4351_v10, %v4239_v47  ;;  %v4241_v51 = vadd.f32 %v4240_v59, %v11541_v57  ;;  %v13460_v24 = vcombine.low %v13452_v19, %v13453_v55  ;;  %v4136_v23 = vadd.f32 %v13461_v4, %v4023_v22  ;;  %v7236_v15 = vpop.eup %7235  ;;  %v13466_v22 = vld [vmem:[#allocation130_spill] sm:$0xff]  ;;  %v13467_v19 = vld [vmem:[#allocation32_spill] sm:$0xff]  ;;  %v13468_v47 = vld [vmem:[#allocation33_spill] sm:$0xff] }
 0x27c   : > { %5187 = vmatprep.subr.bf16.mxu1 %v13459_v43  ;;  %v4025_v40 = vadd.f32 %v13462_v27, %v10653_v18  ;;  %v6074_v63 = vmul.f32 %v7230_v41, %v11339_v17  ;;  %7257 = vrcp.f32 %v5715_v48  ;;  %v13463_v3 = vcombine.high %v11154_v50, %v11159_v39  ;;  %v4355_v18 = vpop.f32.mrf.mxu1  ;;  %v4246_v9 = vpop.f32.mrf.mxu0  ;;  %4923 = vmatmul.mubr.bf16.gmra.mxu0 %v13467_v19  ;;  %v13470_v10 = vld [vmem:[#allocation133_spill] sm:$0xff]  ;;  %v13471_v48 = vld [vmem:[#allocation135_spill] sm:$0xff] }
 0x27d   : > { %5073 = vmatpush2.bf16.msra.mxu0 %v13460_v24  ;;  %v13464_v57 = vcombine.low %v11171_v36, %v11176_v61  ;;  %v5722_v13 = vadd.f32 1.0, %v7232_v30  ;;  %7259 = vpow2.f32 %v6996_v32  ;;  %v7004_v21 = vmul.f32 -1.442695, %v11610_v58  ;;  %v7238_v55 = vpop.eup %7237  ;;  %v13477_v24 = vld [vmem:[#allocation134_spill] sm:$0xff] }
 0x27e   : > { %5074 = vmatprep.subr.bf16.mxu0 %v13463_v3  ;;  %v11627_v35 = vadd.f32 %v4353_v6, %v4241_v51  ;;  %v13465_v17 = vcombine.high %v11243_v46, %v11248_v29  ;;  %v4027_v38 = vadd.f32 %v13466_v22, %v10655_v14  ;;  %6202 = vst [vmem:[%s9969_s27 + $0x110] sm:$0xff] %v6074_v63  ;;  %7261 = vpow2.f32 %v7003_v20  ;;  %v4359_v56 = vpop.f32.mrf.mxu1  ;;  %v4248_v8 = vpop.f32.mrf.mxu0  ;;  %v13475_v20 = vld [vmem:[#allocation34_spill] sm:$0xff]  ;;  %v13476_v51 = vld [vmem:[#allocation35_spill] sm:$0xff] }
 0x27f   : > { %5188 = vmatpush2.bf16.msra.mxu1 %v13464_v57  ;;  %v6075_v36 = vmul.f32 %v7234_v33, %v11356_v1  ;;  %v4243_v61 = vadd.f32 %v4242_v54, %v11557_v53  ;;  %7263 = vrcp.f32 %v5722_v13  ;;  %v5723_v26 = vadd.f32 1.0, %v7236_v15  ;;  %v7240_v1 = vpop.eup %7239  ;;  %5078 = vmatprep.mubr.bf16.mxu0 %v13475_v20 }
 0x280   : > { %5189 = vmatprep.subr.bf16.mxu1 %v13465_v17  ;;  %v7011_v42 = vmul.f32 -1.442695, %v11627_v35  ;;  %v4247_v34 = vadd.f32 %v4246_v9, %v4134_v0  ;;  %5036 = vmatmul.mubr.bf16.gmra.mxu1 %v13468_v47  ;;  %v13469_v14 = vcombine.low %v11154_v50, %v11159_v39  ;;  %v4138_v11 = vadd.f32 %v13470_v10, %v4025_v40  ;;  %v13472_v0 = vld [vmem:[#allocation137_spill] sm:$0xff]  ;;  %v7242_v50 = vpop.eup %7241  ;;  %v4250_v4 = vpop.f32.mrf.mxu0 }
 0x281   : > { %6203 = vst [vmem:[%s9969_s27 + $0x118] sm:$0xff] %v6075_v36  ;;  %v6082_v53 = vmul.f32 %v7238_v55, %v11387_v44  ;;  %7265 = vpow2.f32 %v7004_v21  ;;  %v11646_v31 = vadd.f32 %v4355_v18, %v4243_v61  ;;  %v13473_v32 = vcombine.high %v13471_v48, %v13472_v0  ;;  %v4361_v44 = vpop.f32.mrf.mxu1  ;;  %6897 = vmatprep.mubr.msk.bf16.mxu1 %vm3414_vm1, %v13476_v51  ;;  %v7244_v6 = vpop.eup %7243  ;;  %v13480_v55 = vld [vmem:[#allocation36_spill] sm:$0xff]  ;;  %v13481_v47 = vld [vmem:[#allocation37_spill] sm:$0xff] }
 0x282   : > { %5075 = vmatpush2.bf16.msra.mxu0 %v13469_v14  ;;  %v13474_v59 = vcombine.low %v11243_v46, %v11248_v29  ;;  %7267 = vrcp.f32 %v5723_v26  ;;  %v5730_v39 = vadd.f32 1.0, %v7240_v1  ;;  %v11654_v43 = vadd.f32 %v4359_v56, %v4247_v34  ;;  %v7246_v27 = vpop.eup %7245  ;;  %v4252_v21 = vpop.f32.mrf.mxu0  ;;  %v13482_v14 = vld [vmem:[#allocation38_spill] sm:$0xff] }
 0x283   : > { %5076 = vmatprep.subr.bf16.mxu0 %v13473_v32  ;;  %v4249_v41 = vadd.f32 %v4248_v8, %v4136_v23  ;;  %v4140_v30 = vadd.f32 %v13477_v24, %v4027_v38  ;;  %6210 = vst [vmem:[%s9969_s27 + $0x150] sm:$0xff] %v6082_v53  ;;  %v6083_v46 = vmul.f32 %v7242_v50, %v11390_v45  ;;  %7269 = vpow2.f32 %v7011_v42  ;;  %v4363_v54 = vpop.f32.mrf.mxu1  ;;  %v7248_v57 = vpop.eup %7247  ;;  %v13479_v45 = vld [vmem:[#allocation138_spill] sm:$0xff]  ;;  %v13483_v53 = vld [vmem:[#allocation39_spill] sm:$0xff] }
 0x284   : > { %5190 = vmatpush2.bf16.msra.mxu1 %v13474_v59  ;;  %v7012_v29 = vmul.f32 -1.442695, %v11646_v31  ;;  %7271 = vrcp.f32 %v5730_v39  ;;  %v5731_v23 = vadd.f32 1.0, %v7244_v6  ;;  %v7019_v40 = vmul.f32 -1.442695, %v11654_v43  ;;  %v7250_v18 = vpop.eup %7249  ;;  %v11676_v19 = vpop.f32.mrf.mxu0 }
 0x285   : > { %v11664_v63 = vadd.f32 %v4361_v44, %v4249_v41  ;;  %v13478_v3 = vcombine.low %v13471_v48, %v13472_v0  ;;  %6211 = vst [vmem:[%s9969_s27 + $0x158] sm:$0xff] %v6083_v46  ;;  %v6090_v33 = vmul.f32 %v7246_v27, %v13479_v45  ;;  %v4251_v13 = vadd.f32 %v4250_v4, %v4138_v11  ;;  %v4365_v38 = vpop.f32.mrf.mxu1  ;;  %v7252_v36 = vpop.eup %7251  ;;  %v13484_v27 = vld [vmem:[#allocation40_spill] sm:$0xff] }
 0x286   : > { %7273 = vpow2.f32 %v7012_v29  ;;  %v5738_v17 = vadd.f32 1.0, %v7248_v57  ;;  %v4253_v22 = vadd.f32 %v4252_v21, %v4140_v30  ;;  %v6091_v61 = vmul.f32 %v7250_v18, %v11431_v37  ;;  %v7254_v26 = vpop.eup %7253  ;;  %v11688_v11 = vpop.f32.mrf.mxu0 }
 0x287   : > { %5077 = vmatpush2.bf16.msra.mxu0 %v13478_v3  ;;  %7275 = vrcp.f32 %v5731_v23  ;;  %v7020_v15 = vmul.f32 -1.442695, %v11664_v63  ;;  %6218 = vst [vmem:[%s9969_s27 + $0x190] sm:$0xff] %v6090_v33  ;;  %v11674_v9 = vadd.f32 %v4363_v54, %v4251_v13  ;;  %v5739_v42 = vadd.f32 1.0, %v7252_v36  ;;  %v11681_v56 = vpop.f32.mrf.mxu1  ;;  %v7256_v37 = vpop.eup %7255  ;;  %v13485_v3 = vld [vmem:[#allocation41_spill] sm:$0xff]  ;;  %v13487_v13 = vld [vmem:[#allocation43_spill] sm:$0xff] }
 0x288   : > { %7277 = vpow2.f32 %v7019_v40  ;;  %v11679_v34 = vadd.f32 %v4365_v38, %v4253_v22  ;;  %5192 = vmatmul.mubr.bf16.vlgmr.msra.gmra.mxu1 %v13481_v47  ;;  %6219 = vst [vmem:[%s9969_s27 + $0x198] sm:$0xff] %v6091_v61  ;;  %v6098_v1 = vmul.f32 %v7254_v26, %v11439_v28  ;;  %v5746_v48 = vadd.f32 1.0, %v7256_v37  ;;  %v11697_v50 = vpop.f32.mrf.mxu0 }
 0x289   : > { %7279 = vrcp.f32 %v5738_v17  ;;  %v7027_v10 = vmul.f32 -1.442695, %v11674_v9  ;;  %6898 = vmatprep.mubr.msk.bf16.mxu1 %vm3414_vm1, %v13483_v53  ;;  %v7258_v8 = vpop.eup %7257  ;;  %v11693_v32 = vpop.f32.mrf.mxu1 }
 0x28a   : > { %5079 = vmatmul.mubr.bf16.vlgmr.msra.gmra.mxu0 %v13480_v55  ;;  %7281 = vpow2.f32 %v7020_v15  ;;  %v7028_v0 = vmul.f32 -1.442695, %v11679_v34  ;;  %v7260_v59 = vpop.eup %7259  ;;  %6226 = vst [vmem:[%s9969_s27 + $0x1d0] sm:$0xff] %v6098_v1  ;;  %v6099_v28 = vmul.f32 %v7258_v8, %v11454_v25  ;;  %v11702_v6 = vpop.f32.mrf.mxu0 }
 0x28b   : > { %5088 = vmatprep.mubr.bf16.mxu0 %v13482_v14  ;;  %7283 = vrcp.f32 %v5739_v42  ;;  %v7262_v39 = vpop.eup %7261  ;;  %v5747_v41 = vadd.f32 1.0, %v7260_v59  ;;  %v11699_v44 = vpop.f32.mrf.mxu1  ;;  %v13490_v59 = vld [vmem:[#allocation46_spill] sm:$0xff] }
 0x28c   : > { %7285 = vpow2.f32 %v7027_v10  ;;  %v7264_v20 = vpop.eup %7263  ;;  %6227 = vst [vmem:[%s9969_s27 + $0x1d8] sm:$0xff] %v6099_v28  ;;  %v5754_v51 = vadd.f32 1.0, %v7262_v39  ;;  %v11707_v4 = vpop.f32.mrf.mxu0 }
 0x28d   : > { %7287 = vrcp.f32 %v5746_v48  ;;  %v6106_v30 = vmul.f32 %v7264_v20, %v11479_v12  ;;  %v11705_v25 = vpop.f32.mrf.mxu1  ;;  %v13486_v12 = vld [vmem:[#allocation42_spill] sm:$0xff] }
 0x28e   : > { %7289 = vpow2.f32 %v7028_v0  ;;  %v7266_v24 = vpop.eup %7265  ;;  %v11716_v33 = vpop.f32.mrf.mxu0  ;;  %v13489_v0 = vld [vmem:[#allocation45_spill] sm:$0xff] }
 0x28f   : > { %7291 = vrcp.f32 %v5747_v41  ;;  %v7268_v46 = vpop.eup %7267  ;;  %v5755_v29 = vadd.f32 1.0, %v7266_v24  ;;  %6234 = vst [vmem:[%s9969_s27 + $0x210] sm:$0xff] %v6106_v30  ;;  %v11712_v54 = vpop.f32.mrf.mxu1  ;;  %v13491_v41 = vld [vmem:[#allocation47_spill] sm:$0xff] }
 0x290   : > { %7293 = vrcp.f32 %v5754_v51  ;;  %v7270_v23 = vpop.eup %7269  ;;  %v6107_v40 = vmul.f32 %v7268_v46, %v11485_v52  ;;  %5202 = vmatmul.mubr.bf16.gmra.mxu1 %v13485_v3  ;;  %v11724_v22 = vpop.f32.mrf.mxu0 }
 0x291   : > { %v7272_v57 = vpop.eup %7271  ;;  %7295 = vrcp.f32 %v5755_v29  ;;  %v5762_v45 = vadd.f32 1.0, %v7270_v23  ;;  %6899 = vmatprep.mubr.msk.bf16.mxu1 %vm3414_vm1, %v13487_v13  ;;  %v11722_v18 = vpop.f32.mrf.mxu1  ;;  %v13492_v13 = vld [vmem:[#allocation48_spill] sm:$0xff] }
 0x292   : > { %5089 = vmatmul.mubr.bf16.gmra.mxu0 %v13484_v27  ;;  %6235 = vst [vmem:[%s9969_s27 + $0x218] sm:$0xff] %v6107_v40  ;;  %v6114_v52 = vmul.f32 %v7272_v57, %v11504_v16  ;;  %v11730_v42 = vpop.f32.mrf.mxu0 }
 0x293   : > { %5098 = vmatprep.mubr.bf16.mxu0 %v13486_v12  ;;  %v7274_v21 = vpop.eup %7273  ;;  %7297 = vrcp.f32 %v5762_v45  ;;  %v11728_v61 = vpop.f32.mrf.mxu1 }
 0x294   : > { %v7276_v17 = vpop.eup %7275  ;;  %v5763_v15 = vadd.f32 1.0, %v7274_v21  ;;  %6242 = vst [vmem:[%s9969_s27 + $0x250] sm:$0xff] %v6114_v52  ;;  %v11736_v10 = vpop.f32.mrf.mxu0  ;;  %v13494_v52 = vld [vmem:[#allocation50_spill] sm:$0xff] }
 0x295   : > { %v7278_v38 = vpop.eup %7277  ;;  %v6115_v36 = vmul.f32 %v7276_v17, %v11519_v49  ;;  %v11734_v14 = vpop.f32.mrf.mxu1  ;;  %v13488_v49 = vld [vmem:[#allocation44_spill] sm:$0xff] }
 0x296   : > { %v7280_v55 = vpop.eup %7279  ;;  %7299 = vrcp.f32 %v5763_v15  ;;  %v5770_v26 = vadd.f32 1.0, %v7278_v38  ;;  %v11745_v39 = vpop.f32.mrf.mxu0  ;;  %v13495_v38 = vld [vmem:[#allocation51_spill] sm:$0xff] }
 0x297   : > { %v7282_v16 = vpop.eup %7281  ;;  %6243 = vst [vmem:[%s9969_s27 + $0x258] sm:$0xff] %v6115_v36  ;;  %v6122_v47 = vmul.f32 %v7280_v55, %v11543_v62  ;;  %v11741_v48 = vpop.f32.mrf.mxu1 }
 0x298   : > { %v7284_v37 = vpop.eup %7283  ;;  %7301 = vrcp.f32 %v5770_v26  ;;  %v5771_v1 = vadd.f32 1.0, %v7282_v16  ;;  %5212 = vmatmul.mubr.bf16.gmra.mxu1 %v13489_v0  ;;  %v11753_v46 = vpop.f32.mrf.mxu0 }
 0x299   : > { %v7286_v53 = vpop.eup %7285  ;;  %6250 = vst [vmem:[%s9969_s27 + $0x290] sm:$0xff] %v6122_v47  ;;  %v6123_v8 = vmul.f32 %v7284_v37, %v11550_v60  ;;  %6900 = vmatprep.mubr.msk.bf16.mxu1 %vm3414_vm1, %v13491_v41  ;;  %v11751_v51 = vpop.f32.mrf.mxu1 }
 0x29a   : > { %5099 = vmatmul.mubr.bf16.gmra.mxu0 %v13488_v49  ;;  %v7288_v62 = vpop.eup %7287  ;;  %7303 = vrcp.f32 %v5771_v1  ;;  %v5778_v28 = vadd.f32 1.0, %v7286_v53  ;;  %v11760_v3 = vpop.f32.mrf.mxu0 }
 0x29b   : > { %5108 = vmatprep.mubr.bf16.mxu0 %v13490_v59  ;;  %v7290_v20 = vpop.eup %7289  ;;  %6251 = vst [vmem:[%s9969_s27 + $0x298] sm:$0xff] %v6123_v8  ;;  %v6130_v60 = vmul.f32 %v7288_v62, %v11569_v2  ;;  %v11757_v23 = vpop.f32.mrf.mxu1  ;;  %v13497_v62 = vld [vmem:[#allocation53_spill] sm:$0xff] }
 0x29c   : > { %v7292_v24 = vpop.eup %7291  ;;  %7305 = vrcp.f32 %v5778_v28  ;;  %v5779_v30 = vadd.f32 1.0, %v7290_v20  ;;  %v11767_v45 = vpop.f32.mrf.mxu0  ;;  %v13499_v20 = vld [vmem:[#allocation55_spill] sm:$0xff] }
 0x29d   : > { %v7294_v29 = vpop.eup %7293  ;;  %6258 = vst [vmem:[%s9969_s27 + $0x2d0] sm:$0xff] %v6130_v60  ;;  %v6131_v27 = vmul.f32 %v7292_v24, %v11588_v7  ;;  %v11763_v12 = vpop.f32.mrf.mxu1 }
 0x29e   : > { %v6138_v40 = vmul.f32 %v7294_v29, %v11598_v5  ;;  %7307 = vrcp.f32 %v5779_v30  ;;  %v7296_v2 = vpop.eup %7295  ;;  %v13493_v5 = vld [vmem:[#allocation49_spill] sm:$0xff]  ;;  %v11776_v15 = vpop.f32.mrf.mxu0 }
 0x29f   : > { %6259 = vst [vmem:[%s9969_s27 + $0x2d8] sm:$0xff] %v6131_v27  ;;  %v6139_v57 = vmul.f32 %v7296_v2, %v11610_v58  ;;  %v11770_v21 = vpop.f32.mrf.mxu1  ;;  %v13500_v2 = vld [vmem:[#allocation56_spill] sm:$0xff] }
 0x2a0   : > { %6266 = vst [vmem:[%s9969_s27 + $0x310] sm:$0xff] %v6138_v40  ;;  %v7298_v7 = vpop.eup %7297  ;;  %5222 = vmatmul.mubr.bf16.gmra.mxu1 %v13493_v5  ;;  %v11784_v26 = vpop.f32.mrf.mxu0  ;;  %v13503_v5 = vld [vmem:[#allocation59_spill] sm:$0xff] }
 0x2a1   : > { %6267 = vst [vmem:[%s9969_s27 + $0x318] sm:$0xff] %v6139_v57  ;;  %v6146_v17 = vmul.f32 %v7298_v7, %v11627_v35  ;;  %6901 = vmatprep.mubr.msk.bf16.mxu1 %vm3414_vm1, %v13495_v38  ;;  %v11780_v36 = vpop.f32.mrf.mxu1  ;;  %v13502_v7 = vld [vmem:[#allocation58_spill] sm:$0xff] }
 0x2a2   : > { %5109 = vmatmul.mubr.bf16.gmra.mxu0 %v13492_v13  ;;  %v11790_v37 = vpop.f32.mrf.mxu0  ;;  %v13501_v13 = vld [vmem:[#allocation57_spill] sm:$0xff] }
 0x2a3   : > { %5118 = vmatprep.mubr.bf16.mxu0 %v13494_v52  ;;  %v7300_v58 = vpop.eup %7299  ;;  %6274 = vst [vmem:[%s9969_s27 + $0x350] sm:$0xff] %v6146_v17  ;;  %v11786_v47 = vpop.f32.mrf.mxu1 }
 0x2a4   : > { %v6147_v55 = vmul.f32 %v7300_v58, %v11646_v31  ;;  %v11796_v8 = vpop.f32.mrf.mxu0  ;;  %v13496_v31 = vld [vmem:[#allocation52_spill] sm:$0xff] }
 0x2a5   : > { %v7302_v16 = vpop.eup %7301  ;;  %v11792_v49 = vpop.f32.mrf.mxu1 }
 0x2a6   : > { %6275 = vst [vmem:[%s9969_s27 + $0x358] sm:$0xff] %v6147_v55  ;;  %v6154_v35 = vmul.f32 %v7302_v16, %v11654_v43  ;;  %v13498_v43 = vld [vmem:[#allocation54_spill] sm:$0xff]  ;;  %v11805_v41 = vpop.f32.mrf.mxu0 }
 0x2a7   : > { %v7304_v1 = vpop.eup %7303  ;;  %v11799_v59 = vpop.f32.mrf.mxu1 }
 0x2a8   : > { %6282 = vst [vmem:[%s9969_s27 + $0x390] sm:$0xff] %v6154_v35  ;;  %v6155_v53 = vmul.f32 %v7304_v1, %v11664_v63  ;;  %5232 = vmatmul.mubr.bf16.gmra.mxu1 %v13497_v62  ;;  %v11813_v30 = vpop.f32.mrf.mxu0  ;;  %v13504_v35 = vld [vmem:[#allocation60_spill] sm:$0xff]  ;;  %v13508_v62 = vld [vmem:[#allocation63_spill] sm:$0xff] }
 0x2a9   : > { %v7306_v0 = vpop.eup %7305  ;;  %6902 = vmatprep.mubr.msk.bf16.mxu1 %vm3414_vm1, %v13499_v20  ;;  %v11809_v60 = vpop.f32.mrf.mxu1 }
 0x2aa   : > { %5119 = vmatmul.mubr.bf16.gmra.mxu0 %v13496_v31  ;;  %6283 = vst [vmem:[%s9969_s27 + $0x398] sm:$0xff] %v6155_v53  ;;  %v6162_v28 = vmul.f32 %v7306_v0, %v11674_v9  ;;  %v11818_v27 = vpop.f32.mrf.mxu0  ;;  %v13506_v53 = vld [vmem:[#allocation61_spill] sm:$0xff]  ;;  %v13507_v31 = vld [vmem:[#allocation62_spill] sm:$0xff] }
 0x2ab   : > { %5128 = vmatprep.mubr.bf16.mxu0 %v13498_v43  ;;  %v7308_v63 = vpop.eup %7307  ;;  %v11815_v29 = vpop.f32.mrf.mxu1  ;;  %v13509_v43 = vld [vmem:[#allocation89_spill] sm:$0xff] }
 0x2ac   : > { %6290 = vst [vmem:[%s9969_s27 + $0x3d0] sm:$0xff] %v6162_v28  ;;  %v6163_v24 = vmul.f32 %v7308_v63, %v11679_v34  ;;  %v11822_v9 = vpop.f32.mrf.mxu0  ;;  %v892_v28 = vsub.s32 4, %v13509_v43 }
 0x2ad   : > { %v11820_v40 = vpop.f32.mrf.mxu1 }
 0x2ae   : > { %6291 = vst [vmem:[%s9969_s27 + $0x3d8] sm:$0xff] %v6163_v24  ;;  %v11829_v34 = vpop.f32.mrf.mxu0  ;;  %v896_v24 = vsub.s32 5, %v13509_v43  ;;  %v13518_v43 = vld [vmem:[#allocation65_spill] sm:$0xff] }
 0x2af   : > { %v11825_v57 = vpop.f32.mrf.mxu1 }
 0x2b0   : > { %5242 = vmatmul.mubr.bf16.gmra.mxu1 %v13501_v13  ;;  %v11835_v17 = vpop.f32.mrf.mxu0 }
 0x2b1   : > { %6903 = vmatprep.mubr.msk.bf16.mxu1 %vm3414_vm1, %v13503_v5  ;;  %v11833_v52 = vpop.f32.mrf.mxu1 }
 0x2b2   : > { %5129 = vmatmul.mubr.bf16.gmra.mxu0 %v13500_v2  ;;  %v11839_v58 = vpop.f32.mrf.mxu0 }
 0x2b3   : > { %5138 = vmatprep.mubr.bf16.mxu0 %v13502_v7  ;;  %v11837_v38 = vpop.f32.mrf.mxu1  ;;  %v7566_v7 = vld [vmem:[%s12627_s2] sm:$0xff] }
 0x2b4   : > { %v11843_v16 = vpop.f32.mrf.mxu0  ;;  %v11867_v5 = vrot.slane %v7566_v7, %v892_v28 }
 0x2b5   : > { %v11841_v55 = vpop.f32.mrf.mxu1 }
 0x2b6   : > { %v11850_v0 = vpop.f32.mrf.mxu0 }
 0x2b7   : > { %v11846_v1 = vpop.f32.mrf.mxu1 }
 0x2b8   : > { %13505 = vst [vmem:[#allocation136_spill] sm:$0xff] %v11846_v1  ;;  %5252 = vmatmul.mubr.bf16.gmra.mxu1 %v13506_v53  ;;  %v11857_v63 = vpop.f32.mrf.mxu0 }
 0x2b9   : > { %6904 = vmatprep.mubr.msk.bf16.mxu1 %vm3414_vm1, %v13508_v62  ;;  %v11855_v20 = vpop.f32.mrf.mxu1  ;;  %13511 = vst [vmem:[#allocation140_spill] sm:$0xff] %v11857_v63  ;;  %v11874_v62 = vrot.slane %v7566_v7, %v896_v24 }
 0x2ba   : > { %5139 = vmatmul.mubr.bf16.gmra.mxu0 %v13504_v35  ;;  %13510 = vst [vmem:[#allocation104_spill] sm:$0xff] %v11855_v20  ;;  %v11862_v13 = vpop.f32.mrf.mxu0 }
 0x2bb   : > { %5148 = vmatprep.mubr.bf16.mxu0 %v13507_v31  ;;  %v11860_v2 = vpop.f32.mrf.mxu1  ;;  %13513 = vst [vmem:[#allocation139_spill] sm:$0xff] %v11862_v13  ;;  %v13516_v31 = vld [vmem:[#allocation64_spill] sm:$0xff]  ;;  %v4403_v13 = vadd.f32 %v11676_v19, %v11867_v5 }
 0x2bc   : > { %13512 = vst [vmem:[#allocation141_spill] sm:$0xff] %v11860_v2  ;;  %v11871_v53 = vpop.f32.mrf.mxu0 }
 0x2bd   : > { %v11869_v35 = vpop.f32.mrf.mxu1  ;;  %13515 = vst [vmem:[#allocation145_spill] sm:$0xff] %v11871_v53  ;;  %v4405_v53 = vadd.f32 %v11688_v11, %v11874_v62  ;;  %v4516_v7 = vadd.f32 %v11681_v56, %v4403_v13  ;;  %v4413_v11 = vadd.f32 %v11707_v4, %v11867_v5 }
 0x2be   : > { %13514 = vst [vmem:[#allocation144_spill] sm:$0xff] %v11869_v35  ;;  %v11879_v2 = vpop.f32.mrf.mxu0 }
 0x2bf   : > { %v11876_v63 = vpop.f32.mrf.mxu1  ;;  %13519 = vst [vmem:[#allocation143_spill] sm:$0xff] %v11879_v2  ;;  %v4518_v19 = vadd.f32 %v11693_v32, %v4405_v53  ;;  %v4526_v4 = vadd.f32 %v11712_v54, %v4413_v11 }
 0x2c0   : > { %13517 = vst [vmem:[#allocation142_spill] sm:$0xff] %v11876_v63  ;;  %5262 = vmatmul.mubr.bf16.gmra.mxu1 %v13518_v43  ;;  %v11885_v28 = vpop.f32.mrf.mxu0  ;;  %v4407_v43 = vadd.f32 %v11697_v50, %v11867_v5 }
 0x2c1   : > { %v11883_v20 = vpop.f32.mrf.mxu1  ;;  %13521 = vst [vmem:[#allocation67_spill] sm:$0xff] %v11885_v28  ;;  %v4409_v28 = vadd.f32 %v11702_v6, %v11874_v62 }
 0x2c2   : > { %5149 = vmatmul.mubr.bf16.gmra.mxu0 %v13516_v31  ;;  %13520 = vst [vmem:[#allocation103_spill] sm:$0xff] %v11883_v20  ;;  %v11891_v24 = vpop.f32.mrf.mxu0 }
 0x2c3   : > { %v11889_v35 = vpop.f32.mrf.mxu1  ;;  %13523 = vst [vmem:[#allocation3_spill] sm:$0xff] %v11891_v24  ;;  %v4520_v24 = vadd.f32 %v11699_v44, %v4407_v43  ;;  %v4522_v32 = vadd.f32 %v11705_v25, %v4409_v28  ;;  %v4417_v44 = vadd.f32 %v11724_v22, %v11867_v5  ;;  %v4419_v28 = vadd.f32 %v11730_v42, %v11874_v62 }
 0x2c4   : > { %13522 = vst [vmem:[#allocation2_spill] sm:$0xff] %v11889_v35  ;;  %v4628_v63 = vpop.f32.mrf.mxu0 }
 0x2c5   : > { %v11896_v31 = vpop.f32.mrf.mxu1  ;;  %v4629_v20 = vadd.f32 %v4628_v63, %v4516_v7  ;;  %v4530_v11 = vadd.f32 %v11728_v61, %v4417_v44 }
 0x2c6   : > { %13524 = vst [vmem:[#allocation4_spill] sm:$0xff] %v11896_v31  ;;  %v4630_v35 = vpop.f32.mrf.mxu0  ;;  %v4415_v31 = vadd.f32 %v11716_v33, %v11874_v62 }
 0x2c7   : > { %v4741_v2 = vpop.f32.mrf.mxu1  ;;  %v4631_v13 = vadd.f32 %v4630_v35, %v4518_v19 }
 0x2c8   : > { %v11904_v56 = vadd.f32 %v4741_v2, %v4629_v20  ;;  %v4632_v1 = vpop.f32.mrf.mxu0  ;;  %v4528_v25 = vadd.f32 %v11722_v18, %v4415_v31 }
 0x2c9   : > { %v4743_v50 = vpop.f32.mrf.mxu1  ;;  %v4633_v53 = vadd.f32 %v4632_v1, %v4520_v24 }
 0x2ca   : > { %v6909_v6 = vmul.f32 -1.442695, %v11904_v56  ;;  %v11910_v63 = vadd.f32 %v4743_v50, %v4631_v13  ;;  %v4634_v20 = vpop.f32.mrf.mxu0  ;;  %v4423_v13 = vadd.f32 %v11736_v10, %v11867_v5 }
 0x2cb   : > { %v4745_v7 = vpop.f32.mrf.mxu1  ;;  %v4635_v33 = vadd.f32 %v4634_v20, %v4522_v32 }
 0x2cc   : > { %7309 = vpow2.f32 %v6909_v6  ;;  %v6910_v2 = vmul.f32 -1.442695, %v11910_v63  ;;  %v11916_v35 = vadd.f32 %v4745_v7, %v4633_v53  ;;  %v4638_v1 = vpop.f32.mrf.mxu0  ;;  %v4532_v6 = vadd.f32 %v11734_v14, %v4419_v28 }
 0x2cd   : > { %v4747_v43 = vpop.f32.mrf.mxu1  ;;  %v4639_v22 = vadd.f32 %v4638_v1, %v4526_v4  ;;  %v4425_v53 = vadd.f32 %v11745_v39, %v11874_v62  ;;  %v4536_v20 = vadd.f32 %v11741_v48, %v4423_v13  ;;  %v4435_v48 = vadd.f32 %v11776_v15, %v11874_v62 }
 0x2ce   : > { %7311 = vpow2.f32 %v6910_v2  ;;  %v6917_v54 = vmul.f32 -1.442695, %v11916_v35  ;;  %v11922_v24 = vadd.f32 %v4747_v43, %v4635_v33  ;;  %v4640_v50 = vpop.f32.mrf.mxu0  ;;  %v4427_v2 = vadd.f32 %v11753_v46, %v11867_v5 }
 0x2cf   : > { %v4751_v19 = vpop.f32.mrf.mxu1  ;;  %v4641_v42 = vadd.f32 %v4640_v50, %v4528_v25  ;;  %v4429_v33 = vadd.f32 %v11760_v3, %v11874_v62  ;;  %v4538_v1 = vadd.f32 %v11751_v51, %v4425_v53  ;;  %v4437_v46 = vadd.f32 %v11784_v26, %v11867_v5 }
 0x2d0   : > { %7313 = vpow2.f32 %v6917_v54  ;;  %v6918_v18 = vmul.f32 -1.442695, %v11922_v24  ;;  %v11928_v31 = vadd.f32 %v4751_v19, %v4639_v22  ;;  %v4642_v7 = vpop.f32.mrf.mxu0  ;;  %v4433_v54 = vadd.f32 %v11767_v45, %v11867_v5 }
 0x2d1   : > { %v4753_v32 = vpop.f32.mrf.mxu1  ;;  %v4643_v10 = vadd.f32 %v4642_v7, %v4530_v11  ;;  %v4540_v50 = vadd.f32 %v11757_v23, %v4427_v2  ;;  %v4542_v51 = vadd.f32 %v11763_v12, %v4429_v33  ;;  %v4439_v45 = vadd.f32 %v11790_v37, %v11874_v62 }
 0x2d2   : > { %7315 = vpow2.f32 %v6918_v18  ;;  %v6925_v61 = vmul.f32 -1.442695, %v11928_v31  ;;  %v11934_v4 = vadd.f32 %v4753_v32, %v4641_v42  ;;  %v4644_v14 = vpop.f32.mrf.mxu0  ;;  %v4443_v15 = vadd.f32 %v11796_v8, %v11867_v5 }
 0x2d3   : > { %v4755_v44 = vpop.f32.mrf.mxu1  ;;  %v4645_v25 = vadd.f32 %v4644_v14, %v4532_v6  ;;  %v4546_v7 = vadd.f32 %v11770_v21, %v4433_v54  ;;  %v4548_v23 = vadd.f32 %v11780_v36, %v4435_v48  ;;  %v4550_v12 = vadd.f32 %v11786_v47, %v4437_v46 }
 0x2d4   : > { %7317 = vpow2.f32 %v6925_v61  ;;  %v6926_v39 = vmul.f32 -1.442695, %v11934_v4  ;;  %v11942_v43 = vadd.f32 %v4755_v44, %v4643_v10  ;;  %v4648_v3 = vpop.f32.mrf.mxu0  ;;  %v4445_v37 = vadd.f32 %v11805_v41, %v11874_v62 }
 0x2d5   : > { %v4757_v28 = vpop.f32.mrf.mxu1  ;;  %v4649_v11 = vadd.f32 %v4648_v3, %v4536_v20  ;;  %v4552_v33 = vadd.f32 %v11792_v49, %v4439_v45  ;;  %v11973_v21 = vadd.f32 %v11799_v59, %v4443_v15  ;;  %v4447_v36 = vadd.f32 %v11813_v30, %v11867_v5 }
 0x2d6   : > { %7319 = vpow2.f32 %v6926_v39  ;;  %v6933_v22 = vmul.f32 -1.442695, %v11942_v43  ;;  %v11952_v19 = vadd.f32 %v4757_v28, %v4645_v25  ;;  %v4650_v18 = vpop.f32.mrf.mxu0  ;;  %v11979_v54 = vadd.f32 %v11809_v60, %v4445_v37 }
 0x2d7   : > { %v4761_v13 = vpop.f32.mrf.mxu1  ;;  %v4651_v32 = vadd.f32 %v4650_v18, %v4538_v1  ;;  %v4449_v49 = vadd.f32 %v11818_v27, %v11874_v62  ;;  %v4453_v60 = vadd.f32 %v11822_v9, %v11867_v5 }
 0x2d8   : > { %7321 = vpow2.f32 %v6933_v22  ;;  %v6934_v26 = vmul.f32 -1.442695, %v11952_v19  ;;  %v11961_v42 = vadd.f32 %v4761_v13, %v4649_v11  ;;  %v4652_v61 = vpop.f32.mrf.mxu0  ;;  %v11988_v13 = vadd.f32 %v11815_v29, %v4447_v36 }
 0x2d9   : > { %v4763_v6 = vpop.f32.mrf.mxu1  ;;  %v7310_v53 = vpop.eup %7309  ;;  %v4653_v47 = vadd.f32 %v4652_v61, %v4540_v50  ;;  %v4455_v29 = vadd.f32 %v11829_v34, %v11874_v62 }
 0x2da   : > { %v5660_v8 = vadd.f32 1.0, %v7310_v53  ;;  %7323 = vpow2.f32 %v6934_v26  ;;  %v6941_v10 = vmul.f32 -1.442695, %v11961_v42  ;;  %v11969_v44 = vadd.f32 %v4763_v6, %v4651_v32  ;;  %v4654_v14 = vpop.f32.mrf.mxu0 }
 0x2db   : > { %v4765_v20 = vpop.f32.mrf.mxu1  ;;  %v7312_v2 = vpop.eup %7311  ;;  %v4655_v25 = vadd.f32 %v4654_v14, %v4542_v51  ;;  %v11997_v32 = vadd.f32 %v11820_v40, %v4449_v49  ;;  %v4457_v40 = vadd.f32 %v11835_v17, %v11867_v5 }
 0x2dc   : > { %7325 = vrcp.f32 %v5660_v8  ;;  %v5661_v41 = vadd.f32 1.0, %v7312_v2  ;;  %v6942_v39 = vmul.f32 -1.442695, %v11969_v44  ;;  %v11983_v59 = vadd.f32 %v4765_v20, %v4653_v47  ;;  %v4658_v48 = vpop.f32.mrf.mxu0 }
 0x2dd   : > { %v4767_v28 = vpop.f32.mrf.mxu1  ;;  %v7314_v1 = vpop.eup %7313  ;;  %7327 = vpow2.f32 %v6941_v10  ;;  %v4659_v3 = vadd.f32 %v4658_v48, %v4546_v7  ;;  %v12003_v10 = vadd.f32 %v11825_v57, %v4453_v60  ;;  %v4459_v57 = vadd.f32 %v11839_v58, %v11874_v62 }
 0x2de   : > { %7329 = vrcp.f32 %v5661_v41  ;;  %v5668_v30 = vadd.f32 1.0, %v7314_v1  ;;  %v11985_v46 = vadd.f32 %v4767_v28, %v4655_v25  ;;  %v6949_v27 = vmul.f32 -1.442695, %v11983_v59  ;;  %v4660_v50 = vpop.f32.mrf.mxu0 }
 0x2df   : > { %v4771_v22 = vpop.f32.mrf.mxu1  ;;  %v7316_v11 = vpop.eup %7315  ;;  %7331 = vpow2.f32 %v6942_v39  ;;  %v4661_v9 = vadd.f32 %v4660_v50, %v4548_v23  ;;  %v12021_v49 = vadd.f32 %v11837_v38, %v4457_v40  ;;  %v4465_v38 = vadd.f32 %v11850_v0, %v11874_v62  ;;  %v13526_v40 = vld [vmem:[#allocation104_spill] sm:$0xff] }
 0x2e0   : > { %7333 = vrcp.f32 %v5668_v30  ;;  %v5669_v51 = vadd.f32 1.0, %v7316_v11  ;;  %v6950_v45 = vmul.f32 -1.442695, %v11985_v46  ;;  %v11994_v15 = vadd.f32 %v4771_v22, %v4659_v3  ;;  %v4662_v6 = vpop.f32.mrf.mxu0 }
 0x2e1   : > { %v4773_v18 = vpop.f32.mrf.mxu1  ;;  %v7318_v26 = vpop.eup %7317  ;;  %7335 = vpow2.f32 %v6949_v27  ;;  %v4663_v37 = vadd.f32 %v4662_v6, %v4550_v12  ;;  %v12012_v12 = vadd.f32 %v11833_v52, %v4455_v29  ;;  %v4463_v52 = vadd.f32 %v11843_v16, %v11867_v5 }
 0x2e2   : > { %7337 = vrcp.f32 %v5669_v51  ;;  %v5676_v53 = vadd.f32 1.0, %v7318_v26  ;;  %v6957_v7 = vmul.f32 -1.442695, %v11994_v15  ;;  %v12007_v20 = vadd.f32 %v4773_v18, %v4661_v9  ;;  %v4664_v34 = vpop.f32.mrf.mxu0 }
 0x2e3   : > { %v4775_v61 = vpop.f32.mrf.mxu1  ;;  %v7320_v8 = vpop.eup %7319  ;;  %7339 = vpow2.f32 %v6950_v45  ;;  %v4665_v36 = vadd.f32 %v4664_v34, %v4552_v33  ;;  %v12029_v27 = vadd.f32 %v11841_v55, %v4459_v57  ;;  %v13525_v55 = vld [vmem:[#allocation136_spill] sm:$0xff]  ;;  %v12050_v34 = vadd.f32 %v13526_v40, %v4465_v38 }
 0x2e4   : > { %7341 = vrcp.f32 %v5676_v53  ;;  %v5677_v23 = vadd.f32 1.0, %v7320_v8  ;;  %v12009_v2 = vadd.f32 %v4775_v61, %v4663_v37  ;;  %v6958_v17 = vmul.f32 -1.442695, %v12007_v20  ;;  %v4668_v41 = vpop.f32.mrf.mxu0 }
 0x2e5   : > { %v4777_v47 = vpop.f32.mrf.mxu1  ;;  %v7322_v14 = vpop.eup %7321  ;;  %7343 = vpow2.f32 %v6957_v7  ;;  %v4669_v58 = vadd.f32 %v4668_v41, %v11973_v21  ;;  %v12040_v29 = vadd.f32 %v13525_v55, %v4463_v52  ;;  %v13530_v55 = vld [vmem:[#allocation144_spill] sm:$0xff] }
 0x2e6   : > { %7345 = vrcp.f32 %v5677_v23  ;;  %v5684_v39 = vadd.f32 1.0, %v7322_v14  ;;  %v6965_v25 = vmul.f32 -1.442695, %v12009_v2  ;;  %v12018_v28 = vadd.f32 %v4777_v47, %v4665_v36  ;;  %v4670_v48 = vpop.f32.mrf.mxu0  ;;  %v13527_v23 = vld [vmem:[#allocation140_spill] sm:$0xff] }
 0x2e7   : > { %v4781_v1 = vpop.f32.mrf.mxu1  ;;  %v7324_v33 = vpop.eup %7323  ;;  %7347 = vpow2.f32 %v6958_v17  ;;  %v4671_v22 = vadd.f32 %v4670_v48, %v11979_v54  ;;  %v4467_v36 = vadd.f32 %v13527_v23, %v11867_v5 }
 0x2e8   : > { %7349 = vrcp.f32 %v5684_v39  ;;  %v5685_v30 = vadd.f32 1.0, %v7324_v33  ;;  %v6966_v3 = vmul.f32 -1.442695, %v12018_v28  ;;  %v12033_v16 = vadd.f32 %v4781_v1, %v4669_v58  ;;  %v4672_v21 = vpop.f32.mrf.mxu0 }
 0x2e9   : > { %v4783_v11 = vpop.f32.mrf.mxu1  ;;  %v7326_v60 = vpop.eup %7325  ;;  %7351 = vpow2.f32 %v6965_v25  ;;  %v4673_v54 = vadd.f32 %v4672_v21, %v11988_v13  ;;  %v13528_v25 = vld [vmem:[#allocation139_spill] sm:$0xff] }
 0x2ea   : > { %v7328_v50 = vpop.eup %7327  ;;  %v6044_v51 = vmul.f32 %v7326_v60, %v11904_v56  ;;  %7353 = vrcp.f32 %v5685_v30  ;;  %v12036_v45 = vadd.f32 %v4783_v11, %v4671_v22  ;;  %v6973_v0 = vmul.f32 -1.442695, %v12033_v16  ;;  %v4674_v6 = vpop.f32.mrf.mxu0  ;;  %v13529_v60 = vld [vmem:[#allocation141_spill] sm:$0xff] }
 0x2eb   : > { %v4785_v18 = vpop.f32.mrf.mxu1  ;;  %v7330_v26 = vpop.eup %7329  ;;  %v5692_v9 = vadd.f32 1.0, %v7328_v50  ;;  %7355 = vpow2.f32 %v6966_v3  ;;  %v4675_v13 = vadd.f32 %v4674_v6, %v11997_v32  ;;  %v4469_v1 = vadd.f32 %v13528_v25, %v11874_v62 }
 0x2ec   : > { %v7332_v53 = vpop.eup %7331  ;;  %6172 = vst [vmem:[%s9969_s27 + $0x20] sm:$0xff] %v6044_v51  ;;  %v6045_v56 = vmul.f32 %v7330_v26, %v11910_v63  ;;  %v6974_v7 = vmul.f32 -1.442695, %v12036_v45  ;;  %v12046_v37 = vadd.f32 %v4785_v18, %v4673_v54  ;;  %v4678_v14 = vpop.f32.mrf.mxu0  ;;  %v4580_v38 = vadd.f32 %v13529_v60, %v4467_v36 }
 0x2ed   : > { %v4787_v61 = vpop.f32.mrf.mxu1  ;;  %v7334_v8 = vpop.eup %7333  ;;  %7357 = vrcp.f32 %v5692_v9  ;;  %v5693_v47 = vadd.f32 1.0, %v7332_v53  ;;  %v4679_v52 = vadd.f32 %v4678_v14, %v12003_v10  ;;  %v12075_v9 = vadd.f32 %v13530_v55, %v4469_v1 }
 0x2ee   : > { %v7336_v57 = vpop.eup %7335  ;;  %6173 = vst [vmem:[%s9969_s27 + $0x28] sm:$0xff] %v6045_v56  ;;  %v6052_v63 = vmul.f32 %v7334_v8, %v11916_v35  ;;  %7359 = vpow2.f32 %v6973_v0  ;;  %v6981_v17 = vmul.f32 -1.442695, %v12046_v37  ;;  %v12057_v32 = vadd.f32 %v4787_v61, %v4675_v13  ;;  %v4680_v58 = vpop.f32.mrf.mxu0  ;;  %v13531_v8 = vld [vmem:[#allocation145_spill] sm:$0xff] }
 0x2ef   : > { %v4791_v41 = vpop.f32.mrf.mxu1  ;;  %v7338_v39 = vpop.eup %7337  ;;  %7361 = vrcp.f32 %v5693_v47  ;;  %v5700_v33 = vadd.f32 1.0, %v7336_v57  ;;  %v4681_v3 = vadd.f32 %v4680_v58, %v12012_v12  ;;  %v4473_v40 = vadd.f32 %v13531_v8, %v11867_v5 }
 0x2f0   : > { %v7340_v48 = vpop.eup %7339  ;;  %6180 = vst [vmem:[%s9969_s27 + $0x60] sm:$0xff] %v6052_v63  ;;  %v6053_v35 = vmul.f32 %v7338_v39, %v11922_v24  ;;  %7363 = vpow2.f32 %v6974_v7  ;;  %v6982_v30 = vmul.f32 -1.442695, %v12057_v32  ;;  %v12067_v50 = vadd.f32 %v4791_v41, %v4679_v52  ;;  %v4682_v10 = vpop.f32.mrf.mxu0  ;;  %v13532_v39 = vld [vmem:[#allocation143_spill] sm:$0xff] }
 0x2f1   : > { %v4793_v22 = vpop.f32.mrf.mxu1  ;;  %v7342_v11 = vpop.eup %7341  ;;  %7365 = vrcp.f32 %v5700_v33  ;;  %v5701_v21 = vadd.f32 1.0, %v7340_v48  ;;  %v4683_v18 = vadd.f32 %v4682_v10, %v12021_v49  ;;  %v4475_v25 = vadd.f32 %v13532_v39, %v11874_v62 }
 0x2f2   : > { %v7344_v51 = vpop.eup %7343  ;;  %6181 = vst [vmem:[%s9969_s27 + $0x68] sm:$0xff] %v6053_v35  ;;  %v6060_v54 = vmul.f32 %v7342_v11, %v11928_v31  ;;  %7367 = vpow2.f32 %v6981_v17  ;;  %v12071_v24 = vadd.f32 %v4793_v22, %v4681_v3  ;;  %v6989_v6 = vmul.f32 -1.442695, %v12067_v50  ;;  %v4684_v53 = vpop.f32.mrf.mxu0  ;;  %v13533_v35 = vld [vmem:[#allocation142_spill] sm:$0xff] }
 0x2f3   : > { %v4795_v12 = vpop.f32.mrf.mxu1  ;;  %v7346_v26 = vpop.eup %7345  ;;  %7369 = vrcp.f32 %v5701_v21  ;;  %v5708_v0 = vadd.f32 1.0, %v7344_v51  ;;  %v4685_v36 = vadd.f32 %v4684_v53, %v12029_v27 }
 0x2f4   : > { %v7348_v56 = vpop.eup %7347  ;;  %6188 = vst [vmem:[%s9969_s27 + $0xa0] sm:$0xff] %v6060_v54  ;;  %v6061_v31 = vmul.f32 %v7346_v26, %v11934_v4  ;;  %7371 = vpow2.f32 %v6982_v30  ;;  %v6990_v7 = vmul.f32 -1.442695, %v12071_v24  ;;  %v12081_v13 = vadd.f32 %v4795_v12, %v4683_v18  ;;  %v4688_v47 = vpop.f32.mrf.mxu0  ;;  %v13535_v12 = vld [vmem:[#allocation67_spill] sm:$0xff] }
 0x2f5   : > { %v4797_v49 = vpop.f32.mrf.mxu1  ;;  %v7350_v61 = vpop.eup %7349  ;;  %7373 = vrcp.f32 %v5708_v0  ;;  %v5709_v23 = vadd.f32 1.0, %v7348_v56  ;;  %v4689_v63 = vadd.f32 %v4688_v47, %v12040_v29  ;;  %v4586_v30 = vadd.f32 %v13533_v35, %v4473_v40 }
 0x2f6   : > { %v7352_v14 = vpop.eup %7351  ;;  %6189 = vst [vmem:[%s9969_s27 + $0xa8] sm:$0xff] %v6061_v31  ;;  %v6068_v4 = vmul.f32 %v7350_v61, %v11942_v43  ;;  %7375 = vpow2.f32 %v6989_v6  ;;  %v6997_v57 = vmul.f32 -1.442695, %v12081_v13  ;;  %v12092_v27 = vadd.f32 %v4797_v49, %v4685_v36  ;;  %v4690_v33 = vpop.f32.mrf.mxu0  ;;  %v13536_v49 = vld [vmem:[#allocation3_spill] sm:$0xff] }
 0x2f7   : > { %v4801_v17 = vpop.f32.mrf.mxu1  ;;  %v7354_v41 = vpop.eup %7353  ;;  %7377 = vrcp.f32 %v5709_v23  ;;  %v5716_v1 = vadd.f32 1.0, %v7352_v14  ;;  %v4691_v29 = vadd.f32 %v4690_v33, %v12050_v34  ;;  %v13534_v34 = vld [vmem:[#allocation103_spill] sm:$0xff]  ;;  %v4477_v26 = vadd.f32 %v13535_v12, %v11867_v5 }
 0x2f8   : > { %v7356_v52 = vpop.eup %7355  ;;  %6196 = vst [vmem:[%s9969_s27 + $0xe0] sm:$0xff] %v6068_v4  ;;  %v6069_v43 = vmul.f32 %v7354_v41, %v11952_v19  ;;  %7379 = vpow2.f32 %v6990_v7  ;;  %v12096_v58 = vadd.f32 %v4801_v17, %v4689_v63  ;;  %v6998_v22 = vmul.f32 -1.442695, %v12092_v27  ;;  %v4692_v11 = vpop.f32.mrf.mxu0 }
 0x2f9   : > { %v4803_v48 = vpop.f32.mrf.mxu1  ;;  %7381 = vrcp.f32 %v5716_v1  ;;  %v5717_v3 = vadd.f32 1.0, %v7356_v52  ;;  %v4693_v19 = vadd.f32 %v4692_v11, %v4580_v38  ;;  %v4588_v18 = vadd.f32 %v13534_v34, %v4475_v25  ;;  %v13538_v52 = vld [vmem:[#allocation4_spill] sm:$0xff] }
 0x2fa   : > { %v7358_v60 = vpop.eup %7357  ;;  %6197 = vst [vmem:[%s9969_s27 + $0xe8] sm:$0xff] %v6069_v43  ;;  %7383 = vpow2.f32 %v6997_v57  ;;  %v7005_v21 = vmul.f32 -1.442695, %v12096_v58  ;;  %v12103_v10 = vadd.f32 %v4803_v48, %v4691_v29  ;;  %v4694_v0 = vpop.f32.mrf.mxu0  ;;  %v4479_v61 = vadd.f32 %v13536_v49, %v11874_v62  ;;  %v13537_v57 = vld [vmem:[#allocation2_spill] sm:$0xff] }
 0x2fb   : > { %v4805_v51 = vpop.f32.mrf.mxu1  ;;  %v7360_v54 = vpop.eup %7359  ;;  %v6076_v55 = vmul.f32 %v7358_v60, %v11961_v42  ;;  %7385 = vrcp.f32 %v5717_v3  ;;  %v4695_v42 = vadd.f32 %v4694_v0, %v12075_v9  ;;  %v4590_v63 = vadd.f32 %v13537_v57, %v4477_v26 }
 0x2fc   : > { %v7362_v6 = vpop.eup %7361  ;;  %v5724_v53 = vadd.f32 1.0, %v7360_v54  ;;  %7387 = vpow2.f32 %v6998_v22  ;;  %v7006_v56 = vmul.f32 -1.442695, %v12103_v10  ;;  %v12110_v31 = vadd.f32 %v4805_v51, %v4693_v19  ;;  %v4698_v8 = vpop.f32.mrf.mxu0 }
 0x2fd   : > { %v4807_v38 = vpop.f32.mrf.mxu1  ;;  %v7364_v7 = vpop.eup %7363  ;;  %6204 = vst [vmem:[%s9969_s27 + $0x120] sm:$0xff] %v6076_v55  ;;  %v6077_v5 = vmul.f32 %v7362_v6, %v11969_v44  ;;  %7389 = vpow2.f32 %v7005_v21  ;;  %v4699_v47 = vadd.f32 %v4698_v8, %v4586_v30  ;;  %v4592_v43 = vadd.f32 %v13538_v52, %v4479_v61 }
 0x2fe   : > { %v7366_v40 = vpop.eup %7365  ;;  %7391 = vrcp.f32 %v5724_v53  ;;  %v5725_v23 = vadd.f32 1.0, %v7364_v7  ;;  %v7013_v36 = vmul.f32 -1.442695, %v12110_v31  ;;  %v12121_v44 = vadd.f32 %v4807_v38, %v4695_v42  ;;  %v4700_v17 = vpop.f32.mrf.mxu0 }
 0x2ff   : > { %v4811_v14 = vpop.f32.mrf.mxu1  ;;  %v7368_v4 = vpop.eup %7367  ;;  %6205 = vst [vmem:[%s9969_s27 + $0x128] sm:$0xff] %v6077_v5  ;;  %v6084_v62 = vmul.f32 %v7366_v40, %v11983_v59  ;;  %7393 = vpow2.f32 %v7006_v56  ;;  %v4701_v25 = vadd.f32 %v4700_v17, %v4588_v18 }
 0x300   : > { %v7370_v9 = vpop.eup %7369  ;;  %7395 = vrcp.f32 %v5725_v23  ;;  %v5732_v41 = vadd.f32 1.0, %v7368_v4  ;;  %v12123_v39 = vadd.f32 %v4811_v14, %v4699_v47  ;;  %v7014_v59 = vmul.f32 -1.442695, %v12121_v44  ;;  %v4702_v48 = vpop.f32.mrf.mxu0 }
 0x301   : > { %v4813_v1 = vpop.f32.mrf.mxu1  ;;  %v7372_v33 = vpop.eup %7371  ;;  %6212 = vst [vmem:[%s9969_s27 + $0x160] sm:$0xff] %v6084_v62  ;;  %v6085_v29 = vmul.f32 %v7370_v9, %v11985_v46  ;;  %7397 = vpow2.f32 %v7013_v36  ;;  %v4703_v19 = vadd.f32 %v4702_v48, %v4590_v63 }
 0x302   : > { %v7374_v35 = vpop.eup %7373  ;;  %7399 = vrcp.f32 %v5732_v41  ;;  %v5733_v30 = vadd.f32 1.0, %v7372_v33  ;;  %v7021_v3 = vmul.f32 -1.442695, %v12123_v39  ;;  %v12130_v22 = vadd.f32 %v4813_v1, %v4701_v25  ;;  %v4704_v46 = vpop.f32.mrf.mxu0 }
 0x303   : > { %v4815_v11 = vpop.f32.mrf.mxu1  ;;  %v7376_v60 = vpop.eup %7375  ;;  %6213 = vst [vmem:[%s9969_s27 + $0x168] sm:$0xff] %v6085_v29  ;;  %v6092_v21 = vmul.f32 %v7374_v35, %v11994_v15  ;;  %7401 = vpow2.f32 %v7014_v59  ;;  %v4705_v18 = vadd.f32 %v4704_v46, %v4592_v43 }
 0x304   : > { %v7378_v51 = vpop.eup %7377  ;;  %7403 = vrcp.f32 %v5733_v30  ;;  %v5740_v54 = vadd.f32 1.0, %v7376_v60  ;;  %v7022_v34 = vmul.f32 -1.442695, %v12130_v22  ;;  %v12137_v0 = vadd.f32 %v4815_v11, %v4703_v19  ;;  %v12139_v6 = vpop.f32.mrf.mxu0 }
 0x305   : > { %v4817_v12 = vpop.f32.mrf.mxu1  ;;  %v7380_v26 = vpop.eup %7379  ;;  %6220 = vst [vmem:[%s9969_s27 + $0x1a0] sm:$0xff] %v6092_v21  ;;  %v6093_v55 = vmul.f32 %v7378_v51, %v12007_v20  ;;  %7405 = vpow2.f32 %v7021_v3 }
 0x306   : > { %v7382_v15 = vpop.eup %7381  ;;  %7407 = vrcp.f32 %v5740_v54  ;;  %v5741_v53 = vadd.f32 1.0, %v7380_v26  ;;  %v12141_v56 = vadd.f32 %v4817_v12, %v4705_v18  ;;  %v7029_v20 = vmul.f32 -1.442695, %v12137_v0  ;;  %v12148_v61 = vpop.f32.mrf.mxu0 }
 0x307   : > { %v12143_v38 = vpop.f32.mrf.mxu1  ;;  %v7384_v7 = vpop.eup %7383  ;;  %6221 = vst [vmem:[%s9969_s27 + $0x1a8] sm:$0xff] %v6093_v55  ;;  %v6100_v49 = vmul.f32 %v7382_v15, %v12009_v2  ;;  %7409 = vpow2.f32 %v7022_v34 }
 0x308   : > { %v7386_v5 = vpop.eup %7385  ;;  %7411 = vrcp.f32 %v5741_v53  ;;  %v5748_v42 = vadd.f32 1.0, %v7384_v7  ;;  %v7030_v8 = vmul.f32 -1.442695, %v12141_v56  ;;  %v12155_v47 = vpop.f32.mrf.mxu0 }
 0x309   : > { %v12151_v40 = vpop.f32.mrf.mxu1  ;;  %v7388_v23 = vpop.eup %7387  ;;  %6228 = vst [vmem:[%s9969_s27 + $0x1e0] sm:$0xff] %v6100_v49  ;;  %v6101_v36 = vmul.f32 %v7386_v5, %v12018_v28  ;;  %7413 = vpow2.f32 %v7029_v20 }
 0x30a   : > { %v7390_v2 = vpop.eup %7389  ;;  %7415 = vrcp.f32 %v5748_v42  ;;  %v5749_v14 = vadd.f32 1.0, %v7388_v23  ;;  %v12160_v62 = vpop.f32.mrf.mxu0 }
 0x30b   : > { %v12157_v4 = vpop.f32.mrf.mxu1  ;;  %v7392_v57 = vpop.eup %7391  ;;  %6229 = vst [vmem:[%s9969_s27 + $0x1e8] sm:$0xff] %v6101_v36  ;;  %v5756_v63 = vadd.f32 1.0, %v7390_v2  ;;  %7417 = vpow2.f32 %v7030_v8 }
 0x30c   : > { %v7394_v17 = vpop.eup %7393  ;;  %v6108_v9 = vmul.f32 %v7392_v57, %v12033_v16  ;;  %7419 = vrcp.f32 %v5749_v14  ;;  %v12165_v1 = vpop.f32.mrf.mxu0 }
 0x30d   : > { %v12163_v28 = vpop.f32.mrf.mxu1  ;;  %v7396_v41 = vpop.eup %7395  ;;  %7421 = vrcp.f32 %v5756_v63  ;;  %v5757_v25 = vadd.f32 1.0, %v7394_v17 }
 0x30e   : > { %v7398_v33 = vpop.eup %7397  ;;  %6236 = vst [vmem:[%s9969_s27 + $0x220] sm:$0xff] %v6108_v9  ;;  %v6109_v52 = vmul.f32 %v7396_v41, %v12036_v45  ;;  %v12171_v16 = vpop.f32.mrf.mxu0 }
 0x30f   : > { %v12169_v43 = vpop.f32.mrf.mxu1  ;;  %v7400_v29 = vpop.eup %7399  ;;  %7423 = vrcp.f32 %v5757_v25  ;;  %v5764_v59 = vadd.f32 1.0, %v7398_v33 }
 0x310   : > { %v7402_v48 = vpop.eup %7401  ;;  %6237 = vst [vmem:[%s9969_s27 + $0x228] sm:$0xff] %v6109_v52  ;;  %v6116_v35 = vmul.f32 %v7400_v29, %v12046_v37  ;;  %v12177_v60 = vpop.f32.mrf.mxu0 }
 0x311   : > { %v12175_v30 = vpop.f32.mrf.mxu1  ;;  %v7404_v3 = vpop.eup %7403  ;;  %7425 = vrcp.f32 %v5764_v59  ;;  %v5765_v11 = vadd.f32 1.0, %v7402_v48 }
 0x312   : > { %v7406_v45 = vpop.eup %7405  ;;  %6244 = vst [vmem:[%s9969_s27 + $0x260] sm:$0xff] %v6116_v35  ;;  %v6117_v21 = vmul.f32 %v7404_v3, %v12057_v32  ;;  %v12183_v54 = vpop.f32.mrf.mxu0 }
 0x313   : > { %v12181_v19 = vpop.f32.mrf.mxu1  ;;  %v7408_v46 = vpop.eup %7407  ;;  %7427 = vrcp.f32 %v5765_v11  ;;  %v5772_v51 = vadd.f32 1.0, %v7406_v45 }
 0x314   : > { %v7410_v37 = vpop.eup %7409  ;;  %6245 = vst [vmem:[%s9969_s27 + $0x268] sm:$0xff] %v6117_v21  ;;  %v6124_v34 = vmul.f32 %v7408_v46, %v12067_v50  ;;  %v12189_v55 = vpop.f32.mrf.mxu0 }
 0x315   : > { %v12187_v18 = vpop.f32.mrf.mxu1  ;;  %v7412_v12 = vpop.eup %7411  ;;  %7429 = vrcp.f32 %v5772_v51  ;;  %v5773_v26 = vadd.f32 1.0, %v7410_v37 }
 0x316   : > { %v7414_v32 = vpop.eup %7413  ;;  %6252 = vst [vmem:[%s9969_s27 + $0x2a0] sm:$0xff] %v6124_v34  ;;  %v6125_v15 = vmul.f32 %v7412_v12, %v12071_v24  ;;  %v12195_v20 = vpop.f32.mrf.mxu0 }
 0x317   : > { %v12193_v53 = vpop.f32.mrf.mxu1  ;;  %v7416_v7 = vpop.eup %7415  ;;  %7431 = vrcp.f32 %v5773_v26  ;;  %v5780_v49 = vadd.f32 1.0, %v7414_v32 }
 0x318   : > { %v7418_v50 = vpop.eup %7417  ;;  %6253 = vst [vmem:[%s9969_s27 + $0x2a8] sm:$0xff] %v6125_v15  ;;  %v6132_v5 = vmul.f32 %v7416_v7, %v12081_v13  ;;  %v12201_v36 = vpop.f32.mrf.mxu0 }
 0x319   : > { %v12199_v42 = vpop.f32.mrf.mxu1  ;;  %v7420_v8 = vpop.eup %7419  ;;  %7433 = vrcp.f32 %v5780_v49  ;;  %v5781_v23 = vadd.f32 1.0, %v7418_v50 }
 0x31a   : > { %v7422_v24 = vpop.eup %7421  ;;  %6260 = vst [vmem:[%s9969_s27 + $0x2e0] sm:$0xff] %v6132_v5  ;;  %v6133_v2 = vmul.f32 %v7420_v8, %v12092_v27  ;;  %v12208_v13 = vpop.f32.mrf.mxu0 }
 0x31b   : > { %v12205_v14 = vpop.f32.mrf.mxu1  ;;  %v6140_v57 = vmul.f32 %v7422_v24, %v12096_v58  ;;  %7435 = vrcp.f32 %v5781_v23 }
 0x31c   : > { %v7424_v63 = vpop.eup %7423  ;;  %6261 = vst [vmem:[%s9969_s27 + $0x2e8] sm:$0xff] %v6133_v2  ;;  %v12215_v41 = vpop.f32.mrf.mxu0 }
 0x31d   : > { %v12211_v17 = vpop.f32.mrf.mxu1  ;;  %6268 = vst [vmem:[%s9969_s27 + $0x320] sm:$0xff] %v6140_v57  ;;  %v6141_v9 = vmul.f32 %v7424_v63, %v12103_v10 }
 0x31e   : > { %v7426_v25 = vpop.eup %7425  ;;  %v12221_v33 = vpop.f32.mrf.mxu0 }
 0x31f   : > { %v12217_v27 = vpop.f32.mrf.mxu1  ;;  %6269 = vst [vmem:[%s9969_s27 + $0x328] sm:$0xff] %v6141_v9  ;;  %v6148_v58 = vmul.f32 %v7426_v25, %v12110_v31  ;;  %v13540_v9 = vld [vmem:[#allocation89_spill] sm:$0xff] }
 0x320   : > { %v7428_v52 = vpop.eup %7427  ;;  %v12227_v48 = vpop.f32.mrf.mxu0  ;;  %v900_v25 = vsub.s32 6, %v13540_v9 }
 0x321   : > { %v12223_v29 = vpop.f32.mrf.mxu1  ;;  %6276 = vst [vmem:[%s9969_s27 + $0x360] sm:$0xff] %v6148_v58  ;;  %v6149_v59 = vmul.f32 %v7428_v52, %v12121_v44 }
 0x322   : > { %v7430_v10 = vpop.eup %7429  ;;  %v12233_v11 = vpop.f32.mrf.mxu0 }
 0x323   : > { %v12229_v35 = vpop.f32.mrf.mxu1  ;;  %6277 = vst [vmem:[%s9969_s27 + $0x368] sm:$0xff] %v6149_v59  ;;  %v6156_v3 = vmul.f32 %v7430_v10, %v12123_v39  ;;  %v904_v59 = vsub.s32 7, %v13540_v9 }
 0x324   : > { %v7432_v31 = vpop.eup %7431  ;;  %v12239_v46 = vpop.f32.mrf.mxu0 }
 0x325   : > { %v12235_v45 = vpop.f32.mrf.mxu1  ;;  %6284 = vst [vmem:[%s9969_s27 + $0x3a0] sm:$0xff] %v6156_v3  ;;  %v6157_v21 = vmul.f32 %v7432_v31, %v12130_v22  ;;  %v7567_v31 = vld [vmem:[%s12627_s2] sm:$0xff] }
 0x326   : > { %v7434_v44 = vpop.eup %7433  ;;  %v12245_v34 = vpop.f32.mrf.mxu0 }
 0x327   : > { %v12241_v51 = vpop.f32.mrf.mxu1  ;;  %6285 = vst [vmem:[%s9969_s27 + $0x3a8] sm:$0xff] %v6157_v21  ;;  %v6164_v37 = vmul.f32 %v7434_v44, %v12137_v0  ;;  %v12295_v21 = vrot.slane %v7567_v31, %v900_v25 }
 0x328   : > { %v7436_v39 = vpop.eup %7435  ;;  %v12251_v32 = vpop.f32.mrf.mxu0 }
 0x329   : > { %v12247_v12 = vpop.f32.mrf.mxu1  ;;  %6292 = vst [vmem:[%s9969_s27 + $0x3e0] sm:$0xff] %v6164_v37  ;;  %v6165_v26 = vmul.f32 %v7436_v39, %v12141_v56  ;;  %v12301_v39 = vrot.slane %v7567_v31, %v904_v59  ;;  %v4855_v9 = vadd.f32 %v12139_v6, %v12295_v21  ;;  %v4859_v31 = vadd.f32 %v12155_v47, %v12295_v21 }
 0x32a   : > { %v12256_v22 = vpop.f32.mrf.mxu0 }
 0x32b   : > { %v12253_v15 = vpop.f32.mrf.mxu1  ;;  %6293 = vst [vmem:[%s9969_s27 + $0x3e8] sm:$0xff] %v6165_v26  ;;  %v4857_v25 = vadd.f32 %v12148_v61, %v12301_v39  ;;  %v4968_v59 = vadd.f32 %v12143_v38, %v4855_v9  ;;  %v4865_v61 = vadd.f32 %v12165_v1, %v12295_v21 }
 0x32c   : > { %v12260_v49 = vpop.f32.mrf.mxu0 }
 0x32d   : > { %v12258_v7 = vpop.f32.mrf.mxu1  ;;  %v4970_v6 = vadd.f32 %v12151_v40, %v4857_v25  ;;  %v4978_v1 = vadd.f32 %v12169_v43, %v4865_v61 }
 0x32e   : > { %v12264_v50 = vpop.f32.mrf.mxu0 }
 0x32f   : > { %v12262_v0 = vpop.f32.mrf.mxu1 }
 0x330   : > { %v12268_v8 = vpop.f32.mrf.mxu0 }
 0x331   : > { %v12266_v5 = vpop.f32.mrf.mxu1 }
 0x332   : > { %v12272_v23 = vpop.f32.mrf.mxu0 }
 0x333   : > { %v12270_v56 = vpop.f32.mrf.mxu1 }
 0x334   : > { %v12276_v2 = vpop.f32.mrf.mxu0 }
 0x335   : > { %v12274_v24 = vpop.f32.mrf.mxu1 }
 0x336   : > { %v12280_v63 = vpop.f32.mrf.mxu0 }
 0x337   : > { %v12278_v57 = vpop.f32.mrf.mxu1 }
 0x338   : > { %13539 = vst [vmem:[#allocation5_spill] sm:$0xff] %v12278_v57  ;;  %v12285_v52 = vpop.f32.mrf.mxu0 }
 0x339   : > { %v12283_v58 = vpop.f32.mrf.mxu1  ;;  %13542 = vst [vmem:[#allocation7_spill] sm:$0xff] %v12285_v52 }
 0x33a   : > { %13541 = vst [vmem:[#allocation6_spill] sm:$0xff] %v12283_v58  ;;  %v12290_v3 = vpop.f32.mrf.mxu0 }
 0x33b   : > { %v12288_v10 = vpop.f32.mrf.mxu1  ;;  %13544 = vst [vmem:[#allocation9_spill] sm:$0xff] %v12290_v3 }
 0x33c   : > { %13543 = vst [vmem:[#allocation8_spill] sm:$0xff] %v12288_v10  ;;  %v12299_v37 = vpop.f32.mrf.mxu0 }
 0x33d   : > { %v12297_v44 = vpop.f32.mrf.mxu1  ;;  %13546 = vst [vmem:[#allocation11_spill] sm:$0xff] %v12299_v37 }
 0x33e   : > { %13545 = vst [vmem:[#allocation10_spill] sm:$0xff] %v12297_v44  ;;  %v12305_v52 = vpop.f32.mrf.mxu0 }
 0x33f   : > { %13548 = vst [vmem:[#allocation69_spill] sm:$0xff] %v12305_v52 }
 0x340   : > { %v12303_v26 = vpop.f32.mrf.mxu1  ;;  %v12311_v3 = vpop.f32.mrf.mxu0 }
 0x341   : > { %13547 = vst [vmem:[#allocation66_spill] sm:$0xff] %v12303_v26  ;;  %13550 = vst [vmem:[#allocation71_spill] sm:$0xff] %v12311_v3  ;;  %v4861_v3 = vadd.f32 %v12160_v62, %v12301_v39 }
 0x342   : > { %v12309_v10 = vpop.f32.mrf.mxu1  ;;  %v12317_v44 = vpop.f32.mrf.mxu0 }
 0x343   : > { %13549 = vst [vmem:[#allocation68_spill] sm:$0xff] %v12309_v10  ;;  %13552 = vst [vmem:[#allocation70_spill] sm:$0xff] %v12317_v44  ;;  %v4972_v44 = vadd.f32 %v12157_v4, %v4859_v31  ;;  %v4974_v40 = vadd.f32 %v12163_v28, %v4861_v3  ;;  %v4869_v4 = vadd.f32 %v12177_v60, %v12295_v21 }
 0x344   : > { %v12315_v58 = vpop.f32.mrf.mxu1  ;;  %v4871_v3 = vadd.f32 %v12183_v54, %v12301_v39 }
 0x345   : > { %13551 = vst [vmem:[#allocation105_spill] sm:$0xff] %v12315_v58  ;;  %v4982_v61 = vadd.f32 %v12181_v19, %v4869_v4 }
 0x346   : > { %v12322_v26 = vpop.f32.mrf.mxu1 }
 0x347   : > { %13553 = vst [vmem:[#allocation93_spill] sm:$0xff] %v12322_v26  ;;  %v4867_v26 = vadd.f32 %v12171_v16, %v12301_v39 }
 0x348   : > { %v5193_v37 = vpop.f32.mrf.mxu1 }
 0x349   : > { %v4980_v28 = vadd.f32 %v12175_v30, %v4867_v26 }
 0x34a   : > { %v5080_v52 = vpop.f32.mrf.mxu0  ;;  %v5195_v47 = vpop.f32.mrf.mxu1 }
 0x34b   : > { %v5081_v10 = vadd.f32 %v5080_v52, %v4968_v59 }
 0x34c   : > { %v5082_v58 = vpop.f32.mrf.mxu0  ;;  %v5197_v59 = vpop.f32.mrf.mxu1 }
 0x34d   : > { %v12330_v38 = vadd.f32 %v5193_v37, %v5081_v10  ;;  %v5083_v9 = vadd.f32 %v5082_v58, %v4970_v6 }
 0x34e   : > { %v5084_v57 = vpop.f32.mrf.mxu0  ;;  %v5199_v31 = vpop.f32.mrf.mxu1 }
 0x34f   : > { %v6911_v62 = vmul.f32 -1.442695, %v12330_v38  ;;  %v12336_v52 = vadd.f32 %v5195_v47, %v5083_v9  ;;  %v5085_v25 = vadd.f32 %v5084_v57, %v4972_v44  ;;  %v4875_v9 = vadd.f32 %v12189_v55, %v12295_v21 }
 0x350   : > { %v5086_v10 = vpop.f32.mrf.mxu0  ;;  %v5203_v6 = vpop.f32.mrf.mxu1 }
 0x351   : > { %7437 = vpow2.f32 %v6911_v62  ;;  %v6912_v58 = vmul.f32 -1.442695, %v12336_v52  ;;  %v12342_v37 = vadd.f32 %v5197_v59, %v5085_v25  ;;  %v5087_v16 = vadd.f32 %v5086_v10, %v4974_v40 }
 0x352   : > { %v5090_v57 = vpop.f32.mrf.mxu0  ;;  %v5205_v40 = vpop.f32.mrf.mxu1  ;;  %v4984_v62 = vadd.f32 %v12187_v18, %v4871_v3  ;;  %v4877_v25 = vadd.f32 %v12195_v20, %v12301_v39  ;;  %v4988_v10 = vadd.f32 %v12193_v53, %v4875_v9  ;;  %v4887_v53 = vadd.f32 %v12221_v33, %v12301_v39 }
 0x353   : > { %7439 = vpow2.f32 %v6912_v58  ;;  %v6919_v43 = vmul.f32 -1.442695, %v12342_v37  ;;  %v12348_v44 = vadd.f32 %v5199_v31, %v5087_v16  ;;  %v5091_v60 = vadd.f32 %v5090_v57, %v4978_v1 }
 0x354   : > { %v5092_v47 = vpop.f32.mrf.mxu0  ;;  %v5207_v4 = vpop.f32.mrf.mxu1  ;;  %v4879_v58 = vadd.f32 %v12201_v36, %v12295_v21  ;;  %v4881_v16 = vadd.f32 %v12208_v13, %v12301_v39  ;;  %v4990_v57 = vadd.f32 %v12199_v42, %v4877_v25  ;;  %v4889_v36 = vadd.f32 %v12227_v48, %v12295_v21 }
 0x355   : > { %7441 = vpow2.f32 %v6919_v43  ;;  %v6920_v30 = vmul.f32 -1.442695, %v12348_v44  ;;  %v12354_v26 = vadd.f32 %v5203_v6, %v5091_v60  ;;  %v5093_v54 = vadd.f32 %v5092_v47, %v4980_v28 }
 0x356   : > { %v5094_v59 = vpop.f32.mrf.mxu0  ;;  %v5209_v3 = vpop.f32.mrf.mxu1  ;;  %v4885_v43 = vadd.f32 %v12215_v41, %v12295_v21  ;;  %v4992_v47 = vadd.f32 %v12205_v14, %v4879_v58  ;;  %v4994_v42 = vadd.f32 %v12211_v17, %v4881_v16  ;;  %v4891_v41 = vadd.f32 %v12233_v11, %v12301_v39 }
 0x357   : > { %7443 = vpow2.f32 %v6920_v30  ;;  %v6927_v19 = vmul.f32 -1.442695, %v12354_v26  ;;  %v12360_v1 = vadd.f32 %v5205_v40, %v5093_v54  ;;  %v5095_v55 = vadd.f32 %v5094_v59, %v4982_v61 }
 0x358   : > { %v5096_v18 = vpop.f32.mrf.mxu0  ;;  %v5213_v9 = vpop.f32.mrf.mxu1  ;;  %v4895_v33 = vadd.f32 %v12239_v46, %v12295_v21  ;;  %v4998_v59 = vadd.f32 %v12217_v27, %v4885_v43  ;;  %v5000_v14 = vadd.f32 %v12223_v29, %v4887_v53  ;;  %v5002_v17 = vadd.f32 %v12229_v35, %v4889_v36 }
 0x359   : > { %7445 = vpow2.f32 %v6927_v19  ;;  %v6928_v20 = vmul.f32 -1.442695, %v12360_v1  ;;  %v12368_v31 = vadd.f32 %v5207_v4, %v5095_v55  ;;  %v5097_v28 = vadd.f32 %v5096_v18, %v4984_v62 }
 0x35a   : > { %v5100_v13 = vpop.f32.mrf.mxu0  ;;  %v5215_v62 = vpop.f32.mrf.mxu1  ;;  %v4897_v11 = vadd.f32 %v12245_v34, %v12301_v39  ;;  %v5004_v16 = vadd.f32 %v12235_v45, %v4891_v41  ;;  %v12399_v27 = vadd.f32 %v12241_v51, %v4895_v33  ;;  %v4899_v29 = vadd.f32 %v12251_v32, %v12295_v21 }
 0x35b   : > { %7447 = vpow2.f32 %v6928_v20  ;;  %v6935_v60 = vmul.f32 -1.442695, %v12368_v31  ;;  %v12378_v6 = vadd.f32 %v5209_v3, %v5097_v28  ;;  %v5101_v61 = vadd.f32 %v5100_v13, %v4988_v10 }
 0x35c   : > { %v5102_v30 = vpop.f32.mrf.mxu0  ;;  %v5217_v10 = vpop.f32.mrf.mxu1  ;;  %v12405_v43 = vadd.f32 %v12247_v12, %v4897_v11  ;;  %v4901_v45 = vadd.f32 %v12256_v22, %v12301_v39  ;;  %v4905_v12 = vadd.f32 %v12260_v49, %v12295_v21 }
 0x35d   : > { %7449 = vpow2.f32 %v6935_v60  ;;  %v6936_v48 = vmul.f32 -1.442695, %v12378_v6  ;;  %v12387_v54 = vadd.f32 %v5213_v9, %v5101_v61  ;;  %v5103_v40 = vadd.f32 %v5102_v30, %v4990_v57 }
 0x35e   : > { %v7438_v25 = vpop.eup %7437  ;;  %v5104_v19 = vpop.f32.mrf.mxu0  ;;  %v12414_v9 = vadd.f32 %v12253_v15, %v4899_v29  ;;  %v4907_v15 = vadd.f32 %v12264_v50, %v12301_v39 }
 0x35f   : > { %v5662_v46 = vadd.f32 1.0, %v7438_v25  ;;  %7451 = vpow2.f32 %v6936_v48  ;;  %v6943_v55 = vmul.f32 -1.442695, %v12387_v54  ;;  %v12395_v4 = vadd.f32 %v5215_v62, %v5103_v40  ;;  %v5219_v3 = vpop.f32.mrf.mxu1 }
 0x360   : > { %v7440_v58 = vpop.eup %7439  ;;  %v5105_v35 = vadd.f32 %v5104_v19, %v4992_v47  ;;  %v5106_v18 = vpop.f32.mrf.mxu0  ;;  %v12423_v40 = vadd.f32 %v12258_v7, %v4901_v45  ;;  %v4909_v7 = vadd.f32 %v12268_v8, %v12295_v21 }
 0x361   : > { %7453 = vrcp.f32 %v5662_v46  ;;  %v5663_v34 = vadd.f32 1.0, %v7440_v58  ;;  %v6944_v20 = vmul.f32 -1.442695, %v12395_v4  ;;  %v5107_v28 = vadd.f32 %v5106_v18, %v4994_v42  ;;  %v5223_v60 = vpop.f32.mrf.mxu1 }
 0x362   : > { %v7442_v57 = vpop.eup %7441  ;;  %7455 = vpow2.f32 %v6943_v55  ;;  %v12409_v51 = vadd.f32 %v5217_v10, %v5105_v35  ;;  %v5110_v53 = vpop.f32.mrf.mxu0  ;;  %v12429_v55 = vadd.f32 %v12262_v0, %v4905_v12  ;;  %v4911_v0 = vadd.f32 %v12272_v23, %v12301_v39 }
 0x363   : > { %7457 = vrcp.f32 %v5663_v34  ;;  %v5670_v32 = vadd.f32 1.0, %v7442_v57  ;;  %v12411_v36 = vadd.f32 %v5219_v3, %v5107_v28  ;;  %v5111_v13 = vadd.f32 %v5110_v53, %v4998_v59  ;;  %v5225_v30 = vpop.f32.mrf.mxu1 }
 0x364   : > { %v7444_v61 = vpop.eup %7443  ;;  %7459 = vpow2.f32 %v6944_v20  ;;  %v6951_v22 = vmul.f32 -1.442695, %v12409_v51  ;;  %v5112_v47 = vpop.f32.mrf.mxu0  ;;  %v12447_v45 = vadd.f32 %v12270_v56, %v4909_v7  ;;  %v4917_v56 = vadd.f32 %v12280_v63, %v12301_v39  ;;  %v13555_v7 = vld [vmem:[#allocation6_spill] sm:$0xff] }
 0x365   : > { %7461 = vrcp.f32 %v5670_v32  ;;  %v5671_v42 = vadd.f32 1.0, %v7444_v61  ;;  %v6952_v41 = vmul.f32 -1.442695, %v12411_v36  ;;  %v12420_v33 = vadd.f32 %v5223_v60, %v5111_v13  ;;  %v5227_v19 = vpop.f32.mrf.mxu1 }
 0x366   : > { %v7446_v48 = vpop.eup %7445  ;;  %7463 = vpow2.f32 %v6951_v22  ;;  %v5113_v49 = vadd.f32 %v5112_v47, %v5000_v14  ;;  %v5114_v62 = vpop.f32.mrf.mxu0  ;;  %v12455_v22 = vadd.f32 %v12274_v24, %v4911_v0  ;;  %v13554_v24 = vld [vmem:[#allocation5_spill] sm:$0xff] }
 0x367   : > { %7465 = vrcp.f32 %v5671_v42  ;;  %v5678_v25 = vadd.f32 1.0, %v7446_v48  ;;  %v6959_v59 = vmul.f32 -1.442695, %v12420_v33  ;;  %v5115_v11 = vadd.f32 %v5114_v62, %v5002_v17  ;;  %v5229_v35 = vpop.f32.mrf.mxu1 }
 0x368   : > { %v7448_v46 = vpop.eup %7447  ;;  %7467 = vpow2.f32 %v6952_v41  ;;  %v12433_v10 = vadd.f32 %v5225_v30, %v5113_v49  ;;  %v5116_v50 = vpop.f32.mrf.mxu0  ;;  %v12438_v17 = vadd.f32 %v12266_v5, %v4907_v15  ;;  %v4915_v5 = vadd.f32 %v12276_v2, %v12295_v21 }
 0x369   : > { %7469 = vrcp.f32 %v5678_v25  ;;  %v5679_v14 = vadd.f32 1.0, %v7448_v46  ;;  %v12435_v58 = vadd.f32 %v5227_v19, %v5115_v11  ;;  %v5117_v29 = vadd.f32 %v5116_v50, %v5004_v16  ;;  %v5233_v57 = vpop.f32.mrf.mxu1 }
 0x36a   : > { %v7450_v18 = vpop.eup %7449  ;;  %7471 = vpow2.f32 %v6959_v59  ;;  %v6960_v8 = vmul.f32 -1.442695, %v12433_v10  ;;  %v5120_v34 = vpop.f32.mrf.mxu0  ;;  %v12466_v15 = vadd.f32 %v13554_v24, %v4915_v5  ;;  %v12476_v50 = vadd.f32 %v13555_v7, %v4917_v56  ;;  %v13559_v24 = vld [vmem:[#allocation10_spill] sm:$0xff] }
 0x36b   : > { %7473 = vrcp.f32 %v5679_v14  ;;  %v5686_v20 = vadd.f32 1.0, %v7450_v18  ;;  %v6967_v28 = vmul.f32 -1.442695, %v12435_v58  ;;  %v12444_v3 = vadd.f32 %v5229_v35, %v5117_v29  ;;  %v5235_v61 = vpop.f32.mrf.mxu1  ;;  %v13556_v14 = vld [vmem:[#allocation7_spill] sm:$0xff] }
 0x36c   : > { %v7452_v16 = vpop.eup %7451  ;;  %7475 = vpow2.f32 %v6960_v8  ;;  %v5121_v23 = vadd.f32 %v5120_v34, %v12399_v27  ;;  %v5122_v53 = vpop.f32.mrf.mxu0  ;;  %v4919_v29 = vadd.f32 %v13556_v14, %v12295_v21 }
 0x36d   : > { %7477 = vrcp.f32 %v5686_v20  ;;  %v5687_v32 = vadd.f32 1.0, %v7452_v16  ;;  %v6968_v13 = vmul.f32 -1.442695, %v12444_v3  ;;  %v5123_v60 = vadd.f32 %v5122_v53, %v12405_v43  ;;  %v5237_v30 = vpop.f32.mrf.mxu1 }
 0x36e   : > { %v7454_v12 = vpop.eup %7453  ;;  %7479 = vpow2.f32 %v6967_v28  ;;  %v12459_v2 = vadd.f32 %v5233_v57, %v5121_v23  ;;  %v5124_v27 = vpop.f32.mrf.mxu0  ;;  %v13557_v28 = vld [vmem:[#allocation9_spill] sm:$0xff] }
 0x36f   : > { %v7456_v47 = vpop.eup %7455  ;;  %v6046_v42 = vmul.f32 %v7454_v12, %v12330_v38  ;;  %7481 = vrcp.f32 %v5687_v32  ;;  %v12462_v41 = vadd.f32 %v5235_v61, %v5123_v60  ;;  %v5125_v43 = vadd.f32 %v5124_v27, %v12414_v9  ;;  %v5239_v19 = vpop.f32.mrf.mxu1  ;;  %v13558_v12 = vld [vmem:[#allocation8_spill] sm:$0xff] }
 0x370   : > { %v7458_v48 = vpop.eup %7457  ;;  %v5694_v49 = vadd.f32 1.0, %v7456_v47  ;;  %7483 = vpow2.f32 %v6968_v13  ;;  %v6975_v63 = vmul.f32 -1.442695, %v12459_v2  ;;  %v5126_v62 = vpop.f32.mrf.mxu0  ;;  %v4921_v57 = vadd.f32 %v13557_v28, %v12301_v39 }
 0x371   : > { %v7460_v25 = vpop.eup %7459  ;;  %6174 = vst [vmem:[%s9969_s27 + $0x30] sm:$0xff] %v6046_v42  ;;  %v6047_v38 = vmul.f32 %v7458_v48, %v12336_v52  ;;  %v6976_v59 = vmul.f32 -1.442695, %v12462_v41  ;;  %v12472_v11 = vadd.f32 %v5237_v30, %v5125_v43  ;;  %v5127_v9 = vadd.f32 %v5126_v62, %v12423_v40  ;;  %v5243_v34 = vpop.f32.mrf.mxu1 }
 0x372   : > { %v7462_v46 = vpop.eup %7461  ;;  %7485 = vrcp.f32 %v5694_v49  ;;  %v5695_v35 = vadd.f32 1.0, %v7460_v25  ;;  %v5130_v18 = vpop.f32.mrf.mxu0  ;;  %v5032_v56 = vadd.f32 %v13558_v12, %v4919_v29  ;;  %v12503_v49 = vadd.f32 %v13559_v24, %v4921_v57 }
 0x373   : > { %v7464_v0 = vpop.eup %7463  ;;  %6175 = vst.msk [vmem:[%s9969_s27 + $0x38] sm:$0xff] %vm3414_vm1, %v6047_v38  ;;  %v6054_v52 = vmul.f32 %v7462_v46, %v12342_v37  ;;  %7487 = vpow2.f32 %v6975_v63  ;;  %v6983_v40 = vmul.f32 -1.442695, %v12472_v11  ;;  %v12484_v8 = vadd.f32 %v5239_v19, %v5127_v9  ;;  %v5245_v60 = vpop.f32.mrf.mxu1  ;;  %v13560_v46 = vld [vmem:[#allocation11_spill] sm:$0xff] }
 0x374   : > { %v7466_v20 = vpop.eup %7465  ;;  %7489 = vrcp.f32 %v5695_v35  ;;  %v5702_v16 = vadd.f32 1.0, %v7464_v0  ;;  %v5131_v5 = vadd.f32 %v5130_v18, %v12429_v55  ;;  %v5132_v23 = vpop.f32.mrf.mxu0  ;;  %v4925_v7 = vadd.f32 %v13560_v46, %v12295_v21 }
 0x375   : > { %v7468_v53 = vpop.eup %7467  ;;  %6182 = vst [vmem:[%s9969_s27 + $0x70] sm:$0xff] %v6054_v52  ;;  %v6055_v37 = vmul.f32 %v7466_v20, %v12348_v44  ;;  %7491 = vpow2.f32 %v6976_v59  ;;  %v6984_v32 = vmul.f32 -1.442695, %v12484_v8  ;;  %v5133_v13 = vadd.f32 %v5132_v23, %v12438_v17  ;;  %v5247_v30 = vpop.f32.mrf.mxu1  ;;  %v13561_v20 = vld [vmem:[#allocation69_spill] sm:$0xff] }
 0x376   : > { %v7470_v61 = vpop.eup %7469  ;;  %7493 = vrcp.f32 %v5702_v16  ;;  %v5703_v27 = vadd.f32 1.0, %v7468_v53  ;;  %v12494_v47 = vadd.f32 %v5243_v34, %v5131_v5  ;;  %v5134_v55 = vpop.f32.mrf.mxu0  ;;  %v4927_v28 = vadd.f32 %v13561_v20, %v12301_v39 }
 0x377   : > { %v7472_v42 = vpop.eup %7471  ;;  %6183 = vst.msk [vmem:[%s9969_s27 + $0x78] sm:$0xff] %vm3414_vm1, %v6055_v37  ;;  %v6062_v44 = vmul.f32 %v7470_v61, %v12354_v26  ;;  %7495 = vpow2.f32 %v6983_v40  ;;  %v12499_v43 = vadd.f32 %v5245_v60, %v5133_v13  ;;  %v5135_v17 = vadd.f32 %v5134_v55, %v12447_v45  ;;  %v5249_v45 = vpop.f32.mrf.mxu1  ;;  %v13562_v37 = vld [vmem:[#allocation66_spill] sm:$0xff] }
 0x378   : > { %v7474_v48 = vpop.eup %7473  ;;  %7497 = vrcp.f32 %v5703_v27  ;;  %v5710_v63 = vadd.f32 1.0, %v7472_v42  ;;  %v6991_v62 = vmul.f32 -1.442695, %v12494_v47  ;;  %v5136_v25 = vpop.f32.mrf.mxu0 }
 0x379   : > { %v7476_v38 = vpop.eup %7475  ;;  %6190 = vst [vmem:[%s9969_s27 + $0xb0] sm:$0xff] %v6062_v44  ;;  %v6063_v26 = vmul.f32 %v7474_v48, %v12360_v1  ;;  %7499 = vpow2.f32 %v6984_v32  ;;  %v6992_v59 = vmul.f32 -1.442695, %v12499_v43  ;;  %v12509_v9 = vadd.f32 %v5247_v30, %v5135_v17  ;;  %v5253_v40 = vpop.f32.mrf.mxu1  ;;  %v13563_v44 = vld [vmem:[#allocation68_spill] sm:$0xff]  ;;  %v13564_v30 = vld [vmem:[#allocation71_spill] sm:$0xff] }
 0x37a   : > { %v7478_v19 = vpop.eup %7477  ;;  %7501 = vrcp.f32 %v5710_v63  ;;  %v5711_v14 = vadd.f32 1.0, %v7476_v38  ;;  %v5137_v29 = vadd.f32 %v5136_v25, %v12455_v22  ;;  %v5140_v35 = vpop.f32.mrf.mxu0  ;;  %v5038_v32 = vadd.f32 %v13562_v37, %v4925_v7 }
 0x37b   : > { %v7480_v18 = vpop.eup %7479  ;;  %6191 = vst.msk [vmem:[%s9969_s27 + $0xb8] sm:$0xff] %vm3414_vm1, %v6063_v26  ;;  %v6070_v1 = vmul.f32 %v7478_v19, %v12368_v31  ;;  %7503 = vpow2.f32 %v6991_v62  ;;  %v6999_v0 = vmul.f32 -1.442695, %v12509_v9  ;;  %v5141_v52 = vadd.f32 %v5140_v35, %v12466_v15  ;;  %v5255_v53 = vpop.f32.mrf.mxu1 }
 0x37c   : > { %v7482_v34 = vpop.eup %7481  ;;  %7505 = vrcp.f32 %v5711_v14  ;;  %v5718_v57 = vadd.f32 1.0, %v7480_v18  ;;  %v12521_v22 = vadd.f32 %v5249_v45, %v5137_v29  ;;  %v5142_v16 = vpop.f32.mrf.mxu0  ;;  %v5040_v17 = vadd.f32 %v13563_v44, %v4927_v28  ;;  %v13565_v45 = vld [vmem:[#allocation70_spill] sm:$0xff] }
 0x37d   : > { %v7484_v5 = vpop.eup %7483  ;;  %6198 = vst [vmem:[%s9969_s27 + $0xf0] sm:$0xff] %v6070_v1  ;;  %v6071_v31 = vmul.f32 %v7482_v34, %v12378_v6  ;;  %7507 = vpow2.f32 %v6992_v59  ;;  %v12525_v23 = vadd.f32 %v5253_v40, %v5141_v52  ;;  %v5143_v15 = vadd.f32 %v5142_v16, %v12476_v50  ;;  %v5257_v42 = vpop.f32.mrf.mxu1 }
 0x37e   : > { %7509 = vrcp.f32 %v5718_v57  ;;  %v5719_v13 = vadd.f32 1.0, %v7484_v5  ;;  %v7000_v60 = vmul.f32 -1.442695, %v12521_v22  ;;  %v5144_v61 = vpop.f32.mrf.mxu0  ;;  %v4929_v48 = vadd.f32 %v13564_v30, %v12295_v21  ;;  %v13567_v5 = vld [vmem:[#allocation93_spill] sm:$0xff] }
 0x37f   : > { %v7486_v12 = vpop.eup %7485  ;;  %6199 = vst.msk [vmem:[%s9969_s27 + $0xf8] sm:$0xff] %vm3414_vm1, %v6071_v31  ;;  %7511 = vpow2.f32 %v6999_v0  ;;  %v7007_v27 = vmul.f32 -1.442695, %v12525_v23  ;;  %v12533_v6 = vadd.f32 %v5255_v53, %v5143_v15  ;;  %v5145_v55 = vadd.f32 %v5144_v61, %v5032_v56  ;;  %v5259_v56 = vpop.f32.mrf.mxu1  ;;  %v13566_v0 = vld [vmem:[#allocation105_spill] sm:$0xff] }
 0x380   : > { %v7488_v50 = vpop.eup %7487  ;;  %v6078_v24 = vmul.f32 %v7486_v12, %v12387_v54  ;;  %7513 = vrcp.f32 %v5719_v13  ;;  %v5146_v63 = vpop.f32.mrf.mxu0  ;;  %v4931_v19 = vadd.f32 %v13565_v45, %v12301_v39  ;;  %v5042_v52 = vadd.f32 %v13566_v0, %v4929_v48 }
 0x381   : > { %v7490_v62 = vpop.eup %7489  ;;  %v5726_v25 = vadd.f32 1.0, %v7488_v50  ;;  %7515 = vpow2.f32 %v7000_v60  ;;  %v7008_v38 = vmul.f32 -1.442695, %v12533_v6  ;;  %v12540_v26 = vadd.f32 %v5257_v42, %v5145_v55  ;;  %v5263_v18 = vpop.f32.mrf.mxu1 }
 0x382   : > { %v7492_v59 = vpop.eup %7491  ;;  %6206 = vst [vmem:[%s9969_s27 + $0x130] sm:$0xff] %v6078_v24  ;;  %v6079_v21 = vmul.f32 %v7490_v62, %v12395_v4  ;;  %7517 = vpow2.f32 %v7007_v27  ;;  %v5147_v54 = vadd.f32 %v5146_v63, %v12503_v49  ;;  %v5150_v46 = vpop.f32.mrf.mxu0  ;;  %v5044_v31 = vadd.f32 %v13567_v5, %v4931_v19 }
 0x383   : > { %v7494_v7 = vpop.eup %7493  ;;  %7519 = vrcp.f32 %v5726_v25  ;;  %v5727_v14 = vadd.f32 1.0, %v7492_v59  ;;  %v7015_v29 = vmul.f32 -1.442695, %v12540_v26  ;;  %v5151_v35 = vadd.f32 %v5150_v46, %v5038_v32  ;;  %v5265_v57 = vpop.f32.mrf.mxu1 }
 0x384   : > { %v7496_v1 = vpop.eup %7495  ;;  %6207 = vst.msk [vmem:[%s9969_s27 + $0x138] sm:$0xff] %vm3414_vm1, %v6079_v21  ;;  %v6086_v39 = vmul.f32 %v7494_v7, %v12409_v51  ;;  %7521 = vpow2.f32 %v7008_v38  ;;  %v12552_v4 = vadd.f32 %v5259_v56, %v5147_v54  ;;  %v5152_v49 = vpop.f32.mrf.mxu0 }
 0x385   : > { %v7498_v40 = vpop.eup %7497  ;;  %7523 = vrcp.f32 %v5727_v14  ;;  %v5734_v34 = vadd.f32 1.0, %v7496_v1  ;;  %v12554_v20 = vadd.f32 %v5263_v18, %v5151_v35  ;;  %v5153_v28 = vadd.f32 %v5152_v49, %v5040_v17  ;;  %v5267_v61 = vpop.f32.mrf.mxu1 }
 0x386   : > { %v7500_v16 = vpop.eup %7499  ;;  %6214 = vst [vmem:[%s9969_s27 + $0x170] sm:$0xff] %v6086_v39  ;;  %v6087_v15 = vmul.f32 %v7498_v40, %v12411_v36  ;;  %7525 = vpow2.f32 %v7015_v29  ;;  %v7016_v51 = vmul.f32 -1.442695, %v12552_v4  ;;  %v5154_v53 = vpop.f32.mrf.mxu0 }
 0x387   : > { %v7502_v37 = vpop.eup %7501  ;;  %7527 = vrcp.f32 %v5734_v34  ;;  %v5735_v32 = vadd.f32 1.0, %v7500_v16  ;;  %v7023_v13 = vmul.f32 -1.442695, %v12554_v20  ;;  %v12561_v60 = vadd.f32 %v5265_v57, %v5153_v28  ;;  %v5269_v63 = vpop.f32.mrf.mxu1 }
 0x388   : > { %v7504_v12 = vpop.eup %7503  ;;  %6215 = vst.msk [vmem:[%s9969_s27 + $0x178] sm:$0xff] %vm3414_vm1, %v6087_v15  ;;  %v6094_v27 = vmul.f32 %v7502_v37, %v12420_v33  ;;  %7529 = vpow2.f32 %v7016_v51  ;;  %v5155_v36 = vadd.f32 %v5154_v53, %v5042_v52  ;;  %v5156_v55 = vpop.f32.mrf.mxu0 }
 0x389   : > { %v7506_v42 = vpop.eup %7505  ;;  %7531 = vrcp.f32 %v5735_v32  ;;  %v5742_v50 = vadd.f32 1.0, %v7504_v12  ;;  %v7024_v44 = vmul.f32 -1.442695, %v12561_v60  ;;  %v5157_v17 = vadd.f32 %v5156_v55, %v5044_v31 }
 0x38a   : > { %v7508_v30 = vpop.eup %7507  ;;  %6222 = vst [vmem:[%s9969_s27 + $0x1b0] sm:$0xff] %v6094_v27  ;;  %v6095_v48 = vmul.f32 %v7506_v42, %v12433_v10  ;;  %7533 = vpow2.f32 %v7023_v13  ;;  %v12569_v24 = vadd.f32 %v5267_v61, %v5155_v36 }
 0x38b   : > { %v7510_v33 = vpop.eup %7509  ;;  %7535 = vrcp.f32 %v5742_v50  ;;  %v5743_v62 = vadd.f32 1.0, %v7508_v30  ;;  %v12571_v25 = vadd.f32 %v5269_v63, %v5157_v17 }
 0x38c   : > { %v7512_v38 = vpop.eup %7511  ;;  %6223 = vst.msk [vmem:[%s9969_s27 + $0x1b8] sm:$0xff] %vm3414_vm1, %v6095_v48  ;;  %v6102_v56 = vmul.f32 %v7510_v33, %v12435_v58  ;;  %7537 = vpow2.f32 %v7024_v44  ;;  %v7031_v59 = vmul.f32 -1.442695, %v12569_v24 }
 0x38d   : > { %v7514_v10 = vpop.eup %7513  ;;  %7539 = vrcp.f32 %v5743_v62  ;;  %v5750_v45 = vadd.f32 1.0, %v7512_v38  ;;  %v7032_v19 = vmul.f32 -1.442695, %v12571_v25 }
 0x38e   : > { %v7516_v21 = vpop.eup %7515  ;;  %6230 = vst [vmem:[%s9969_s27 + $0x1f0] sm:$0xff] %v6102_v56  ;;  %v6103_v54 = vmul.f32 %v7514_v10, %v12444_v3  ;;  %7541 = vpow2.f32 %v7031_v59 }
 0x38f   : > { %v7518_v46 = vpop.eup %7517  ;;  %7543 = vrcp.f32 %v5750_v45  ;;  %v5751_v7 = vadd.f32 1.0, %v7516_v21 }
 0x390   : > { %v7520_v14 = vpop.eup %7519  ;;  %6231 = vst.msk [vmem:[%s9969_s27 + $0x1f8] sm:$0xff] %vm3414_vm1, %v6103_v54  ;;  %v5758_v58 = vadd.f32 1.0, %v7518_v46  ;;  %7545 = vpow2.f32 %v7032_v19 }
 0x391   : > { %v7522_v29 = vpop.eup %7521  ;;  %v6110_v35 = vmul.f32 %v7520_v14, %v12459_v2  ;;  %7547 = vrcp.f32 %v5751_v7 }
 0x392   : > { %v7524_v18 = vpop.eup %7523  ;;  %7549 = vrcp.f32 %v5758_v58  ;;  %v5759_v1 = vadd.f32 1.0, %v7522_v29 }
 0x393   : > { %v7526_v3 = vpop.eup %7525  ;;  %6238 = vst [vmem:[%s9969_s27 + $0x230] sm:$0xff] %v6110_v35  ;;  %v6111_v0 = vmul.f32 %v7524_v18, %v12462_v41 }
 0x394   : > { %v7528_v52 = vpop.eup %7527  ;;  %7551 = vrcp.f32 %v5759_v1  ;;  %v5766_v39 = vadd.f32 1.0, %v7526_v3 }
 0x395   : > { %v7530_v49 = vpop.eup %7529  ;;  %6239 = vst.msk [vmem:[%s9969_s27 + $0x238] sm:$0xff] %vm3414_vm1, %v6111_v0  ;;  %v6118_v40 = vmul.f32 %v7528_v52, %v12472_v11 }
 0x396   : > { %v7532_v34 = vpop.eup %7531  ;;  %7553 = vrcp.f32 %v5766_v39  ;;  %v5767_v2 = vadd.f32 1.0, %v7530_v49 }
 0x397   : > { %v7534_v28 = vpop.eup %7533  ;;  %6246 = vst [vmem:[%s9969_s27 + $0x270] sm:$0xff] %v6118_v40  ;;  %v6119_v57 = vmul.f32 %v7532_v34, %v12484_v8 }
 0x398   : > { %v7536_v16 = vpop.eup %7535  ;;  %7555 = vrcp.f32 %v5767_v2  ;;  %v5774_v41 = vadd.f32 1.0, %v7534_v28 }
 0x399   : > { %v7538_v5 = vpop.eup %7537  ;;  %6247 = vst.msk [vmem:[%s9969_s27 + $0x278] sm:$0xff] %vm3414_vm1, %v6119_v57  ;;  %v6126_v31 = vmul.f32 %v7536_v16, %v12494_v47 }
 0x39a   : > { %v7540_v15 = vpop.eup %7539  ;;  %7557 = vrcp.f32 %v5774_v41  ;;  %v5775_v11 = vadd.f32 1.0, %v7538_v5 }
 0x39b   : > { %v7542_v51 = vpop.eup %7541  ;;  %6254 = vst [vmem:[%s9969_s27 + $0x2b0] sm:$0xff] %v6126_v31  ;;  %v6127_v53 = vmul.f32 %v7540_v15, %v12499_v43 }
 0x39c   : > { %v7544_v37 = vpop.eup %7543  ;;  %7559 = vrcp.f32 %v5775_v11  ;;  %v5782_v8 = vadd.f32 1.0, %v7542_v51 }
 0x39d   : > { %v7546_v32 = vpop.eup %7545  ;;  %6255 = vst.msk [vmem:[%s9969_s27 + $0x2b8] sm:$0xff] %vm3414_vm1, %v6127_v53  ;;  %v6134_v13 = vmul.f32 %v7544_v37, %v12509_v9 }
 0x39e   : > { %v7548_v47 = vpop.eup %7547  ;;  %7561 = vrcp.f32 %v5782_v8  ;;  %v5783_v61 = vadd.f32 1.0, %v7546_v32 }
 0x39f   : > { %v7550_v12 = vpop.eup %7549  ;;  %6262 = vst [vmem:[%s9969_s27 + $0x2f0] sm:$0xff] %v6134_v13  ;;  %v6135_v43 = vmul.f32 %v7548_v47, %v12521_v22 }
 0x3a0   : > { %v6142_v27 = vmul.f32 %v7550_v12, %v12525_v23  ;;  %7563 = vrcp.f32 %v5783_v61 }
 0x3a1   : > { %v7552_v36 = vpop.eup %7551  ;;  %6263 = vst.msk [vmem:[%s9969_s27 + $0x2f8] sm:$0xff] %vm3414_vm1, %v6135_v43 }
 0x3a2   : > { %6270 = vst [vmem:[%s9969_s27 + $0x330] sm:$0xff] %v6142_v27  ;;  %v6143_v9 = vmul.f32 %v7552_v36, %v12533_v6 }
 0x3a3   : > { %v7554_v55 = vpop.eup %7553 }
 0x3a4   : > { %6271 = vst.msk [vmem:[%s9969_s27 + $0x338] sm:$0xff] %vm3414_vm1, %v6143_v9  ;;  %v6150_v42 = vmul.f32 %v7554_v55, %v12540_v26 }
 0x3a5   : > { %v7556_v50 = vpop.eup %7555 }
 0x3a6   : > { %6278 = vst [vmem:[%s9969_s27 + $0x370] sm:$0xff] %v6150_v42  ;;  %v6151_v22 = vmul.f32 %v7556_v50, %v12552_v4 }
 0x3a7   : > { %v7558_v23 = vpop.eup %7557 }
 0x3a8   : > { %6279 = vst.msk [vmem:[%s9969_s27 + $0x378] sm:$0xff] %vm3414_vm1, %v6151_v22  ;;  %v6158_v44 = vmul.f32 %v7558_v23, %v12554_v20 }
 0x3a9   : > { %v7560_v17 = vpop.eup %7559 }
 0x3aa   : > { %6286 = vst [vmem:[%s9969_s27 + $0x3b0] sm:$0xff] %v6158_v44  ;;  %v6159_v6 = vmul.f32 %v7560_v17, %v12561_v60 }
 0x3ab   : > { %v7562_v30 = vpop.eup %7561 }
 0x3ac   : > { %6287 = vst.msk [vmem:[%s9969_s27 + $0x3b8] sm:$0xff] %vm3414_vm1, %v6159_v6  ;;  %v6166_v48 = vmul.f32 %v7562_v30, %v12569_v24 }
 0x3ad   : > { %v7564_v26 = vpop.eup %7563 }
 0x3ae   : > { %6294 = vst [vmem:[%s9969_s27 + $0x3f0] sm:$0xff] %v6166_v48  ;;  %v6167_v63 = vmul.f32 %v7564_v26, %v12571_v25 }
 0x3b0   : > { %6295 = vst.msk [vmem:[%s9969_s27 + $0x3f8] sm:$0xff] %vm3414_vm1, %v6167_v63 }
 0x3b1 PF: > { %s13_s12 = sadd.s32 1, %s7574_s12  }
 0x3b2   : > { %p10_p4 = scmp.ge.s32.totalorder %s13_s12, 4  }
 0x3b4   :  { %12 = sbr.rel (!%p10_p4) target bundleno = 1 (0x1), region = 62 }

</bundles_post_ra>
